<compile_context>
chip_gen: v5e
topology: v5e:2x2
jax: 0.10.0
libtpu: 0.0.40
codegen_flags: <defaults>
</compile_context>

<pallas_src>
import jax
import jax.numpy as jnp
from jax import lax
from jax.experimental import pallas as pl
from jax.experimental.pallas import tpu as pltpu


# ---------------------------------------------------------------------------
# Kernel
# ---------------------------------------------------------------------------
def _make_unfold3d_kernel(*, C, pt, st, ps, ss, NH, NW, NTB, blocked_t):
    HU = (NH - 1) * ss + ps          # H extent actually covered by patches
    WU = (NW - 1) * ss + ps          # W extent actually covered by patches
    nonoverlap = (ss == ps)
    Dp = C * pt * ps * ps

    def kernel(x_ref, o_ref):
        # x_ref: (C, NTB*pt, H, W) when blocked_t else (C, T, H, W)
        # o_ref: (NTB, NH*NW, Dp)
        for j in range(NTB):
            pieces = []
            for c in range(C):
                for t in range(pt):
                    if blocked_t:
                        t_idx = j * pt + t                  # static index
                    else:
                        t_idx = pl.program_id(1) * st + t   # overlapping T windows
                    if nonoverlap:
                        # (NH*ps, NW*ps) slab -> (NH, NW, ps*ps) patch chunk,
                        # using only minor-dim transposes + VMEM-local reshapes.
                        slab = x_ref[c, t_idx, :, :][:HU, :WU]   # [nh*ps+ph, nw*ps+pw]
                        a = slab.reshape(NH, ps, WU)             # [nh, ph, w]
                        b = jnp.swapaxes(a, 1, 2)                # [nh, w, ph]
                        b = b.reshape(NH, NW, ps, ps)            # [nh, nw, pw, ph]
                        d = jnp.swapaxes(b, 2, 3)                # [nh, nw, ph, pw]
                        pieces.append(d.reshape(NH, NW, ps * ps))
                    else:
                        # TODO(synk): overlapping spatial patches (stride != size) take
                        # this slower strided-gather path; correct but not tuned.
                        for ph in range(ps):
                            rows = x_ref[c, t_idx, pl.ds(ph, NH, stride=ss), :]  # (NH, W)
                            cols = [
                                lax.slice(rows, (0, pw),
                                          (NH, pw + (NW - 1) * ss + 1), (1, ss))
                                for pw in range(ps)
                            ]                                    # ps x (NH, NW)
                            pieces.append(jnp.stack(cols, axis=-1))   # (NH, NW, ps)
            # Lane-dense write in final layout: (NH*NW, C*pt*ps*ps).
            patch = jnp.concatenate(pieces, axis=-1)             # (NH, NW, Dp)
            o_ref[j] = patch.reshape(NH * NW, Dp)

    return kernel


# ---------------------------------------------------------------------------
# Wrapper
# ---------------------------------------------------------------------------
def unfold3d(x, *, spatial_patch_size, spatial_patch_stride,
             temporal_patch_size, temporal_patch_stride,
             vmem_block_budget_bytes=2 * 1024 * 1024):
    if x.ndim == 4:
        x = x[None, ...]
    assert x.ndim == 5, "expected (B, C, T, H, W) or (C, T, H, W)"
    B, C, T, H, W = x.shape
    pt, st = temporal_patch_size, temporal_patch_stride
    ps, ss = spatial_patch_size, spatial_patch_stride
    NT = (T - pt) // st + 1
    NH = (H - ps) // ss + 1
    NW = (W - ps) // ss + 1
    Dp = C * pt * ps * ps
    itemsize = x.dtype.itemsize

    blocked_t = (st == pt)
    if blocked_t:
        # Coarsen the temporal-patch axis: NTB patches per grid step, sized so
        # in+out blocks stay around vmem_block_budget_bytes (Pallas double-buffers).
        step_bytes = (C * pt * H * W + NH * NW * Dp) * itemsize
        max_ntb = NT if B >= 2 else max(1, NT // 2)   # keep >=2 steps for v7x's 2 TCs
        NTB = 1
        for d in range(1, NT + 1):
            if NT % d == 0 and d <= max_ntb and d * step_bytes <= vmem_block_budget_bytes:
                NTB = d
        grid = (B, NT // NTB)
        x_spec = pl.BlockSpec((None, C, NTB * pt, H, W), lambda b, n: (b, 0, n, 0, 0))
    else:
        # Overlapping temporal windows: keep the full T axis resident (fetched
        # once per batch element, block index constant along n) and slice
        # dynamically in-kernel.
        NTB = 1
        grid = (B, NT)
        x_spec = pl.BlockSpec((None, C, T, H, W), lambda b, n: (b, 0, 0, 0, 0))

    out_spec = pl.BlockSpec((None, NTB, NH * NW, Dp), lambda b, n: (b, n, 0, 0))
    kernel = _make_unfold3d_kernel(C=C, pt=pt, st=st, ps=ps, ss=ss,
                                   NH=NH, NW=NW, NTB=NTB, blocked_t=blocked_t)

    return pl.pallas_call(
        kernel,
        out_shape=jax.ShapeDtypeStruct((B, NT, NH * NW, Dp), x.dtype),
        grid=grid,
        in_specs=[x_spec],
        out_specs=out_spec,
        compiler_params=pltpu.CompilerParams(
            dimension_semantics=("parallel", "parallel")),
    )(x)


# ---------------------------------------------------------------------------
# Pure-JAX reference (mirrors torch.Tensor.unfold + rearrange) for verification.
# ---------------------------------------------------------------------------
def unfold3d_reference(x, *, spatial_patch_size, spatial_patch_stride,
                       temporal_patch_size, temporal_patch_stride):
    if x.ndim == 4:
        x = x[None, ...]
    B, C, T, H, W = x.shape
    pt, st = temporal_patch_size, temporal_patch_stride
    ps, ss = spatial_patch_size, spatial_patch_stride
    NT = (T - pt) // st + 1
    NH = (H - ps) // ss + 1
    NW = (W - ps) // ss + 1
    it = jnp.arange(NT)[:, None] * st + jnp.arange(pt)[None, :]
    ih = jnp.arange(NH)[:, None] * ss + jnp.arange(ps)[None, :]
    iw = jnp.arange(NW)[:, None] * ss + jnp.arange(ps)[None, :]
    u = x[:, :, it, :, :]                 # (B, C, NT, pt, H, W)
    u = u[:, :, :, :, ih, :]              # (B, C, NT, pt, NH, ps, W)
    u = u[:, :, :, :, :, :, iw]           # (B, C, NT, pt, NH, ps, NW, ps)
    u = jnp.transpose(u, (0, 2, 4, 6, 1, 3, 5, 7))  # (B, NT, NH, NW, C, pt, ps, ps)
    return u.reshape(B, NT, NH * NW, C * pt * ps * ps)


if __name__ == "__main__":
    key = jax.random.PRNGKey(0)

    # Small shapes consistent with the module: (B, C, T, H, W) video input,
    # 4x4 spatial patches, 2-frame tubelets (stride == size, the ViViT config).
    B, C, T, H, W = 2, 4, 8, 16, 16
    ps = ss = 4
    pt = st = 2

    x = jax.random.normal(key, (B, C, T, H, W), dtype=jnp.float32)

    out = unfold3d(x, spatial_patch_size=ps, spatial_patch_stride=ss,
                   temporal_patch_size=pt, temporal_patch_stride=st)
    out = jax.block_until_ready(out)
    ref = unfold3d_reference(x, spatial_patch_size=ps, spatial_patch_stride=ss,
                             temporal_patch_size=pt, temporal_patch_stride=st)
    if out.shape != ref.shape or not bool(jnp.array_equal(out, ref)):
        raise AssertionError(f"mismatch: pallas {out.shape} vs ref {ref.shape}")

    # 4-D (no batch) input path; also exercises a different temporal coarsening.
    x4 = x[0]
    out4 = jax.block_until_ready(
        unfold3d(x4, spatial_patch_size=ps, spatial_patch_stride=ss,
                 temporal_patch_size=pt, temporal_patch_stride=st))
    ref4 = unfold3d_reference(x4, spatial_patch_size=ps, spatial_patch_stride=ss,
                              temporal_patch_size=pt, temporal_patch_stride=st)
    if not bool(jnp.array_equal(out4, ref4)):
        raise AssertionError("mismatch on 4-D (no batch) input path")

    print("KERNEL_OK")
</pallas_src>

<mosaic_0001>
module attributes {stable_mosaic.version = 11 : i64} {
  func.func @kernel(%arg0: i32, %arg1: i32, %arg2: memref<1x4x8x16x16xf32, #tpu.memory_space<vmem>>, %arg3: memref<1x4x16x128xf32, #tpu.memory_space<vmem>>) attributes {dimension_semantics = [#tpu.dimension_semantics<parallel>, #tpu.dimension_semantics<parallel>], iteration_bounds = array<i64: 2, 1>, scalar_prefetch = 0 : i64, scratch_operands = 0 : i64, tpu.core_type = #tpu.core_type<tc>, window_params = [{transform_indices = @transform_0, window_bounds = array<i64: 1, 4, 8, 16, 16>}, {transform_indices = @transform_1, window_bounds = array<i64: 1, 4, 16, 128>}]} {
    %c0 = arith.constant 0 : index
    %c0_0 = arith.constant 0 : index
    %c0_1 = arith.constant 0 : index
    %c0_2 = arith.constant 0 : index
    %c0_3 = arith.constant 0 : index
    %0 = vector.load %arg2[%c0, %c0_0, %c0_1, %c0_2, %c0_3] : memref<1x4x8x16x16xf32, #tpu.memory_space<vmem>>, vector<1x1x1x16x16xf32>
    %1 = vector.shape_cast %0 : vector<1x1x1x16x16xf32> to vector<16x16xf32>
    %2 = vector.shape_cast %1 : vector<16x16xf32> to vector<4x4x16xf32>
    %3 = tpu.transpose %2, [0, 2, 1] : vector<4x4x16xf32> -> vector<4x16x4xf32>
    %4 = vector.shape_cast %3 : vector<4x16x4xf32> to vector<4x4x4x4xf32>
    %5 = tpu.transpose %4, [0, 1, 3, 2] : vector<4x4x4x4xf32> -> vector<4x4x4x4xf32>
    %6 = vector.shape_cast %5 : vector<4x4x4x4xf32> to vector<4x4x16xf32>
    %c0_4 = arith.constant 0 : index
    %c0_5 = arith.constant 0 : index
    %c1 = arith.constant 1 : index
    %c0_6 = arith.constant 0 : index
    %c0_7 = arith.constant 0 : index
    %7 = vector.load %arg2[%c0_4, %c0_5, %c1, %c0_6, %c0_7] : memref<1x4x8x16x16xf32, #tpu.memory_space<vmem>>, vector<1x1x1x16x16xf32>
    %8 = vector.shape_cast %7 : vector<1x1x1x16x16xf32> to vector<16x16xf32>
    %9 = vector.shape_cast %8 : vector<16x16xf32> to vector<4x4x16xf32>
    %10 = tpu.transpose %9, [0, 2, 1] : vector<4x4x16xf32> -> vector<4x16x4xf32>
    %11 = vector.shape_cast %10 : vector<4x16x4xf32> to vector<4x4x4x4xf32>
    %12 = tpu.transpose %11, [0, 1, 3, 2] : vector<4x4x4x4xf32> -> vector<4x4x4x4xf32>
    %13 = vector.shape_cast %12 : vector<4x4x4x4xf32> to vector<4x4x16xf32>
    %c0_8 = arith.constant 0 : index
    %c1_9 = arith.constant 1 : index
    %c0_10 = arith.constant 0 : index
    %c0_11 = arith.constant 0 : index
    %c0_12 = arith.constant 0 : index
    %14 = vector.load %arg2[%c0_8, %c1_9, %c0_10, %c0_11, %c0_12] : memref<1x4x8x16x16xf32, #tpu.memory_space<vmem>>, vector<1x1x1x16x16xf32>
    %15 = vector.shape_cast %14 : vector<1x1x1x16x16xf32> to vector<16x16xf32>
    %16 = vector.shape_cast %15 : vector<16x16xf32> to vector<4x4x16xf32>
    %17 = tpu.transpose %16, [0, 2, 1] : vector<4x4x16xf32> -> vector<4x16x4xf32>
    %18 = vector.shape_cast %17 : vector<4x16x4xf32> to vector<4x4x4x4xf32>
    %19 = tpu.transpose %18, [0, 1, 3, 2] : vector<4x4x4x4xf32> -> vector<4x4x4x4xf32>
    %20 = vector.shape_cast %19 : vector<4x4x4x4xf32> to vector<4x4x16xf32>
    %c0_13 = arith.constant 0 : index
    %c1_14 = arith.constant 1 : index
    %c1_15 = arith.constant 1 : index
    %c0_16 = arith.constant 0 : index
    %c0_17 = arith.constant 0 : index
    %21 = vector.load %arg2[%c0_13, %c1_14, %c1_15, %c0_16, %c0_17] : memref<1x4x8x16x16xf32, #tpu.memory_space<vmem>>, vector<1x1x1x16x16xf32>
    %22 = vector.shape_cast %21 : vector<1x1x1x16x16xf32> to vector<16x16xf32>
    %23 = vector.shape_cast %22 : vector<16x16xf32> to vector<4x4x16xf32>
    %24 = tpu.transpose %23, [0, 2, 1] : vector<4x4x16xf32> -> vector<4x16x4xf32>
    %25 = vector.shape_cast %24 : vector<4x16x4xf32> to vector<4x4x4x4xf32>
    %26 = tpu.transpose %25, [0, 1, 3, 2] : vector<4x4x4x4xf32> -> vector<4x4x4x4xf32>
    %27 = vector.shape_cast %26 : vector<4x4x4x4xf32> to vector<4x4x16xf32>
    %c0_18 = arith.constant 0 : index
    %c2 = arith.constant 2 : index
    %c0_19 = arith.constant 0 : index
    %c0_20 = arith.constant 0 : index
    %c0_21 = arith.constant 0 : index
    %28 = vector.load %arg2[%c0_18, %c2, %c0_19, %c0_20, %c0_21] : memref<1x4x8x16x16xf32, #tpu.memory_space<vmem>>, vector<1x1x1x16x16xf32>
    %29 = vector.shape_cast %28 : vector<1x1x1x16x16xf32> to vector<16x16xf32>
    %30 = vector.shape_cast %29 : vector<16x16xf32> to vector<4x4x16xf32>
    %31 = tpu.transpose %30, [0, 2, 1] : vector<4x4x16xf32> -> vector<4x16x4xf32>
    %32 = vector.shape_cast %31 : vector<4x16x4xf32> to vector<4x4x4x4xf32>
    %33 = tpu.transpose %32, [0, 1, 3, 2] : vector<4x4x4x4xf32> -> vector<4x4x4x4xf32>
    %34 = vector.shape_cast %33 : vector<4x4x4x4xf32> to vector<4x4x16xf32>
    %c0_22 = arith.constant 0 : index
    %c2_23 = arith.constant 2 : index
    %c1_24 = arith.constant 1 : index
    %c0_25 = arith.constant 0 : index
    %c0_26 = arith.constant 0 : index
    %35 = vector.load %arg2[%c0_22, %c2_23, %c1_24, %c0_25, %c0_26] : memref<1x4x8x16x16xf32, #tpu.memory_space<vmem>>, vector<1x1x1x16x16xf32>
    %36 = vector.shape_cast %35 : vector<1x1x1x16x16xf32> to vector<16x16xf32>
    %37 = vector.shape_cast %36 : vector<16x16xf32> to vector<4x4x16xf32>
    %38 = tpu.transpose %37, [0, 2, 1] : vector<4x4x16xf32> -> vector<4x16x4xf32>
    %39 = vector.shape_cast %38 : vector<4x16x4xf32> to vector<4x4x4x4xf32>
    %40 = tpu.transpose %39, [0, 1, 3, 2] : vector<4x4x4x4xf32> -> vector<4x4x4x4xf32>
    %41 = vector.shape_cast %40 : vector<4x4x4x4xf32> to vector<4x4x16xf32>
    %c0_27 = arith.constant 0 : index
    %c3 = arith.constant 3 : index
    %c0_28 = arith.constant 0 : index
    %c0_29 = arith.constant 0 : index
    %c0_30 = arith.constant 0 : index
    %42 = vector.load %arg2[%c0_27, %c3, %c0_28, %c0_29, %c0_30] : memref<1x4x8x16x16xf32, #tpu.memory_space<vmem>>, vector<1x1x1x16x16xf32>
    %43 = vector.shape_cast %42 : vector<1x1x1x16x16xf32> to vector<16x16xf32>
    %44 = vector.shape_cast %43 : vector<16x16xf32> to vector<4x4x16xf32>
    %45 = tpu.transpose %44, [0, 2, 1] : vector<4x4x16xf32> -> vector<4x16x4xf32>
    %46 = vector.shape_cast %45 : vector<4x16x4xf32> to vector<4x4x4x4xf32>
    %47 = tpu.transpose %46, [0, 1, 3, 2] : vector<4x4x4x4xf32> -> vector<4x4x4x4xf32>
    %48 = vector.shape_cast %47 : vector<4x4x4x4xf32> to vector<4x4x16xf32>
    %c0_31 = arith.constant 0 : index
    %c3_32 = arith.constant 3 : index
    %c1_33 = arith.constant 1 : index
    %c0_34 = arith.constant 0 : index
    %c0_35 = arith.constant 0 : index
    %49 = vector.load %arg2[%c0_31, %c3_32, %c1_33, %c0_34, %c0_35] : memref<1x4x8x16x16xf32, #tpu.memory_space<vmem>>, vector<1x1x1x16x16xf32>
    %50 = vector.shape_cast %49 : vector<1x1x1x16x16xf32> to vector<16x16xf32>
    %51 = vector.shape_cast %50 : vector<16x16xf32> to vector<4x4x16xf32>
    %52 = tpu.transpose %51, [0, 2, 1] : vector<4x4x16xf32> -> vector<4x16x4xf32>
    %53 = vector.shape_cast %52 : vector<4x16x4xf32> to vector<4x4x4x4xf32>
    %54 = tpu.transpose %53, [0, 1, 3, 2] : vector<4x4x4x4xf32> -> vector<4x4x4x4xf32>
    %55 = vector.shape_cast %54 : vector<4x4x4x4xf32> to vector<4x4x16xf32>
    %56 = tpu.concatenate %6, %13, %20, %27, %34, %41, %48, %55 in 2 : vector<4x4x16xf32>, vector<4x4x16xf32>, vector<4x4x16xf32>, vector<4x4x16xf32>, vector<4x4x16xf32>, vector<4x4x16xf32>, vector<4x4x16xf32>, vector<4x4x16xf32> -> vector<4x4x128xf32>
    %57 = vector.shape_cast %56 : vector<4x4x128xf32> to vector<16x128xf32>
    %c0_36 = arith.constant 0 : index
    %c0_37 = arith.constant 0 : index
    %c0_38 = arith.constant 0 : index
    %c0_39 = arith.constant 0 : index
    %58 = vector.load %arg3[%c0_36, %c0_37, %c0_38, %c0_39] : memref<1x4x16x128xf32, #tpu.memory_space<vmem>>, vector<1x1x16x128xf32>
    %59 = vector.shape_cast %58 : vector<1x1x16x128xf32> to vector<16x128xf32>
    %60 = vector.shape_cast %57 : vector<16x128xf32> to vector<1x1x16x128xf32>
    tpu.vector_store %arg3[%c0_36, %c0_37, %c0_38, %c0_39], %60 {strides = array<i32>} : memref<1x4x16x128xf32, #tpu.memory_space<vmem>>, vector<1x1x16x128xf32>,
    %c0_40 = arith.constant 0 : index
    %c0_41 = arith.constant 0 : index
    %c2_42 = arith.constant 2 : index
    %c0_43 = arith.constant 0 : index
    %c0_44 = arith.constant 0 : index
    %61 = vector.load %arg2[%c0_40, %c0_41, %c2_42, %c0_43, %c0_44] : memref<1x4x8x16x16xf32, #tpu.memory_space<vmem>>, vector<1x1x1x16x16xf32>
    %62 = vector.shape_cast %61 : vector<1x1x1x16x16xf32> to vector<16x16xf32>
    %63 = vector.shape_cast %62 : vector<16x16xf32> to vector<4x4x16xf32>
    %64 = tpu.transpose %63, [0, 2, 1] : vector<4x4x16xf32> -> vector<4x16x4xf32>
    %65 = vector.shape_cast %64 : vector<4x16x4xf32> to vector<4x4x4x4xf32>
    %66 = tpu.transpose %65, [0, 1, 3, 2] : vector<4x4x4x4xf32> -> vector<4x4x4x4xf32>
    %67 = vector.shape_cast %66 : vector<4x4x4x4xf32> to vector<4x4x16xf32>
    %c0_45 = arith.constant 0 : index
    %c0_46 = arith.constant 0 : index
    %c3_47 = arith.constant 3 : index
    %c0_48 = arith.constant 0 : index
    %c0_49 = arith.constant 0 : index
    %68 = vector.load %arg2[%c0_45, %c0_46, %c3_47, %c0_48, %c0_49] : memref<1x4x8x16x16xf32, #tpu.memory_space<vmem>>, vector<1x1x1x16x16xf32>
    %69 = vector.shape_cast %68 : vector<1x1x1x16x16xf32> to vector<16x16xf32>
    %70 = vector.shape_cast %69 : vector<16x16xf32> to vector<4x4x16xf32>
    %71 = tpu.transpose %70, [0, 2, 1] : vector<4x4x16xf32> -> vector<4x16x4xf32>
    %72 = vector.shape_cast %71 : vector<4x16x4xf32> to vector<4x4x4x4xf32>
    %73 = tpu.transpose %72, [0, 1, 3, 2] : vector<4x4x4x4xf32> -> vector<4x4x4x4xf32>
    %74 = vector.shape_cast %73 : vector<4x4x4x4xf32> to vector<4x4x16xf32>
    %c0_50 = arith.constant 0 : index
    %c1_51 = arith.constant 1 : index
    %c2_52 = arith.constant 2 : index
    %c0_53 = arith.constant 0 : index
    %c0_54 = arith.constant 0 : index
    %75 = vector.load %arg2[%c0_50, %c1_51, %c2_52, %c0_53, %c0_54] : memref<1x4x8x16x16xf32, #tpu.memory_space<vmem>>, vector<1x1x1x16x16xf32>
    %76 = vector.shape_cast %75 : vector<1x1x1x16x16xf32> to vector<16x16xf32>
    %77 = vector.shape_cast %76 : vector<16x16xf32> to vector<4x4x16xf32>
    %78 = tpu.transpose %77, [0, 2, 1] : vector<4x4x16xf32> -> vector<4x16x4xf32>
    %79 = vector.shape_cast %78 : vector<4x16x4xf32> to vector<4x4x4x4xf32>
    %80 = tpu.transpose %79, [0, 1, 3, 2] : vector<4x4x4x4xf32> -> vector<4x4x4x4xf32>
    %81 = vector.shape_cast %80 : vector<4x4x4x4xf32> to vector<4x4x16xf32>
    %c0_55 = arith.constant 0 : index
    %c1_56 = arith.constant 1 : index
    %c3_57 = arith.constant 3 : index
    %c0_58 = arith.constant 0 : index
    %c0_59 = arith.constant 0 : index
    %82 = vector.load %arg2[%c0_55, %c1_56, %c3_57, %c0_58, %c0_59] : memref<1x4x8x16x16xf32, #tpu.memory_space<vmem>>, vector<1x1x1x16x16xf32>
    %83 = vector.shape_cast %82 : vector<1x1x1x16x16xf32> to vector<16x16xf32>
    %84 = vector.shape_cast %83 : vector<16x16xf32> to vector<4x4x16xf32>
    %85 = tpu.transpose %84, [0, 2, 1] : vector<4x4x16xf32> -> vector<4x16x4xf32>
    %86 = vector.shape_cast %85 : vector<4x16x4xf32> to vector<4x4x4x4xf32>
    %87 = tpu.transpose %86, [0, 1, 3, 2] : vector<4x4x4x4xf32> -> vector<4x4x4x4xf32>
    %88 = vector.shape_cast %87 : vector<4x4x4x4xf32> to vector<4x4x16xf32>
    %c0_60 = arith.constant 0 : index
    %c2_61 = arith.constant 2 : index
    %c2_62 = arith.constant 2 : index
    %c0_63 = arith.constant 0 : index
    %c0_64 = arith.constant 0 : index
    %89 = vector.load %arg2[%c0_60, %c2_61, %c2_62, %c0_63, %c0_64] : memref<1x4x8x16x16xf32, #tpu.memory_space<vmem>>, vector<1x1x1x16x16xf32>
    %90 = vector.shape_cast %89 : vector<1x1x1x16x16xf32> to vector<16x16xf32>
    %91 = vector.shape_cast %90 : vector<16x16xf32> to vector<4x4x16xf32>
    %92 = tpu.transpose %91, [0, 2, 1] : vector<4x4x16xf32> -> vector<4x16x4xf32>
    %93 = vector.shape_cast %92 : vector<4x16x4xf32> to vector<4x4x4x4xf32>
    %94 = tpu.transpose %93, [0, 1, 3, 2] : vector<4x4x4x4xf32> -> vector<4x4x4x4xf32>
    %95 = vector.shape_cast %94 : vector<4x4x4x4xf32> to vector<4x4x16xf32>
    %c0_65 = arith.constant 0 : index
    %c2_66 = arith.constant 2 : index
    %c3_67 = arith.constant 3 : index
    %c0_68 = arith.constant 0 : index
    %c0_69 = arith.constant 0 : index
    %96 = vector.load %arg2[%c0_65, %c2_66, %c3_67, %c0_68, %c0_69] : memref<1x4x8x16x16xf32, #tpu.memory_space<vmem>>, vector<1x1x1x16x16xf32>
    %97 = vector.shape_cast %96 : vector<1x1x1x16x16xf32> to vector<16x16xf32>
    %98 = vector.shape_cast %97 : vector<16x16xf32> to vector<4x4x16xf32>
    %99 = tpu.transpose %98, [0, 2, 1] : vector<4x4x16xf32> -> vector<4x16x4xf32>
    %100 = vector.shape_cast %99 : vector<4x16x4xf32> to vector<4x4x4x4xf32>
    %101 = tpu.transpose %100, [0, 1, 3, 2] : vector<4x4x4x4xf32> -> vector<4x4x4x4xf32>
    %102 = vector.shape_cast %101 : vector<4x4x4x4xf32> to vector<4x4x16xf32>
    %c0_70 = arith.constant 0 : index
    %c3_71 = arith.constant 3 : index
    %c2_72 = arith.constant 2 : index
    %c0_73 = arith.constant 0 : index
    %c0_74 = arith.constant 0 : index
    %103 = vector.load %arg2[%c0_70, %c3_71, %c2_72, %c0_73, %c0_74] : memref<1x4x8x16x16xf32, #tpu.memory_space<vmem>>, vector<1x1x1x16x16xf32>
    %104 = vector.shape_cast %103 : vector<1x1x1x16x16xf32> to vector<16x16xf32>
    %105 = vector.shape_cast %104 : vector<16x16xf32> to vector<4x4x16xf32>
    %106 = tpu.transpose %105, [0, 2, 1] : vector<4x4x16xf32> -> vector<4x16x4xf32>
    %107 = vector.shape_cast %106 : vector<4x16x4xf32> to vector<4x4x4x4xf32>
    %108 = tpu.transpose %107, [0, 1, 3, 2] : vector<4x4x4x4xf32> -> vector<4x4x4x4xf32>
    %109 = vector.shape_cast %108 : vector<4x4x4x4xf32> to vector<4x4x16xf32>
    %c0_75 = arith.constant 0 : index
    %c3_76 = arith.constant 3 : index
    %c3_77 = arith.constant 3 : index
    %c0_78 = arith.constant 0 : index
    %c0_79 = arith.constant 0 : index
    %110 = vector.load %arg2[%c0_75, %c3_76, %c3_77, %c0_78, %c0_79] : memref<1x4x8x16x16xf32, #tpu.memory_space<vmem>>, vector<1x1x1x16x16xf32>
    %111 = vector.shape_cast %110 : vector<1x1x1x16x16xf32> to vector<16x16xf32>
    %112 = vector.shape_cast %111 : vector<16x16xf32> to vector<4x4x16xf32>
    %113 = tpu.transpose %112, [0, 2, 1] : vector<4x4x16xf32> -> vector<4x16x4xf32>
    %114 = vector.shape_cast %113 : vector<4x16x4xf32> to vector<4x4x4x4xf32>
    %115 = tpu.transpose %114, [0, 1, 3, 2] : vector<4x4x4x4xf32> -> vector<4x4x4x4xf32>
    %116 = vector.shape_cast %115 : vector<4x4x4x4xf32> to vector<4x4x16xf32>
    %117 = tpu.concatenate %67, %74, %81, %88, %95, %102, %109, %116 in 2 : vector<4x4x16xf32>, vector<4x4x16xf32>, vector<4x4x16xf32>, vector<4x4x16xf32>, vector<4x4x16xf32>, vector<4x4x16xf32>, vector<4x4x16xf32>, vector<4x4x16xf32> -> vector<4x4x128xf32>
    %118 = vector.shape_cast %117 : vector<4x4x128xf32> to vector<16x128xf32>
    %c0_80 = arith.constant 0 : index
    %c1_81 = arith.constant 1 : index
    %c0_82 = arith.constant 0 : index
    %c0_83 = arith.constant 0 : index
    %119 = vector.load %arg3[%c0_80, %c1_81, %c0_82, %c0_83] : memref<1x4x16x128xf32, #tpu.memory_space<vmem>>, vector<1x1x16x128xf32>
    %120 = vector.shape_cast %119 : vector<1x1x16x128xf32> to vector<16x128xf32>
    %121 = vector.shape_cast %118 : vector<16x128xf32> to vector<1x1x16x128xf32>
    tpu.vector_store %arg3[%c0_80, %c1_81, %c0_82, %c0_83], %121 {strides = array<i32>} : memref<1x4x16x128xf32, #tpu.memory_space<vmem>>, vector<1x1x16x128xf32>,
    %c0_84 = arith.constant 0 : index
    %c0_85 = arith.constant 0 : index
    %c4 = arith.constant 4 : index
    %c0_86 = arith.constant 0 : index
    %c0_87 = arith.constant 0 : index
    %122 = vector.load %arg2[%c0_84, %c0_85, %c4, %c0_86, %c0_87] : memref<1x4x8x16x16xf32, #tpu.memory_space<vmem>>, vector<1x1x1x16x16xf32>
    %123 = vector.shape_cast %122 : vector<1x1x1x16x16xf32> to vector<16x16xf32>
    %124 = vector.shape_cast %123 : vector<16x16xf32> to vector<4x4x16xf32>
    %125 = tpu.transpose %124, [0, 2, 1] : vector<4x4x16xf32> -> vector<4x16x4xf32>
    %126 = vector.shape_cast %125 : vector<4x16x4xf32> to vector<4x4x4x4xf32>
    %127 = tpu.transpose %126, [0, 1, 3, 2] : vector<4x4x4x4xf32> -> vector<4x4x4x4xf32>
    %128 = vector.shape_cast %127 : vector<4x4x4x4xf32> to vector<4x4x16xf32>
    %c0_88 = arith.constant 0 : index
    %c0_89 = arith.constant 0 : index
    %c5 = arith.constant 5 : index
    %c0_90 = arith.constant 0 : index
    %c0_91 = arith.constant 0 : index
    %129 = vector.load %arg2[%c0_88, %c0_89, %c5, %c0_90, %c0_91] : memref<1x4x8x16x16xf32, #tpu.memory_space<vmem>>, vector<1x1x1x16x16xf32>
    %130 = vector.shape_cast %129 : vector<1x1x1x16x16xf32> to vector<16x16xf32>
    %131 = vector.shape_cast %130 : vector<16x16xf32> to vector<4x4x16xf32>
    %132 = tpu.transpose %131, [0, 2, 1] : vector<4x4x16xf32> -> vector<4x16x4xf32>
    %133 = vector.shape_cast %132 : vector<4x16x4xf32> to vector<4x4x4x4xf32>
    %134 = tpu.transpose %133, [0, 1, 3, 2] : vector<4x4x4x4xf32> -> vector<4x4x4x4xf32>
    %135 = vector.shape_cast %134 : vector<4x4x4x4xf32> to vector<4x4x16xf32>
    %c0_92 = arith.constant 0 : index
    %c1_93 = arith.constant 1 : index
    %c4_94 = arith.constant 4 : index
    %c0_95 = arith.constant 0 : index
    %c0_96 = arith.constant 0 : index
    %136 = vector.load %arg2[%c0_92, %c1_93, %c4_94, %c0_95, %c0_96] : memref<1x4x8x16x16xf32, #tpu.memory_space<vmem>>, vector<1x1x1x16x16xf32>
    %137 = vector.shape_cast %136 : vector<1x1x1x16x16xf32> to vector<16x16xf32>
    %138 = vector.shape_cast %137 : vector<16x16xf32> to vector<4x4x16xf32>
    %139 = tpu.transpose %138, [0, 2, 1] : vector<4x4x16xf32> -> vector<4x16x4xf32>
    %140 = vector.shape_cast %139 : vector<4x16x4xf32> to vector<4x4x4x4xf32>
    %141 = tpu.transpose %140, [0, 1, 3, 2] : vector<4x4x4x4xf32> -> vector<4x4x4x4xf32>
    %142 = vector.shape_cast %141 : vector<4x4x4x4xf32> to vector<4x4x16xf32>
    %c0_97 = arith.constant 0 : index
    %c1_98 = arith.constant 1 : index
    %c5_99 = arith.constant 5 : index
    %c0_100 = arith.constant 0 : index
    %c0_101 = arith.constant 0 : index
    %143 = vector.load %arg2[%c0_97, %c1_98, %c5_99, %c0_100, %c0_101] : memref<1x4x8x16x16xf32, #tpu.memory_space<vmem>>, vector<1x1x1x16x16xf32>
    %144 = vector.shape_cast %143 : vector<1x1x1x16x16xf32> to vector<16x16xf32>
    %145 = vector.shape_cast %144 : vector<16x16xf32> to vector<4x4x16xf32>
    %146 = tpu.transpose %145, [0, 2, 1] : vector<4x4x16xf32> -> vector<4x16x4xf32>
    %147 = vector.shape_cast %146 : vector<4x16x4xf32> to vector<4x4x4x4xf32>
    %148 = tpu.transpose %147, [0, 1, 3, 2] : vector<4x4x4x4xf32> -> vector<4x4x4x4xf32>
    %149 = vector.shape_cast %148 : vector<4x4x4x4xf32> to vector<4x4x16xf32>
    %c0_102 = arith.constant 0 : index
    %c2_103 = arith.constant 2 : index
    %c4_104 = arith.constant 4 : index
    %c0_105 = arith.constant 0 : index
    %c0_106 = arith.constant 0 : index
    %150 = vector.load %arg2[%c0_102, %c2_103, %c4_104, %c0_105, %c0_106] : memref<1x4x8x16x16xf32, #tpu.memory_space<vmem>>, vector<1x1x1x16x16xf32>
    %151 = vector.shape_cast %150 : vector<1x1x1x16x16xf32> to vector<16x16xf32>
    %152 = vector.shape_cast %151 : vector<16x16xf32> to vector<4x4x16xf32>
    %153 = tpu.transpose %152, [0, 2, 1] : vector<4x4x16xf32> -> vector<4x16x4xf32>
    %154 = vector.shape_cast %153 : vector<4x16x4xf32> to vector<4x4x4x4xf32>
    %155 = tpu.transpose %154, [0, 1, 3, 2] : vector<4x4x4x4xf32> -> vector<4x4x4x4xf32>
    %156 = vector.shape_cast %155 : vector<4x4x4x4xf32> to vector<4x4x16xf32>
    %c0_107 = arith.constant 0 : index
    %c2_108 = arith.constant 2 : index
    %c5_109 = arith.constant 5 : index
    %c0_110 = arith.constant 0 : index
    %c0_111 = arith.constant 0 : index
    %157 = vector.load %arg2[%c0_107, %c2_108, %c5_109, %c0_110, %c0_111] : memref<1x4x8x16x16xf32, #tpu.memory_space<vmem>>, vector<1x1x1x16x16xf32>
    %158 = vector.shape_cast %157 : vector<1x1x1x16x16xf32> to vector<16x16xf32>
    %159 = vector.shape_cast %158 : vector<16x16xf32> to vector<4x4x16xf32>
    %160 = tpu.transpose %159, [0, 2, 1] : vector<4x4x16xf32> -> vector<4x16x4xf32>
    %161 = vector.shape_cast %160 : vector<4x16x4xf32> to vector<4x4x4x4xf32>
    %162 = tpu.transpose %161, [0, 1, 3, 2] : vector<4x4x4x4xf32> -> vector<4x4x4x4xf32>
    %163 = vector.shape_cast %162 : vector<4x4x4x4xf32> to vector<4x4x16xf32>
    %c0_112 = arith.constant 0 : index
    %c3_113 = arith.constant 3 : index
    %c4_114 = arith.constant 4 : index
    %c0_115 = arith.constant 0 : index
    %c0_116 = arith.constant 0 : index
    %164 = vector.load %arg2[%c0_112, %c3_113, %c4_114, %c0_115, %c0_116] : memref<1x4x8x16x16xf32, #tpu.memory_space<vmem>>, vector<1x1x1x16x16xf32>
    %165 = vector.shape_cast %164 : vector<1x1x1x16x16xf32> to vector<16x16xf32>
    %166 = vector.shape_cast %165 : vector<16x16xf32> to vector<4x4x16xf32>
    %167 = tpu.transpose %166, [0, 2, 1] : vector<4x4x16xf32> -> vector<4x16x4xf32>
    %168 = vector.shape_cast %167 : vector<4x16x4xf32> to vector<4x4x4x4xf32>
    %169 = tpu.transpose %168, [0, 1, 3, 2] : vector<4x4x4x4xf32> -> vector<4x4x4x4xf32>
    %170 = vector.shape_cast %169 : vector<4x4x4x4xf32> to vector<4x4x16xf32>
    %c0_117 = arith.constant 0 : index
    %c3_118 = arith.constant 3 : index
    %c5_119 = arith.constant 5 : index
    %c0_120 = arith.constant 0 : index
    %c0_121 = arith.constant 0 : index
    %171 = vector.load %arg2[%c0_117, %c3_118, %c5_119, %c0_120, %c0_121] : memref<1x4x8x16x16xf32, #tpu.memory_space<vmem>>, vector<1x1x1x16x16xf32>
    %172 = vector.shape_cast %171 : vector<1x1x1x16x16xf32> to vector<16x16xf32>
    %173 = vector.shape_cast %172 : vector<16x16xf32> to vector<4x4x16xf32>
    %174 = tpu.transpose %173, [0, 2, 1] : vector<4x4x16xf32> -> vector<4x16x4xf32>
    %175 = vector.shape_cast %174 : vector<4x16x4xf32> to vector<4x4x4x4xf32>
    %176 = tpu.transpose %175, [0, 1, 3, 2] : vector<4x4x4x4xf32> -> vector<4x4x4x4xf32>
    %177 = vector.shape_cast %176 : vector<4x4x4x4xf32> to vector<4x4x16xf32>
    %178 = tpu.concatenate %128, %135, %142, %149, %156, %163, %170, %177 in 2 : vector<4x4x16xf32>, vector<4x4x16xf32>, vector<4x4x16xf32>, vector<4x4x16xf32>, vector<4x4x16xf32>, vector<4x4x16xf32>, vector<4x4x16xf32>, vector<4x4x16xf32> -> vector<4x4x128xf32>
    %179 = vector.shape_cast %178 : vector<4x4x128xf32> to vector<16x128xf32>
    %c0_122 = arith.constant 0 : index
    %c2_123 = arith.constant 2 : index
    %c0_124 = arith.constant 0 : index
    %c0_125 = arith.constant 0 : index
    %180 = vector.load %arg3[%c0_122, %c2_123, %c0_124, %c0_125] : memref<1x4x16x128xf32, #tpu.memory_space<vmem>>, vector<1x1x16x128xf32>
    %181 = vector.shape_cast %180 : vector<1x1x16x128xf32> to vector<16x128xf32>
    %182 = vector.shape_cast %179 : vector<16x128xf32> to vector<1x1x16x128xf32>
    tpu.vector_store %arg3[%c0_122, %c2_123, %c0_124, %c0_125], %182 {strides = array<i32>} : memref<1x4x16x128xf32, #tpu.memory_space<vmem>>, vector<1x1x16x128xf32>,
    %c0_126 = arith.constant 0 : index
    %c0_127 = arith.constant 0 : index
    %c6 = arith.constant 6 : index
    %c0_128 = arith.constant 0 : index
    %c0_129 = arith.constant 0 : index
    %183 = vector.load %arg2[%c0_126, %c0_127, %c6, %c0_128, %c0_129] : memref<1x4x8x16x16xf32, #tpu.memory_space<vmem>>, vector<1x1x1x16x16xf32>
    %184 = vector.shape_cast %183 : vector<1x1x1x16x16xf32> to vector<16x16xf32>
    %185 = vector.shape_cast %184 : vector<16x16xf32> to vector<4x4x16xf32>
    %186 = tpu.transpose %185, [0, 2, 1] : vector<4x4x16xf32> -> vector<4x16x4xf32>
    %187 = vector.shape_cast %186 : vector<4x16x4xf32> to vector<4x4x4x4xf32>
    %188 = tpu.transpose %187, [0, 1, 3, 2] : vector<4x4x4x4xf32> -> vector<4x4x4x4xf32>
    %189 = vector.shape_cast %188 : vector<4x4x4x4xf32> to vector<4x4x16xf32>
    %c0_130 = arith.constant 0 : index
    %c0_131 = arith.constant 0 : index
    %c7 = arith.constant 7 : index
    %c0_132 = arith.constant 0 : index
    %c0_133 = arith.constant 0 : index
    %190 = vector.load %arg2[%c0_130, %c0_131, %c7, %c0_132, %c0_133] : memref<1x4x8x16x16xf32, #tpu.memory_space<vmem>>, vector<1x1x1x16x16xf32>
    %191 = vector.shape_cast %190 : vector<1x1x1x16x16xf32> to vector<16x16xf32>
    %192 = vector.shape_cast %191 : vector<16x16xf32> to vector<4x4x16xf32>
    %193 = tpu.transpose %192, [0, 2, 1] : vector<4x4x16xf32> -> vector<4x16x4xf32>
    %194 = vector.shape_cast %193 : vector<4x16x4xf32> to vector<4x4x4x4xf32>
    %195 = tpu.transpose %194, [0, 1, 3, 2] : vector<4x4x4x4xf32> -> vector<4x4x4x4xf32>
    %196 = vector.shape_cast %195 : vector<4x4x4x4xf32> to vector<4x4x16xf32>
    %c0_134 = arith.constant 0 : index
    %c1_135 = arith.constant 1 : index
    %c6_136 = arith.constant 6 : index
    %c0_137 = arith.constant 0 : index
    %c0_138 = arith.constant 0 : index
    %197 = vector.load %arg2[%c0_134, %c1_135, %c6_136, %c0_137, %c0_138] : memref<1x4x8x16x16xf32, #tpu.memory_space<vmem>>, vector<1x1x1x16x16xf32>
    %198 = vector.shape_cast %197 : vector<1x1x1x16x16xf32> to vector<16x16xf32>
    %199 = vector.shape_cast %198 : vector<16x16xf32> to vector<4x4x16xf32>
    %200 = tpu.transpose %199, [0, 2, 1] : vector<4x4x16xf32> -> vector<4x16x4xf32>
    %201 = vector.shape_cast %200 : vector<4x16x4xf32> to vector<4x4x4x4xf32>
    %202 = tpu.transpose %201, [0, 1, 3, 2] : vector<4x4x4x4xf32> -> vector<4x4x4x4xf32>
    %203 = vector.shape_cast %202 : vector<4x4x4x4xf32> to vector<4x4x16xf32>
    %c0_139 = arith.constant 0 : index
    %c1_140 = arith.constant 1 : index
    %c7_141 = arith.constant 7 : index
    %c0_142 = arith.constant 0 : index
    %c0_143 = arith.constant 0 : index
    %204 = vector.load %arg2[%c0_139, %c1_140, %c7_141, %c0_142, %c0_143] : memref<1x4x8x16x16xf32, #tpu.memory_space<vmem>>, vector<1x1x1x16x16xf32>
    %205 = vector.shape_cast %204 : vector<1x1x1x16x16xf32> to vector<16x16xf32>
    %206 = vector.shape_cast %205 : vector<16x16xf32> to vector<4x4x16xf32>
    %207 = tpu.transpose %206, [0, 2, 1] : vector<4x4x16xf32> -> vector<4x16x4xf32>
    %208 = vector.shape_cast %207 : vector<4x16x4xf32> to vector<4x4x4x4xf32>
    %209 = tpu.transpose %208, [0, 1, 3, 2] : vector<4x4x4x4xf32> -> vector<4x4x4x4xf32>
    %210 = vector.shape_cast %209 : vector<4x4x4x4xf32> to vector<4x4x16xf32>
    %c0_144 = arith.constant 0 : index
    %c2_145 = arith.constant 2 : index
    %c6_146 = arith.constant 6 : index
    %c0_147 = arith.constant 0 : index
    %c0_148 = arith.constant 0 : index
    %211 = vector.load %arg2[%c0_144, %c2_145, %c6_146, %c0_147, %c0_148] : memref<1x4x8x16x16xf32, #tpu.memory_space<vmem>>, vector<1x1x1x16x16xf32>
    %212 = vector.shape_cast %211 : vector<1x1x1x16x16xf32> to vector<16x16xf32>
    %213 = vector.shape_cast %212 : vector<16x16xf32> to vector<4x4x16xf32>
    %214 = tpu.transpose %213, [0, 2, 1] : vector<4x4x16xf32> -> vector<4x16x4xf32>
    %215 = vector.shape_cast %214 : vector<4x16x4xf32> to vector<4x4x4x4xf32>
    %216 = tpu.transpose %215, [0, 1, 3, 2] : vector<4x4x4x4xf32> -> vector<4x4x4x4xf32>
    %217 = vector.shape_cast %216 : vector<4x4x4x4xf32> to vector<4x4x16xf32>
    %c0_149 = arith.constant 0 : index
    %c2_150 = arith.constant 2 : index
    %c7_151 = arith.constant 7 : index
    %c0_152 = arith.constant 0 : index
    %c0_153 = arith.constant 0 : index
    %218 = vector.load %arg2[%c0_149, %c2_150, %c7_151, %c0_152, %c0_153] : memref<1x4x8x16x16xf32, #tpu.memory_space<vmem>>, vector<1x1x1x16x16xf32>
    %219 = vector.shape_cast %218 : vector<1x1x1x16x16xf32> to vector<16x16xf32>
    %220 = vector.shape_cast %219 : vector<16x16xf32> to vector<4x4x16xf32>
    %221 = tpu.transpose %220, [0, 2, 1] : vector<4x4x16xf32> -> vector<4x16x4xf32>
    %222 = vector.shape_cast %221 : vector<4x16x4xf32> to vector<4x4x4x4xf32>
    %223 = tpu.transpose %222, [0, 1, 3, 2] : vector<4x4x4x4xf32> -> vector<4x4x4x4xf32>
    %224 = vector.shape_cast %223 : vector<4x4x4x4xf32> to vector<4x4x16xf32>
    %c0_154 = arith.constant 0 : index
    %c3_155 = arith.constant 3 : index
    %c6_156 = arith.constant 6 : index
    %c0_157 = arith.constant 0 : index
    %c0_158 = arith.constant 0 : index
    %225 = vector.load %arg2[%c0_154, %c3_155, %c6_156, %c0_157, %c0_158] : memref<1x4x8x16x16xf32, #tpu.memory_space<vmem>>, vector<1x1x1x16x16xf32>
    %226 = vector.shape_cast %225 : vector<1x1x1x16x16xf32> to vector<16x16xf32>
    %227 = vector.shape_cast %226 : vector<16x16xf32> to vector<4x4x16xf32>
    %228 = tpu.transpose %227, [0, 2, 1] : vector<4x4x16xf32> -> vector<4x16x4xf32>
    %229 = vector.shape_cast %228 : vector<4x16x4xf32> to vector<4x4x4x4xf32>
    %230 = tpu.transpose %229, [0, 1, 3, 2] : vector<4x4x4x4xf32> -> vector<4x4x4x4xf32>
    %231 = vector.shape_cast %230 : vector<4x4x4x4xf32> to vector<4x4x16xf32>
    %c0_159 = arith.constant 0 : index
    %c3_160 = arith.constant 3 : index
    %c7_161 = arith.constant 7 : index
    %c0_162 = arith.constant 0 : index
    %c0_163 = arith.constant 0 : index
    %232 = vector.load %arg2[%c0_159, %c3_160, %c7_161, %c0_162, %c0_163] : memref<1x4x8x16x16xf32, #tpu.memory_space<vmem>>, vector<1x1x1x16x16xf32>
    %233 = vector.shape_cast %232 : vector<1x1x1x16x16xf32> to vector<16x16xf32>
    %234 = vector.shape_cast %233 : vector<16x16xf32> to vector<4x4x16xf32>
    %235 = tpu.transpose %234, [0, 2, 1] : vector<4x4x16xf32> -> vector<4x16x4xf32>
    %236 = vector.shape_cast %235 : vector<4x16x4xf32> to vector<4x4x4x4xf32>
    %237 = tpu.transpose %236, [0, 1, 3, 2] : vector<4x4x4x4xf32> -> vector<4x4x4x4xf32>
    %238 = vector.shape_cast %237 : vector<4x4x4x4xf32> to vector<4x4x16xf32>
    %239 = tpu.concatenate %189, %196, %203, %210, %217, %224, %231, %238 in 2 : vector<4x4x16xf32>, vector<4x4x16xf32>, vector<4x4x16xf32>, vector<4x4x16xf32>, vector<4x4x16xf32>, vector<4x4x16xf32>, vector<4x4x16xf32>, vector<4x4x16xf32> -> vector<4x4x128xf32>
    %240 = vector.shape_cast %239 : vector<4x4x128xf32> to vector<16x128xf32>
    %c0_164 = arith.constant 0 : index
    %c3_165 = arith.constant 3 : index
    %c0_166 = arith.constant 0 : index
    %c0_167 = arith.constant 0 : index
    %241 = vector.load %arg3[%c0_164, %c3_165, %c0_166, %c0_167] : memref<1x4x16x128xf32, #tpu.memory_space<vmem>>, vector<1x1x16x128xf32>
    %242 = vector.shape_cast %241 : vector<1x1x16x128xf32> to vector<16x128xf32>
    %243 = vector.shape_cast %240 : vector<16x128xf32> to vector<1x1x16x128xf32>
    tpu.vector_store %arg3[%c0_164, %c3_165, %c0_166, %c0_167], %243 {strides = array<i32>} : memref<1x4x16x128xf32, #tpu.memory_space<vmem>>, vector<1x1x16x128xf32>,
    return
  }
  func.func @transform_0(%arg0: i32, %arg1: i32) -> (i32, i32, i32, i32, i32) {
    %c0_i32 = arith.constant 0 : i32
    %c0_i32_0 = arith.constant 0 : i32
    %c0_i32_1 = arith.constant 0 : i32
    %c0_i32_2 = arith.constant 0 : i32
    return %arg0, %c0_i32, %arg1, %c0_i32_0, %c0_i32_1 : i32, i32, i32, i32, i32
  }
  func.func @transform_1(%arg0: i32, %arg1: i32) -> (i32, i32, i32, i32) {
    %c0_i32 = arith.constant 0 : i32
    %c0_i32_0 = arith.constant 0 : i32
    %c0_i32_1 = arith.constant 0 : i32
    return %arg0, %arg1, %c0_i32, %c0_i32_0 : i32, i32, i32, i32
  }
}

</mosaic_0001>

<bundles_post_ra>
// kernel: tpu_custom_call.1
= control target key start
LH: loop header
LB: loop body
LE: loop exit
PB: predicated region body
PF: predicated region fallthrough
CT: control target
= control target key end

     0   :  { %6 = vsyncpa [#allocation3], 0  ;;  %s34269_s0 = inlined_call_operand.hbm [shape: f32[2,4,8,16,16], index: 0, kind: input, shape index: {}]   ;;  %s34270_s1 = inlined_call_operand.hbm [shape: f32[2,4,16,128], index: 1, kind: output, shape index: {}]  }
   0x1   :  { %8 = vsyncpa [#allocation3 + $0x1], 0 }
   0x2   :  { %9 = vsyncpa [#allocation4], 0 }
   0x3   :  { %11 = vsyncpa [#allocation4 + $0x1], 0  ;;  %s28247_s6 = smov 0   ;;  %s28249_s7 = smov 0  }
   0x4   :  { %s28251_s8 = smov 0   ;;  %s28253_s9 = smov 0  }
   0x5   :  { %s28255_s10 = smov 0   ;;  %s28257_s11 = smov 0  }
   0x6 LB: > { %s27945_s12 = sadd.s32 4294967295, %s28220_s11   ;;  %s27946_s13 = sadd.s32 4294967294, %s28220_s11   ;;  %s28220_s11 = sphi %s28257_s11, %s17_s11   ;;  %s28216_s10 = sphi %s28255_s10, %s35673_s10   ;;  %s28212_s9 = sphi %s28253_s9, %s35672_s9   ;;  %s28208_s8 = sphi %s28251_s8, %s35671_s8   ;;  %s28204_s7 = sphi %s28249_s7, %s35670_s7   ;;  %s28200_s6 = sphi %s28247_s6, %s35669_s6  }
   0x7   : > { %s29_s14 = sadd.s32 1, %s28216_s10  ;;  %s38_s15 = sadd.s32 1, %s28208_s8 }
   0x8   : > { %p31_p0 = scmp.ge.s32.totalorder %s29_s14, 2  ;;  %p45_p1 = scmp.ne.s32.totalorder %s28208_s8, %s28204_s7 }
   0x9   : > { %p46_p2 = scmp.eq.s32.totalorder %s28220_s11, 0  ;;  %p51_p3 = scmp.ne.s32.totalorder %s28204_s7, %s28200_s6 }
   0xa   : > { %s35675_s14 = smov (%p31_p0, %s29_s14), 0  ;;  %p52_p5 = scmp.eq.s32.totalorder %s27945_s12, 0 }
   0xb   : > { %p28288_p4 = por %p46_p2, %p45_p1  ;;  %s33_s17 = ssub.s32 %s28216_s10, %s35675_s14 }
   0xc   : > { %p77_p6 = scmp.eq.s32.totalorder %s27945_s12, 1  ;;  %p36_p7 = scmp.eq.s32.totalorder %s33_s17, 0 }
   0xd   : > { %p28294_p8 = por %p52_p5, %p51_p3  ;;  %p83_p10 = scmp.eq.s32.totalorder %s27946_s13, 1 }
   0xe   : > { %p28298_p9 = por %p77_p6, %p45_p1  ;;  %p27948_p12 = scmp.ge.s32.totalorder %s28220_s11, 2 }
   0xf   : > { %s28303_s20 = scalar_select %p36_p7, %s28208_s8, %s38_s15  }
  0x10   : > { %p28305_p11 = por %p83_p10, %p51_p3  ;;  %p28042_p13 = scmp.lt.s32.totalorder %s28220_s11, 2 }
  0x11   : > { %s103_s22 = sand.u32 1, %s28208_s8   ;;  %s28028_s24 = sshll.u32 %s28216_s10, 9 }
  0x12   : > { %s27949_s23 = sshll.u32 %s103_s22, 9  ;;  %s115_s27 = scalar_lea.hbm %s34269_s0, %s28028_s24 }
  0x13   : > { %s107_s28 = scalar_lea.vmem [#allocation2], %s27949_s23  ;;  %s116_s30 = sshll.u32 %s115_s27, 4  ;;  %s117_s30 = int_to_ptr.hbm [resolvable:$true] %s116_s30 }
  0x14   : > { %s118_s29 = sshll.u32 %s107_s28, 4  ;;  %p28035_p0 = pnand %p28042_p13, %p28288_p4  ;;  %s119_s29 = int_to_ptr.vmem [resolvable:$true] %s118_s29 }
  0x15   : > { %p27952_p1 = scmp.ge.s32.totalorder %s28220_s11, 1  ;;  %s104_s2 = scalar_lea.sflag [#allocation3], %s103_s22 }
  0x16   : > { %s28222_s3 = smov 128   ;;  %s28223_s4 = smov 8  }
  0x17   : > { %28037 = dma.hbm_to_vmem [thread:$0]  (!%p28035_p0), %s117_s30, 8192, %s119_s29, %s104_s2, %s28222_s3, %s28222_s3, %s28223_s4  }
  0x18   : > { %p126_p2 = scmp.lt.s32.totalorder %s28220_s11, 3 }
  0x1a   : > { %p127_p3 = pnand %p27952_p1, %p126_p2 }
  0x1c   : > { %130 = sbr.rel (%p127_p3) target bundleno = 9992 (0x2708), region = 24 }
  0x21   : > { %s28321_s5 = sand.u32 1, %s28204_s7  }
  0x22   : > { %s27953_s12 = sshll.u32 %s28321_s5, 9  ;;  %s133_s13 = scalar_lea.sflag [#allocation3], %s28321_s5 }
  0x23   : > { %s28325_s15 = scalar_lea.vmem [#allocation2], %s27953_s12 }
  0x24   : > { %28191 = dma.done.wait (%p28294_p8), %s133_s13, 8192  }
  0x25   : > { %28193 = vsyncadd (%p28294_p8), %s133_s13, 4294959104  ;;  %v159_v0 = vld [vmem:[%s28325_s15 + $0x8] sm:$0xff]  ;;  %v158_v1 = vld [vmem:[%s28325_s15] sm:$0xff]  ;;  %v28224_v35 = vmov 1983009808   ;;  %vm831_vm0 = vcmask 1047556  }
  0x26   : > { %230 = vxpose.xlu1.b32.start.end [1/1] (short) (narrow) %v159_v0, 16  ;;  %166 = vxpose.xlu0.b32.start.end [1/1] (short) (narrow) %v158_v1, 16  ;;  %v163_v2 = vrot.slane %v159_v0, 4  ;;  %v162_v3 = vrot.slane %v158_v1, 4  ;;  %v27955_v18 = vld [vmem:[%s28325_s15 + $0x10] sm:$0xff]  ;;  %v27956_v22 = vld [vmem:[%s28325_s15 + $0x18] sm:$0xff]  ;;  %v834_v36 = vunpack.c.l.s4 %v28224_v35 }
  0x27   : > { %v1011_v20 = vrot.slane %v27955_v18, 4  ;;  %v1012_v23 = vrot.slane %v27956_v22, 4  ;;  %s28226_s16 = smov 4   ;;  %s28227_s17 = smov 8   ;;  %vm991_vm1 = vcmask 31744   ;;  %vm996_vm2 = vcmask 64512  }
  0x28   : > { %v28351_v41 = vunpack.c.0.s8 %v834_v36  ;;  %s28228_s18 = smov 12   ;;  %vm1001_vm3 = vcmask 97280   ;;  %s28229_s22 = smov 16   ;;  %vm7033_vm4 = vcmask 130048   ;;  %vm7038_vm5 = vcmask 261120  }
  0x29   : > { %s28230_s23 = smov 32   ;;  %s28231_s24 = smov 48   ;;  %vm7043_vm6 = vcmask 392192   ;;  %vm7048_vm7 = vcmask 523264   ;;  %vm7053_vm8 = vcmask 654336   ;;  %vm7063_vm9 = vcmask 916480  }
  0x2a   : > { %s28232_s25 = smov 64   ;;  %s28233_s26 = smov 80   ;;  %vm7058_vm10 = vcmask 785408  }
  0x2b   : > { %s28234_s27 = smov 96   ;;  %s28235_s28 = smov 112  }
  0x2c   : > { %s27954_s29 = sshll.u32 %s28321_s5, 6  ;;  %s28029_s2 = sshll.u32 %s28212_s9, 6 }
  0x2d   : > { %s31238_s30 = scalar_lea.vmem [#allocation5], %s27954_s29  ;;  %s27854_s12 = scalar_lea.hbm %s34270_s1, %s28029_s2 }
  0x2e   : > { %s27855_s13 = sshll.u32 %s31238_s30, 4  ;;  %s27856_s13 = int_to_ptr.vmem [resolvable:$true] %s27855_s13 }
  0x36   : > { %262 = vxpose.xlu1.b32.start.end [1/1] (short) (narrow) %v163_v2, 16  ;;  %198 = vxpose.xlu0.b32.start.end [1/1] (short) (narrow) %v162_v3, 16 }
  0xca   : > { %v246_v4 = vpop.trf.xlu1  ;;  %v182_v5 = vpop.trf.xlu0 }
  0xcb   : > { %574 = vxpose.xlu1.b32.start.end [1/1] (short) (narrow) %v246_v4, 8  ;;  %318 = vxpose.xlu2.b32.start.end [1/1] (short) (narrow) %v182_v5, 8  ;;  %v302_v6 = vrot.slane %v182_v5, 4  ;;  %v306_v9 = vrot.slane %v246_v4, 4  ;;  %v27957_v5 = vld [vmem:[%s28325_s15 + $0x80] sm:$0xff] }
  0xd2   : > { %v247_v7 = vpop.trf.xlu1  ;;  %v183_v8 = vpop.trf.xlu0 }
  0xd3   : > { %350 = vxpose.xlu2.b32.start.end [1/1] (short) (narrow) %v302_v6, 8  ;;  %v307_v13 = vrot.slane %v247_v7, 4  ;;  %v303_v16 = vrot.slane %v183_v8, 4  ;;  %v1856_v6 = vrot.slane %v27957_v5, 4 }
  0xda   : > { %v278_v10 = vpop.trf.xlu1  ;;  %v214_v11 = vpop.trf.xlu0 }
  0xdb   : > { %606 = vxpose.xlu2.b32.start.end [1/1] (short) (narrow) %v306_v9, 8  ;;  %446 = vxpose.xlu1.b32.start.end [1/1] (short) (narrow) %v214_v11, 8  ;;  %v308_v12 = vrot.slane %v278_v10, 4  ;;  %v304_v15 = vrot.slane %v214_v11, 4 }
  0xdd   : > { %734 = vxpose.xlu0.b32.start.end [1/1] (short) (narrow) %v308_v12, 8 }
  0xe2   : > { %v279_v14 = vpop.trf.xlu1  ;;  %v215_v17 = vpop.trf.xlu0 }
  0xe3   : > { %702 = vxpose.xlu2.b32.start.end [1/1] (short) (narrow) %v278_v10, 8  ;;  %670 = vxpose.xlu1.b32.start.end [1/1] (short) (narrow) %v307_v13, 8  ;;  %v305_v19 = vrot.slane %v215_v17, 4  ;;  %v309_v21 = vrot.slane %v279_v14, 4 }
  0xe5   : > { %638 = vxpose.xlu0.b32.start.end [1/1] (short) (narrow) %v247_v7, 8  ;;  %v27958_v7 = vld [vmem:[%s28325_s15 + $0x88] sm:$0xff] }
  0xeb   : > { %478 = vxpose.xlu2.b32.start.end [1/1] (short) (narrow) %v304_v15, 8  ;;  %766 = vxpose.xlu1.b32.start.end [1/1] (short) (narrow) %v279_v14, 8 }
  0xed   : > { %414 = vxpose.xlu0.b32.start.end [1/1] (short) (narrow) %v303_v16, 8 }
  0xf3   : > { %382 = vxpose.xlu2.b32.start.end [1/1] (short) (narrow) %v183_v8, 8  ;;  %1015 = vxpose.xlu1.b32.start.end [1/1] (short) (narrow) %v27955_v18, 16  ;;  %v1857_v8 = vrot.slane %v27958_v7, 4 }
  0xf5   : > { %542 = vxpose.xlu0.b32.start.end [1/1] (short) (narrow) %v305_v19, 8 }
  0xfb   : > { %510 = vxpose.xlu2.b32.start.end [1/1] (short) (narrow) %v215_v17, 8 }
  0xfd   : > { %1047 = vxpose.xlu0.b32.start.end [1/1] (short) (narrow) %v1011_v20, 16 }
 0x103   : > { %798 = vxpose.xlu2.b32.start.end [1/1] (short) (narrow) %v309_v21, 8 }
 0x10b   : > { %1079 = vxpose.xlu2.b32.start.end [1/1] (short) (narrow) %v27956_v22, 16 }
 0x10d   : > { %1111 = vxpose.xlu0.b32.start.end [1/1] (short) (narrow) %v1012_v23, 16 }
 0x164   : > { %v334_v24 = vpop.trf.xlu2 }
 0x16c   : > { %v366_v25 = vpop.trf.xlu2 }
 0x16f   : > { %v28337_v27 = vpop.trf.xlu1 }
 0x174   : > { %v28335_v26 = vpop.trf.xlu2 }
 0x17c   : > { %v28339_v28 = vpop.trf.xlu2 }
 0x17f   : > { %v28341_v29 = vpop.trf.xlu1 }
 0x181   : > { %v750_v30 = vpop.trf.xlu0 }
 0x184   : > { %v28343_v31 = vpop.trf.xlu2 }
 0x187   : > { %v28345_v32 = vpop.trf.xlu1 }
 0x189   : > { %v28347_v33 = vpop.trf.xlu0 }
 0x18c   : > { %v398_v34 = vpop.trf.xlu2 }
 0x18d   : > { %v830_v38 = vrot.slane %v398_v34, 4 }
 0x18f   : > { %v28349_v37 = vpop.trf.xlu1  ;;  %v832_v42 = vsel %vm831_vm0, %v830_v38, %v334_v24 }
 0x190   : > { %v28361_v46 = vperm.slane %v832_v42, %v28351_v41 }
 0x191   : > { %v430_v39 = vpop.trf.xlu0 }
 0x192   : > { %v837_v40 = vrot.slane %v430_v39, 4 }
 0x194   : > { %v838_v43 = vsel %vm831_vm0, %v837_v40, %v366_v25  ;;  %v28355_v44 = vpop.trf.xlu2 }
 0x195   : > { %v28358_v45 = vperm.slane %v838_v43, %v28351_v41 }
 0x197   : > { %v843_v47 = vrot.slane %v28358_v45, 4  ;;  %v1031_v48 = vpop.trf.xlu1 }
 0x198   : > { %v1151_v49 = vrot.slane %v1031_v48, 4  ;;  %1167 = vxpose.xlu2.b32.start.end [1/1] (short) (narrow) %v1031_v48, 8 }
 0x199   : > { %v28364_v50 = vpop.trf.xlu0  ;;  %v28368_v51 = vsel %vm831_vm0, %v843_v47, %v28361_v46 }
 0x19a   : > { %34417 = vst [vmem:[#allocation8_spill] sm:$0xff] %v28368_v51  ;;  %1199 = vxpose.xlu1.b32.start.end [1/1] (short) (narrow) %v1151_v49, 8 }
 0x19c   : > { %v814_v52 = vpop.trf.xlu2 }
 0x19d   : > { %v921_v53 = vrot.slane %v814_v52, 4 }
 0x19f   : > { %v28371_v54 = vsel %vm831_vm0, %v921_v53, %v750_v30  ;;  %v1032_v55 = vpop.trf.xlu1 }
 0x1a0   : > { %1231 = vxpose.xlu0.b32.start.end [1/1] (short) (narrow) %v1032_v55, 8  ;;  %v1152_v56 = vrot.slane %v1032_v55, 4 }
 0x1a1   : > { %v1063_v57 = vpop.trf.xlu0 }
 0x1a2   : > { %1263 = vxpose.xlu2.b32.start.end [1/1] (short) (narrow) %v1152_v56, 8  ;;  %1295 = vxpose.xlu1.b32.start.end [1/1] (short) (narrow) %v1063_v57, 8  ;;  %v1153_v59 = vrot.slane %v1063_v57, 4 }
 0x1a4   : > { %v1095_v58 = vpop.trf.xlu2 }
 0x1a5   : > { %v1155_v62 = vrot.slane %v1095_v58, 4 }
 0x1a9   : > { %v1064_v60 = vpop.trf.xlu0 }
 0x1aa   : > { %1327 = vxpose.xlu2.b32.start.end [1/1] (short) (narrow) %v1153_v59, 8  ;;  %1359 = vxpose.xlu0.b32.start.end [1/1] (short) (narrow) %v1064_v60, 8  ;;  %v1154_v61 = vrot.slane %v1064_v60, 4 }
 0x1ac   : > { %1391 = vxpose.xlu1.b32.start.end [1/1] (short) (narrow) %v1154_v61, 8  ;;  %v1096_v63 = vpop.trf.xlu2 }
 0x1ad   : > { %v1156_v1 = vrot.slane %v1096_v63, 4 }
 0x1b1   : > { %v1127_v0 = vpop.trf.xlu0 }
 0x1b2   : > { %1423 = vxpose.xlu2.b32.start.end [1/1] (short) (narrow) %v1095_v58, 8  ;;  %1455 = vxpose.xlu0.b32.start.end [1/1] (short) (narrow) %v1155_v62, 8  ;;  %v1157_v2 = vrot.slane %v1127_v0, 4 }
 0x1b4   : > { %1487 = vxpose.xlu1.b32.start.end [1/1] (short) (narrow) %v1096_v63, 8 }
 0x1b9   : > { %v1128_v3 = vpop.trf.xlu0 }
 0x1ba   : > { %1519 = vxpose.xlu2.b32.start.end [1/1] (short) (narrow) %v1156_v1, 8  ;;  %1551 = vxpose.xlu0.b32.start.end [1/1] (short) (narrow) %v1127_v0, 8  ;;  %v1158_v4 = vrot.slane %v1128_v3, 4  ;;  %v27959_v0 = vld [vmem:[%s28325_s15 + $0x90] sm:$0xff] }
 0x1bb   : > { %v2701_v1 = vrot.slane %v27959_v0, 4 }
 0x1bc   : > { %1583 = vxpose.xlu1.b32.start.end [1/1] (short) (narrow) %v1157_v2, 8  ;;  %v27960_v2 = vld [vmem:[%s28325_s15 + $0x98] sm:$0xff] }
 0x1c2   : > { %1647 = vxpose.xlu0.b32.start.end [1/1] (short) (narrow) %v1158_v4, 8  ;;  %1615 = vxpose.xlu2.b32.start.end [1/1] (short) (narrow) %v1128_v3, 8  ;;  %v2702_v3 = vrot.slane %v27960_v2, 4 }
 0x1c4   : > { %1860 = vxpose.xlu1.b32.start.end [1/1] (short) (narrow) %v27957_v5, 16 }
 0x1ca   : > { %1892 = vxpose.xlu0.b32.start.end [1/1] (short) (narrow) %v1856_v6, 16  ;;  %1924 = vxpose.xlu2.b32.start.end [1/1] (short) (narrow) %v27958_v7, 16 }
 0x1da   : > { %1956 = vxpose.xlu0.b32.start.end [1/1] (short) (narrow) %v1857_v8, 16 }
 0x231   : > { %v28375_v9 = vpop.trf.xlu2 }
 0x23b   : > { %v28377_v10 = vpop.trf.xlu2 }
 0x23e   : > { %v28379_v11 = vpop.trf.xlu1 }
 0x243   : > { %v28381_v12 = vpop.trf.xlu2 }
 0x244   : > { %v28383_v13 = vpop.trf.xlu0 }
 0x246   : > { %v28385_v14 = vpop.trf.xlu1 }
 0x24b   : > { %v1439_v15 = vpop.trf.xlu2 }
 0x24e   : > { %v28387_v16 = vpop.trf.xlu0 }
 0x250   : > { %v28389_v17 = vpop.trf.xlu1 }
 0x253   : > { %v1535_v18 = vpop.trf.xlu2 }
 0x254   : > { %v1741_v19 = vrot.slane %v1535_v18, 4 }
 0x256   : > { %v1471_v20 = vpop.trf.xlu0 }
 0x257   : > { %v1742_v21 = vsel %vm831_vm0, %v1741_v19, %v1471_v20 }
 0x258   : > { %v28393_v22 = vperm.slane %v1742_v21, %v28351_v41  ;;  %v1503_v23 = vpop.trf.xlu1 }
 0x259   : > { %v1735_v24 = vrot.slane %v1503_v23, 4 }
 0x25a   : > { %v1747_v25 = vrot.slane %v28393_v22, 4 }
 0x25b   : > { %v1736_v30 = vsel %vm831_vm0, %v1735_v24, %v1439_v15  ;;  %v28410_v43 = vpop.trf.xlu2 }
 0x25c   : > { %v28398_v34 = vperm.slane %v1736_v30, %v28351_v41 }
 0x25e   : > { %v28400_v35 = vpop.trf.xlu0  ;;  %v28404_v36 = vsel %vm831_vm0, %v1747_v25, %v28398_v34 }
 0x25f   : > { %34418 = vst [vmem:[#allocation9_spill] sm:$0xff] %v28404_v36 }
 0x260   : > { %v28406_v38 = vpop.trf.xlu1 }
 0x263   : > { %v1940_v53 = vpop.trf.xlu2 }
 0x264   : > { %v2000_v57 = vrot.slane %v1940_v53, 4 }
 0x266   : > { %v28408_v39 = vpop.trf.xlu0 }
 0x268   : > { %v1876_v40 = vpop.trf.xlu1 }
 0x269   : > { %2012 = vxpose.xlu2.b32.start.end [1/1] (short) (narrow) %v1876_v40, 8  ;;  %v1996_v42 = vrot.slane %v1876_v40, 4 }
 0x26b   : > { %2044 = vxpose.xlu1.b32.start.end [1/1] (short) (narrow) %v1996_v42, 8  ;;  %v1941_v58 = vpop.trf.xlu2 }
 0x26c   : > { %v2001_v61 = vrot.slane %v1941_v58, 4 }
 0x26e   : > { %v1908_v47 = vpop.trf.xlu0 }
 0x26f   : > { %v1998_v56 = vrot.slane %v1908_v47, 4 }
 0x270   : > { %v1877_v48 = vpop.trf.xlu1 }
 0x271   : > { %2076 = vxpose.xlu0.b32.start.end [1/1] (short) (narrow) %v1877_v48, 8  ;;  %v1997_v49 = vrot.slane %v1877_v48, 4 }
 0x273   : > { %2108 = vxpose.xlu2.b32.start.end [1/1] (short) (narrow) %v1997_v49, 8  ;;  %2140 = vxpose.xlu1.b32.start.end [1/1] (short) (narrow) %v1908_v47, 8 }
 0x276   : > { %v1909_v52 = vpop.trf.xlu0 }
 0x277   : > { %v1999_v55 = vrot.slane %v1909_v52, 4 }
 0x279   : > { %2204 = vxpose.xlu0.b32.start.end [1/1] (short) (narrow) %v1909_v52, 8 }
 0x27b   : > { %2172 = vxpose.xlu2.b32.start.end [1/1] (short) (narrow) %v1998_v56, 8  ;;  %2236 = vxpose.xlu1.b32.start.end [1/1] (short) (narrow) %v1999_v55, 8 }
 0x27e   : > { %v1972_v59 = vpop.trf.xlu0 }
 0x27f   : > { %v2002_v60 = vrot.slane %v1972_v59, 4 }
 0x281   : > { %2300 = vxpose.xlu0.b32.start.end [1/1] (short) (narrow) %v2000_v57, 8 }
 0x283   : > { %2268 = vxpose.xlu2.b32.start.end [1/1] (short) (narrow) %v1940_v53, 8  ;;  %2332 = vxpose.xlu1.b32.start.end [1/1] (short) (narrow) %v1941_v58, 8 }
 0x286   : > { %v1973_v62 = vpop.trf.xlu0 }
 0x287   : > { %v2003_v63 = vrot.slane %v1973_v62, 4 }
 0x289   : > { %2396 = vxpose.xlu0.b32.start.end [1/1] (short) (narrow) %v1972_v59, 8 }
 0x28b   : > { %2364 = vxpose.xlu2.b32.start.end [1/1] (short) (narrow) %v2001_v61, 8  ;;  %2428 = vxpose.xlu1.b32.start.end [1/1] (short) (narrow) %v2002_v60, 8 }
 0x291   : > { %2492 = vxpose.xlu0.b32.start.end [1/1] (short) (narrow) %v2003_v63, 8 }
 0x293   : > { %2705 = vxpose.xlu1.b32.start.end [1/1] (short) (narrow) %v27959_v0, 16  ;;  %2460 = vxpose.xlu2.b32.start.end [1/1] (short) (narrow) %v1973_v62, 8 }
 0x299   : > { %2737 = vxpose.xlu0.b32.start.end [1/1] (short) (narrow) %v2701_v1, 16 }
 0x29b   : > { %2769 = vxpose.xlu2.b32.start.end [1/1] (short) (narrow) %v27960_v2, 16 }
 0x2a9   : > { %2801 = vxpose.xlu0.b32.start.end [1/1] (short) (narrow) %v2702_v3, 16 }
 0x302   : > { %v28414_v4 = vpop.trf.xlu2 }
 0x30c   : > { %v28416_v5 = vpop.trf.xlu2 }
 0x30f   : > { %v28418_v6 = vpop.trf.xlu1 }
 0x314   : > { %v28420_v7 = vpop.trf.xlu2 }
 0x315   : > { %v28422_v8 = vpop.trf.xlu0 }
 0x317   : > { %v28424_v15 = vpop.trf.xlu1 }
 0x31c   : > { %v2284_v18 = vpop.trf.xlu2 }
 0x31d   : > { %v28426_v19 = vpop.trf.xlu0 }
 0x31f   : > { %v28428_v20 = vpop.trf.xlu1 }
 0x324   : > { %v2380_v21 = vpop.trf.xlu2 }
 0x325   : > { %v2586_v23 = vrot.slane %v2380_v21, 4  ;;  %v2316_v24 = vpop.trf.xlu0 }
 0x327   : > { %v2587_v25 = vsel %vm831_vm0, %v2586_v23, %v2316_v24  ;;  %v2348_v30 = vpop.trf.xlu1 }
 0x328   : > { %v28432_v40 = vperm.slane %v2587_v25, %v28351_v41  ;;  %v2580_v42 = vrot.slane %v2348_v30, 4 }
 0x32a   : > { %v2592_v47 = vrot.slane %v28432_v40, 4  ;;  %v2581_v48 = vsel %vm831_vm0, %v2580_v42, %v2284_v18  ;;  %v27961_v42 = vld [vmem:[%s28325_s15 + $0x100] sm:$0xff] }
 0x32b   : > { %v28437_v49 = vperm.slane %v2581_v48, %v28351_v41  ;;  %v27962_v48 = vld [vmem:[%s28325_s15 + $0x108] sm:$0xff] }
 0x32c   : > { %v28449_v59 = vpop.trf.xlu2 }
 0x32d   : > { %v28439_v52 = vpop.trf.xlu0  ;;  %v28443_v53 = vsel %vm831_vm0, %v2592_v47, %v28437_v49  ;;  %v3546_v47 = vrot.slane %v27961_v42, 4 }
 0x32e   : > { %34419 = vst [vmem:[#allocation10_spill] sm:$0xff] %v28443_v53 }
 0x32f   : > { %v28445_v55 = vpop.trf.xlu1 }
 0x334   : > { %v2785_v0 = vpop.trf.xlu2 }
 0x335   : > { %v28447_v56 = vpop.trf.xlu0  ;;  %v2845_v3 = vrot.slane %v2785_v0, 4 }
 0x337   : > { %v2721_v57 = vpop.trf.xlu1 }
 0x338   : > { %2857 = vxpose.xlu2.b32.start.end [1/1] (short) (narrow) %v2721_v57, 8  ;;  %v2841_v58 = vrot.slane %v2721_v57, 4  ;;  %v3547_v57 = vrot.slane %v27962_v48, 4 }
 0x33a   : > { %2889 = vxpose.xlu1.b32.start.end [1/1] (short) (narrow) %v2841_v58, 8 }
 0x33c   : > { %v2786_v18 = vpop.trf.xlu2 }
 0x33d   : > { %v2753_v60 = vpop.trf.xlu0  ;;  %v2846_v24 = vrot.slane %v2786_v18, 4 }
 0x33e   : > { %v2843_v2 = vrot.slane %v2753_v60, 4 }
 0x33f   : > { %v2722_v61 = vpop.trf.xlu1 }
 0x340   : > { %2921 = vxpose.xlu0.b32.start.end [1/1] (short) (narrow) %v2722_v61, 8  ;;  %v2842_v62 = vrot.slane %v2722_v61, 4 }
 0x342   : > { %2953 = vxpose.xlu2.b32.start.end [1/1] (short) (narrow) %v2842_v62, 8  ;;  %2985 = vxpose.xlu1.b32.start.end [1/1] (short) (narrow) %v2753_v60, 8 }
 0x345   : > { %v2754_v63 = vpop.trf.xlu0 }
 0x346   : > { %v2844_v1 = vrot.slane %v2754_v63, 4 }
 0x348   : > { %3049 = vxpose.xlu0.b32.start.end [1/1] (short) (narrow) %v2754_v63, 8 }
 0x34a   : > { %3017 = vxpose.xlu2.b32.start.end [1/1] (short) (narrow) %v2843_v2, 8  ;;  %3081 = vxpose.xlu1.b32.start.end [1/1] (short) (narrow) %v2844_v1, 8 }
 0x34d   : > { %v2817_v21 = vpop.trf.xlu0 }
 0x34e   : > { %v2847_v23 = vrot.slane %v2817_v21, 4 }
 0x350   : > { %3145 = vxpose.xlu0.b32.start.end [1/1] (short) (narrow) %v2845_v3, 8 }
 0x352   : > { %3113 = vxpose.xlu2.b32.start.end [1/1] (short) (narrow) %v2785_v0, 8  ;;  %3177 = vxpose.xlu1.b32.start.end [1/1] (short) (narrow) %v2786_v18, 8 }
 0x355   : > { %v2818_v25 = vpop.trf.xlu0 }
 0x356   : > { %v2848_v30 = vrot.slane %v2818_v25, 4 }
 0x358   : > { %3241 = vxpose.xlu0.b32.start.end [1/1] (short) (narrow) %v2817_v21, 8 }
 0x35a   : > { %3209 = vxpose.xlu2.b32.start.end [1/1] (short) (narrow) %v2846_v24, 8  ;;  %3273 = vxpose.xlu1.b32.start.end [1/1] (short) (narrow) %v2847_v23, 8 }
 0x360   : > { %3337 = vxpose.xlu0.b32.start.end [1/1] (short) (narrow) %v2848_v30, 8 }
 0x362   : > { %3550 = vxpose.xlu1.b32.start.end [1/1] (short) (narrow) %v27961_v42, 16  ;;  %3305 = vxpose.xlu2.b32.start.end [1/1] (short) (narrow) %v2818_v25, 8 }
 0x368   : > { %3582 = vxpose.xlu0.b32.start.end [1/1] (short) (narrow) %v3546_v47, 16 }
 0x36a   : > { %3614 = vxpose.xlu2.b32.start.end [1/1] (short) (narrow) %v27962_v48, 16 }
 0x378   : > { %3646 = vxpose.xlu0.b32.start.end [1/1] (short) (narrow) %v3547_v57, 16 }
 0x3d1   : > { %v28453_v58 = vpop.trf.xlu2 }
 0x3db   : > { %v28455_v60 = vpop.trf.xlu2 }
 0x3de   : > { %v28457_v61 = vpop.trf.xlu1 }
 0x3e3   : > { %v28459_v62 = vpop.trf.xlu2 }
 0x3e4   : > { %v28461_v63 = vpop.trf.xlu0 }
 0x3e6   : > { %v28463_v0 = vpop.trf.xlu1 }
 0x3eb   : > { %v3129_v1 = vpop.trf.xlu2 }
 0x3ec   : > { %v28465_v2 = vpop.trf.xlu0 }
 0x3ee   : > { %v28467_v3 = vpop.trf.xlu1 }
 0x3f3   : > { %v3225_v18 = vpop.trf.xlu2 }
 0x3f4   : > { %v3431_v21 = vrot.slane %v3225_v18, 4  ;;  %v3161_v23 = vpop.trf.xlu0 }
 0x3f6   : > { %v3432_v24 = vsel %vm831_vm0, %v3431_v21, %v3161_v23  ;;  %v3193_v25 = vpop.trf.xlu1 }
 0x3f7   : > { %v28471_v30 = vperm.slane %v3432_v24, %v28351_v41  ;;  %v3425_v42 = vrot.slane %v3193_v25, 4 }
 0x3f9   : > { %34420 = vst [vmem:[#allocation11_spill] sm:$0xff] %v28471_v30  ;;  %v3437_v47 = vrot.slane %v28471_v30, 4  ;;  %v3426_v48 = vsel %vm831_vm0, %v3425_v42, %v3129_v1 }
 0x3fa   : > { %v28476_v57 = vperm.slane %v3426_v48, %v28351_v41 }
 0x3fb   : > { %v28488_v25 = vpop.trf.xlu2 }
 0x3fc   : > { %34421 = vst [vmem:[#allocation12_spill] sm:$0xff] %v28476_v57  ;;  %v28478_v53 = vpop.trf.xlu0  ;;  %v28482_v18 = vsel %vm831_vm0, %v3437_v47, %v28476_v57 }
 0x3fd   : > { %34422 = vst [vmem:[#allocation13_spill] sm:$0xff] %v28478_v53 }
 0x3fe   : > { %34423 = vst [vmem:[#allocation14_spill] sm:$0xff] %v28482_v18  ;;  %v28484_v36 = vpop.trf.xlu1 }
 0x3ff   : > { %34424 = vst [vmem:[#allocation15_spill] sm:$0xff] %v28484_v36  ;;  %v27963_v36 = vld [vmem:[%s28325_s15 + $0x110] sm:$0xff] }
 0x400   : > { %34425 = vst [vmem:[#allocation16_spill] sm:$0xff] %v28488_v25 }
 0x403   : > { %v3630_v30 = vpop.trf.xlu2 }
 0x404   : > { %v28486_v21 = vpop.trf.xlu0  ;;  %v3690_v57 = vrot.slane %v3630_v30, 4 }
 0x406   : > { %v3566_v23 = vpop.trf.xlu1 }
 0x407   : > { %3702 = vxpose.xlu2.b32.start.end [1/1] (short) (narrow) %v3566_v23, 8  ;;  %v3686_v24 = vrot.slane %v3566_v23, 4 }
 0x409   : > { %3734 = vxpose.xlu1.b32.start.end [1/1] (short) (narrow) %v3686_v24, 8 }
 0x40b   : > { %v3631_v53 = vpop.trf.xlu2 }
 0x40c   : > { %v3598_v1 = vpop.trf.xlu0 }
 0x40d   : > { %v3688_v18 = vrot.slane %v3598_v1, 4 }
 0x40e   : > { %v3567_v42 = vpop.trf.xlu1 }
 0x40f   : > { %3766 = vxpose.xlu0.b32.start.end [1/1] (short) (narrow) %v3567_v42, 8  ;;  %v3687_v48 = vrot.slane %v3567_v42, 4  ;;  %v3691_v42 = vrot.slane %v3631_v53, 4 }
 0x411   : > { %3798 = vxpose.xlu2.b32.start.end [1/1] (short) (narrow) %v3687_v48, 8  ;;  %3830 = vxpose.xlu1.b32.start.end [1/1] (short) (narrow) %v3598_v1, 8 }
 0x414   : > { %v3599_v51 = vpop.trf.xlu0 }
 0x415   : > { %v3689_v47 = vrot.slane %v3599_v51, 4 }
 0x417   : > { %3894 = vxpose.xlu0.b32.start.end [1/1] (short) (narrow) %v3599_v51, 8  ;;  %v27964_v51 = vld [vmem:[%s28325_s15 + $0x118] sm:$0xff] }
 0x418   : > { %v4392_v1 = vrot.slane %v27964_v51, 4 }
 0x419   : > { %3862 = vxpose.xlu2.b32.start.end [1/1] (short) (narrow) %v3688_v18, 8  ;;  %3926 = vxpose.xlu1.b32.start.end [1/1] (short) (narrow) %v3689_v47, 8  ;;  %v4391_v18 = vrot.slane %v27963_v36, 4 }
 0x41c   : > { %v3662_v23 = vpop.trf.xlu0 }
 0x41d   : > { %v3692_v24 = vrot.slane %v3662_v23, 4 }
 0x41f   : > { %3990 = vxpose.xlu0.b32.start.end [1/1] (short) (narrow) %v3690_v57, 8 }
 0x421   : > { %3958 = vxpose.xlu2.b32.start.end [1/1] (short) (narrow) %v3630_v30, 8  ;;  %4022 = vxpose.xlu1.b32.start.end [1/1] (short) (narrow) %v3631_v53, 8 }
 0x424   : > { %v3663_v48 = vpop.trf.xlu0 }
 0x425   : > { %v3693_v25 = vrot.slane %v3663_v48, 4 }
 0x427   : > { %4086 = vxpose.xlu0.b32.start.end [1/1] (short) (narrow) %v3662_v23, 8 }
 0x429   : > { %4054 = vxpose.xlu2.b32.start.end [1/1] (short) (narrow) %v3691_v42, 8  ;;  %4118 = vxpose.xlu1.b32.start.end [1/1] (short) (narrow) %v3692_v24, 8 }
 0x42f   : > { %4182 = vxpose.xlu0.b32.start.end [1/1] (short) (narrow) %v3693_v25, 8 }
 0x431   : > { %4395 = vxpose.xlu1.b32.start.end [1/1] (short) (narrow) %v27963_v36, 16  ;;  %4150 = vxpose.xlu2.b32.start.end [1/1] (short) (narrow) %v3663_v48, 8 }
 0x437   : > { %4459 = vxpose.xlu0.b32.start.end [1/1] (short) (narrow) %v27964_v51, 16 }
 0x439   : > { %4427 = vxpose.xlu2.b32.start.end [1/1] (short) (narrow) %v4391_v18, 16 }
 0x447   : > { %4491 = vxpose.xlu0.b32.start.end [1/1] (short) (narrow) %v4392_v1, 16 }
 0x4a0   : > { %v28492_v57 = vpop.trf.xlu2 }
 0x4a1   : > { %34426 = vst [vmem:[#allocation17_spill] sm:$0xff] %v28492_v57 }
 0x4aa   : > { %v28494_v30 = vpop.trf.xlu2 }
 0x4ab   : > { %34427 = vst [vmem:[#allocation18_spill] sm:$0xff] %v28494_v30 }
 0x4ad   : > { %v28496_v47 = vpop.trf.xlu1 }
 0x4ae   : > { %34428 = vst [vmem:[#allocation19_spill] sm:$0xff] %v28496_v47 }
 0x4b2   : > { %v28498_v53 = vpop.trf.xlu2 }
 0x4b3   : > { %34429 = vst [vmem:[#allocation20_spill] sm:$0xff] %v28498_v53  ;;  %v28500_v23 = vpop.trf.xlu0 }
 0x4b4   : > { %34430 = vst [vmem:[#allocation21_spill] sm:$0xff] %v28500_v23 }
 0x4b5   : > { %v28502_v24 = vpop.trf.xlu1 }
 0x4b6   : > { %34431 = vst [vmem:[#allocation22_spill] sm:$0xff] %v28502_v24 }
 0x4ba   : > { %v3974_v25 = vpop.trf.xlu2 }
 0x4bb   : > { %v28504_v42 = vpop.trf.xlu0 }
 0x4bc   : > { %34432 = vst [vmem:[#allocation23_spill] sm:$0xff] %v28504_v42 }
 0x4bd   : > { %v28506_v36 = vpop.trf.xlu1 }
 0x4be   : > { %34433 = vst [vmem:[#allocation24_spill] sm:$0xff] %v28506_v36 }
 0x4c2   : > { %v4070_v48 = vpop.trf.xlu2 }
 0x4c3   : > { %v4276_v51 = vrot.slane %v4070_v48, 4  ;;  %v4006_v18 = vpop.trf.xlu0 }
 0x4c5   : > { %v4277_v1 = vsel %vm831_vm0, %v4276_v51, %v4006_v18  ;;  %v4038_v57 = vpop.trf.xlu1 }
 0x4c6   : > { %v28510_v30 = vperm.slane %v4277_v1, %v28351_v41  ;;  %v4270_v47 = vrot.slane %v4038_v57, 4 }
 0x4c8   : > { %34434 = vst [vmem:[#allocation25_spill] sm:$0xff] %v28510_v30  ;;  %v4282_v53 = vrot.slane %v28510_v30, 4  ;;  %v4271_v23 = vsel %vm831_vm0, %v4270_v47, %v3974_v25 }
 0x4c9   : > { %v28515_v24 = vperm.slane %v4271_v23, %v28351_v41 }
 0x4ca   : > { %v28525_v51 = vpop.trf.xlu2 }
 0x4cb   : > { %34435 = vst [vmem:[#allocation26_spill] sm:$0xff] %v28515_v24  ;;  %v28517_v42 = vpop.trf.xlu0  ;;  %v28521_v48 = vsel %vm831_vm0, %v4282_v53, %v28515_v24 }
 0x4cc   : > { %34436 = vst [vmem:[#allocation27_spill] sm:$0xff] %v28517_v42 }
 0x4cd   : > { %34437 = vst [vmem:[#allocation28_spill] sm:$0xff] %v28521_v48  ;;  %v28523_v36 = vpop.trf.xlu1 }
 0x4ce   : > { %34438 = vst [vmem:[#allocation29_spill] sm:$0xff] %v28523_v36 }
 0x4cf   : > { %34439 = vst [vmem:[#allocation30_spill] sm:$0xff] %v28525_v51 }
 0x4d2   : > { %v4443_v30 = vpop.trf.xlu2 }
 0x4d3   : > { %v28527_v18 = vpop.trf.xlu0  ;;  %v4533_v24 = vrot.slane %v4443_v30, 4 }
 0x4d4   : > { %34440 = vst [vmem:[#allocation31_spill] sm:$0xff] %v28527_v18  ;;  %v27966_v18 = vld [vmem:[%s28325_s15 + $0x188] sm:$0xff] }
 0x4d5   : > { %v4411_v57 = vpop.trf.xlu1 }
 0x4d6   : > { %4547 = vxpose.xlu2.b32.start.end [1/1] (short) (narrow) %v4411_v57, 8  ;;  %v4531_v1 = vrot.slane %v4411_v57, 4 }
 0x4d8   : > { %4579 = vxpose.xlu1.b32.start.end [1/1] (short) (narrow) %v4531_v1, 8 }
 0x4da   : > { %v4444_v42 = vpop.trf.xlu2 }
 0x4db   : > { %v4475_v47 = vpop.trf.xlu0  ;;  %v4534_v48 = vrot.slane %v4444_v42, 4 }
 0x4dc   : > { %v4535_v51 = vrot.slane %v4475_v47, 4 }
 0x4dd   : > { %v4412_v23 = vpop.trf.xlu1 }
 0x4de   : > { %4611 = vxpose.xlu0.b32.start.end [1/1] (short) (narrow) %v4412_v23, 8  ;;  %v4532_v25 = vrot.slane %v4412_v23, 4 }
 0x4e0   : > { %4643 = vxpose.xlu2.b32.start.end [1/1] (short) (narrow) %v4532_v25, 8  ;;  %4675 = vxpose.xlu1.b32.start.end [1/1] (short) (narrow) %v4443_v30, 8  ;;  %v27965_v30 = vld [vmem:[%s28325_s15 + $0x180] sm:$0xff] }
 0x4e3   : > { %v4476_v53 = vpop.trf.xlu0 }
 0x4e4   : > { %v4536_v57 = vrot.slane %v4476_v53, 4 }
 0x4e6   : > { %4739 = vxpose.xlu0.b32.start.end [1/1] (short) (narrow) %v4444_v42, 8  ;;  %v5237_v42 = vrot.slane %v27966_v18, 4 }
 0x4e8   : > { %4707 = vxpose.xlu2.b32.start.end [1/1] (short) (narrow) %v4533_v24, 8  ;;  %4771 = vxpose.xlu1.b32.start.end [1/1] (short) (narrow) %v4534_v48, 8  ;;  %v5236_v24 = vrot.slane %v27965_v30, 4 }
 0x4eb   : > { %v4507_v36 = vpop.trf.xlu0 }
 0x4ec   : > { %v4537_v1 = vrot.slane %v4507_v36, 4 }
 0x4ee   : > { %4835 = vxpose.xlu0.b32.start.end [1/1] (short) (narrow) %v4535_v51, 8 }
 0x4f0   : > { %4803 = vxpose.xlu2.b32.start.end [1/1] (short) (narrow) %v4475_v47, 8  ;;  %4867 = vxpose.xlu1.b32.start.end [1/1] (short) (narrow) %v4476_v53, 8 }
 0x4f3   : > { %v4508_v23 = vpop.trf.xlu0 }
 0x4f4   : > { %v4538_v25 = vrot.slane %v4508_v23, 4 }
 0x4f6   : > { %4931 = vxpose.xlu0.b32.start.end [1/1] (short) (narrow) %v4507_v36, 8 }
 0x4f8   : > { %4899 = vxpose.xlu2.b32.start.end [1/1] (short) (narrow) %v4536_v57, 8  ;;  %4963 = vxpose.xlu1.b32.start.end [1/1] (short) (narrow) %v4537_v1, 8 }
 0x4fe   : > { %5027 = vxpose.xlu0.b32.start.end [1/1] (short) (narrow) %v4538_v25, 8 }
 0x500   : > { %4995 = vxpose.xlu2.b32.start.end [1/1] (short) (narrow) %v4508_v23, 8  ;;  %5304 = vxpose.xlu1.b32.start.end [1/1] (short) (narrow) %v27966_v18, 16 }
 0x506   : > { %5240 = vxpose.xlu0.b32.start.end [1/1] (short) (narrow) %v27965_v30, 16 }
 0x508   : > { %5272 = vxpose.xlu2.b32.start.end [1/1] (short) (narrow) %v5236_v24, 16 }
 0x516   : > { %5336 = vxpose.xlu0.b32.start.end [1/1] (short) (narrow) %v5237_v42, 16 }
 0x56f   : > { %v28531_v48 = vpop.trf.xlu2 }
 0x570   : > { %34441 = vst [vmem:[#allocation32_spill] sm:$0xff] %v28531_v48 }
 0x579   : > { %v28533_v51 = vpop.trf.xlu2 }
 0x57a   : > { %34442 = vst [vmem:[#allocation33_spill] sm:$0xff] %v28533_v51 }
 0x57c   : > { %v28535_v47 = vpop.trf.xlu1 }
 0x57d   : > { %34443 = vst [vmem:[#allocation34_spill] sm:$0xff] %v28535_v47 }
 0x581   : > { %v28537_v36 = vpop.trf.xlu2 }
 0x582   : > { %34444 = vst [vmem:[#allocation35_spill] sm:$0xff] %v28537_v36  ;;  %v28539_v53 = vpop.trf.xlu0 }
 0x583   : > { %34445 = vst [vmem:[#allocation36_spill] sm:$0xff] %v28539_v53 }
 0x584   : > { %v28541_v57 = vpop.trf.xlu1 }
 0x585   : > { %34446 = vst [vmem:[#allocation37_spill] sm:$0xff] %v28541_v57 }
 0x589   : > { %v4819_v1 = vpop.trf.xlu2 }
 0x58a   : > { %v28543_v23 = vpop.trf.xlu0 }
 0x58b   : > { %34447 = vst [vmem:[#allocation38_spill] sm:$0xff] %v28543_v23 }
 0x58c   : > { %v28545_v25 = vpop.trf.xlu1 }
 0x58d   : > { %34448 = vst [vmem:[#allocation39_spill] sm:$0xff] %v28545_v25 }
 0x591   : > { %v4915_v30 = vpop.trf.xlu2 }
 0x592   : > { %v5121_v18 = vrot.slane %v4915_v30, 4  ;;  %v4851_v24 = vpop.trf.xlu0 }
 0x594   : > { %v5122_v42 = vsel %vm831_vm0, %v5121_v18, %v4851_v24  ;;  %v4883_v48 = vpop.trf.xlu1 }
 0x595   : > { %v28549_v51 = vperm.slane %v5122_v42, %v28351_v41  ;;  %v5115_v47 = vrot.slane %v4883_v48, 4 }
 0x597   : > { %34449 = vst [vmem:[#allocation40_spill] sm:$0xff] %v28549_v51  ;;  %v5127_v36 = vrot.slane %v28549_v51, 4  ;;  %v5116_v53 = vsel %vm831_vm0, %v5115_v47, %v4819_v1 }
 0x598   : > { %v28554_v57 = vperm.slane %v5116_v53, %v28351_v41 }
 0x599   : > { %v28562_v25 = vpop.trf.xlu2 }
 0x59a   : > { %34450 = vst [vmem:[#allocation41_spill] sm:$0xff] %v28554_v57  ;;  %v28556_v23 = vpop.trf.xlu0  ;;  %v28560_v30 = vsel %vm831_vm0, %v5127_v36, %v28554_v57 }
 0x59b   : > { %34451 = vst [vmem:[#allocation42_spill] sm:$0xff] %v28556_v23 }
 0x59c   : > { %34452 = vst [vmem:[#allocation43_spill] sm:$0xff] %v28560_v30  ;;  %v28566_v51 = vpop.trf.xlu1 }
 0x59d   : > { %34453 = vst [vmem:[#allocation44_spill] sm:$0xff] %v28562_v25 }
 0x59e   : > { %34455 = vst [vmem:[#allocation46_spill] sm:$0xff] %v28566_v51 }
 0x5a1   : > { %v5288_v42 = vpop.trf.xlu2 }
 0x5a2   : > { %v28564_v18 = vpop.trf.xlu0  ;;  %v5378_v30 = vrot.slane %v5288_v42, 4 }
 0x5a3   : > { %34454 = vst [vmem:[#allocation45_spill] sm:$0xff] %v28564_v18 }
 0x5a4   : > { %v5320_v23 = vpop.trf.xlu1 }
 0x5a5   : > { %v5380_v25 = vrot.slane %v5320_v23, 4 }
 0x5a9   : > { %v5289_v1 = vpop.trf.xlu2 }
 0x5aa   : > { %v5256_v24 = vpop.trf.xlu0  ;;  %v5379_v36 = vrot.slane %v5289_v1, 4 }
 0x5ab   : > { %v5376_v48 = vrot.slane %v5256_v24, 4  ;;  %5392 = vxpose.xlu2.b32.start.end [1/1] (short) (narrow) %v5256_v24, 8 }
 0x5ac   : > { %v5321_v57 = vpop.trf.xlu1 }
 0x5ad   : > { %5424 = vxpose.xlu0.b32.start.end [1/1] (short) (narrow) %v5376_v48, 8  ;;  %v5381_v51 = vrot.slane %v5321_v57, 4 }
 0x5b2   : > { %v5257_v47 = vpop.trf.xlu0 }
 0x5b3   : > { %v5377_v53 = vrot.slane %v5257_v47, 4  ;;  %5456 = vxpose.xlu1.b32.start.end [1/1] (short) (narrow) %v5257_v47, 8 }
 0x5b5   : > { %5520 = vxpose.xlu0.b32.start.end [1/1] (short) (narrow) %v5288_v42, 8  ;;  %5488 = vxpose.xlu2.b32.start.end [1/1] (short) (narrow) %v5377_v53, 8  ;;  %v27968_v53 = vld [vmem:[%s28325_s15 + $0x198] sm:$0xff]  ;;  %v27967_v42 = vld [vmem:[%s28325_s15 + $0x190] sm:$0xff] }
 0x5ba   : > { %v5352_v24 = vpop.trf.xlu0 }
 0x5bb   : > { %5616 = vxpose.xlu1.b32.start.end [1/1] (short) (narrow) %v5379_v36, 8  ;;  %v5382_v48 = vrot.slane %v5352_v24, 4 }
 0x5bd   : > { %5584 = vxpose.xlu0.b32.start.end [1/1] (short) (narrow) %v5289_v1, 8  ;;  %5552 = vxpose.xlu2.b32.start.end [1/1] (short) (narrow) %v5378_v30, 8  ;;  %v6081_v30 = vrot.slane %v27967_v42, 4  ;;  %v6082_v1 = vrot.slane %v27968_v53, 4 }
 0x5c2   : > { %v5353_v47 = vpop.trf.xlu0 }
 0x5c3   : > { %5712 = vxpose.xlu1.b32.start.end [1/1] (short) (narrow) %v5321_v57, 8  ;;  %v5383_v18 = vrot.slane %v5353_v47, 4 }
 0x5c5   : > { %5680 = vxpose.xlu0.b32.start.end [1/1] (short) (narrow) %v5380_v25, 8  ;;  %5648 = vxpose.xlu2.b32.start.end [1/1] (short) (narrow) %v5320_v23, 8 }
 0x5cb   : > { %5808 = vxpose.xlu1.b32.start.end [1/1] (short) (narrow) %v5382_v48, 8 }
 0x5cd   : > { %5744 = vxpose.xlu2.b32.start.end [1/1] (short) (narrow) %v5381_v51, 8  ;;  %5776 = vxpose.xlu0.b32.start.end [1/1] (short) (narrow) %v5352_v24, 8 }
 0x5d3   : > { %6149 = vxpose.xlu1.b32.start.end [1/1] (short) (narrow) %v27968_v53, 16 }
 0x5d5   : > { %5872 = vxpose.xlu0.b32.start.end [1/1] (short) (narrow) %v5383_v18, 8  ;;  %5840 = vxpose.xlu2.b32.start.end [1/1] (short) (narrow) %v5353_v47, 8 }
 0x5dd   : > { %6085 = vxpose.xlu0.b32.start.end [1/1] (short) (narrow) %v27967_v42, 16  ;;  %6117 = vxpose.xlu2.b32.start.end [1/1] (short) (narrow) %v6081_v30, 16 }
 0x5ed   : > { %6181 = vxpose.xlu0.b32.start.end [1/1] (short) (narrow) %v6082_v1, 16 }
 0x644   : > { %v28570_v36 = vpop.trf.xlu2 }
 0x645   : > { %34456 = vst [vmem:[#allocation47_spill] sm:$0xff] %v28570_v36 }
 0x64e   : > { %v28572_v23 = vpop.trf.xlu2 }
 0x64f   : > { %34457 = vst [vmem:[#allocation48_spill] sm:$0xff] %v28572_v23 }
 0x651   : > { %v28574_v57 = vpop.trf.xlu0 }
 0x652   : > { %34458 = vst [vmem:[#allocation49_spill] sm:$0xff] %v28574_v57 }
 0x656   : > { %v28576_v51 = vpop.trf.xlu2 }
 0x657   : > { %34459 = vst [vmem:[#allocation50_spill] sm:$0xff] %v28576_v51  ;;  %v28578_v25 = vpop.trf.xlu1 }
 0x658   : > { %34460 = vst [vmem:[#allocation51_spill] sm:$0xff] %v28578_v25 }
 0x659   : > { %v28580_v24 = vpop.trf.xlu0 }
 0x65a   : > { %34461 = vst [vmem:[#allocation52_spill] sm:$0xff] %v28580_v24 }
 0x65e   : > { %v5664_v18 = vpop.trf.xlu2 }
 0x65f   : > { %v28582_v48 = vpop.trf.xlu1 }
 0x660   : > { %34462 = vst [vmem:[#allocation53_spill] sm:$0xff] %v28582_v48 }
 0x661   : > { %v28584_v47 = vpop.trf.xlu0 }
 0x662   : > { %34463 = vst [vmem:[#allocation54_spill] sm:$0xff] %v28584_v47 }
 0x666   : > { %v5760_v42 = vpop.trf.xlu2 }
 0x667   : > { %v5966_v53 = vrot.slane %v5760_v42, 4  ;;  %v5728_v30 = vpop.trf.xlu1 }
 0x668   : > { %v5960_v1 = vrot.slane %v5728_v30, 4 }
 0x669   : > { %v5696_v36 = vpop.trf.xlu0 }
 0x66a   : > { %v5961_v23 = vsel %vm831_vm0, %v5960_v1, %v5664_v18  ;;  %v5967_v57 = vsel %vm831_vm0, %v5966_v53, %v5696_v36 }
 0x66b   : > { %v28589_v51 = vperm.slane %v5967_v57, %v28351_v41  ;;  %v28592_v25 = vperm.slane %v5961_v23, %v28351_v41 }
 0x66d   : > { %34464 = vst [vmem:[#allocation55_spill] sm:$0xff] %v28589_v51  ;;  %v5972_v24 = vrot.slane %v28589_v51, 4 }
 0x66e   : > { %34465 = vst [vmem:[#allocation56_spill] sm:$0xff] %v28592_v25  ;;  %v28601_v30 = vpop.trf.xlu2 }
 0x66f   : > { %v28597_v47 = vsel %vm831_vm0, %v5972_v24, %v28592_v25  ;;  %34468 = vst [vmem:[#allocation59_spill] sm:$0xff] %v28601_v30  ;;  %v28605_v57 = vpop.trf.xlu1 }
 0x670   : > { %34466 = vst [vmem:[#allocation57_spill] sm:$0xff] %v28597_v47 }
 0x671   : > { %v28599_v42 = vpop.trf.xlu0  ;;  %34470 = vst [vmem:[#allocation61_spill] sm:$0xff] %v28605_v57 }
 0x672   : > { %34467 = vst [vmem:[#allocation58_spill] sm:$0xff] %v28599_v42 }
 0x676   : > { %v6133_v36 = vpop.trf.xlu2 }
 0x677   : > { %v6165_v24 = vpop.trf.xlu1  ;;  %v6223_v25 = vrot.slane %v6133_v36, 4 }
 0x679   : > { %v28603_v48 = vpop.trf.xlu0 }
 0x67a   : > { %34469 = vst [vmem:[#allocation60_spill] sm:$0xff] %v28603_v48  ;;  %v6225_v48 = vrot.slane %v6165_v24, 4 }
 0x67e   : > { %v6134_v51 = vpop.trf.xlu2 }
 0x67f   : > { %v6224_v47 = vrot.slane %v6134_v51, 4  ;;  %v6166_v42 = vpop.trf.xlu1 }
 0x681   : > { %v6101_v18 = vpop.trf.xlu0 }
 0x682   : > { %v6221_v53 = vrot.slane %v6101_v18, 4  ;;  %6237 = vxpose.xlu2.b32.start.end [1/1] (short) (narrow) %v6101_v18, 8 }
 0x684   : > { %6269 = vxpose.xlu0.b32.start.end [1/1] (short) (narrow) %v6221_v53, 8  ;;  %v6226_v53 = vrot.slane %v6166_v42, 4 }
 0x689   : > { %v6102_v23 = vpop.trf.xlu0 }
 0x68a   : > { %v6222_v1 = vrot.slane %v6102_v23, 4  ;;  %6301 = vxpose.xlu1.b32.start.end [1/1] (short) (narrow) %v6102_v23, 8 }
 0x68c   : > { %6365 = vxpose.xlu0.b32.start.end [1/1] (short) (narrow) %v6133_v36, 8  ;;  %6333 = vxpose.xlu2.b32.start.end [1/1] (short) (narrow) %v6222_v1, 8  ;;  %v865_v36 = vrot.slane %v28364_v50, 4  ;;  %v28225_v1 = vmov 1934713408   ;;  %v28618_v50 = vperm.slane %v28371_v54, %v28351_v41 }
 0x691   : > { %v6197_v30 = vpop.trf.xlu0 }
 0x692   : > { %6461 = vxpose.xlu1.b32.start.end [1/1] (short) (narrow) %v6224_v47, 8  ;;  %v6227_v18 = vrot.slane %v6197_v30, 4 }
 0x694   : > { %6429 = vxpose.xlu0.b32.start.end [1/1] (short) (narrow) %v6134_v51, 8  ;;  %6397 = vxpose.xlu2.b32.start.end [1/1] (short) (narrow) %v6223_v25, 8  ;;  %v866_v51 = vsel %vm831_vm0, %v865_v36, %v28343_v31  ;;  %v859_v25 = vrot.slane %v28355_v44, 4  ;;  %v893_v36 = vrot.slane %v28345_v32, 4 }
 0x695   : > { %v870_v47 = vperm.slane %v866_v51, %v28351_v41 }
 0x699   : > { %v6198_v23 = vpop.trf.xlu0 }
 0x69a   : > { %6557 = vxpose.xlu1.b32.start.end [1/1] (short) (narrow) %v6166_v42, 8  ;;  %v6228_v57 = vrot.slane %v6198_v23, 4  ;;  %v871_v42 = vrot.slane %v870_v47, 4 }
 0x69c   : > { %6525 = vxpose.xlu0.b32.start.end [1/1] (short) (narrow) %v6225_v48, 8  ;;  %6493 = vxpose.xlu2.b32.start.end [1/1] (short) (narrow) %v6165_v24, 8  ;;  %v860_v48 = vsel %vm831_vm0, %v859_v25, %v28341_v29  ;;  %v848_v24 = vunpack.c.l.s4 %v28225_v1 }
 0x6a2   : > { %6653 = vxpose.xlu1.b32.start.end [1/1] (short) (narrow) %v6227_v18, 8  ;;  %v915_v18 = vrot.slane %v28349_v37, 4 }
 0x6a4   : > { %6589 = vxpose.xlu2.b32.start.end [1/1] (short) (narrow) %v6226_v53, 8  ;;  %6621 = vxpose.xlu0.b32.start.end [1/1] (short) (narrow) %v6197_v30, 8  ;;  %v864_v30 = vperm.slane %v860_v48, %v28351_v41  ;;  %v916_v44 = vsel %vm831_vm0, %v915_v18, %v28339_v28  ;;  %v927_v53 = vrot.slane %v28618_v50, 4  ;;  %v894_v28 = vsel %vm831_vm0, %v893_v36, %v28335_v26 }
 0x6a5   : > { %v887_v48 = vrot.slane %v28347_v33, 4  ;;  %v898_v1 = vperm.slane %v894_v28, %v28351_v41  ;;  %v1679_v36 = vrot.slane %v28383_v13, 4 }
 0x6a6   : > { %v872_v31 = vsel %vm831_vm0, %v871_v42, %v864_v30 }
 0x6a7   : > { %v888_v32 = vsel %vm831_vm0, %v887_v48, %v28337_v27  ;;  %v899_v18 = vrot.slane %v898_v1, 4 }
 0x6ac   : > { %6685 = vxpose.xlu2.b32.start.end [1/1] (short) (narrow) %v6198_v23, 8  ;;  %6717 = vxpose.xlu0.b32.start.end [1/1] (short) (narrow) %v6228_v57, 8  ;;  %v28621_v57 = vunpack.c.0.s8 %v848_v24  ;;  %v28630_v23 = vperm.slane %v916_v44, %v28351_v41  ;;  %v845_v44 = vrot.slane %v28361_v46, 4 }
 0x6ae   : > { %v28626_v29 = vperm.slane %v872_v31, %v28621_v57  ;;  %v928_v54 = vsel %vm831_vm0, %v927_v53, %v28630_v23  ;;  %v892_v31 = vperm.slane %v888_v32, %v28351_v41  ;;  %v846_v26 = vsel %vm831_vm0, %v28358_v45, %v845_v44 }
 0x6af   : > { %v28638_v25 = vperm.slane %v928_v54, %v28621_v57  ;;  %v854_v53 = vperm.slane %v846_v26, %v28621_v57  ;;  %v1685_v54 = vrot.slane %v28377_v10, 4  ;;  %v1680_v10 = vsel %vm831_vm0, %v1679_v36, %v28375_v9 }
 0x6b0   : > { %34471 = vst [vmem:[#allocation62_spill] sm:$0xff] %v28626_v29  ;;  %v883_v37 = vrot.slane %v28626_v29, 4  ;;  %v900_v33 = vsel %vm831_vm0, %v899_v18, %v892_v31  ;;  %v1713_v44 = vrot.slane %v28389_v17, 4  ;;  %v1707_v36 = vrot.slane %v28387_v16, 4 }
 0x6b1   : > { %34472 = vst [vmem:[#allocation63_spill] sm:$0xff] %v28638_v25  ;;  %v939_v42 = vrot.slane %v28638_v25, 4  ;;  %v28659_v27 = vperm.slane %v900_v33, %v28621_v57  ;;  %v1686_v46 = vsel %vm831_vm0, %v1685_v54, %v28379_v11  ;;  %v1684_v11 = vperm.slane %v1680_v10, %v28351_v41  ;;  %v34524_v25 = vld [vmem:[#allocation40_spill] sm:$0xff] }
 0x6b2   : > { %v884_v51 = vsel %vm831_vm0, 0.0, %v883_v37  ;;  %v901_v37 = vrot.slane %v892_v31, 4  ;;  %v1690_v32 = vperm.slane %v1686_v46, %v28351_v41  ;;  %v929_v54 = vrot.slane %v28630_v23, 4 }
 0x6b3   : > { %v940_v24 = vsel %vm831_vm0, 0.0, %v939_v42  ;;  %34473 = vst [vmem:[#allocation64_spill] sm:$0xff] %v28659_v27  ;;  %v911_v28 = vrot.slane %v28659_v27, 4  ;;  %v1769_v42 = vrot.slane %v28408_v39, 4  ;;  %v1763_v39 = vrot.slane %v28410_v43, 4 }
 0x6b4   : > { %v902_v45 = vsel %vm831_vm0, %v898_v1, %v901_v37  ;;  %v1691_v9 = vrot.slane %v1690_v32, 4  ;;  %v1714_v43 = vsel %vm831_vm0, %v1713_v44, %v28381_v12  ;;  %v1708_v23 = vsel %vm831_vm0, %v1707_v36, %v28385_v14 }
 0x6b5   : > { %v1764_v26 = vsel %vm831_vm0, %v1763_v39, %v28400_v35 }
 0x6b6   : > { %v1692_v31 = vsel %vm831_vm0, %v1691_v9, %v1684_v11  ;;  %v1768_v17 = vperm.slane %v1764_v26, %v28351_v41  ;;  %v1749_v26 = vrot.slane %v28398_v34, 4 }
 0x6fc   : > { %949 = vrot.lane.b32.xlu1 %v884_v51, %s28226_s16  ;;  %v873_v51 = vrot.slane %v864_v30, 4  ;;  %v912_v30 = vsel %vm831_vm0, 0.0, %v911_v28  ;;  %v930_v28 = vsel %vm831_vm0, %v28618_v50, %v929_v54  ;;  %v1712_v50 = vperm.slane %v1708_v23, %v28351_v41 }
 0x6fd   : > { %v1750_v54 = vsel %vm831_vm0, %v28393_v22, %v1749_v26 }
 0x6fe   : > { %v874_v48 = vsel %vm831_vm0, %v870_v47, %v873_v51  ;;  %v1770_v47 = vsel %vm831_vm0, %v1769_v42, %v28406_v38  ;;  %v28692_v38 = vperm.slane %v1692_v31, %v28621_v57  ;;  %v857_v51 = vrot.slane %v854_v53, 4 }
 0x6ff   : > { %v882_v13 = vperm.slane %v874_v48, %v28621_v57  ;;  %v28684_v18 = vperm.slane %v1770_v47, %v28351_v41  ;;  %v1693_v47 = vrot.slane %v1684_v11, 4  ;;  %v2530_v11 = vrot.slane %v28416_v5, 4 }
 0x700   : > { %v1703_v35 = vrot.slane %v28692_v38, 4  ;;  %v858_v16 = vsel %vm831_vm0, 0.0, %v857_v51  ;;  %v2614_v5 = vrot.slane %v28447_v56, 4  ;;  %v2558_v51 = vrot.slane %v28428_v20, 4 }
 0x701   : > { %v885_v1 = vrot.slane %v882_v13, 4  ;;  %v1775_v37 = vrot.slane %v28684_v18, 4  ;;  %v1777_v20 = vrot.slane %v1768_v17, 4 }
 0x702   : > { %v1704_v48 = vsel %vm831_vm0, 0.0, %v1703_v35  ;;  %v2615_v22 = vsel %vm831_vm0, %v2614_v5, %v28445_v55  ;;  %v2559_v56 = vsel %vm831_vm0, %v2558_v51, %v28420_v7 }
 0x703   : > { %v886_v33 = vsel %vm831_vm0, 0.0, %v885_v1  ;;  %v1776_v46 = vsel %vm831_vm0, %v1775_v37, %v1768_v17  ;;  %v1694_v1 = vsel %vm831_vm0, %v1690_v32, %v1693_v47  ;;  %v2531_v32 = vsel %vm831_vm0, %v2530_v11, %v28418_v6 }
 0x704   : > { %953 = vrot.lane.b32.xlu1 %v940_v24, %s28226_s16  ;;  %v28672_v24 = vperm.slane %v902_v45, %v28621_v57  ;;  %v1718_v45 = vperm.slane %v1714_v43, %v28351_v41  ;;  %v28709_v12 = vperm.slane %v1776_v46, %v28621_v57  ;;  %v1702_v44 = vperm.slane %v1694_v1, %v28621_v57 }
 0x705   : > { %v2524_v43 = vrot.slane %v28422_v8, 4  ;;  %v2535_v36 = vperm.slane %v2531_v32, %v28351_v41  ;;  %v28750_v8 = vperm.slane %v1750_v54, %v28621_v57  ;;  %v2619_v23 = vperm.slane %v2615_v22, %v28351_v41 }
 0x706   : > { %v1719_v10 = vrot.slane %v1718_v45, 4  ;;  %v1787_v42 = vrot.slane %v28709_v12, 4  ;;  %v1778_v55 = vsel %vm831_vm0, %v28684_v18, %v1777_v20 }
 0x707   : > { %v2525_v34 = vsel %vm831_vm0, %v2524_v43, %v28414_v4  ;;  %v2536_v4 = vrot.slane %v2535_v36, 4  ;;  %v2620_v17 = vrot.slane %v2619_v23, 4 }
 0x708   : > { %v1788_v14 = vsel %vm831_vm0, 0.0, %v1787_v42  ;;  %v2529_v6 = vperm.slane %v2525_v34, %v28351_v41 }
 0x70a   : > { %v2538_v32 = vrot.slane %v2529_v6, 4 }
 0x70c   : > { %963 = vrot.lane.b32.xlu1 %v854_v53, %s28227_s17  ;;  %v28716_v53 = vperm.slane %v930_v28, %v28621_v57  ;;  %v2539_v5 = vsel %vm831_vm0, %v2535_v36, %v2538_v32 }
 0x70d   : > { %v2547_v22 = vperm.slane %v2539_v5, %v28621_v57 }
 0x714   : > { %967 = vrot.lane.b32.xlu1 %v28672_v24, %s28227_s17 }
 0x715   : > { %951 = vrot.lane.b32.xlu2 %v912_v30, %s28226_s16  ;;  %v1720_v30 = vsel %vm831_vm0, %v1719_v10, %v1712_v50  ;;  %v2537_v10 = vsel %vm831_vm0, %v2536_v4, %v2529_v6  ;;  %v2594_v4 = vrot.slane %v28437_v49, 4  ;;  %v3375_v6 = vrot.slane %v28455_v60, 4 }
 0x716   : > { %v28727_v39 = vperm.slane %v1720_v30, %v28621_v57  ;;  %v28779_v30 = vperm.slane %v1778_v55, %v28621_v57  ;;  %v3397_v60 = vrot.slane %v28465_v2, 4 }
 0x717   : > { %v2595_v49 = vsel %vm831_vm0, %v28432_v40, %v2594_v4 }
 0x718   : > { %34474 = vst [vmem:[#allocation65_spill] sm:$0xff] %v28727_v39  ;;  %v1731_v31 = vrot.slane %v28727_v39, 4  ;;  %v28832_v55 = vperm.slane %v2595_v49, %v28621_v57  ;;  %v3398_v40 = vsel %vm831_vm0, %v3397_v60, %v28463_v0  ;;  %v34478_v0 = vld [vmem:[#allocation16_spill] sm:$0xff]  ;;  %v34542_v39 = vld [vmem:[#allocation55_spill] sm:$0xff] }
 0x71a   : > { %v1732_v37 = vsel %vm831_vm0, 0.0, %v1731_v31 }
 0x71c   : > { %981 = vrot.lane.b32.xlu1 %v886_v33, %s28228_s18  ;;  %v1721_v33 = vrot.slane %v1712_v50, 4  ;;  %v2563_v50 = vperm.slane %v2559_v56, %v28351_v41 }
 0x71d   : > { %965 = vrot.lane.b32.xlu2 %v882_v13, %s28227_s17  ;;  %v941_v13 = vrot.slane %v28716_v53, 4 }
 0x71e   : > { %v1722_v35 = vsel %vm831_vm0, %v1718_v45, %v1721_v33  ;;  %v2608_v45 = vrot.slane %v28449_v59, 4  ;;  %v28772_v59 = vperm.slane %v2537_v10, %v28621_v57  ;;  %v2564_v18 = vrot.slane %v2563_v50, 4 }
 0x71f   : > { %v942_v9 = vsel %vm831_vm0, 0.0, %v941_v13  ;;  %v1730_v46 = vperm.slane %v1722_v35, %v28621_v57  ;;  %v3459_v10 = vrot.slane %v28486_v21, 4 }
 0x720   : > { %v2609_v42 = vsel %vm831_vm0, %v2608_v45, %v28439_v52  ;;  %34475 = vst [vmem:[#allocation66_spill] sm:$0xff] %v28772_v59  ;;  %v3369_v45 = vrot.slane %v28461_v63, 4 }
 0x721   : > { %v1733_v28 = vrot.slane %v1730_v46, 4  ;;  %v2613_v52 = vperm.slane %v2609_v42, %v28351_v41 }
 0x723   : > { %v1734_v7 = vsel %vm831_vm0, 0.0, %v1733_v28  ;;  %v3376_v28 = vsel %vm831_vm0, %v3375_v6, %v28457_v61 }
 0x724   : > { %1795 = vrot.lane.b32.xlu1 %v1704_v48, %s28226_s16  ;;  %v2552_v48 = vrot.slane %v28426_v19, 4 }
 0x725   : > { %979 = vrot.lane.b32.xlu2 %v858_v16, %s28228_s18  ;;  %v1705_v16 = vrot.slane %v1702_v44, 4 }
 0x726   : > { %v2553_v19 = vsel %vm831_vm0, %v2552_v48, %v28424_v15  ;;  %v2621_v15 = vsel %vm831_vm0, %v2620_v17, %v2613_v52  ;;  %v2550_v48 = vrot.slane %v2547_v22, 4  ;;  %v3402_v17 = vperm.slane %v3398_v40, %v28351_v41  ;;  %v34482_v40 = vld [vmem:[#allocation20_spill] sm:$0xff] }
 0x727   : > { %v1706_v13 = vsel %vm831_vm0, 0.0, %v1705_v16  ;;  %v2557_v47 = vperm.slane %v2553_v19, %v28351_v41  ;;  %v3370_v16 = vsel %vm831_vm0, %v3369_v45, %v28453_v58 }
 0x728   : > { %v3374_v61 = vperm.slane %v3370_v16, %v28351_v41  ;;  %v2551_v58 = vsel %vm831_vm0, 0.0, %v2550_v48  ;;  %v3411_v6 = vrot.slane %v3402_v17, 4  ;;  %v34481_v48 = vld [vmem:[#allocation24_spill] sm:$0xff] }
 0x729   : > { %v2565_v1 = vsel %vm831_vm0, %v2564_v18, %v2557_v47  ;;  %v2566_v35 = vrot.slane %v2557_v47, 4  ;;  %v4248_v16 = vrot.slane %v34481_v48, 4 }
 0x72a   : > { %v28795_v11 = vperm.slane %v2565_v1, %v28621_v57  ;;  %v3383_v45 = vrot.slane %v3374_v61, 4 }
 0x72b   : > { %v2567_v51 = vsel %vm831_vm0, %v2563_v50, %v2566_v35  ;;  %v28867_v35 = vpop.trf.xlu2 }
 0x72c   : > { %1801 = vrot.lane.b32.xlu1 %v1788_v14, %s28226_s16  ;;  %v2548_v14 = vrot.slane %v28772_v59, 4  ;;  %v2575_v20 = vperm.slane %v2567_v51, %v28621_v57  ;;  %v34535_v59 = vld [vmem:[#allocation48_spill] sm:$0xff] }
 0x72d   : > { %985 = vrot.lane.b32.xlu2 %v942_v9, %s28228_s18  ;;  %v1789_v9 = vrot.slane %v28779_v30, 4 }
 0x72e   : > { %v2549_v31 = vsel %vm831_vm0, 0.0, %v2548_v14  ;;  %v28800_v43 = vpop.trf.xlu1  ;;  %v2578_v18 = vrot.slane %v2575_v20, 4 }
 0x72f   : > { %v1790_v26 = vsel %vm831_vm0, 0.0, %v1789_v9 }
 0x734   : > { %1811 = vrot.lane.b32.xlu1 %v1702_v44, %s28227_s17  ;;  %v28790_v44 = vperm.slane %v2621_v15, %v28621_v57  ;;  %v34479_v15 = vld [vmem:[#allocation13_spill] sm:$0xff] }
 0x735   : > { %1797 = vrot.lane.b32.xlu2 %v1732_v37, %s28226_s16  ;;  %v2576_v37 = vrot.slane %v28795_v11, 4 }
 0x736   : > { %34476 = vst [vmem:[#allocation67_spill] sm:$0xff] %v28790_v44  ;;  %v2632_v33 = vrot.slane %v28790_v44, 4  ;;  %v28812_v56 = vpop.trf.xlu1 }
 0x737   : > { %v2577_v34 = vsel %vm831_vm0, 0.0, %v2576_v37 }
 0x738   : > { %v2633_v54 = vsel %vm831_vm0, 0.0, %v2632_v33 }
 0x73c   : > { %1815 = vrot.lane.b32.xlu1 %v28750_v8, %s28227_s17 }
 0x73d   : > { %1813 = vrot.lane.b32.xlu2 %v1730_v46, %s28227_s17  ;;  %v3403_v46 = vrot.slane %v28467_v3, 4  ;;  %v2622_v3 = vrot.slane %v2613_v52, 4 }
 0x73f   : > { %v3404_v36 = vsel %vm831_vm0, %v3403_v46, %v28459_v62  ;;  %v2623_v50 = vsel %vm831_vm0, %v2619_v23, %v2622_v3  ;;  %v3380_v62 = vperm.slane %v3376_v28, %v28351_v41  ;;  %v34477_v23 = vld [vmem:[#allocation15_spill] sm:$0xff]  ;;  %v28883_v28 = vpop.trf.xlu2 }
 0x740   : > { %v3408_v63 = vperm.slane %v3404_v36, %v28351_v41  ;;  %v28841_v2 = vperm.slane %v2623_v50, %v28621_v57  ;;  %v3460_v42 = vsel %vm831_vm0, %v3459_v10, %v34477_v23 }
 0x741   : > { %v3381_v19 = vrot.slane %v3380_v62, 4  ;;  %v3464_v52 = vperm.slane %v3460_v42, %v28351_v41  ;;  %v3384_v60 = vsel %vm831_vm0, %v3380_v62, %v3383_v45 }
 0x742   : > { %v3409_v21 = vrot.slane %v3408_v63, 4  ;;  %v2634_v47 = vrot.slane %v28841_v2, 4  ;;  %v3412_v3 = vsel %vm831_vm0, %v3408_v63, %v3411_v6  ;;  %v4249_v63 = vsel %vm831_vm0, %v4248_v16, %v34482_v40 }
 0x743   : > { %v3382_v14 = vsel %vm831_vm0, %v3381_v19, %v3374_v61  ;;  %v3465_v33 = vrot.slane %v3464_v52, 4  ;;  %v3420_v50 = vperm.slane %v3412_v3, %v28621_v57  ;;  %v3392_v61 = vperm.slane %v3384_v60, %v28621_v57 }
 0x744   : > { %1829 = vrot.lane.b32.xlu1 %v1734_v7, %s28228_s18  ;;  %v28845_v7 = vpop.trf.xlu1  ;;  %v3410_v9 = vsel %vm831_vm0, %v3409_v21, %v3402_v17  ;;  %v2635_v37 = vsel %vm831_vm0, 0.0, %v2634_v47  ;;  %v34483_v21 = vld [vmem:[#allocation23_spill] sm:$0xff]  ;;  %v4253_v62 = vperm.slane %v4249_v63, %v28351_v41  ;;  %v34484_v17 = vld [vmem:[#allocation12_spill] sm:$0xff]  ;;  %v34494_v63 = vld [vmem:[#allocation29_spill] sm:$0xff] }
 0x745   : > { %1827 = vrot.lane.b32.xlu2 %v1706_v13, %s28228_s18  ;;  %v3453_v13 = vrot.slane %v34478_v0, 4  ;;  %v28863_v32 = vperm.slane %v3410_v9, %v28621_v57  ;;  %v4242_v23 = vrot.slane %v34483_v21, 4  ;;  %v3395_v42 = vrot.slane %v3392_v61, 4  ;;  %v34487_v9 = vld [vmem:[#allocation22_spill] sm:$0xff] }
 0x746   : > { %v3439_v0 = vrot.slane %v34484_v17, 4 }
 0x747   : > { %v3454_v1 = vsel %vm831_vm0, %v3453_v13, %v34479_v15  ;;  %v3421_v51 = vrot.slane %v28863_v32, 4  ;;  %v34485_v13 = vld [vmem:[#allocation18_spill] sm:$0xff]  ;;  %v28901_v47 = vpop.trf.xlu2  ;;  %v4243_v15 = vsel %vm831_vm0, %v4242_v23, %v34487_v9 }
 0x74c   : > { %2640 = vrot.lane.b32.xlu1 %v2549_v31, %s28226_s16  ;;  %v2579_v31 = vsel %vm831_vm0, 0.0, %v2578_v18  ;;  %v4220_v18 = vrot.slane %v34485_v13, 4 }
 0x74d   : > { %1833 = vrot.lane.b32.xlu2 %v1790_v26, %s28228_s18  ;;  %v28858_v26 = vperm.slane %v3382_v14, %v28621_v57 }
 0x74f   : > { %v3393_v5 = vrot.slane %v28858_v26, 4  ;;  %v28937_v21 = vpop.trf.xlu2 }
 0x754   : > { %2646 = vrot.lane.b32.xlu1 %v2633_v54, %s28226_s16  ;;  %v3458_v54 = vperm.slane %v3454_v1, %v28351_v41  ;;  %v3396_v1 = vsel %vm831_vm0, 0.0, %v3395_v42 }
 0x755   : > { %2642 = vrot.lane.b32.xlu2 %v2577_v34, %s28226_s16  ;;  %v28869_v34 = vpop.trf.xlu1 }
 0x756   : > { %v3466_v46 = vsel %vm831_vm0, %v3465_v33, %v3458_v54  ;;  %v34488_v33 = vld [vmem:[#allocation21_spill] sm:$0xff] }
 0x757   : > { %v28876_v4 = vperm.slane %v3466_v46, %v28621_v57  ;;  %v34490_v46 = vld [vmem:[#allocation11_spill] sm:$0xff] }
 0x759   : > { %v3477_v36 = vrot.slane %v28876_v4, 4 }
 0x75b   : > { %v3478_v10 = vsel %vm831_vm0, 0.0, %v3477_v36  ;;  %v34492_v36 = vld [vmem:[#allocation31_spill] sm:$0xff] }
 0x75c   : > { %2656 = vrot.lane.b32.xlu1 %v2547_v22, %s28227_s17  ;;  %v3394_v22 = vsel %vm831_vm0, 0.0, %v3393_v5  ;;  %v4304_v3 = vrot.slane %v34492_v36, 4 }
 0x75d   : > { %2658 = vrot.lane.b32.xlu2 %v2575_v20, %s28227_s17  ;;  %v3422_v20 = vsel %vm831_vm0, 0.0, %v3421_v51  ;;  %v4247_v51 = vperm.slane %v4243_v15, %v28351_v41  ;;  %v34497_v15 = vld [vmem:[#allocation27_spill] sm:$0xff] }
 0x764   : > { %2660 = vrot.lane.b32.xlu1 %v28832_v55, %s28227_s17 }
 0x765   : > { %2672 = vrot.lane.b32.xlu2 %v2551_v58, %s28228_s18  ;;  %v3467_v58 = vrot.slane %v3458_v54, 4  ;;  %v34489_v54 = vld [vmem:[#allocation19_spill] sm:$0xff] }
 0x766   : > { %v4221_v5 = vsel %vm831_vm0, %v4220_v18, %v34489_v54 }
 0x767   : > { %v3468_v19 = vsel %vm831_vm0, %v3464_v52, %v3467_v58  ;;  %v4214_v52 = vrot.slane %v34488_v33, 4  ;;  %v4225_v48 = vperm.slane %v4221_v5, %v28351_v41  ;;  %v4305_v58 = vsel %vm831_vm0, %v4304_v3, %v34494_v63 }
 0x768   : > { %v4309_v13 = vperm.slane %v4305_v58, %v28351_v41  ;;  %v34501_v58 = vld [vmem:[#allocation26_spill] sm:$0xff] }
 0x769   : > { %v4226_v42 = vrot.slane %v4225_v48, 4 }
 0x76a   : > { %v4310_v54 = vrot.slane %v4309_v13, 4 }
 0x76c   : > { %2674 = vrot.lane.b32.xlu1 %v2579_v31, %s28228_s18  ;;  %v28910_v31 = vperm.slane %v3468_v19, %v28621_v57  ;;  %v34496_v19 = vld [vmem:[#allocation30_spill] sm:$0xff] }
 0x76d   : > { %2678 = vrot.lane.b32.xlu2 %v2635_v37, %s28228_s18  ;;  %v4254_v37 = vrot.slane %v4253_v62, 4  ;;  %v4298_v17 = vrot.slane %v34496_v19, 4  ;;  %v34502_v19 = vld [vmem:[#allocation35_spill] sm:$0xff] }
 0x76e   : > { %v28885_v49 = vpop.permute.xlu1 %949  ;;  %v3479_v6 = vrot.slane %v28910_v31, 4 }
 0x76f   : > { %34480 = vst [vmem:[#allocation15_spill] sm:$0xff] %v28885_v49  ;;  %v4255_v60 = vsel %vm831_vm0, %v4254_v37, %v4247_v51  ;;  %v4256_v37 = vrot.slane %v4247_v51, 4  ;;  %v34499_v51 = vld [vmem:[#allocation39_spill] sm:$0xff] }
 0x770   : > { %v28933_v40 = vperm.slane %v4255_v60, %v28621_v57  ;;  %v5093_v36 = vrot.slane %v34499_v51, 4 }
 0x772   : > { %34493 = vst [vmem:[#allocation13_spill] sm:$0xff] %v28933_v40  ;;  %v4266_v18 = vrot.slane %v28933_v40, 4 }
 0x774   : > { %3485 = vrot.lane.b32.xlu1 %v3394_v22, %s28226_s16  ;;  %v3440_v22 = vsel %vm831_vm0, %v34490_v46, %v3439_v0  ;;  %v3423_v0 = vrot.slane %v3420_v50, 4  ;;  %v28956_v46 = vpop.trf.xlu2 }
 0x775   : > { %3487 = vrot.lane.b32.xlu2 %v3422_v20, %s28226_s16  ;;  %v34491_v20 = vld [vmem:[#allocation17_spill] sm:$0xff]  ;;  %v28926_v16 = vperm.slane %v3440_v22, %v28621_v57 }
 0x776   : > { %v28903_v14 = vpop.permute.xlu1 %953  ;;  %v4215_v45 = vsel %vm831_vm0, %v4214_v52, %v34491_v20  ;;  %v3424_v33 = vsel %vm831_vm0, 0.0, %v3423_v0  ;;  %v4257_v20 = vsel %vm831_vm0, %v4253_v62, %v4256_v37  ;;  %v5094_v62 = vsel %vm831_vm0, %v5093_v36, %v34502_v19  ;;  %v34503_v0 = vld [vmem:[#allocation38_spill] sm:$0xff]  ;;  %v34505_v37 = vld [vmem:[#allocation25_spill] sm:$0xff] }
 0x777   : > { %34486 = vst [vmem:[#allocation16_spill] sm:$0xff] %v28903_v14  ;;  %v4265_v60 = vperm.slane %v4257_v20, %v28621_v57  ;;  %v34506_v20 = vld [vmem:[#allocation37_spill] sm:$0xff] }
 0x77c   : > { %3491 = vrot.lane.b32.xlu1 %v3478_v10, %s28226_s16  ;;  %v4219_v10 = vperm.slane %v4215_v45, %v28351_v41 }
 0x77d   : > { %3503 = vrot.lane.b32.xlu2 %v3420_v50, %s28227_s17  ;;  %v4267_v50 = vsel %vm831_vm0, 0.0, %v4266_v18  ;;  %v5087_v18 = vrot.slane %v34503_v0, 4 }
 0x77e   : > { %v28939_v23 = vpop.permute.xlu1 %963  ;;  %v4227_v9 = vsel %vm831_vm0, %v4226_v42, %v4219_v10  ;;  %v4284_v42 = vrot.slane %v34501_v58, 4 }
 0x77f   : > { %34495 = vst [vmem:[#allocation24_spill] sm:$0xff] %v28939_v23  ;;  %v28950_v52 = vperm.slane %v4227_v9, %v28621_v57 }
 0x784   : > { %3501 = vrot.lane.b32.xlu1 %v3392_v61, %s28227_s17  ;;  %v3480_v61 = vsel %vm831_vm0, 0.0, %v3479_v6  ;;  %v4238_v6 = vrot.slane %v28950_v52, 4 }
 0x785   : > { %3517 = vrot.lane.b32.xlu2 %v3396_v1, %s28228_s18  ;;  %v4299_v1 = vsel %vm831_vm0, %v4298_v17, %v34497_v15  ;;  %v5098_v15 = vperm.slane %v5094_v62, %v28351_v41 }
 0x786   : > { %v4303_v5 = vperm.slane %v4299_v1, %v28351_v41  ;;  %v28958_v22 = vpop.permute.xlu1 %967  ;;  %v4239_v3 = vsel %vm831_vm0, 0.0, %v4238_v6  ;;  %v28978_v1 = vpop.trf.xlu2 }
 0x787   : > { %34498 = vst [vmem:[#allocation20_spill] sm:$0xff] %v28958_v22  ;;  %v5099_v51 = vrot.slane %v5098_v15, 4 }
 0x788   : > { %v4311_v45 = vsel %vm831_vm0, %v4310_v54, %v4303_v5  ;;  %v4312_v63 = vrot.slane %v4303_v5, 4  ;;  %v4285_v54 = vsel %vm831_vm0, %v34505_v37, %v4284_v42  ;;  %v34511_v37 = vld [vmem:[#allocation36_spill] sm:$0xff] }
 0x78a   : > { %v4313_v9 = vsel %vm831_vm0, %v4309_v13, %v4312_v63  ;;  %v4293_v13 = vperm.slane %v4285_v54, %v28621_v57  ;;  %v34507_v63 = vld [vmem:[#allocation33_spill] sm:$0xff]  ;;  %v5059_v54 = vrot.slane %v34511_v37, 4 }
 0x78b   : > { %v28986_v6 = vperm.slane %v4313_v9, %v28621_v57  ;;  %v5065_v58 = vrot.slane %v34507_v63, 4 }
 0x78c   : > { %3505 = vrot.lane.b32.xlu1 %v28926_v16, %s28227_s17 }
 0x78d   : > { %3523 = vrot.lane.b32.xlu2 %v3480_v61, %s28228_s18  ;;  %v28967_v61 = vperm.slane %v4311_v45, %v28621_v57  ;;  %v5088_v45 = vsel %vm831_vm0, %v5087_v18, %v34506_v20  ;;  %v34512_v20 = vld [vmem:[#allocation32_spill] sm:$0xff] }
 0x78e   : > { %v5092_v36 = vperm.slane %v5088_v45, %v28351_v41  ;;  %v29001_v62 = vpop.permute.xlu2 %951  ;;  %v5060_v45 = vsel %vm831_vm0, %v5059_v54, %v34512_v20  ;;  %v34517_v54 = vld [vmem:[#allocation42_spill] sm:$0xff] }
 0x78f   : > { %34500 = vst [vmem:[#allocation23_spill] sm:$0xff] %v28967_v61  ;;  %v4322_v17 = vrot.slane %v28967_v61, 4 }
 0x790   : > { %v5100_v42 = vsel %vm831_vm0, %v5099_v51, %v5092_v36  ;;  %34508 = vst [vmem:[#allocation18_spill] sm:$0xff] %v29001_v62  ;;  %v34513_v51 = vld [vmem:[#allocation45_spill] sm:$0xff]  ;;  %v5101_v29 = vrot.slane %v5092_v36, 4 }
 0x791   : > { %v4323_v5 = vsel %vm831_vm0, 0.0, %v4322_v17  ;;  %v29009_v18 = vperm.slane %v5100_v42, %v28621_v57 }
 0x792   : > { %v5102_v36 = vsel %vm831_vm0, %v5098_v15, %v5101_v29  ;;  %v34521_v15 = vld [vmem:[#allocation50_spill] sm:$0xff] }
 0x793   : > { %34509 = vst [vmem:[#allocation22_spill] sm:$0xff] %v29009_v18 }
 0x794   : > { %3519 = vrot.lane.b32.xlu1 %v3424_v33, %s28228_s18  ;;  %v28980_v33 = vpop.permute.xlu1 %981 }
 0x795   : > { %4332 = vrot.lane.b32.xlu2 %v4267_v50, %s28226_s16  ;;  %34504 = vst [vmem:[#allocation12_spill] sm:$0xff] %v28980_v33  ;;  %v4228_v50 = vrot.slane %v4219_v10, 4  ;;  %v5064_v33 = vperm.slane %v5060_v45, %v28351_v41 }
 0x797   : > { %v4229_v10 = vsel %vm831_vm0, %v4225_v48, %v4228_v50  ;;  %v34510_v48 = vld [vmem:[#allocation34_spill] sm:$0xff] }
 0x798   : > { %v28999_v19 = vperm.slane %v4229_v10, %v28621_v57  ;;  %v5066_v9 = vsel %vm831_vm0, %v5065_v58, %v34510_v48  ;;  %v5149_v10 = vrot.slane %v34513_v51, 4  ;;  %v4268_v51 = vrot.slane %v4265_v60, 4 }
 0x799   : > { %v5070_v50 = vperm.slane %v5066_v9, %v28351_v41  ;;  %v29026_v9 = vpop.permute.xlu2 %965 }
 0x79a   : > { %34516 = vst [vmem:[#allocation21_spill] sm:$0xff] %v29026_v9  ;;  %v29040_v9 = vperm.slane %v5102_v36, %v28621_v57 }
 0x79b   : > { %v5071_v42 = vrot.slane %v5070_v50, 4 }
 0x79c   : > { %4330 = vrot.lane.b32.xlu1 %v4239_v3, %s28226_s16  ;;  %v4296_v3 = vrot.slane %v4293_v13, 4  ;;  %v29003_v17 = vpop.permute.xlu1 %1795 }
 0x79d   : > { %4348 = vrot.lane.b32.xlu2 %v4265_v60, %s28227_s17  ;;  %v34520_v60 = vld [vmem:[#allocation41_spill] sm:$0xff] }
 0x79e   : > { %v4297_v0 = vsel %vm831_vm0, 0.0, %v4296_v3  ;;  %v34514_v3 = vld [vmem:[#allocation44_spill] sm:$0xff] }
 0x79f   : > { %v5143_v63 = vrot.slane %v34514_v3, 4  ;;  %v34518_v3 = vld [vmem:[#allocation53_spill] sm:$0xff] }
 0x7a1   : > { %v5144_v20 = vsel %vm831_vm0, %v5143_v63, %v34517_v54  ;;  %v34522_v54 = vld [vmem:[#allocation54_spill] sm:$0xff] }
 0x7a4   : > { %4336 = vrot.lane.b32.xlu1 %v4323_v5, %s28226_s16  ;;  %v5111_v5 = vrot.slane %v29009_v18, 4  ;;  %v29028_v37 = vpop.permute.xlu1 %1801 }
 0x7a5   : > { %4352 = vrot.lane.b32.xlu2 %v28986_v6, %s28227_s17 }
 0x7a6   : > { %v5112_v58 = vsel %vm831_vm0, 0.0, %v5111_v5  ;;  %v5148_v5 = vperm.slane %v5144_v20, %v28351_v41  ;;  %v5932_v20 = vrot.slane %v34522_v54, 4 }
 0x7a8   : > { %v5157_v29 = vrot.slane %v5148_v5, 4 }
 0x7ac   : > { %4346 = vrot.lane.b32.xlu1 %v28999_v19, %s28227_s17  ;;  %v29054_v36 = vpop.permute.xlu1 %1811 }
 0x7ad   : > { %4366 = vrot.lane.b32.xlu2 %v4297_v0, %s28228_s18  ;;  %v34515_v0 = vld [vmem:[#allocation46_spill] sm:$0xff] }
 0x7ae   : > { %v5150_v48 = vsel %vm831_vm0, %v5149_v10, %v34515_v0  ;;  %v5938_v10 = vrot.slane %v34518_v3, 4  ;;  %v4269_v0 = vsel %vm831_vm0, 0.0, %v4268_v51  ;;  %v29052_v51 = vpop.permute.xlu2 %979 }
 0x7af   : > { %v5154_v45 = vperm.slane %v5150_v48, %v28351_v41  ;;  %v5129_v48 = vrot.slane %v34520_v60, 4  ;;  %34523 = vst [vmem:[#allocation11_spill] sm:$0xff] %v29052_v51 }
 0x7b1   : > { %v5155_v63 = vrot.slane %v5154_v45, 4  ;;  %v5158_v3 = vsel %vm831_vm0, %v5154_v45, %v5157_v29  ;;  %v5130_v14 = vsel %vm831_vm0, %v34524_v25, %v5129_v48 }
 0x7b2   : > { %v29068_v51 = vperm.slane %v5158_v3, %v28621_v57  ;;  %v5138_v45 = vperm.slane %v5130_v14, %v28621_v57  ;;  %v5073_v3 = vrot.slane %v5064_v33, 4 }
 0x7b3   : > { %v5156_v60 = vsel %vm831_vm0, %v5155_v63, %v5148_v5 }
 0x7b4   : > { %4350 = vrot.lane.b32.xlu1 %v4293_v13, %s28227_s17  ;;  %v5072_v13 = vsel %vm831_vm0, %v5071_v42, %v5064_v33  ;;  %v5939_v42 = vsel %vm831_vm0, %v5938_v10, %v34521_v15  ;;  %v34525_v10 = vld [vmem:[#allocation52_spill] sm:$0xff]  ;;  %v29071_v23 = vperm.slane %v5156_v60, %v28621_v57  ;;  %v5141_v48 = vrot.slane %v5138_v45, 4 }
 0x7b5   : > { %5177 = vrot.lane.b32.xlu2 %v5112_v58, %s28226_s16  ;;  %v29043_v58 = vperm.slane %v5072_v13, %v28621_v57  ;;  %v5943_v49 = vperm.slane %v5939_v42, %v28351_v41  ;;  %v5933_v15 = vsel %vm831_vm0, %v5932_v20, %v34525_v10  ;;  %v29081_v42 = vpop.permute.xlu1 %1815 }
 0x7b6   : > { %34526 = vst [vmem:[#allocation17_spill] sm:$0xff] %v29071_v23  ;;  %v5937_v63 = vperm.slane %v5933_v15, %v28351_v41  ;;  %v5167_v25 = vrot.slane %v29071_v23, 4  ;;  %v29079_v29 = vpop.permute.xlu2 %985  ;;  %v5142_v14 = vsel %vm831_vm0, 0.0, %v5141_v48  ;;  %v5074_v15 = vsel %vm831_vm0, %v5070_v50, %v5073_v3  ;;  %v34533_v50 = vld [vmem:[#allocation58_spill] sm:$0xff] }
 0x7b7   : > { %34519 = vst [vmem:[#allocation19_spill] sm:$0xff] %v29043_v58  ;;  %v5083_v13 = vrot.slane %v29043_v58, 4  ;;  %v5944_v5 = vrot.slane %v5943_v49, 4 }
 0x7b8   : > { %34527 = vst [vmem:[#allocation31_spill] sm:$0xff] %v29079_v29  ;;  %v5168_v60 = vsel %vm831_vm0, 0.0, %v5167_v25  ;;  %v5082_v29 = vperm.slane %v5074_v15, %v28621_v57 }
 0x7b9   : > { %v5084_v54 = vsel %vm831_vm0, 0.0, %v5083_v13  ;;  %v5945_v20 = vsel %vm831_vm0, %v5944_v5, %v5937_v63  ;;  %v34529_v5 = vld [vmem:[#allocation59_spill] sm:$0xff] }
 0x7ba   : > { %v29088_v10 = vperm.slane %v5945_v20, %v28621_v57  ;;  %v5988_v23 = vrot.slane %v34529_v5, 4  ;;  %v34532_v20 = vld [vmem:[#allocation60_spill] sm:$0xff]  ;;  %v34534_v5 = vld [vmem:[#allocation61_spill] sm:$0xff] }
 0x7bc   : > { %4364 = vrot.lane.b32.xlu1 %v4269_v0, %s28228_s18  ;;  %v29058_v0 = vpop.trf.xlu0  ;;  %34528 = vst [vmem:[#allocation29_spill] sm:$0xff] %v29088_v10  ;;  %v5989_v3 = vsel %vm831_vm0, %v5988_v23, %v34533_v50  ;;  %v34537_v50 = vld [vmem:[#allocation56_spill] sm:$0xff] }
 0x7bd   : > { %5193 = vrot.lane.b32.xlu2 %v29040_v9, %s28227_s17  ;;  %v29097_v25 = vpop.permute.xlu1 %1829  ;;  %v5993_v44 = vperm.slane %v5989_v3, %v28351_v41 }
 0x7be   : > { %v29095_v33 = vpop.permute.xlu2 %1797  ;;  %34531 = vst [vmem:[#allocation27_spill] sm:$0xff] %v29097_v25  ;;  %v5910_v25 = vrot.slane %v34535_v59, 4 }
 0x7bf   : > { %34530 = vst [vmem:[#allocation30_spill] sm:$0xff] %v29095_v33 }
 0x7c4   : > { %5175 = vrot.lane.b32.xlu1 %v5084_v54, %s28226_s16  ;;  %v6381_v13 = vpop.trf.xlu0  ;;  %v5956_v54 = vrot.slane %v29088_v10, 4 }
 0x7c5   : > { %5197 = vrot.lane.b32.xlu2 %v29068_v51, %s28227_s17 }
 0x7c6   : > { %v5957_v48 = vsel %vm831_vm0, 0.0, %v5956_v54 }
 0x7cc   : > { %5181 = vrot.lane.b32.xlu1 %v5168_v60, %s28226_s16  ;;  %v5946_v60 = vrot.slane %v5937_v63, 4  ;;  %v6445_v58 = vpop.trf.xlu0  ;;  %v6783_v63 = vrot.slane %v28812_v56, 4  ;;  %v6002_v56 = vrot.slane %v5993_v44, 4 }
 0x7cd   : > { %5211 = vrot.lane.b32.xlu2 %v5142_v14, %s28228_s18  ;;  %v5994_v14 = vrot.slane %v34532_v20, 4 }
 0x7ce   : > { %v5947_v15 = vsel %vm831_vm0, %v5943_v49, %v5946_v60  ;;  %v5974_v49 = vrot.slane %v34537_v50, 4  ;;  %v29118_v60 = vpop.permute.xlu2 %1813  ;;  %v6784_v59 = vsel %vm831_vm0, %v6783_v63, %v28901_v47  ;;  %v34541_v50 = vld [vmem:[#allocation47_spill] sm:$0xff] }
 0x7cf   : > { %v5995_v40 = vsel %vm831_vm0, %v5994_v14, %v34534_v5  ;;  %v29112_v54 = vperm.slane %v5947_v15, %v28621_v57  ;;  %34538 = vst [vmem:[#allocation39_spill] sm:$0xff] %v29118_v60  ;;  %v29120_v14 = vpop.permute.xlu1 %2640  ;;  %v34540_v15 = vld [vmem:[#allocation49_spill] sm:$0xff]  ;;  %v6788_v33 = vperm.slane %v6784_v59, %v28351_v41 }
 0x7d0   : > { %v5999_v20 = vperm.slane %v5995_v40, %v28351_v41  ;;  %34539 = vst [vmem:[#allocation26_spill] sm:$0xff] %v29120_v14  ;;  %v5911_v40 = vsel %vm831_vm0, %v5910_v25, %v34540_v15  ;;  %v5975_v14 = vsel %vm831_vm0, %v34542_v39, %v5974_v49 }
 0x7d1   : > { %v5915_v22 = vperm.slane %v5911_v40, %v28351_v41 }
 0x7d2   : > { %v6003_v5 = vsel %vm831_vm0, %v5999_v20, %v6002_v56 }
 0x7d3   : > { %v29137_v63 = vperm.slane %v6003_v5, %v28621_v57  ;;  %v5916_v39 = vrot.slane %v5915_v22, 4 }
 0x7d4   : > { %5191 = vrot.lane.b32.xlu1 %v5082_v29, %s28227_s17  ;;  %v6541_v3 = vpop.trf.xlu0 }
 0x7d5   : > { %6022 = vrot.lane.b32.xlu2 %v5957_v48, %s28226_s16  ;;  %v34536_v48 = vld [vmem:[#allocation51_spill] sm:$0xff] }
 0x7d6   : > { %v5904_v23 = vrot.slane %v34536_v48, 4  ;;  %v6777_v48 = vrot.slane %v6445_v58, 4  ;;  %v29143_v58 = vperm.slane %v5975_v14, %v28621_v57  ;;  %v29147_v49 = vpop.permute.xlu2 %1827 }
 0x7d7   : > { %v29150_v59 = vpop.permute.xlu1 %2646 }
 0x7d8   : > { %v5905_v60 = vsel %vm831_vm0, %v5904_v23, %v34541_v50  ;;  %v6778_v25 = vsel %vm831_vm0, %v6777_v48, %v6381_v13  ;;  %v6789_v23 = vrot.slane %v6788_v33, 4  ;;  %34543 = vst [vmem:[#allocation35_spill] sm:$0xff] %v29150_v59  ;;  %v5986_v13 = vrot.slane %v29143_v58, 4 }
 0x7d9   : > { %v6782_v56 = vperm.slane %v6778_v25, %v28351_v41  ;;  %v6000_v48 = vrot.slane %v5999_v20, 4 }
 0x7da   : > { %v5987_v50 = vsel %vm831_vm0, 0.0, %v5986_v13 }
 0x7db   : > { %v6790_v14 = vsel %vm831_vm0, %v6789_v23, %v6782_v56  ;;  %v6001_v23 = vsel %vm831_vm0, %v6000_v48, %v5993_v44 }
 0x7dc   : > { %5195 = vrot.lane.b32.xlu1 %v5138_v45, %s28227_s17  ;;  %v5085_v45 = vrot.slane %v5082_v29, 4  ;;  %v5909_v29 = vperm.slane %v5905_v60, %v28351_v41  ;;  %v5169_v60 = vrot.slane %v29068_v51, 4  ;;  %v6637_v15 = vpop.trf.xlu0 }
 0x7dd   : > { %6038 = vrot.lane.b32.xlu2 %v29112_v54, %s28227_s17 }
 0x7de   : > { %v5086_v47 = vsel %vm831_vm0, 0.0, %v5085_v45  ;;  %v5917_v40 = vsel %vm831_vm0, %v5916_v39, %v5909_v29  ;;  %v5170_v45 = vsel %vm831_vm0, 0.0, %v5169_v60  ;;  %v6833_v39 = vrot.slane %v28978_v1, 4  ;;  %v29170_v60 = vpop.permute.xlu2 %1833 }
 0x7df   : > { %v29158_v5 = vperm.slane %v5917_v40, %v28621_v57  ;;  %v29172_v20 = vpop.permute.xlu1 %2656  ;;  %v6805_v40 = vrot.slane %v28845_v7, 4 }
 0x7e0   : > { %34546 = vst [vmem:[#allocation37_spill] sm:$0xff] %v29172_v20  ;;  %v6834_v44 = vsel %vm831_vm0, %v6833_v39, %v6637_v15 }
 0x7e1   : > { %34544 = vst [vmem:[#allocation38_spill] sm:$0xff] %v29158_v5  ;;  %v5928_v51 = vrot.slane %v29158_v5, 4  ;;  %v6806_v48 = vsel %vm831_vm0, %v6805_v40, %v28937_v21 }
 0x7e4   : > { %5207 = vrot.lane.b32.xlu1 %v5086_v47, %s28228_s18  ;;  %v29163_v47 = vperm.slane %v6790_v14, %v28621_v57  ;;  %v6733_v13 = vpop.trf.xlu0  ;;  %v5929_v14 = vsel %vm831_vm0, 0.0, %v5928_v51  ;;  %v6811_v51 = vrot.slane %v28956_v46, 4 }
 0x7e5   : > { %6042 = vrot.lane.b32.xlu2 %v29137_v63, %s28227_s17  ;;  %v6839_v1 = vrot.slane %v6733_v13, 4 }
 0x7e6   : > { %34545 = vst [vmem:[#allocation25_spill] sm:$0xff] %v29163_v47  ;;  %v6801_v25 = vrot.slane %v29163_v47, 4  ;;  %v29194_v39 = vpop.permute.xlu2 %2642  ;;  %v6812_v46 = vsel %vm831_vm0, %v6811_v51, %v6541_v3 }
 0x7e7   : > { %v6840_v15 = vsel %vm831_vm0, %v6839_v1, %v28869_v34  ;;  %v29209_v34 = vperm.slane %v6812_v46, %v28351_v41 }
 0x7e8   : > { %v6802_v47 = vsel %vm831_vm0, 0.0, %v6801_v25  ;;  %v5918_v25 = vrot.slane %v5909_v29, 4 }
 0x7ea   : > { %v5919_v29 = vsel %vm831_vm0, %v5915_v22, %v5918_v25 }
 0x7eb   : > { %v5927_v1 = vperm.slane %v5919_v29, %v28621_v57 }
 0x7ec   : > { %5213 = vrot.lane.b32.xlu1 %v5170_v45, %s28228_s18  ;;  %v29177_v45 = vperm.slane %v6001_v23, %v28621_v57  ;;  %v6838_v23 = vperm.slane %v6834_v44, %v28351_v41 }
 0x7ed   : > { %6056 = vrot.lane.b32.xlu2 %v5987_v50, %s28228_s18  ;;  %v6791_v50 = vrot.slane %v6782_v56, 4  ;;  %v5930_v29 = vrot.slane %v5927_v1, 4 }
 0x7ee   : > { %34547 = vst [vmem:[#allocation33_spill] sm:$0xff] %v29177_v45  ;;  %v6012_v7 = vrot.slane %v29177_v45, 4  ;;  %v6847_v13 = vrot.slane %v6838_v23, 4  ;;  %v29219_v51 = vpop.permute.xlu2 %2658 }
 0x7ef   : > { %v6792_v56 = vsel %vm831_vm0, %v6788_v33, %v6791_v50  ;;  %v6844_v33 = vperm.slane %v6840_v15, %v28351_v41  ;;  %v6755_v15 = vrot.slane %v28883_v28, 4 }
 0x7f0   : > { %v6013_v21 = vsel %vm831_vm0, 0.0, %v6012_v7  ;;  %v29200_v40 = vperm.slane %v6792_v56, %v28621_v57 }
 0x7f1   : > { %v6848_v44 = vsel %vm831_vm0, %v6844_v33, %v6847_v13  ;;  %v6756_v46 = vsel %vm831_vm0, %v6755_v15, %v29058_v0  ;;  %v6014_v0 = vrot.slane %v29137_v63, 4 }
 0x7f4   : > { %6020 = vrot.lane.b32.xlu1 %v5929_v14, %s28226_s16  ;;  %v29190_v14 = vperm.slane %v6806_v48, %v28351_v41  ;;  %v6856_v48 = vperm.slane %v6848_v44, %v28621_v57  ;;  %v6760_v44 = vperm.slane %v6756_v46, %v28351_v41 }
 0x7f5   : > { %6867 = vrot.lane.b32.xlu2 %v6802_v47, %s28226_s16  ;;  %v29196_v47 = vpop.permute.xlu1 %2660 }
 0x7f6   : > { %v6819_v50 = vrot.slane %v29190_v14, 4  ;;  %v29232_v13 = vpop.permute.xlu2 %2672 }
 0x7f7   : > { %34548 = vst [vmem:[#allocation34_spill] sm:$0xff] %v29232_v13 }
 0x7f8   : > { %v6820_v3 = vsel %vm831_vm0, %v29209_v34, %v6819_v50 }
 0x7f9   : > { %v6828_v7 = vperm.slane %v6820_v3, %v28621_v57 }
 0x7fb   : > { %v6831_v22 = vrot.slane %v6828_v7, 4 }
 0x7fc   : > { %6026 = vrot.lane.b32.xlu1 %v6013_v21, %s28226_s16  ;;  %v6749_v21 = vrot.slane %v28800_v43, 4  ;;  %v6761_v43 = vrot.slane %v6760_v44, 4 }
 0x7fd   : > { %6883 = vrot.lane.b32.xlu2 %v29200_v40, %s28227_s17  ;;  %v29221_v56 = vpop.permute.xlu1 %2674  ;;  %v6832_v25 = vsel %vm831_vm0, 0.0, %v6831_v22 }
 0x7fe   : > { %v6750_v28 = vsel %vm831_vm0, %v6749_v21, %v28867_v35  ;;  %v29244_v15 = vpop.permute.xlu2 %2678  ;;  %v6845_v35 = vrot.slane %v6844_v33, 4 }
 0x7ff   : > { %v6754_v3 = vperm.slane %v6750_v28, %v28351_v41  ;;  %34549 = vst [vmem:[#allocation36_spill] sm:$0xff] %v29244_v15 }
 0x801   : > { %v6762_v22 = vsel %vm831_vm0, %v6761_v43, %v6754_v3  ;;  %v6763_v33 = vrot.slane %v6754_v3, 4 }
 0x802   : > { %v29250_v46 = vperm.slane %v6762_v22, %v28621_v57 }
 0x804   : > { %6036 = vrot.lane.b32.xlu1 %v5927_v1, %s28227_s17  ;;  %v6015_v1 = vsel %vm831_vm0, 0.0, %v6014_v0  ;;  %34550 = vst [vmem:[#allocation32_spill] sm:$0xff] %v29250_v46  ;;  %v6773_v21 = vrot.slane %v29250_v46, 4 }
 0x805   : > { %6887 = vrot.lane.b32.xlu2 %v6856_v48, %s28227_s17  ;;  %v29234_v50 = vpop.permute.xlu1 %3485 }
 0x806   : > { %v29255_v28 = vpop.permute.xlu2 %3487 }
 0x80c   : > { %6040 = vrot.lane.b32.xlu1 %v29143_v58, %s28227_s17  ;;  %v5931_v58 = vsel %vm831_vm0, 0.0, %v5930_v29  ;;  %v6846_v29 = vsel %vm831_vm0, %v6845_v35, %v6838_v23  ;;  %v6764_v35 = vsel %vm831_vm0, %v6760_v44, %v6763_v33  ;;  %v6859_v44 = vrot.slane %v6856_v48, 4 }
 0x80d   : > { %6901 = vrot.lane.b32.xlu2 %v6832_v25, %s28228_s18  ;;  %v29246_v25 = vpop.permute.xlu1 %3491  ;;  %v29261_v43 = vperm.slane %v6846_v29, %v28621_v57 }
 0x80e   : > { %v6860_v59 = vsel %vm831_vm0, 0.0, %v6859_v44 }
 0x80f   : > { %34551 = vst [vmem:[#allocation45_spill] sm:$0xff] %v29261_v43  ;;  %v6857_v0 = vrot.slane %v29261_v43, 4 }
 0x811   : > { %v6858_v22 = vsel %vm831_vm0, 0.0, %v6857_v0 }
 0x814   : > { %6052 = vrot.lane.b32.xlu1 %v5931_v58, %s28228_s18  ;;  %v6774_v58 = vsel %vm831_vm0, 0.0, %v6773_v21  ;;  %v6772_v21 = vperm.slane %v6764_v35, %v28621_v57 }
 0x815   : > { %v29257_v63 = vpop.permute.xlu1 %3501 }
 0x816   : > { %v6775_v3 = vrot.slane %v6772_v21, 4 }
 0x818   : > { %v6776_v15 = vsel %vm831_vm0, 0.0, %v6775_v3 }
 0x81c   : > { %6058 = vrot.lane.b32.xlu1 %v6015_v1, %s28228_s18  ;;  %v29267_v1 = vpop.permute.xlu2 %3503 }
 0x81d   : > { %v29269_v23 = vpop.permute.xlu1 %3505 }
 0x824   : > { %6865 = vrot.lane.b32.xlu1 %v6774_v58, %s28226_s16  ;;  %v29274_v29 = vpop.permute.xlu2 %3517 }
 0x825   : > { %v29276_v58 = vpop.permute.xlu1 %3519 }
 0x82c   : > { %6871 = vrot.lane.b32.xlu1 %v6858_v22, %s28226_s16  ;;  %v29279_v0 = vpop.permute.xlu2 %3523 }
 0x82d   : > { %v29281_v22 = vpop.permute.xlu1 %4330 }
 0x834   : > { %6881 = vrot.lane.b32.xlu1 %v6772_v21, %s28227_s17  ;;  %v29285_v33 = vpop.permute.xlu2 %4332 }
 0x835   : > { %34552 = vst [vmem:[#allocation44_spill] sm:$0xff] %v29285_v33  ;;  %v29287_v35 = vpop.permute.xlu1 %4336 }
 0x836   : > { %34553 = vst [vmem:[#allocation46_spill] sm:$0xff] %v29287_v35 }
 0x83c   : > { %6885 = vrot.lane.b32.xlu1 %v6828_v7, %s28227_s17  ;;  %v27969_v7 = vld [vmem:[%s28325_s15 + $0x20] sm:$0xff]  ;;  %v29292_v21 = vpop.permute.xlu2 %4348 }
 0x83d   : > { %7094 = vxpose.xlu2.b32.start.end [1/1] (short) (narrow) %v27969_v7, 16  ;;  %34554 = vst [vmem:[#allocation42_spill] sm:$0xff] %v29292_v21  ;;  %v29294_v13 = vpop.permute.xlu1 %4346  ;;  %v7090_v62 = vrot.slane %v27969_v7, 4 }
 0x844   : > { %6897 = vrot.lane.b32.xlu1 %v6776_v15, %s28228_s18  ;;  %v29296_v20 = vpop.permute.xlu2 %4352  ;;  %v27970_v15 = vld [vmem:[%s28325_s15 + $0x28] sm:$0xff] }
 0x845   : > { %34555 = vst [vmem:[#allocation53_spill] sm:$0xff] %v29296_v20  ;;  %v29298_v3 = vpop.permute.xlu1 %4350  ;;  %7158 = vxpose.xlu0.b32.start.end [1/1] (short) (narrow) %v27970_v15, 16  ;;  %v7091_v43 = vrot.slane %v27970_v15, 4 }
 0x84c   : > { %6903 = vrot.lane.b32.xlu1 %v6860_v59, %s28228_s18  ;;  %v29301_v48 = vpop.permute.xlu2 %4366 }
 0x84d   : > { %v29303_v33 = vpop.permute.xlu1 %4364 }
 0x84e   : > { %34556 = vst [vmem:[#allocation41_spill] sm:$0xff] %v29303_v33 }
 0x854   : > { %v29305_v44 = vpop.permute.xlu2 %5177 }
 0x855   : > { %7190 = vxpose.xlu0.b32.start.end [1/1] (short) (narrow) %v7091_v43, 16  ;;  %34557 = vst [vmem:[#allocation50_spill] sm:$0xff] %v29305_v44  ;;  %v29307_v59 = vpop.permute.xlu1 %5175 }
 0x856   : > { %34558 = vst [vmem:[#allocation54_spill] sm:$0xff] %v29307_v59 }
 0x85c   : > { %v29309_v27 = vpop.permute.xlu2 %5193 }
 0x85d   : > { %34559 = vst [vmem:[#allocation40_spill] sm:$0xff] %v29309_v27  ;;  %v29311_v21 = vpop.permute.xlu1 %5181 }
 0x85e   : > { %34560 = vst [vmem:[#allocation52_spill] sm:$0xff] %v29311_v21 }
 0x864   : > { %v29313_v46 = vpop.permute.xlu2 %5197 }
 0x865   : > { %34561 = vst [vmem:[#allocation59_spill] sm:$0xff] %v29313_v46  ;;  %v29315_v10 = vpop.permute.xlu1 %5191 }
 0x866   : > { %34562 = vst [vmem:[#allocation60_spill] sm:$0xff] %v29315_v10 }
 0x86c   : > { %v29317_v45 = vpop.permute.xlu2 %5211 }
 0x86d   : > { %34563 = vst [vmem:[#allocation58_spill] sm:$0xff] %v29317_v45  ;;  %v29319_v5 = vpop.permute.xlu1 %5195 }
 0x86e   : > { %34564 = vst [vmem:[#allocation61_spill] sm:$0xff] %v29319_v5 }
 0x874   : > { %v29321_v15 = vpop.permute.xlu2 %6022 }
 0x875   : > { %34565 = vst [vmem:[#allocation48_spill] sm:$0xff] %v29321_v15  ;;  %v29323_v43 = vpop.permute.xlu1 %5207 }
 0x876   : > { %34566 = vst [vmem:[#allocation51_spill] sm:$0xff] %v29323_v43 }
 0x87c   : > { %v29325_v33 = vpop.permute.xlu2 %6038 }
 0x87d   : > { %34567 = vst [vmem:[#allocation56_spill] sm:$0xff] %v29325_v33  ;;  %v29327_v59 = vpop.permute.xlu1 %5213 }
 0x87e   : > { %34568 = vst [vmem:[#allocation49_spill] sm:$0xff] %v29327_v59 }
 0x881   : > { %7126 = vxpose.xlu1.b32.start.end [1/1] (short) (narrow) %v7090_v62, 16 }
 0x884   : > { %v29329_v27 = vpop.permute.xlu2 %6042 }
 0x885   : > { %34569 = vst [vmem:[#allocation47_spill] sm:$0xff] %v29329_v27  ;;  %v29331_v7 = vpop.permute.xlu1 %6020 }
 0x886   : > { %34570 = vst [vmem:[#allocation55_spill] sm:$0xff] %v29331_v7 }
 0x88c   : > { %v29333_v62 = vpop.permute.xlu2 %6056 }
 0x88d   : > { %34571 = vst [vmem:[#allocation68_spill] sm:$0xff] %v29333_v62  ;;  %v29335_v46 = vpop.permute.xlu1 %6026 }
 0x88e   : > { %34572 = vst [vmem:[#allocation69_spill] sm:$0xff] %v29335_v46 }
 0x894   : > { %v29337_v21 = vpop.permute.xlu2 %6867 }
 0x895   : > { %34573 = vst [vmem:[#allocation70_spill] sm:$0xff] %v29337_v21  ;;  %v29339_v10 = vpop.permute.xlu1 %6036 }
 0x896   : > { %34574 = vst [vmem:[#allocation71_spill] sm:$0xff] %v29339_v10 }
 0x89c   : > { %v29341_v18 = vpop.permute.xlu2 %6883 }
 0x89d   : > { %34575 = vst [vmem:[#allocation72_spill] sm:$0xff] %v29341_v18  ;;  %v29343_v15 = vpop.permute.xlu1 %6040 }
 0x89e   : > { %34576 = vst [vmem:[#allocation73_spill] sm:$0xff] %v29343_v15 }
 0x8a4   : > { %v29345_v43 = vpop.permute.xlu2 %6887 }
 0x8a5   : > { %34577 = vst [vmem:[#allocation74_spill] sm:$0xff] %v29345_v43  ;;  %v29347_v33 = vpop.permute.xlu1 %6052 }
 0x8a6   : > { %34578 = vst [vmem:[#allocation75_spill] sm:$0xff] %v29347_v33 }
 0x8ac   : > { %v29349_v59 = vpop.permute.xlu2 %6901 }
 0x8ad   : > { %34579 = vst [vmem:[#allocation76_spill] sm:$0xff] %v29349_v59  ;;  %v29351_v27 = vpop.permute.xlu1 %6058 }
 0x8ae   : > { %34580 = vst [vmem:[#allocation77_spill] sm:$0xff] %v29351_v27 }
 0x8b5   : > { %v29353_v46 = vpop.permute.xlu1 %6865 }
 0x8b6   : > { %34581 = vst [vmem:[#allocation78_spill] sm:$0xff] %v29353_v46 }
 0x8bd   : > { %v29355_v18 = vpop.permute.xlu1 %6871 }
 0x8be   : > { %34582 = vst [vmem:[#allocation79_spill] sm:$0xff] %v29355_v18 }
 0x8c5   : > { %v29357_v15 = vpop.permute.xlu1 %6881 }
 0x8c6   : > { %34583 = vst [vmem:[#allocation80_spill] sm:$0xff] %v29357_v15 }
 0x8cd   : > { %v29359_v43 = vpop.permute.xlu1 %6885 }
 0x8ce   : > { %34584 = vst [vmem:[#allocation81_spill] sm:$0xff] %v29359_v43 }
 0x8d5   : > { %v29361_v33 = vpop.permute.xlu1 %6897 }
 0x8d6   : > { %v7110_v7 = vpop.trf.xlu2  ;;  %34585 = vst [vmem:[#allocation82_spill] sm:$0xff] %v29361_v33  ;;  %v27972_v33 = vld [vmem:[%s28325_s15 + $0x38] sm:$0xff] }
 0x8d7   : > { %v7230_v62 = vrot.slane %v7110_v7, 4  ;;  %7246 = vxpose.xlu2.b32.start.end [1/1] (short) (narrow) %v7110_v7, 8 }
 0x8d9   : > { %7278 = vxpose.xlu0.b32.start.end [1/1] (short) (narrow) %v7230_v62, 8 }
 0x8dd   : > { %v29363_v59 = vpop.permute.xlu1 %6903 }
 0x8de   : > { %v7111_v21 = vpop.trf.xlu2  ;;  %34586 = vst [vmem:[#allocation83_spill] sm:$0xff] %v29363_v59 }
 0x8df   : > { %v7231_v10 = vrot.slane %v7111_v21, 4  ;;  %7310 = vxpose.xlu1.b32.start.end [1/1] (short) (narrow) %v7111_v21, 8 }
 0x8e1   : > { %7342 = vxpose.xlu2.b32.start.end [1/1] (short) (narrow) %v7231_v10, 8 }
 0x8e9   : > { %v7174_v27 = vpop.trf.xlu0 }
 0x8ea   : > { %v7234_v21 = vrot.slane %v7174_v27, 4 }
 0x8f1   : > { %v7175_v62 = vpop.trf.xlu0 }
 0x8f2   : > { %v7235_v18 = vrot.slane %v7175_v62, 4 }
 0x8f9   : > { %v7206_v10 = vpop.trf.xlu0 }
 0x8fa   : > { %v7236_v43 = vrot.slane %v7206_v10, 4 }
 0x901   : > { %v7207_v59 = vpop.trf.xlu0 }
 0x925   : > { %v7142_v44 = vpop.trf.xlu1 }
 0x926   : > { %v7232_v7 = vrot.slane %v7142_v44, 4  ;;  %7374 = vxpose.xlu2.b32.start.end [1/1] (short) (narrow) %v7142_v44, 8  ;;  %v7237_v44 = vrot.slane %v7207_v59, 4 }
 0x928   : > { %7406 = vxpose.xlu0.b32.start.end [1/1] (short) (narrow) %v7232_v7, 8  ;;  %v27971_v7 = vld [vmem:[%s28325_s15 + $0x30] sm:$0xff] }
 0x92d   : > { %v7143_v46 = vpop.trf.xlu1 }
 0x92e   : > { %v7233_v45 = vrot.slane %v7143_v46, 4  ;;  %7438 = vxpose.xlu1.b32.start.end [1/1] (short) (narrow) %v7143_v46, 8  ;;  %v7935_v46 = vrot.slane %v27971_v7, 4 }
 0x930   : > { %7470 = vxpose.xlu2.b32.start.end [1/1] (short) (narrow) %v7233_v45, 8  ;;  %7502 = vxpose.xlu0.b32.start.end [1/1] (short) (narrow) %v7174_v27, 8  ;;  %v7936_v45 = vrot.slane %v27972_v33, 4 }
 0x936   : > { %7534 = vxpose.xlu1.b32.start.end [1/1] (short) (narrow) %v7234_v21, 8 }
 0x938   : > { %7598 = vxpose.xlu0.b32.start.end [1/1] (short) (narrow) %v7235_v18, 8  ;;  %7566 = vxpose.xlu2.b32.start.end [1/1] (short) (narrow) %v7175_v62, 8 }
 0x93e   : > { %7630 = vxpose.xlu1.b32.start.end [1/1] (short) (narrow) %v7206_v10, 8 }
 0x940   : > { %7662 = vxpose.xlu2.b32.start.end [1/1] (short) (narrow) %v7236_v43, 8  ;;  %7694 = vxpose.xlu0.b32.start.end [1/1] (short) (narrow) %v7207_v59, 8 }
 0x946   : > { %7726 = vxpose.xlu1.b32.start.end [1/1] (short) (narrow) %v7237_v44, 8 }
 0x948   : > { %7939 = vxpose.xlu2.b32.start.end [1/1] (short) (narrow) %v27971_v7, 16  ;;  %8003 = vxpose.xlu0.b32.start.end [1/1] (short) (narrow) %v27972_v33, 16 }
 0x94e   : > { %7971 = vxpose.xlu1.b32.start.end [1/1] (short) (narrow) %v7935_v46, 16 }
 0x958   : > { %8035 = vxpose.xlu2.b32.start.end [1/1] (short) (narrow) %v7936_v45, 16 }
 0x970   : > { %v7262_v27 = vpop.trf.xlu2 }
 0x97a   : > { %v7358_v15 = vpop.trf.xlu2 }
 0x97b   : > { %v7764_v21 = vrot.slane %v7358_v15, 4 }
 0x97d   : > { %v7294_v18 = vpop.trf.xlu0 }
 0x97e   : > { %v7765_v62 = vsel %vm831_vm0, %v7764_v21, %v7294_v18 }
 0x97f   : > { %v29369_v43 = vperm.slane %v7765_v62, %v28351_v41 }
 0x981   : > { %34587 = vst [vmem:[#allocation84_spill] sm:$0xff] %v29369_v43  ;;  %v7770_v7 = vrot.slane %v29369_v43, 4 }
 0x983   : > { %v7326_v5 = vpop.trf.xlu1 }
 0x984   : > { %v7758_v10 = vrot.slane %v7326_v5, 4 }
 0x986   : > { %v7759_v59 = vsel %vm831_vm0, %v7758_v10, %v7262_v27 }
 0x987   : > { %v29373_v44 = vperm.slane %v7759_v59, %v28351_v41 }
 0x989   : > { %34588 = vst [vmem:[#allocation85_spill] sm:$0xff] %v29373_v44  ;;  %v29378_v33 = vsel %vm831_vm0, %v7770_v7, %v29373_v44 }
 0x98a   : > { %34589 = vst [vmem:[#allocation86_spill] sm:$0xff] %v29378_v33 }
 0x9bf   : > { %v29380_v15 = vpop.trf.xlu2 }
 0x9c0   : > { %34590 = vst [vmem:[#allocation87_spill] sm:$0xff] %v29380_v15 }
 0x9c9   : > { %v29382_v46 = vpop.trf.xlu2 }
 0x9ca   : > { %34591 = vst [vmem:[#allocation88_spill] sm:$0xff] %v29382_v46 }
 0x9cc   : > { %v29384_v45 = vpop.trf.xlu0 }
 0x9cd   : > { %34592 = vst [vmem:[#allocation89_spill] sm:$0xff] %v29384_v45 }
 0x9d1   : > { %v29386_v5 = vpop.trf.xlu2 }
 0x9d2   : > { %34593 = vst [vmem:[#allocation90_spill] sm:$0xff] %v29386_v5  ;;  %v29388_v21 = vpop.trf.xlu1 }
 0x9d3   : > { %34594 = vst [vmem:[#allocation91_spill] sm:$0xff] %v29388_v21 }
 0x9d4   : > { %v29390_v27 = vpop.trf.xlu0 }
 0x9d5   : > { %34595 = vst [vmem:[#allocation92_spill] sm:$0xff] %v29390_v27 }
 0x9d9   : > { %v29392_v18 = vpop.trf.xlu2 }
 0x9da   : > { %34596 = vst [vmem:[#allocation93_spill] sm:$0xff] %v29392_v18  ;;  %v29394_v62 = vpop.trf.xlu1 }
 0x9db   : > { %34597 = vst [vmem:[#allocation94_spill] sm:$0xff] %v29394_v62  ;;  %v27974_v62 = vld [vmem:[%s28325_s15 + $0xa8] sm:$0xff] }
 0x9dc   : > { %v29396_v59 = vpop.trf.xlu0 }
 0x9dd   : > { %34598 = vst [vmem:[#allocation95_spill] sm:$0xff] %v29396_v59 }
 0x9e1   : > { %v7955_v10 = vpop.trf.xlu2 }
 0x9e2   : > { %v8075_v7 = vrot.slane %v7955_v10, 4  ;;  %v29398_v33 = vpop.trf.xlu1  ;;  %8091 = vxpose.xlu0.b32.start.end [1/1] (short) (narrow) %v7955_v10, 8 }
 0x9e3   : > { %34599 = vst [vmem:[#allocation96_spill] sm:$0xff] %v29398_v33 }
 0x9e4   : > { %8123 = vxpose.xlu1.b32.start.end [1/1] (short) (narrow) %v8075_v7, 8  ;;  %v29402_v21 = vpop.trf.xlu0 }
 0x9e5   : > { %34601 = vst [vmem:[#allocation98_spill] sm:$0xff] %v29402_v21 }
 0x9e9   : > { %v7956_v43 = vpop.trf.xlu2 }
 0x9ea   : > { %v8076_v44 = vrot.slane %v7956_v43, 4  ;;  %v29400_v15 = vpop.trf.xlu1  ;;  %8155 = vxpose.xlu2.b32.start.end [1/1] (short) (narrow) %v7956_v43, 8 }
 0x9eb   : > { %34600 = vst [vmem:[#allocation97_spill] sm:$0xff] %v29400_v15 }
 0x9ec   : > { %8187 = vxpose.xlu0.b32.start.end [1/1] (short) (narrow) %v8076_v44, 8  ;;  %v8019_v45 = vpop.trf.xlu0 }
 0x9ed   : > { %v8079_v33 = vrot.slane %v8019_v45, 4 }
 0x9f1   : > { %v8051_v7 = vpop.trf.xlu2 }
 0x9f2   : > { %v7987_v27 = vpop.trf.xlu1  ;;  %v8081_v44 = vrot.slane %v8051_v7, 4 }
 0x9f3   : > { %v8077_v18 = vrot.slane %v7987_v27, 4 }
 0x9f4   : > { %8219 = vxpose.xlu0.b32.start.end [1/1] (short) (narrow) %v7987_v27, 8  ;;  %v8020_v10 = vpop.trf.xlu0  ;;  %v27973_v27 = vld [vmem:[%s28325_s15 + $0xa0] sm:$0xff] }
 0x9f5   : > { %8251 = vxpose.xlu1.b32.start.end [1/1] (short) (narrow) %v8077_v18, 8  ;;  %v8080_v15 = vrot.slane %v8020_v10, 4  ;;  %v8780_v21 = vrot.slane %v27973_v27, 4 }
 0x9f9   : > { %v8052_v43 = vpop.trf.xlu2 }
 0x9fa   : > { %v7988_v5 = vpop.trf.xlu1  ;;  %v8082_v18 = vrot.slane %v8052_v43, 4 }
 0x9fb   : > { %v8078_v46 = vrot.slane %v7988_v5, 4  ;;  %8283 = vxpose.xlu2.b32.start.end [1/1] (short) (narrow) %v7988_v5, 8 }
 0x9fd   : > { %8315 = vxpose.xlu0.b32.start.end [1/1] (short) (narrow) %v8078_v46, 8  ;;  %8347 = vxpose.xlu1.b32.start.end [1/1] (short) (narrow) %v8019_v45, 8  ;;  %v8781_v46 = vrot.slane %v27974_v62, 4 }
 0xa03   : > { %8379 = vxpose.xlu2.b32.start.end [1/1] (short) (narrow) %v8079_v33, 8 }
 0xa05   : > { %8443 = vxpose.xlu1.b32.start.end [1/1] (short) (narrow) %v8080_v15, 8  ;;  %8411 = vxpose.xlu0.b32.start.end [1/1] (short) (narrow) %v8020_v10, 8 }
 0xa0b   : > { %8475 = vxpose.xlu2.b32.start.end [1/1] (short) (narrow) %v8051_v7, 8 }
 0xa0d   : > { %8539 = vxpose.xlu1.b32.start.end [1/1] (short) (narrow) %v8052_v43, 8  ;;  %8507 = vxpose.xlu0.b32.start.end [1/1] (short) (narrow) %v8081_v44, 8 }
 0xa13   : > { %8571 = vxpose.xlu2.b32.start.end [1/1] (short) (narrow) %v8082_v18, 8 }
 0xa15   : > { %8816 = vxpose.xlu1.b32.start.end [1/1] (short) (narrow) %v8780_v21, 16  ;;  %8848 = vxpose.xlu0.b32.start.end [1/1] (short) (narrow) %v27974_v62, 16 }
 0xa1b   : > { %8784 = vxpose.xlu2.b32.start.end [1/1] (short) (narrow) %v27973_v27, 16 }
 0xa2b   : > { %8880 = vxpose.xlu2.b32.start.end [1/1] (short) (narrow) %v8781_v46, 16 }
 0xa83   : > { %v29408_v33 = vpop.trf.xlu2 }
 0xa84   : > { %34603 = vst [vmem:[#allocation100_spill] sm:$0xff] %v29408_v33 }
 0xa86   : > { %v29406_v45 = vpop.trf.xlu0 }
 0xa87   : > { %34602 = vst [vmem:[#allocation99_spill] sm:$0xff] %v29406_v45 }
 0xa88   : > { %v29410_v15 = vpop.trf.xlu1 }
 0xa89   : > { %34604 = vst [vmem:[#allocation101_spill] sm:$0xff] %v29410_v15 }
 0xa90   : > { %v29412_v5 = vpop.trf.xlu0 }
 0xa91   : > { %34605 = vst [vmem:[#allocation102_spill] sm:$0xff] %v29412_v5 }
 0xa94   : > { %v29414_v10 = vpop.trf.xlu2 }
 0xa95   : > { %34606 = vst [vmem:[#allocation103_spill] sm:$0xff] %v29414_v10 }
 0xa98   : > { %v29416_v7 = vpop.trf.xlu0 }
 0xa99   : > { %34607 = vst [vmem:[#allocation104_spill] sm:$0xff] %v29416_v7  ;;  %v29418_v43 = vpop.trf.xlu1 }
 0xa9a   : > { %34608 = vst [vmem:[#allocation105_spill] sm:$0xff] %v29418_v43 }
 0xa9c   : > { %v8395_v44 = vpop.trf.xlu2 }
 0xaa1   : > { %v8363_v21 = vpop.trf.xlu1  ;;  %v29420_v18 = vpop.trf.xlu0 }
 0xaa2   : > { %34609 = vst [vmem:[#allocation106_spill] sm:$0xff] %v29420_v18 }
 0xaa4   : > { %v29422_v62 = vpop.trf.xlu2 }
 0xaa5   : > { %34610 = vst [vmem:[#allocation107_spill] sm:$0xff] %v29422_v62 }
 0xaa9   : > { %v8459_v27 = vpop.trf.xlu1  ;;  %v8427_v46 = vpop.trf.xlu0 }
 0xaaa   : > { %v8665_v45 = vrot.slane %v8459_v27, 4  ;;  %v8659_v33 = vrot.slane %v8427_v46, 4 }
 0xaac   : > { %v8666_v15 = vsel %vm831_vm0, %v8665_v45, %v8395_v44  ;;  %v8660_v5 = vsel %vm831_vm0, %v8659_v33, %v8363_v21  ;;  %v29426_v59 = vpop.trf.xlu2 }
 0xaad   : > { %34611 = vst [vmem:[#allocation108_spill] sm:$0xff] %v29426_v59  ;;  %v29429_v7 = vperm.slane %v8666_v15, %v28351_v41  ;;  %v29433_v43 = vperm.slane %v8660_v5, %v28351_v41 }
 0xaaf   : > { %34612 = vst [vmem:[#allocation109_spill] sm:$0xff] %v29429_v7  ;;  %v8671_v10 = vrot.slane %v29429_v7, 4 }
 0xab0   : > { %34613 = vst [vmem:[#allocation110_spill] sm:$0xff] %v29433_v43 }
 0xab1   : > { %v29435_v18 = vpop.trf.xlu1  ;;  %v29439_v27 = vsel %vm831_vm0, %v8671_v10, %v29433_v43  ;;  %v29441_v33 = vpop.trf.xlu0 }
 0xab2   : > { %34614 = vst [vmem:[#allocation111_spill] sm:$0xff] %v29435_v18 }
 0xab3   : > { %34615 = vst [vmem:[#allocation112_spill] sm:$0xff] %v29439_v27 }
 0xab4   : > { %v8800_v46 = vpop.trf.xlu2  ;;  %34616 = vst [vmem:[#allocation113_spill] sm:$0xff] %v29441_v33 }
 0xab5   : > { %v8920_v45 = vrot.slane %v8800_v46, 4  ;;  %8936 = vxpose.xlu0.b32.start.end [1/1] (short) (narrow) %v8800_v46, 8 }
 0xab7   : > { %8968 = vxpose.xlu1.b32.start.end [1/1] (short) (narrow) %v8920_v45, 8 }
 0xab9   : > { %v8832_v44 = vpop.trf.xlu1  ;;  %v8864_v7 = vpop.trf.xlu0 }
 0xaba   : > { %v8922_v15 = vrot.slane %v8832_v44, 4  ;;  %v8924_v43 = vrot.slane %v8864_v7, 4 }
 0xabc   : > { %v8801_v21 = vpop.trf.xlu2 }
 0xabd   : > { %v8921_v62 = vrot.slane %v8801_v21, 4  ;;  %9000 = vxpose.xlu2.b32.start.end [1/1] (short) (narrow) %v8801_v21, 8 }
 0xabf   : > { %9096 = vxpose.xlu1.b32.start.end [1/1] (short) (narrow) %v8922_v15, 8  ;;  %9032 = vxpose.xlu0.b32.start.end [1/1] (short) (narrow) %v8921_v62, 8  ;;  %v27975_v15 = vld [vmem:[%s28325_s15 + $0xb0] sm:$0xff] }
 0xac0   : > { %v9625_v21 = vrot.slane %v27975_v15, 4 }
 0xac1   : > { %v8833_v5 = vpop.trf.xlu1  ;;  %v8865_v10 = vpop.trf.xlu0 }
 0xac2   : > { %v8925_v46 = vrot.slane %v8865_v10, 4  ;;  %v8923_v33 = vrot.slane %v8833_v5, 4 }
 0xac4   : > { %v8896_v27 = vpop.trf.xlu2 }
 0xac5   : > { %9128 = vxpose.xlu2.b32.start.end [1/1] (short) (narrow) %v8833_v5, 8  ;;  %v8926_v18 = vrot.slane %v8896_v27, 4 }
 0xac7   : > { %9064 = vxpose.xlu0.b32.start.end [1/1] (short) (narrow) %v8832_v44, 8  ;;  %9192 = vxpose.xlu1.b32.start.end [1/1] (short) (narrow) %v8864_v7, 8  ;;  %v27976_v44 = vld [vmem:[%s28325_s15 + $0xb8] sm:$0xff] }
 0xac8   : > { %v9626_v7 = vrot.slane %v27976_v44, 4 }
 0xacc   : > { %v8897_v45 = vpop.trf.xlu2 }
 0xacd   : > { %9224 = vxpose.xlu2.b32.start.end [1/1] (short) (narrow) %v8924_v43, 8  ;;  %v8927_v62 = vrot.slane %v8897_v45, 4 }
 0xacf   : > { %9160 = vxpose.xlu0.b32.start.end [1/1] (short) (narrow) %v8923_v33, 8  ;;  %9288 = vxpose.xlu1.b32.start.end [1/1] (short) (narrow) %v8925_v46, 8 }
 0xad5   : > { %9320 = vxpose.xlu2.b32.start.end [1/1] (short) (narrow) %v8896_v27, 8 }
 0xad7   : > { %9384 = vxpose.xlu1.b32.start.end [1/1] (short) (narrow) %v8897_v45, 8  ;;  %9256 = vxpose.xlu0.b32.start.end [1/1] (short) (narrow) %v8865_v10, 8 }
 0xadd   : > { %9416 = vxpose.xlu2.b32.start.end [1/1] (short) (narrow) %v8927_v62, 8 }
 0xadf   : > { %9352 = vxpose.xlu0.b32.start.end [1/1] (short) (narrow) %v8926_v18, 8  ;;  %9661 = vxpose.xlu1.b32.start.end [1/1] (short) (narrow) %v9625_v21, 16 }
 0xae5   : > { %9629 = vxpose.xlu2.b32.start.end [1/1] (short) (narrow) %v27975_v15, 16 }
 0xae7   : > { %9693 = vxpose.xlu0.b32.start.end [1/1] (short) (narrow) %v27976_v44, 16 }
 0xaf5   : > { %9725 = vxpose.xlu2.b32.start.end [1/1] (short) (narrow) %v9626_v7, 16 }
 0xb56   : > { %v29445_v5 = vpop.trf.xlu2 }
 0xb57   : > { %34617 = vst [vmem:[#allocation114_spill] sm:$0xff] %v29445_v5 }
 0xb59   : > { %v29447_v43 = vpop.trf.xlu0 }
 0xb5a   : > { %34618 = vst [vmem:[#allocation115_spill] sm:$0xff] %v29447_v43 }
 0xb5b   : > { %v29449_v33 = vpop.trf.xlu1 }
 0xb5c   : > { %34619 = vst [vmem:[#allocation116_spill] sm:$0xff] %v29449_v33 }
 0xb5e   : > { %v29451_v46 = vpop.trf.xlu2 }
 0xb5f   : > { %34620 = vst [vmem:[#allocation117_spill] sm:$0xff] %v29451_v46 }
 0xb63   : > { %v29453_v10 = vpop.trf.xlu1  ;;  %v29455_v45 = vpop.trf.xlu0 }
 0xb64   : > { %34621 = vst [vmem:[#allocation118_spill] sm:$0xff] %v29453_v10 }
 0xb65   : > { %34622 = vst [vmem:[#allocation119_spill] sm:$0xff] %v29455_v45 }
 0xb66   : > { %v9240_v27 = vpop.trf.xlu2 }
 0xb6b   : > { %v9208_v18 = vpop.trf.xlu1  ;;  %v29457_v62 = vpop.trf.xlu0 }
 0xb6c   : > { %34623 = vst [vmem:[#allocation120_spill] sm:$0xff] %v29457_v62 }
 0xb6e   : > { %v29459_v15 = vpop.trf.xlu2 }
 0xb6f   : > { %34624 = vst [vmem:[#allocation121_spill] sm:$0xff] %v29459_v15 }
 0xb73   : > { %v9304_v21 = vpop.trf.xlu1  ;;  %v29461_v44 = vpop.trf.xlu0 }
 0xb74   : > { %34625 = vst [vmem:[#allocation122_spill] sm:$0xff] %v29461_v44  ;;  %v9510_v7 = vrot.slane %v9304_v21, 4 }
 0xb76   : > { %v29463_v5 = vpop.trf.xlu2  ;;  %v9511_v43 = vsel %vm831_vm0, %v9510_v7, %v9240_v27 }
 0xb77   : > { %34626 = vst [vmem:[#allocation123_spill] sm:$0xff] %v29463_v5  ;;  %v29467_v46 = vperm.slane %v9511_v43, %v28351_v41 }
 0xb79   : > { %34627 = vst [vmem:[#allocation124_spill] sm:$0xff] %v29467_v46  ;;  %v9516_v15 = vrot.slane %v29467_v46, 4 }
 0xb7b   : > { %v29469_v10 = vpop.trf.xlu1  ;;  %v9272_v33 = vpop.trf.xlu0 }
 0xb7c   : > { %34628 = vst [vmem:[#allocation125_spill] sm:$0xff] %v29469_v10  ;;  %v9504_v45 = vrot.slane %v9272_v33, 4 }
 0xb7e   : > { %v9505_v59 = vsel %vm831_vm0, %v9504_v45, %v9208_v18  ;;  %v9645_v62 = vpop.trf.xlu2 }
 0xb7f   : > { %v29474_v20 = vperm.slane %v9505_v59, %v28351_v41  ;;  %v9765_v21 = vrot.slane %v9645_v62, 4  ;;  %9781 = vxpose.xlu0.b32.start.end [1/1] (short) (narrow) %v9645_v62, 8 }
 0xb81   : > { %34629 = vst [vmem:[#allocation126_spill] sm:$0xff] %v29474_v20  ;;  %9813 = vxpose.xlu1.b32.start.end [1/1] (short) (narrow) %v9765_v21, 8  ;;  %v29478_v27 = vsel %vm831_vm0, %v9516_v15, %v29474_v20 }
 0xb82   : > { %34630 = vst [vmem:[#allocation127_spill] sm:$0xff] %v29478_v27 }
 0xb83   : > { %v29480_v43 = vpop.trf.xlu0  ;;  %v9677_v7 = vpop.trf.xlu1 }
 0xb84   : > { %34631 = vst [vmem:[#allocation128_spill] sm:$0xff] %v29480_v43  ;;  %v9767_v5 = vrot.slane %v9677_v7, 4 }
 0xb86   : > { %v9646_v33 = vpop.trf.xlu2 }
 0xb87   : > { %v9766_v10 = vrot.slane %v9646_v33, 4  ;;  %9845 = vxpose.xlu2.b32.start.end [1/1] (short) (narrow) %v9646_v33, 8 }
 0xb89   : > { %9941 = vxpose.xlu1.b32.start.end [1/1] (short) (narrow) %v9767_v5, 8  ;;  %9877 = vxpose.xlu0.b32.start.end [1/1] (short) (narrow) %v9766_v10, 8  ;;  %v27977_v5 = vld [vmem:[%s28325_s15 + $0x120] sm:$0xff] }
 0xb8a   : > { %v10470_v33 = vrot.slane %v27977_v5, 4 }
 0xb8b   : > { %v9709_v45 = vpop.trf.xlu0  ;;  %v9678_v18 = vpop.trf.xlu1 }
 0xb8c   : > { %v9769_v59 = vrot.slane %v9709_v45, 4  ;;  %v9768_v27 = vrot.slane %v9678_v18, 4 }
 0xb8e   : > { %v9741_v21 = vpop.trf.xlu2 }
 0xb8f   : > { %9973 = vxpose.xlu2.b32.start.end [1/1] (short) (narrow) %v9678_v18, 8  ;;  %v9771_v20 = vrot.slane %v9741_v21, 4 }
 0xb91   : > { %9909 = vxpose.xlu0.b32.start.end [1/1] (short) (narrow) %v9677_v7, 8  ;;  %10037 = vxpose.xlu1.b32.start.end [1/1] (short) (narrow) %v9709_v45, 8  ;;  %v27978_v7 = vld [vmem:[%s28325_s15 + $0x128] sm:$0xff] }
 0xb92   : > { %v10471_v45 = vrot.slane %v27978_v7, 4 }
 0xb93   : > { %v9710_v62 = vpop.trf.xlu0 }
 0xb94   : > { %v9770_v15 = vrot.slane %v9710_v62, 4 }
 0xb96   : > { %v9742_v46 = vpop.trf.xlu2 }
 0xb97   : > { %10069 = vxpose.xlu2.b32.start.end [1/1] (short) (narrow) %v9769_v59, 8  ;;  %v9772_v10 = vrot.slane %v9742_v46, 4 }
 0xb99   : > { %10005 = vxpose.xlu0.b32.start.end [1/1] (short) (narrow) %v9768_v27, 8  ;;  %10133 = vxpose.xlu1.b32.start.end [1/1] (short) (narrow) %v9770_v15, 8 }
 0xb9f   : > { %10165 = vxpose.xlu2.b32.start.end [1/1] (short) (narrow) %v9741_v21, 8 }
 0xba1   : > { %10229 = vxpose.xlu1.b32.start.end [1/1] (short) (narrow) %v9742_v46, 8  ;;  %10101 = vxpose.xlu0.b32.start.end [1/1] (short) (narrow) %v9710_v62, 8 }
 0xba7   : > { %10261 = vxpose.xlu2.b32.start.end [1/1] (short) (narrow) %v9772_v10, 8 }
 0xba9   : > { %10197 = vxpose.xlu0.b32.start.end [1/1] (short) (narrow) %v9771_v20, 8  ;;  %10506 = vxpose.xlu1.b32.start.end [1/1] (short) (narrow) %v10470_v33, 16 }
 0xbaf   : > { %10474 = vxpose.xlu2.b32.start.end [1/1] (short) (narrow) %v27977_v5, 16 }
 0xbb1   : > { %10538 = vxpose.xlu0.b32.start.end [1/1] (short) (narrow) %v27978_v7, 16 }
 0xbbf   : > { %10570 = vxpose.xlu2.b32.start.end [1/1] (short) (narrow) %v10471_v45, 16 }
 0xc20   : > { %v29484_v18 = vpop.trf.xlu2 }
 0xc21   : > { %34632 = vst [vmem:[#allocation129_spill] sm:$0xff] %v29484_v18 }
 0xc23   : > { %v29486_v27 = vpop.trf.xlu0 }
 0xc24   : > { %34633 = vst [vmem:[#allocation130_spill] sm:$0xff] %v29486_v27 }
 0xc25   : > { %v29488_v59 = vpop.trf.xlu1 }
 0xc26   : > { %34634 = vst [vmem:[#allocation131_spill] sm:$0xff] %v29488_v59 }
 0xc28   : > { %v29490_v15 = vpop.trf.xlu2 }
 0xc29   : > { %34635 = vst [vmem:[#allocation132_spill] sm:$0xff] %v29490_v15 }
 0xc2d   : > { %v29492_v62 = vpop.trf.xlu1  ;;  %v29494_v46 = vpop.trf.xlu0 }
 0xc2e   : > { %34636 = vst [vmem:[#allocation133_spill] sm:$0xff] %v29492_v62 }
 0xc2f   : > { %34637 = vst [vmem:[#allocation134_spill] sm:$0xff] %v29494_v46 }
 0xc30   : > { %v10085_v21 = vpop.trf.xlu2 }
 0xc35   : > { %v10053_v20 = vpop.trf.xlu1  ;;  %v29496_v10 = vpop.trf.xlu0 }
 0xc36   : > { %34638 = vst [vmem:[#allocation135_spill] sm:$0xff] %v29496_v10 }
 0xc38   : > { %v29498_v5 = vpop.trf.xlu2 }
 0xc39   : > { %34639 = vst [vmem:[#allocation136_spill] sm:$0xff] %v29498_v5 }
 0xc3d   : > { %v10149_v33 = vpop.trf.xlu1  ;;  %v29500_v7 = vpop.trf.xlu0 }
 0xc3e   : > { %34640 = vst [vmem:[#allocation137_spill] sm:$0xff] %v29500_v7  ;;  %v10355_v45 = vrot.slane %v10149_v33, 4 }
 0xc40   : > { %v29502_v18 = vpop.trf.xlu2  ;;  %v10356_v27 = vsel %vm831_vm0, %v10355_v45, %v10085_v21 }
 0xc41   : > { %34641 = vst [vmem:[#allocation138_spill] sm:$0xff] %v29502_v18  ;;  %v29506_v15 = vperm.slane %v10356_v27, %v28351_v41 }
 0xc43   : > { %34642 = vst [vmem:[#allocation139_spill] sm:$0xff] %v29506_v15  ;;  %v10361_v5 = vrot.slane %v29506_v15, 4 }
 0xc45   : > { %v29508_v62 = vpop.trf.xlu1  ;;  %v10117_v59 = vpop.trf.xlu0 }
 0xc46   : > { %34643 = vst [vmem:[#allocation140_spill] sm:$0xff] %v29508_v62  ;;  %v10349_v46 = vrot.slane %v10117_v59, 4 }
 0xc48   : > { %v10350_v43 = vsel %vm831_vm0, %v10349_v46, %v10053_v20  ;;  %v10490_v10 = vpop.trf.xlu2 }
 0xc49   : > { %v29513_v44 = vperm.slane %v10350_v43, %v28351_v41  ;;  %v10610_v33 = vrot.slane %v10490_v10, 4  ;;  %10626 = vxpose.xlu0.b32.start.end [1/1] (short) (narrow) %v10490_v10, 8 }
 0xc4b   : > { %34644 = vst [vmem:[#allocation141_spill] sm:$0xff] %v29513_v44  ;;  %10658 = vxpose.xlu1.b32.start.end [1/1] (short) (narrow) %v10610_v33, 8  ;;  %v29517_v21 = vsel %vm831_vm0, %v10361_v5, %v29513_v44 }
 0xc4c   : > { %34645 = vst [vmem:[#allocation142_spill] sm:$0xff] %v29517_v21 }
 0xc4d   : > { %v29519_v27 = vpop.trf.xlu0  ;;  %v10522_v45 = vpop.trf.xlu1 }
 0xc4e   : > { %34646 = vst [vmem:[#allocation143_spill] sm:$0xff] %v29519_v27  ;;  %v10612_v18 = vrot.slane %v10522_v45, 4 }
 0xc50   : > { %v10491_v59 = vpop.trf.xlu2 }
 0xc51   : > { %v10611_v62 = vrot.slane %v10491_v59, 4  ;;  %10690 = vxpose.xlu2.b32.start.end [1/1] (short) (narrow) %v10491_v59, 8 }
 0xc53   : > { %10722 = vxpose.xlu0.b32.start.end [1/1] (short) (narrow) %v10611_v62, 8  ;;  %10786 = vxpose.xlu1.b32.start.end [1/1] (short) (narrow) %v10612_v18, 8  ;;  %v27979_v62 = vld [vmem:[%s28325_s15 + $0x130] sm:$0xff] }
 0xc54   : > { %v11315_v44 = vrot.slane %v27979_v62, 4 }
 0xc55   : > { %v10554_v46 = vpop.trf.xlu0  ;;  %v10523_v20 = vpop.trf.xlu1 }
 0xc56   : > { %v10614_v43 = vrot.slane %v10554_v46, 4  ;;  %v10613_v5 = vrot.slane %v10523_v20, 4 }
 0xc58   : > { %v10586_v33 = vpop.trf.xlu2 }
 0xc59   : > { %10818 = vxpose.xlu2.b32.start.end [1/1] (short) (narrow) %v10523_v20, 8  ;;  %v10616_v59 = vrot.slane %v10586_v33, 4 }
 0xc5b   : > { %10754 = vxpose.xlu0.b32.start.end [1/1] (short) (narrow) %v10522_v45, 8  ;;  %10882 = vxpose.xlu1.b32.start.end [1/1] (short) (narrow) %v10554_v46, 8  ;;  %v27980_v45 = vld [vmem:[%s28325_s15 + $0x138] sm:$0xff] }
 0xc5c   : > { %v11316_v46 = vrot.slane %v27980_v45, 4 }
 0xc5d   : > { %v10555_v10 = vpop.trf.xlu0 }
 0xc5e   : > { %v10615_v21 = vrot.slane %v10555_v10, 4 }
 0xc60   : > { %v10587_v15 = vpop.trf.xlu2 }
 0xc61   : > { %10914 = vxpose.xlu2.b32.start.end [1/1] (short) (narrow) %v10614_v43, 8  ;;  %v10617_v18 = vrot.slane %v10587_v15, 4 }
 0xc63   : > { %10850 = vxpose.xlu0.b32.start.end [1/1] (short) (narrow) %v10613_v5, 8  ;;  %10978 = vxpose.xlu1.b32.start.end [1/1] (short) (narrow) %v10615_v21, 8 }
 0xc69   : > { %11010 = vxpose.xlu2.b32.start.end [1/1] (short) (narrow) %v10586_v33, 8 }
 0xc6b   : > { %10946 = vxpose.xlu0.b32.start.end [1/1] (short) (narrow) %v10555_v10, 8  ;;  %11074 = vxpose.xlu1.b32.start.end [1/1] (short) (narrow) %v10587_v15, 8 }
 0xc71   : > { %11106 = vxpose.xlu2.b32.start.end [1/1] (short) (narrow) %v10617_v18, 8 }
 0xc73   : > { %11042 = vxpose.xlu0.b32.start.end [1/1] (short) (narrow) %v10616_v59, 8  ;;  %11351 = vxpose.xlu1.b32.start.end [1/1] (short) (narrow) %v11315_v44, 16 }
 0xc79   : > { %11383 = vxpose.xlu2.b32.start.end [1/1] (short) (narrow) %v27980_v45, 16 }
 0xc7b   : > { %11319 = vxpose.xlu0.b32.start.end [1/1] (short) (narrow) %v27979_v62, 16 }
 0xc8b   : > { %11415 = vxpose.xlu0.b32.start.end [1/1] (short) (narrow) %v11316_v46, 16 }
 0xcea   : > { %v29527_v21 = vpop.trf.xlu2 }
 0xceb   : > { %34649 = vst [vmem:[#allocation146_spill] sm:$0xff] %v29527_v21 }
 0xced   : > { %v29523_v20 = vpop.trf.xlu0 }
 0xcee   : > { %34647 = vst [vmem:[#allocation144_spill] sm:$0xff] %v29523_v20 }
 0xcef   : > { %v29525_v43 = vpop.trf.xlu1 }
 0xcf0   : > { %34648 = vst [vmem:[#allocation145_spill] sm:$0xff] %v29525_v43 }
 0xcf2   : > { %v29533_v33 = vpop.trf.xlu2 }
 0xcf3   : > { %34652 = vst [vmem:[#allocation149_spill] sm:$0xff] %v29533_v33 }
 0xcf7   : > { %v29529_v10 = vpop.trf.xlu0  ;;  %v29531_v15 = vpop.trf.xlu1 }
 0xcf8   : > { %34650 = vst [vmem:[#allocation147_spill] sm:$0xff] %v29529_v10 }
 0xcf9   : > { %34651 = vst [vmem:[#allocation148_spill] sm:$0xff] %v29531_v15 }
 0xcfa   : > { %v10930_v45 = vpop.trf.xlu2 }
 0xcff   : > { %v29535_v5 = vpop.trf.xlu0  ;;  %v10898_v44 = vpop.trf.xlu1 }
 0xd00   : > { %34653 = vst [vmem:[#allocation150_spill] sm:$0xff] %v29535_v5 }
 0xd07   : > { %v29537_v18 = vpop.trf.xlu0  ;;  %v10994_v62 = vpop.trf.xlu1 }
 0xd08   : > { %34654 = vst [vmem:[#allocation151_spill] sm:$0xff] %v29537_v18  ;;  %v11200_v59 = vrot.slane %v10994_v62, 4 }
 0xd0a   : > { %v11201_v46 = vsel %vm831_vm0, %v11200_v59, %v10930_v45  ;;  %v29556_v59 = vpop.trf.xlu2 }
 0xd0b   : > { %v29541_v20 = vperm.slane %v11201_v46, %v28351_v41  ;;  %34660 = vst [vmem:[#allocation157_spill] sm:$0xff] %v29556_v59 }
 0xd0d   : > { %34655 = vst [vmem:[#allocation152_spill] sm:$0xff] %v29541_v20  ;;  %v11206_v10 = vrot.slane %v29541_v20, 4 }
 0xd0f   : > { %v10962_v21 = vpop.trf.xlu0  ;;  %v29554_v18 = vpop.trf.xlu1 }
 0xd10   : > { %v11194_v43 = vrot.slane %v10962_v21, 4  ;;  %34659 = vst [vmem:[#allocation156_spill] sm:$0xff] %v29554_v18 }
 0xd12   : > { %v11195_v15 = vsel %vm831_vm0, %v11194_v43, %v10898_v44  ;;  %v29558_v20 = vpop.trf.xlu2 }
 0xd13   : > { %v29546_v33 = vperm.slane %v11195_v15, %v28351_v41  ;;  %34661 = vst [vmem:[#allocation158_spill] sm:$0xff] %v29558_v20 }
 0xd15   : > { %34656 = vst [vmem:[#allocation153_spill] sm:$0xff] %v29546_v33  ;;  %v29550_v5 = vsel %vm831_vm0, %v11206_v10, %v29546_v33 }
 0xd16   : > { %34657 = vst [vmem:[#allocation154_spill] sm:$0xff] %v29550_v5 }
 0xd17   : > { %v29552_v62 = vpop.trf.xlu0  ;;  %v11367_v21 = vpop.trf.xlu1 }
 0xd18   : > { %34658 = vst [vmem:[#allocation155_spill] sm:$0xff] %v29552_v62  ;;  %v11457_v44 = vrot.slane %v11367_v21, 4 }
 0xd1a   : > { %v11399_v5 = vpop.trf.xlu2 }
 0xd1b   : > { %v11459_v18 = vrot.slane %v11399_v5, 4 }
 0xd1f   : > { %v11335_v45 = vpop.trf.xlu0  ;;  %v11368_v10 = vpop.trf.xlu1 }
 0xd20   : > { %v11455_v46 = vrot.slane %v11335_v45, 4  ;;  %11471 = vxpose.xlu2.b32.start.end [1/1] (short) (narrow) %v11335_v45, 8  ;;  %v11458_v62 = vrot.slane %v11368_v10, 4 }
 0xd22   : > { %11503 = vxpose.xlu0.b32.start.end [1/1] (short) (narrow) %v11455_v46, 8  ;;  %v11400_v59 = vpop.trf.xlu2 }
 0xd23   : > { %v11460_v46 = vrot.slane %v11400_v59, 4 }
 0xd27   : > { %v11336_v43 = vpop.trf.xlu0 }
 0xd28   : > { %v11456_v15 = vrot.slane %v11336_v43, 4  ;;  %11535 = vxpose.xlu1.b32.start.end [1/1] (short) (narrow) %v11336_v43, 8 }
 0xd2a   : > { %11599 = vxpose.xlu0.b32.start.end [1/1] (short) (narrow) %v11367_v21, 8  ;;  %11567 = vxpose.xlu2.b32.start.end [1/1] (short) (narrow) %v11456_v15, 8  ;;  %v27981_v21 = vld [vmem:[%s28325_s15 + $0x1a0] sm:$0xff] }
 0xd2b   : > { %v12160_v33 = vrot.slane %v27981_v21, 4 }
 0xd2f   : > { %v11431_v45 = vpop.trf.xlu0 }
 0xd30   : > { %11631 = vxpose.xlu1.b32.start.end [1/1] (short) (narrow) %v11457_v44, 8  ;;  %v11461_v20 = vrot.slane %v11431_v45, 4 }
 0xd32   : > { %11695 = vxpose.xlu0.b32.start.end [1/1] (short) (narrow) %v11458_v62, 8  ;;  %11663 = vxpose.xlu2.b32.start.end [1/1] (short) (narrow) %v11368_v10, 8  ;;  %v27982_v62 = vld [vmem:[%s28325_s15 + $0x1a8] sm:$0xff] }
 0xd37   : > { %v11432_v43 = vpop.trf.xlu0 }
 0xd38   : > { %11727 = vxpose.xlu1.b32.start.end [1/1] (short) (narrow) %v11399_v5, 8  ;;  %v11462_v15 = vrot.slane %v11432_v43, 4  ;;  %v12161_v5 = vrot.slane %v27982_v62, 4 }
 0xd3a   : > { %11791 = vxpose.xlu0.b32.start.end [1/1] (short) (narrow) %v11400_v59, 8  ;;  %11759 = vxpose.xlu2.b32.start.end [1/1] (short) (narrow) %v11459_v18, 8 }
 0xd40   : > { %11823 = vxpose.xlu1.b32.start.end [1/1] (short) (narrow) %v11460_v46, 8 }
 0xd42   : > { %11887 = vxpose.xlu0.b32.start.end [1/1] (short) (narrow) %v11461_v20, 8  ;;  %11855 = vxpose.xlu2.b32.start.end [1/1] (short) (narrow) %v11431_v45, 8 }
 0xd48   : > { %11919 = vxpose.xlu1.b32.start.end [1/1] (short) (narrow) %v11432_v43, 8 }
 0xd4a   : > { %11951 = vxpose.xlu2.b32.start.end [1/1] (short) (narrow) %v11462_v15, 8  ;;  %12196 = vxpose.xlu0.b32.start.end [1/1] (short) (narrow) %v12160_v33, 16 }
 0xd50   : > { %12164 = vxpose.xlu1.b32.start.end [1/1] (short) (narrow) %v27981_v21, 16 }
 0xd52   : > { %12228 = vxpose.xlu2.b32.start.end [1/1] (short) (narrow) %v27982_v62, 16 }
 0xd5a   : > { %12260 = vxpose.xlu0.b32.start.end [1/1] (short) (narrow) %v12161_v5, 16 }
 0xdb9   : > { %v11487_v10 = vpop.trf.xlu2 }
 0xdc3   : > { %v11583_v18 = vpop.trf.xlu2 }
 0xdc4   : > { %v11989_v59 = vrot.slane %v11583_v18, 4 }
 0xdc6   : > { %v11519_v44 = vpop.trf.xlu0 }
 0xdc7   : > { %v11990_v45 = vsel %vm831_vm0, %v11989_v59, %v11519_v44 }
 0xdc8   : > { %v29570_v33 = vperm.slane %v11990_v45, %v28351_v41 }
 0xdca   : > { %34664 = vst [vmem:[#allocation161_spill] sm:$0xff] %v29570_v33 }
 0xdcb   : > { %v29581_v5 = vpop.trf.xlu2 }
 0xdcc   : > { %v11551_v27 = vpop.trf.xlu1  ;;  %34668 = vst [vmem:[#allocation165_spill] sm:$0xff] %v29581_v5 }
 0xdcd   : > { %v11983_v46 = vrot.slane %v11551_v27, 4 }
 0xdce   : > { %v29562_v20 = vpop.trf.xlu0 }
 0xdcf   : > { %34662 = vst [vmem:[#allocation159_spill] sm:$0xff] %v29562_v20  ;;  %v11984_v7 = vsel %vm831_vm0, %v11983_v46, %v11487_v10 }
 0xdd0   : > { %v29567_v43 = vperm.slane %v11984_v7, %v28351_v41 }
 0xdd2   : > { %34663 = vst [vmem:[#allocation160_spill] sm:$0xff] %v29567_v43  ;;  %v11997_v21 = vrot.slane %v29567_v43, 4 }
 0xdd3   : > { %v11775_v46 = vpop.trf.xlu2 }
 0xdd4   : > { %v29573_v15 = vpop.trf.xlu1  ;;  %v29577_v62 = vsel %vm831_vm0, %v29570_v33, %v11997_v21 }
 0xdd5   : > { %34665 = vst [vmem:[#allocation162_spill] sm:$0xff] %v29573_v15 }
 0xdd6   : > { %34666 = vst [vmem:[#allocation163_spill] sm:$0xff] %v29577_v62  ;;  %v29579_v27 = vpop.trf.xlu0 }
 0xdd7   : > { %34667 = vst [vmem:[#allocation164_spill] sm:$0xff] %v29579_v27 }
 0xddb   : > { %v29600_v5 = vpop.trf.xlu2 }
 0xddc   : > { %v11743_v44 = vpop.trf.xlu1  ;;  %34674 = vst [vmem:[#allocation171_spill] sm:$0xff] %v29600_v5 }
 0xdde   : > { %v11807_v10 = vpop.trf.xlu0 }
 0xddf   : > { %v12039_v18 = vrot.slane %v11807_v10, 4 }
 0xde1   : > { %v12040_v45 = vsel %vm831_vm0, %v12039_v18, %v11743_v44 }
 0xde2   : > { %v29589_v21 = vperm.slane %v12040_v45, %v28351_v41 }
 0xde4   : > { %v11839_v7 = vpop.trf.xlu1  ;;  %34670 = vst [vmem:[#allocation167_spill] sm:$0xff] %v29589_v21 }
 0xde5   : > { %v12045_v59 = vrot.slane %v11839_v7, 4 }
 0xde6   : > { %v29598_v7 = vpop.trf.xlu0 }
 0xde7   : > { %v12046_v20 = vsel %vm831_vm0, %v12045_v59, %v11775_v46  ;;  %34673 = vst [vmem:[#allocation170_spill] sm:$0xff] %v29598_v7  ;;  %v29602_v59 = vpop.trf.xlu2 }
 0xde8   : > { %v29586_v15 = vperm.slane %v12046_v20, %v28351_v41  ;;  %34675 = vst [vmem:[#allocation172_spill] sm:$0xff] %v29602_v59 }
 0xdea   : > { %34669 = vst [vmem:[#allocation166_spill] sm:$0xff] %v29586_v15  ;;  %v12051_v62 = vrot.slane %v29586_v15, 4 }
 0xdec   : > { %v29592_v27 = vpop.trf.xlu1  ;;  %v29596_v10 = vsel %vm831_vm0, %v12051_v62, %v29589_v21 }
 0xded   : > { %34671 = vst [vmem:[#allocation168_spill] sm:$0xff] %v29592_v27 }
 0xdee   : > { %34672 = vst [vmem:[#allocation169_spill] sm:$0xff] %v29596_v10  ;;  %v12212_v20 = vpop.trf.xlu0 }
 0xdef   : > { %v12302_v43 = vrot.slane %v12212_v20, 4  ;;  %v12244_v62 = vpop.trf.xlu2 }
 0xdf0   : > { %v12304_v7 = vrot.slane %v12244_v62, 4 }
 0xdf4   : > { %v12180_v44 = vpop.trf.xlu1 }
 0xdf5   : > { %v12300_v18 = vrot.slane %v12180_v44, 4  ;;  %12316 = vxpose.xlu2.b32.start.end [1/1] (short) (narrow) %v12180_v44, 8 }
 0xdf6   : > { %v12213_v15 = vpop.trf.xlu0 }
 0xdf7   : > { %12348 = vxpose.xlu0.b32.start.end [1/1] (short) (narrow) %v12300_v18, 8  ;;  %v12303_v10 = vrot.slane %v12213_v15, 4  ;;  %v12245_v21 = vpop.trf.xlu2 }
 0xdf8   : > { %v12305_v18 = vrot.slane %v12245_v21, 4 }
 0xdfc   : > { %v12181_v46 = vpop.trf.xlu1 }
 0xdfd   : > { %v12301_v45 = vrot.slane %v12181_v46, 4  ;;  %12380 = vxpose.xlu1.b32.start.end [1/1] (short) (narrow) %v12181_v46, 8 }
 0xdfe   : > { %v12276_v44 = vpop.trf.xlu0 }
 0xdff   : > { %12412 = vxpose.xlu2.b32.start.end [1/1] (short) (narrow) %v12301_v45, 8  ;;  %12444 = vxpose.xlu0.b32.start.end [1/1] (short) (narrow) %v12212_v20, 8  ;;  %v12306_v59 = vrot.slane %v12276_v44, 4  ;;  %v27983_v20 = vld [vmem:[%s28325_s15 + $0x1b0] sm:$0xff] }
 0xe00   : > { %v13005_v5 = vrot.slane %v27983_v20, 4 }
 0xe05   : > { %12476 = vxpose.xlu1.b32.start.end [1/1] (short) (narrow) %v12302_v43, 8  ;;  %v27984_v43 = vld [vmem:[%s28325_s15 + $0x1b8] sm:$0xff] }
 0xe06   : > { %v12277_v46 = vpop.trf.xlu0 }
 0xe07   : > { %12540 = vxpose.xlu0.b32.start.end [1/1] (short) (narrow) %v12303_v10, 8  ;;  %12508 = vxpose.xlu2.b32.start.end [1/1] (short) (narrow) %v12213_v15, 8  ;;  %v12307_v45 = vrot.slane %v12277_v46, 4  ;;  %v13006_v15 = vrot.slane %v27984_v43, 4 }
 0xe0d   : > { %12572 = vxpose.xlu1.b32.start.end [1/1] (short) (narrow) %v12244_v62, 8 }
 0xe0f   : > { %12636 = vxpose.xlu0.b32.start.end [1/1] (short) (narrow) %v12245_v21, 8  ;;  %12604 = vxpose.xlu2.b32.start.end [1/1] (short) (narrow) %v12304_v7, 8 }
 0xe15   : > { %12668 = vxpose.xlu1.b32.start.end [1/1] (short) (narrow) %v12305_v18, 8 }
 0xe17   : > { %12732 = vxpose.xlu0.b32.start.end [1/1] (short) (narrow) %v12306_v59, 8  ;;  %12700 = vxpose.xlu2.b32.start.end [1/1] (short) (narrow) %v12276_v44, 8 }
 0xe1d   : > { %12764 = vxpose.xlu1.b32.start.end [1/1] (short) (narrow) %v12277_v46, 8 }
 0xe1f   : > { %12796 = vxpose.xlu2.b32.start.end [1/1] (short) (narrow) %v12307_v45, 8  ;;  %13041 = vxpose.xlu0.b32.start.end [1/1] (short) (narrow) %v13005_v5, 16 }
 0xe25   : > { %13009 = vxpose.xlu1.b32.start.end [1/1] (short) (narrow) %v27983_v20, 16 }
 0xe27   : > { %13073 = vxpose.xlu2.b32.start.end [1/1] (short) (narrow) %v27984_v43, 16 }
 0xe2f   : > { %13105 = vxpose.xlu0.b32.start.end [1/1] (short) (narrow) %v13006_v15, 16 }
 0xe8e   : > { %v12332_v10 = vpop.trf.xlu2 }
 0xe98   : > { %v12428_v62 = vpop.trf.xlu2 }
 0xe99   : > { %v12834_v21 = vrot.slane %v12428_v62, 4 }
 0xe9b   : > { %v12364_v7 = vpop.trf.xlu0 }
 0xe9c   : > { %v12835_v33 = vsel %vm831_vm0, %v12834_v21, %v12364_v7 }
 0xe9d   : > { %v29616_v20 = vperm.slane %v12835_v33, %v28351_v41 }
 0xea0   : > { %v29606_v27 = vpop.trf.xlu2 }
 0xea1   : > { %34676 = vst [vmem:[#allocation173_spill] sm:$0xff] %v29606_v27  ;;  %v12396_v59 = vpop.trf.xlu1 }
 0xea2   : > { %v12828_v44 = vrot.slane %v12396_v59, 4 }
 0xea3   : > { %v29608_v18 = vpop.trf.xlu0 }
 0xea4   : > { %34677 = vst [vmem:[#allocation174_spill] sm:$0xff] %v29608_v18  ;;  %v12829_v46 = vsel %vm831_vm0, %v12828_v44, %v12332_v10 }
 0xea5   : > { %v29613_v5 = vperm.slane %v12829_v46, %v28351_v41 }
 0xea7   : > { %34678 = vst [vmem:[#allocation175_spill] sm:$0xff] %v29613_v5  ;;  %v12842_v45 = vrot.slane %v29613_v5, 4 }
 0xea8   : > { %v12620_v43 = vpop.trf.xlu2 }
 0xea9   : > { %v29619_v15 = vpop.trf.xlu1  ;;  %v29623_v62 = vsel %vm831_vm0, %v29616_v20, %v12842_v45 }
 0xeaa   : > { %34679 = vst [vmem:[#allocation176_spill] sm:$0xff] %v29619_v15 }
 0xeab   : > { %34680 = vst [vmem:[#allocation177_spill] sm:$0xff] %v29623_v62  ;;  %v29625_v59 = vpop.trf.xlu0 }
 0xeac   : > { %34681 = vst [vmem:[#allocation178_spill] sm:$0xff] %v29625_v59 }
 0xeb0   : > { %v12716_v7 = vpop.trf.xlu2 }
 0xeb1   : > { %v12588_v21 = vpop.trf.xlu1 }
 0xeb3   : > { %v12652_v10 = vpop.trf.xlu0 }
 0xeb4   : > { %v12884_v44 = vrot.slane %v12652_v10, 4 }
 0xeb6   : > { %v12885_v5 = vsel %vm831_vm0, %v12884_v44, %v12588_v21 }
 0xeb7   : > { %v29634_v62 = vperm.slane %v12885_v5, %v28351_v41 }
 0xeb8   : > { %v12812_v46 = vpop.trf.xlu2 }
 0xeb9   : > { %v12684_v18 = vpop.trf.xlu1  ;;  %v12918_v27 = vrot.slane %v12812_v46, 4 }
 0xeba   : > { %v12890_v33 = vrot.slane %v12684_v18, 4 }
 0xebb   : > { %v12748_v61 = vpop.trf.xlu0 }
 0xebc   : > { %v12891_v35 = vsel %vm831_vm0, %v12890_v33, %v12620_v43  ;;  %v12919_v15 = vsel %vm831_vm0, %v12918_v27, %v12748_v61 }
 0xebd   : > { %v29631_v45 = vperm.slane %v12891_v35, %v28351_v41  ;;  %v29638_v10 = vperm.slane %v12919_v15, %v28351_v41 }
 0xebf   : > { %v12896_v59 = vrot.slane %v29631_v45, 4  ;;  %v12924_v43 = vrot.slane %v29638_v10, 4 }
 0xec1   : > { %v12780_v46 = vpop.trf.xlu1  ;;  %v29642_v18 = vsel %vm831_vm0, %v12896_v59, %v29634_v62 }
 0xec2   : > { %34682 = vst [vmem:[#allocation179_spill] sm:$0xff] %v29642_v18  ;;  %v12912_v21 = vrot.slane %v12780_v46, 4  ;;  %v13089_v18 = vpop.trf.xlu2 }
 0xec3   : > { %v13057_v44 = vpop.trf.xlu0 }
 0xec4   : > { %v12913_v61 = vsel %vm831_vm0, %v12912_v21, %v12716_v7  ;;  %v13147_v7 = vrot.slane %v13057_v44, 4 }
 0xec5   : > { %v29647_v35 = vperm.slane %v12913_v61, %v28351_v41 }
 0xec7   : > { %v29651_v27 = vsel %vm831_vm0, %v12924_v43, %v29647_v35  ;;  %v13149_v43 = vrot.slane %v13089_v18, 4 }
 0xec8   : > { %34683 = vst [vmem:[#allocation180_spill] sm:$0xff] %v29651_v27 }
 0xec9   : > { %v13025_v5 = vpop.trf.xlu1 }
 0xeca   : > { %v13145_v15 = vrot.slane %v13025_v5, 4  ;;  %13161 = vxpose.xlu2.b32.start.end [1/1] (short) (narrow) %v13025_v5, 8  ;;  %v13090_v61 = vpop.trf.xlu2 }
 0xecb   : > { %v13058_v46 = vpop.trf.xlu0  ;;  %v13150_v27 = vrot.slane %v13090_v61, 4 }
 0xecc   : > { %13193 = vxpose.xlu0.b32.start.end [1/1] (short) (narrow) %v13145_v15, 8  ;;  %v13148_v21 = vrot.slane %v13058_v46, 4 }
 0xed1   : > { %v13026_v33 = vpop.trf.xlu1 }
 0xed2   : > { %v13146_v59 = vrot.slane %v13026_v33, 4  ;;  %13225 = vxpose.xlu1.b32.start.end [1/1] (short) (narrow) %v13026_v33, 8 }
 0xed3   : > { %v13121_v5 = vpop.trf.xlu0 }
 0xed4   : > { %13257 = vxpose.xlu2.b32.start.end [1/1] (short) (narrow) %v13146_v59, 8  ;;  %13289 = vxpose.xlu0.b32.start.end [1/1] (short) (narrow) %v13057_v44, 8  ;;  %v13151_v15 = vrot.slane %v13121_v5, 4  ;;  %v34684_v44 = vld [vmem:[#allocation8_spill] sm:$0xff] }
 0xeda   : > { %13321 = vxpose.xlu1.b32.start.end [1/1] (short) (narrow) %v13147_v7, 8  ;;  %v29655_v7 = vperm.slane %v34684_v44, %v28621_v57  ;;  %v1761_v44 = vrot.slane %v28750_v8, 4 }
 0xedb   : > { %v13122_v33 = vpop.trf.xlu0 }
 0xedc   : > { %13385 = vxpose.xlu0.b32.start.end [1/1] (short) (narrow) %v13148_v21, 8  ;;  %13353 = vxpose.xlu2.b32.start.end [1/1] (short) (narrow) %v13058_v46, 8  ;;  %v13152_v59 = vrot.slane %v13122_v33, 4  ;;  %34685 = vst [vmem:[#allocation8_spill] sm:$0xff] %v29655_v7  ;;  %v855_v46 = vrot.slane %v29655_v7, 4  ;;  %v2606_v7 = vrot.slane %v28832_v55, 4 }
 0xee2   : > { %13417 = vxpose.xlu1.b32.start.end [1/1] (short) (narrow) %v13089_v18, 8  ;;  %v856_v18 = vsel %vm831_vm0, 0.0, %v855_v46 }
 0xee4   : > { %13481 = vxpose.xlu0.b32.start.end [1/1] (short) (narrow) %v13090_v61, 8  ;;  %13449 = vxpose.xlu2.b32.start.end [1/1] (short) (narrow) %v13149_v43, 8  ;;  %v34686_v61 = vld [vmem:[#allocation9_spill] sm:$0xff] }
 0xee5   : > { %v29666_v43 = vperm.slane %v34686_v61, %v28621_v57  ;;  %v34687_v61 = vld [vmem:[#allocation10_spill] sm:$0xff] }
 0xeea   : > { %13513 = vxpose.xlu1.b32.start.end [1/1] (short) (narrow) %v13150_v27, 8  ;;  %v913_v27 = vrot.slane %v28672_v24, 4 }
 0xeec   : > { %13577 = vxpose.xlu0.b32.start.end [1/1] (short) (narrow) %v13151_v15, 8  ;;  %13545 = vxpose.xlu2.b32.start.end [1/1] (short) (narrow) %v13121_v5, 8  ;;  %v914_v21 = vsel %vm831_vm0, 0.0, %v913_v27  ;;  %v1759_v5 = vrot.slane %v29666_v43, 4 }
 0xeee   : > { %v1760_v15 = vsel %vm831_vm0, 0.0, %v1759_v5  ;;  %v29679_v5 = vperm.slane %v34687_v61, %v28621_v57 }
 0xef0   : > { %v2604_v8 = vrot.slane %v29679_v5, 4 }
 0xef2   : > { %13609 = vxpose.xlu1.b32.start.end [1/1] (short) (narrow) %v13122_v33, 8 }
 0xef4   : > { %13641 = vxpose.xlu2.b32.start.end [1/1] (short) (narrow) %v13152_v59, 8 }
 0xf5a   : > { %947 = vrot.lane.b32.xlu0 %v856_v18, %s28226_s16 }
 0xf62   : > { %969 = vrot.lane.b32.xlu0 %v28716_v53, %s28227_s17 }
 0xf63   : > { %v13177_v33 = vpop.trf.xlu2 }
 0xf6a   : > { %983 = vrot.lane.b32.xlu0 %v914_v21, %s28228_s18  ;;  %v1762_v21 = vsel %vm831_vm0, 0.0, %v1761_v44 }
 0xf6d   : > { %v13273_v59 = vpop.trf.xlu2 }
 0xf6e   : > { %v13679_v27 = vrot.slane %v13273_v59, 4 }
 0xf70   : > { %v13209_v46 = vpop.trf.xlu0 }
 0xf72   : > { %1799 = vrot.lane.b32.xlu0 %v1760_v15, %s28226_s16 }
 0xf75   : > { %v29693_v59 = vpop.trf.xlu2 }
 0xf76   : > { %v13241_v53 = vpop.trf.xlu1  ;;  %34691 = vst [vmem:[#allocation182_spill] sm:$0xff] %v29693_v59 }
 0xf77   : > { %v13673_v24 = vrot.slane %v13241_v53, 4  ;;  %v13680_v53 = vsel %vm831_vm0, %v13679_v27, %v13209_v46 }
 0xf78   : > { %v29695_v44 = vpop.trf.xlu0 }
 0xf79   : > { %v13674_v18 = vsel %vm831_vm0, %v13673_v24, %v13177_v33  ;;  %v29691_v24 = vperm.slane %v13680_v53, %v28351_v41  ;;  %34692 = vst [vmem:[#allocation183_spill] sm:$0xff] %v29695_v44  ;;  %v2607_v44 = vsel %vm831_vm0, 0.0, %v2606_v7 }
 0xf7a   : > { %1817 = vrot.lane.b32.xlu0 %v28779_v30, %s28227_s17  ;;  %v29683_v15 = vperm.slane %v13674_v18, %v28351_v41 }
 0xf7b   : > { %34690 = vst [vmem:[#allocation181_spill] sm:$0xff] %v29691_v24 }
 0xf7c   : > { %34688 = vst [vmem:[#allocation9_spill] sm:$0xff] %v29683_v15  ;;  %v13687_v33 = vrot.slane %v29683_v15, 4 }
 0xf7d   : > { %v13465_v46 = vpop.trf.xlu2 }
 0xf7e   : > { %v29685_v30 = vpop.trf.xlu1  ;;  %v29701_v61 = vsel %vm831_vm0, %v29691_v24, %v13687_v33 }
 0xf7f   : > { %34689 = vst [vmem:[#allocation10_spill] sm:$0xff] %v29685_v30 }
 0xf80   : > { %34693 = vst [vmem:[#allocation184_spill] sm:$0xff] %v29701_v61  ;;  %v29705_v27 = vpop.trf.xlu0 }
 0xf81   : > { %34694 = vst [vmem:[#allocation185_spill] sm:$0xff] %v29705_v27 }
 0xf82   : > { %1831 = vrot.lane.b32.xlu0 %v1762_v21, %s28228_s18  ;;  %v2605_v21 = vsel %vm831_vm0, 0.0, %v2604_v8  ;;  %v34695_v8 = vld [vmem:[#allocation14_spill] sm:$0xff] }
 0xf85   : > { %v13561_v33 = vpop.trf.xlu2 }
 0xf86   : > { %v13433_v18 = vpop.trf.xlu1 }
 0xf88   : > { %v13497_v61 = vpop.trf.xlu0 }
 0xf89   : > { %v13729_v15 = vrot.slane %v13497_v61, 4 }
 0xf8a   : > { %2644 = vrot.lane.b32.xlu0 %v2605_v21, %s28226_s16  ;;  %v29711_v21 = vperm.slane %v34695_v8, %v28621_v57 }
 0xf8b   : > { %v13730_v55 = vsel %vm831_vm0, %v13729_v15, %v13433_v18 }
 0xf8c   : > { %v3449_v27 = vrot.slane %v29711_v21, 4 }
 0xf8e   : > { %v13529_v53 = vpop.trf.xlu1 }
 0xf8f   : > { %v13735_v59 = vrot.slane %v13529_v53, 4  ;;  %v29722_v53 = vperm.slane %v13730_v55, %v28351_v41 }
 0xf91   : > { %v13736_v30 = vsel %vm831_vm0, %v13735_v59, %v13465_v46  ;;  %v3450_v59 = vsel %vm831_vm0, 0.0, %v3449_v27  ;;  %v13593_v46 = vpop.trf.xlu0 }
 0xf92   : > { %2662 = vrot.lane.b32.xlu0 %v28841_v2, %s28227_s17  ;;  %v29716_v2 = vperm.slane %v13736_v30, %v28351_v41 }
 0xf94   : > { %34696 = vst [vmem:[#allocation14_spill] sm:$0xff] %v29716_v2  ;;  %v13741_v7 = vrot.slane %v29716_v2, 4 }
 0xf96   : > { %v13625_v8 = vpop.trf.xlu1  ;;  %v29728_v30 = vsel %vm831_vm0, %v13741_v7, %v29722_v53  ;;  %v3451_v7 = vrot.slane %v28926_v16, 4  ;;  %v4324_v16 = vrot.slane %v28986_v6, 4  ;;  %v5113_v6 = vrot.slane %v29040_v9, 4 }
 0xf97   : > { %v13757_v61 = vrot.slane %v13625_v8, 4  ;;  %34697 = vst [vmem:[#allocation186_spill] sm:$0xff] %v29728_v30  ;;  %v5958_v9 = vrot.slane %v29112_v54, 4 }
 0xf99   : > { %v13758_v55 = vsel %vm831_vm0, %v13757_v61, %v13561_v33  ;;  %v4325_v61 = vsel %vm831_vm0, 0.0, %v4324_v16 }
 0xf9a   : > { %2676 = vrot.lane.b32.xlu0 %v2607_v44, %s28228_s18  ;;  %v13657_v44 = vpop.trf.xlu2  ;;  %v29739_v27 = vperm.slane %v13758_v55, %v28351_v41 }
 0xf9b   : > { %v13763_v24 = vrot.slane %v13657_v44, 4 }
 0xf9d   : > { %v13764_v15 = vsel %vm831_vm0, %v13763_v24, %v13593_v46  ;;  %v3452_v24 = vsel %vm831_vm0, 0.0, %v3451_v7  ;;  %v4240_v46 = vrot.slane %v28999_v19, 4 }
 0xf9e   : > { %v29732_v18 = vperm.slane %v13764_v15, %v28351_v41  ;;  %v34699_v15 = vld [vmem:[#allocation43_spill] sm:$0xff] }
 0xf9f   : > { %v29762_v55 = vperm.slane %v34699_v15, %v28621_v57  ;;  %v6817_v15 = vrot.slane %v29209_v34, 4 }
 0xfa0   : > { %v13769_v2 = vrot.slane %v29732_v18, 4 }
 0xfa2   : > { %3489 = vrot.lane.b32.xlu0 %v3450_v59, %s28226_s16  ;;  %v29743_v8 = vsel %vm831_vm0, %v13769_v2, %v29739_v27  ;;  %v34698_v59 = vld [vmem:[#allocation28_spill] sm:$0xff]  ;;  %v4241_v2 = vsel %vm831_vm0, 0.0, %v4240_v46 }
 0xfa3   : > { %v29749_v44 = vperm.slane %v34698_v59, %v28621_v57 }
 0xfa5   : > { %v4294_v33 = vrot.slane %v29749_v44, 4 }
 0xfaa   : > { %3507 = vrot.lane.b32.xlu0 %v28910_v31, %s28227_s17  ;;  %v4295_v31 = vsel %vm831_vm0, 0.0, %v4294_v33  ;;  %v5114_v33 = vsel %vm831_vm0, 0.0, %v5113_v6  ;;  %v5959_v6 = vsel %vm831_vm0, 0.0, %v5958_v9  ;;  %v6803_v9 = vrot.slane %v29200_v40, 4 }
 0xfb2   : > { %3521 = vrot.lane.b32.xlu0 %v3452_v24, %s28228_s18  ;;  %v5139_v24 = vrot.slane %v29762_v55, 4 }
 0xfb4   : > { %v5140_v19 = vsel %vm831_vm0, 0.0, %v5139_v24 }
 0xfba   : > { %4334 = vrot.lane.b32.xlu0 %v4295_v31, %s28226_s16  ;;  %v34700_v31 = vld [vmem:[#allocation57_spill] sm:$0xff] }
 0xfbb   : > { %v29776_v46 = vperm.slane %v34700_v31, %v28621_v57 }
 0xfbd   : > { %v5984_v16 = vrot.slane %v29776_v46, 4 }
 0xfc2   : > { %4362 = vrot.lane.b32.xlu0 %v4241_v2, %s28228_s18 }
 0xfca   : > { %4368 = vrot.lane.b32.xlu0 %v4325_v61, %s28228_s18  ;;  %v5985_v61 = vsel %vm831_vm0, 0.0, %v5984_v16 }
 0xfcc   : > { %v29765_v7 = vpop.permute.xlu0 %947 }
 0xfd2   : > { %5179 = vrot.lane.b32.xlu0 %v5140_v19, %s28226_s16  ;;  %v6818_v19 = vsel %vm831_vm0, %v6817_v15, %v29190_v14 }
 0xfd4   : > { %v29770_v59 = vpop.permute.xlu0 %969 }
 0xfda   : > { %5209 = vrot.lane.b32.xlu0 %v5114_v33, %s28228_s18  ;;  %v29790_v33 = vperm.slane %v6818_v19, %v28621_v57  ;;  %v6804_v19 = vsel %vm831_vm0, 0.0, %v6803_v9 }
 0xfdc   : > { %v29779_v2 = vpop.permute.xlu0 %983  ;;  %v6829_v16 = vrot.slane %v29790_v33, 4 }
 0xfe2   : > { %6024 = vrot.lane.b32.xlu0 %v5985_v61, %s28226_s16  ;;  %v6830_v61 = vsel %vm831_vm0, 0.0, %v6829_v16 }
 0xfe4   : > { %v1800_v24 = vpop.permute.xlu0 %1799 }
 0xfe5   : > { %v1841_v34 = vsel %vm991_vm1, %v29666_v43, %v1800_v24  ;;  %v2685_v43 = vsel %vm991_vm1, %v28795_v11, %v29194_v39  ;;  %v3529_v11 = vsel %vm991_vm1, %v28858_v26, %v29234_v50 }
 0xfe6   : > { %v1845_v54 = vsel %vm996_vm2, %v1841_v34, %v29081_v42  ;;  %v2689_v24 = vsel %vm996_vm2, %v2685_v43, %v29219_v51  ;;  %v3533_v51 = vsel %vm996_vm2, %v3529_v11, %v29257_v63  ;;  %v34707_v11 = vld [vmem:[#allocation22_spill] sm:$0xff] }
 0xfe7   : > { %v2693_v40 = vsel %vm1001_vm3, %v2689_v24, %v29221_v56 }
 0xfea   : > { %6054 = vrot.lane.b32.xlu0 %v5959_v6, %s28228_s18  ;;  %v1839_v6 = vsel %vm991_vm1, %v28692_v38, %v29003_v17  ;;  %v1842_v17 = vsel %vm991_vm1, %v28709_v12, %v29028_v37 }
 0xfeb   : > { %v1843_v16 = vsel %vm996_vm2, %v1839_v6, %v29054_v36  ;;  %v3537_v36 = vsel %vm1001_vm3, %v3533_v51, %v29274_v29  ;;  %v3530_v29 = vsel %vm991_vm1, %v28863_v32, %v29255_v28  ;;  %v34705_v6 = vld [vmem:[#allocation58_spill] sm:$0xff]  ;;  %v34708_v51 = vld [vmem:[#allocation40_spill] sm:$0xff] }
 0xfec   : > { %v1818_v31 = vpop.permute.xlu0 %1817  ;;  %v1847_v39 = vsel %vm1001_vm3, %v1843_v16, %v29147_v49  ;;  %v34706_v16 = vld [vmem:[#allocation50_spill] sm:$0xff] }
 0xfed   : > { %v1846_v56 = vsel %vm996_vm2, %v1842_v17, %v1818_v31 }
 0xfee   : > { %v1850_v26 = vsel %vm1001_vm3, %v1846_v56, %v29170_v60  ;;  %v3534_v60 = vsel %vm996_vm2, %v3530_v29, %v29267_v1 }
 0xfef   : > { %v3538_v31 = vsel %vm1001_vm3, %v3534_v60, %v29276_v58  ;;  %v34713_v60 = vld [vmem:[#allocation95_spill] sm:$0xff] }
 0xff2   : > { %6869 = vrot.lane.b32.xlu0 %v6830_v61, %s28226_s16 }
 0xff4   : > { %v1832_v14 = vpop.permute.xlu0 %1831 }
 0xff5   : > { %v1849_v15 = vsel %vm1001_vm3, %v1845_v54, %v1832_v14 }
 0xff6   : > { %6929 = vrot.lane.b32.xlu1 %v1849_v15, %s28229_s22 }
 0xffa   : > { %6899 = vrot.lane.b32.xlu0 %v6804_v19, %s28228_s18 }
 0xffc   : > { %v2645_v42 = vpop.permute.xlu0 %2644 }
 0xffd   : > { %v2686_v50 = vsel %vm991_vm1, %v29679_v5, %v2645_v42 }
 0xffe   : > { %6943 = vrot.lane.b32.xlu1 %v2693_v40, %s28230_s23  ;;  %v2690_v12 = vsel %vm996_vm2, %v2686_v50, %v29196_v47  ;;  %v3532_v47 = vsel %vm991_vm1, %v28876_v4, %v29246_v25  ;;  %v34711_v50 = vld [vmem:[#allocation71_spill] sm:$0xff] }
0x1002   : > { %6925 = vrot.lane.b32.xlu0 %v1847_v39, %s28229_s22  ;;  %v5220_v39 = vsel %vm991_vm1, %v34707_v11, %v34706_v16 }
0x1003   : > { %v5224_v17 = vsel %vm996_vm2, %v5220_v39, %v34708_v51  ;;  %v34728_v39 = vld [vmem:[#allocation93_spill] sm:$0xff] }
0x1004   : > { %v29826_v38 = vpop.permute.xlu0 %2662 }
0x1006   : > { %6957 = vrot.lane.b32.xlu1 %v3537_v36, %s28231_s24 }
0x100a   : > { %6931 = vrot.lane.b32.xlu0 %v1850_v26, %s28229_s22  ;;  %v34710_v26 = vld [vmem:[#allocation38_spill] sm:$0xff] }
0x100c   : > { %v2677_v49 = vpop.permute.xlu0 %2676 }
0x100d   : > { %v2694_v37 = vsel %vm1001_vm3, %v2690_v12, %v2677_v49 }
0x1012   : > { %6945 = vrot.lane.b32.xlu0 %v2694_v37, %s28230_s23 }
0x1014   : > { %v3490_v63 = vpop.permute.xlu0 %3489 }
0x1015   : > { %v3531_v32 = vsel %vm991_vm1, %v29711_v21, %v3490_v63  ;;  %v34712_v63 = vld [vmem:[#allocation75_spill] sm:$0xff] }
0x1016   : > { %v3535_v28 = vsel %vm996_vm2, %v3531_v32, %v29269_v23  ;;  %v4374_v23 = vsel %vm991_vm1, %v28950_v52, %v29281_v22  ;;  %v34704_v22 = vld [vmem:[#allocation61_spill] sm:$0xff] }
0x1017   : > { %v4378_v21 = vsel %vm996_vm2, %v4374_v23, %v29294_v13 }
0x101a   : > { %6959 = vrot.lane.b32.xlu0 %v3538_v31, %s28231_s24  ;;  %v7820_v31 = vrot.slane %v34713_v60, 4 }
0x101c   : > { %v3508_v5 = vpop.permute.xlu0 %3507 }
0x101d   : > { %v3536_v34 = vsel %vm996_vm2, %v3532_v47, %v3508_v5  ;;  %v34714_v47 = vld [vmem:[#allocation69_spill] sm:$0xff] }
0x101e   : > { %v3540_v61 = vsel %vm1001_vm3, %v3536_v34, %v29279_v0  ;;  %v34715_v5 = vld [vmem:[#allocation33_spill] sm:$0xff] }
0x101f   : > { %6963 = vrot.lane.b32.xlu1 %v3540_v61, %s28231_s24  ;;  %v6067_v34 = vsel %vm991_vm1, %v34715_v5, %v34714_v47  ;;  %v34716_v61 = vld [vmem:[#allocation94_spill] sm:$0xff] }
0x1020   : > { %v7821_v32 = vsel %vm831_vm0, %v7820_v31, %v34716_v61  ;;  %v34735_v61 = vld [vmem:[#allocation64_spill] sm:$0xff] }
0x1024   : > { %v3522_v1 = vpop.permute.xlu0 %3521 }
0x1025   : > { %v29864_v58 = vsel %vm1001_vm3, %v3535_v28, %v3522_v1  ;;  %v34717_v28 = vld [vmem:[#allocation48_spill] sm:$0xff]  ;;  %v34718_v1 = vld [vmem:[#allocation29_spill] sm:$0xff] }
0x102c   : > { %v4335_v54 = vpop.permute.xlu0 %4334 }
0x102d   : > { %v4376_v4 = vsel %vm991_vm1, %v29749_v44, %v4335_v54  ;;  %v34701_v44 = vld [vmem:[#allocation46_spill] sm:$0xff]  ;;  %v6065_v54 = vsel %vm991_vm1, %v34718_v1, %v34717_v28 }
0x102e   : > { %v4380_v25 = vsel %vm996_vm2, %v4376_v4, %v29298_v3  ;;  %v34702_v3 = vld [vmem:[#allocation23_spill] sm:$0xff]  ;;  %v34719_v4 = vld [vmem:[#allocation88_spill] sm:$0xff]  ;;  %v34736_v28 = vld [vmem:[#allocation82_spill] sm:$0xff] }
0x102f   : > { %v4384_v0 = vsel %vm1001_vm3, %v4380_v25, %v29301_v48  ;;  %v4377_v9 = vsel %vm991_vm1, %v34702_v3, %v34701_v44  ;;  %v34703_v48 = vld [vmem:[#allocation53_spill] sm:$0xff]  ;;  %v7792_v25 = vrot.slane %v34719_v4, 4  ;;  %v29927_v3 = vperm.slane %v7821_v32, %v28351_v41 }
0x1030   : > { %6977 = vrot.lane.b32.xlu1 %v4384_v0, %s28232_s25  ;;  %v4381_v19 = vsel %vm996_vm2, %v4377_v9, %v34703_v48  ;;  %v34720_v0 = vld [vmem:[#allocation90_spill] sm:$0xff]  ;;  %v34723_v48 = vld [vmem:[#allocation77_spill] sm:$0xff] }
0x1031   : > { %v7814_v23 = vrot.slane %v34720_v0, 4  ;;  %v7826_v11 = vrot.slane %v29927_v3, 4  ;;  %v34737_v0 = vld [vmem:[#allocation81_spill] sm:$0xff] }
0x1034   : > { %v4363_v14 = vpop.permute.xlu0 %4362 }
0x1035   : > { %v4382_v15 = vsel %vm1001_vm3, %v4378_v21, %v4363_v14  ;;  %v34721_v21 = vld [vmem:[#allocation56_spill] sm:$0xff] }
0x1036   : > { %6973 = vrot.lane.b32.xlu0 %v4382_v15, %s28232_s25  ;;  %v6069_v14 = vsel %vm996_vm2, %v6065_v54, %v34721_v21  ;;  %v34722_v15 = vld [vmem:[#allocation47_spill] sm:$0xff]  ;;  %v34738_v21 = vld [vmem:[#allocation20_spill] sm:$0xff] }
0x1037   : > { %v6071_v44 = vsel %vm996_vm2, %v6067_v34, %v34722_v15  ;;  %v34734_v34 = vld [vmem:[#allocation18_spill] sm:$0xff]  ;;  %v34739_v15 = vld [vmem:[#allocation96_spill] sm:$0xff] }
0x1038   : > { %v994_v32 = vsel %vm991_vm1, %v34735_v61, %v34734_v34 }
0x103c   : > { %v4369_v43 = vpop.permute.xlu0 %4368 }
0x103d   : > { %v4385_v24 = vsel %vm1001_vm3, %v4381_v19, %v4369_v43  ;;  %v6075_v19 = vsel %vm1001_vm3, %v6071_v44, %v34723_v48  ;;  %v34724_v43 = vld [vmem:[#allocation97_spill] sm:$0xff] }
0x103e   : > { %6979 = vrot.lane.b32.xlu0 %v4385_v24, %s28232_s25  ;;  %v7848_v24 = vrot.slane %v34724_v43, 4 }
0x1040   : > { %v7849_v51 = vsel %vm831_vm0, %v7848_v24, %v34728_v39 }
0x1041   : > { %v7853_v31 = vperm.slane %v7849_v51, %v28351_v41  ;;  %v34745_v51 = vld [vmem:[#allocation83_spill] sm:$0xff] }
0x1044   : > { %v5180_v52 = vpop.permute.xlu0 %5179 }
0x1045   : > { %v5221_v13 = vsel %vm991_vm1, %v29762_v55, %v5180_v52  ;;  %v34709_v55 = vld [vmem:[#allocation55_spill] sm:$0xff] }
0x1046   : > { %v5225_v42 = vsel %vm996_vm2, %v5221_v13, %v34704_v22  ;;  %v6064_v49 = vsel %vm991_vm1, %v34710_v26, %v34709_v55  ;;  %v34725_v13 = vld [vmem:[#allocation89_spill] sm:$0xff]  ;;  %v34730_v55 = vld [vmem:[#allocation32_spill] sm:$0xff] }
0x1047   : > { %v5229_v40 = vsel %vm1001_vm3, %v5225_v42, %v34705_v6  ;;  %v6068_v12 = vsel %vm996_vm2, %v6064_v49, %v34711_v50  ;;  %v7793_v22 = vsel %vm831_vm0, %v7792_v25, %v34725_v13  ;;  %v34726_v42 = vld [vmem:[#allocation91_spill] sm:$0xff]  ;;  %v34743_v13 = vld [vmem:[#allocation45_spill] sm:$0xff] }
0x1048   : > { %6993 = vrot.lane.b32.xlu0 %v5229_v40, %s28233_s26  ;;  %v6072_v29 = vsel %vm1001_vm3, %v6068_v12, %v34712_v63  ;;  %v7786_v6 = vrot.slane %v34726_v42, 4  ;;  %v34727_v40 = vld [vmem:[#allocation92_spill] sm:$0xff]  ;;  %v34731_v49 = vld [vmem:[#allocation87_spill] sm:$0xff]  ;;  %v34732_v12 = vld [vmem:[#allocation98_spill] sm:$0xff] }
0x1049   : > { %v7815_v16 = vsel %vm831_vm0, %v7814_v23, %v34727_v40  ;;  %v7842_v63 = vrot.slane %v34732_v12, 4 }
0x104a   : > { %v7787_v50 = vsel %vm831_vm0, %v7786_v6, %v34731_v49 }
0x104b   : > { %v7791_v25 = vperm.slane %v7787_v50, %v28351_v41  ;;  %v7843_v44 = vsel %vm831_vm0, %v7842_v63, %v34739_v15 }
0x104c   : > { %v5210_v36 = vpop.permute.xlu0 %5209  ;;  %v7847_v6 = vperm.slane %v7843_v44, %v28351_v41 }
0x104d   : > { %v5228_v56 = vsel %vm1001_vm3, %v5224_v17, %v5210_v36  ;;  %v7797_v17 = vperm.slane %v7793_v22, %v28351_v41  ;;  %v29945_v36 = vperm.slane %v7815_v16, %v28351_v41 }
0x104e   : > { %6991 = vrot.lane.b32.xlu1 %v5228_v56, %s28233_s26  ;;  %v34729_v56 = vld [vmem:[#allocation78_spill] sm:$0xff] }
0x104f   : > { %v6909_v26 = vsel %vm991_vm1, %v34730_v55, %v34729_v56  ;;  %v7827_v5 = vsel %vm831_vm0, %v7826_v11, %v29945_v36  ;;  %v7798_v4 = vrot.slane %v7797_v17, 4  ;;  %v34744_v11 = vld [vmem:[#allocation74_spill] sm:$0xff] }
0x1051   : > { %v7799_v40 = vsel %vm831_vm0, %v7798_v4, %v7791_v25 }
0x1052   : > { %v29996_v55 = vperm.slane %v7799_v40, %v28621_v57 }
0x1054   : > { %v29906_v37 = vpop.permute.xlu0 %6024  ;;  %34746 = vst [vmem:[#allocation43_spill] sm:$0xff] %v29996_v55  ;;  %v7810_v63 = vrot.slane %v29996_v55, 4 }
0x1056   : > { %7005 = vrot.lane.b32.xlu1 %v6072_v29, %s28234_s27  ;;  %v34733_v29 = vld [vmem:[#allocation80_spill] sm:$0xff]  ;;  %v7811_v61 = vsel %vm831_vm0, 0.0, %v7810_v63 }
0x1057   : > { %v6913_v60 = vsel %vm996_vm2, %v6909_v26, %v34733_v29  ;;  %v34747_v26 = vld [vmem:[#allocation85_spill] sm:$0xff]  ;;  %v34749_v29 = vld [vmem:[#allocation84_spill] sm:$0xff] }
0x1058   : > { %v6917_v1 = vsel %vm1001_vm3, %v6913_v60, %v34736_v28  ;;  %v7772_v49 = vrot.slane %v34747_v26, 4  ;;  %v7800_v28 = vrot.slane %v7791_v25, 4  ;;  %v34759_v63 = vld [vmem:[#allocation108_spill] sm:$0xff] }
0x105a   : > { %v7773_v60 = vsel %vm831_vm0, %v34749_v29, %v7772_v49  ;;  %v34758_v49 = vld [vmem:[#allocation104_spill] sm:$0xff]  ;;  %v8693_v29 = vrot.slane %v34759_v63, 4 }
0x105c   : > { %v6055_v9 = vpop.permute.xlu0 %6054 }
0x105d   : > { %v6073_v52 = vsel %vm1001_vm3, %v6069_v14, %v6055_v9  ;;  %v999_v14 = vsel %vm996_vm2, %v994_v32, %v34738_v21  ;;  %v34740_v9 = vld [vmem:[#allocation76_spill] sm:$0xff]  ;;  %v30012_v32 = vperm.slane %v7773_v60, %v28621_v57 }
0x105e   : > { %7011 = vrot.lane.b32.xlu1 %v6075_v19, %s28234_s27  ;;  %7007 = vrot.lane.b32.xlu0 %v6073_v52, %s28234_s27  ;;  %v7854_v19 = vrot.slane %v7853_v31, 4  ;;  %v1004_v43 = vsel %vm1001_vm3, %v999_v14, %v29779_v2  ;;  %v34742_v52 = vld [vmem:[#allocation79_spill] sm:$0xff] }
0x105f   : > { %v6912_v22 = vsel %vm991_vm1, %v34743_v13, %v34742_v52  ;;  %v7784_v14 = vrot.slane %v30012_v32, 4 }
0x1060   : > { %v6916_v39 = vsel %vm996_vm2, %v6912_v22, %v34744_v11  ;;  %v7855_v2 = vsel %vm831_vm0, %v7854_v19, %v7847_v6  ;;  %v34754_v19 = vld [vmem:[#allocation106_spill] sm:$0xff] }
0x1061   : > { %v6920_v56 = vsel %vm1001_vm3, %v6916_v39, %v34745_v51  ;;  %v30002_v12 = vperm.slane %v7855_v2, %v28621_v57  ;;  %v34756_v51 = vld [vmem:[#allocation103_spill] sm:$0xff] }
0x1063   : > { %34748 = vst [vmem:[#allocation57_spill] sm:$0xff] %v30002_v12  ;;  %v7866_v34 = vrot.slane %v30002_v12, 4 }
0x1064   : > { %v6870_v47 = vpop.permute.xlu0 %6869 }
0x1065   : > { %v6911_v54 = vsel %vm991_vm1, %v29790_v33, %v6870_v47  ;;  %v29976_v33 = vperm.slane %v7827_v5, %v28621_v57  ;;  %v34750_v47 = vld [vmem:[#allocation102_spill] sm:$0xff]  ;;  %v7867_v4 = vsel %vm831_vm0, 0.0, %v7866_v34  ;;  %v34761_v34 = vld [vmem:[#allocation113_spill] sm:$0xff] }
0x1066   : > { %v6915_v23 = vsel %vm996_vm2, %v6911_v54, %v34737_v0  ;;  %7021 = vrot.lane.b32.xlu0 %v6917_v1, %s28235_s28  ;;  %v8609_v5 = vrot.slane %v34750_v47, 4  ;;  %v34751_v1 = vld [vmem:[#allocation101_spill] sm:$0xff]  ;;  %v7856_v0 = vrot.slane %v7847_v6, 4  ;;  %v7828_v6 = vrot.slane %v29945_v36, 4 }
0x1067   : > { %v6919_v48 = vsel %vm1001_vm3, %v6915_v23, %v34740_v9  ;;  %34741 = vst [vmem:[#allocation28_spill] sm:$0xff] %v29976_v33  ;;  %v7838_v16 = vrot.slane %v29976_v33, 4  ;;  %v34752_v23 = vld [vmem:[#allocation100_spill] sm:$0xff]  ;;  %v7801_v9 = vsel %vm831_vm0, %v7797_v17, %v7800_v28  ;;  %v34755_v17 = vld [vmem:[#allocation105_spill] sm:$0xff] }
0x1068   : > { %v6930_v24 = vpop.permute.xlu1 %6929  ;;  %7025 = vrot.lane.b32.xlu1 %v6919_v48, %s28235_s28  ;;  %v8610_v54 = vsel %vm831_vm0, %v8609_v5, %v34751_v1  ;;  %v8603_v21 = vrot.slane %v34752_v23, 4  ;;  %v7857_v44 = vsel %vm831_vm0, %v7853_v31, %v7856_v0  ;;  %v34753_v48 = vld [vmem:[#allocation99_spill] sm:$0xff]  ;;  %v30031_v22 = vperm.slane %v7801_v9, %v28621_v57 }
0x1069   : > { %v29985_v42 = vsel %vm7033_vm4, %v1004_v43, %v6930_v24  ;;  %v7839_v50 = vsel %vm831_vm0, 0.0, %v7838_v16  ;;  %v8614_v15 = vperm.slane %v8610_v54, %v28351_v41  ;;  %v8637_v43 = vrot.slane %v34754_v19, 4  ;;  %v34762_v23 = vld [vmem:[#allocation107_spill] sm:$0xff] }
0x106a   : > { %v8604_v25 = vsel %vm831_vm0, %v8603_v21, %v34753_v48  ;;  %v7785_v24 = vsel %vm831_vm0, 0.0, %v7784_v14  ;;  %v7865_v52 = vperm.slane %v7857_v44, %v28621_v57  ;;  %v7829_v2 = vsel %vm831_vm0, %v29927_v3, %v7828_v6  ;;  %v34760_v3 = vld [vmem:[#allocation111_spill] sm:$0xff] }
0x106b   : > { %v8615_v13 = vrot.slane %v8614_v15, 4  ;;  %v8608_v31 = vperm.slane %v8604_v25, %v28351_v41  ;;  %v8638_v40 = vsel %vm831_vm0, %v8637_v43, %v34755_v17  ;;  %v30053_v60 = vperm.slane %v7829_v2, %v28621_v57  ;;  %v34765_v2 = vld [vmem:[#allocation116_spill] sm:$0xff] }
0x106c   : > { %v7868_v16 = vrot.slane %v7865_v52, 4  ;;  %v8642_v39 = vperm.slane %v8638_v40, %v28351_v41  ;;  %v8687_v5 = vrot.slane %v34760_v3, 4 }
0x106d   : > { %v8616_v11 = vsel %vm831_vm0, %v8615_v13, %v8608_v31  ;;  %v7840_v54 = vrot.slane %v30053_v60, 4  ;;  %v8617_v25 = vrot.slane %v8608_v31, 4  ;;  %v34764_v13 = vld [vmem:[#allocation119_spill] sm:$0xff] }
0x106e   : > { %7027 = vrot.lane.b32.xlu0 %v6920_v56, %s28235_s28  ;;  %v8631_v56 = vrot.slane %v34756_v51, 4  ;;  %v7869_v36 = vsel %vm831_vm0, 0.0, %v7868_v16  ;;  %v30046_v26 = vperm.slane %v8616_v11, %v28621_v57  ;;  %v8643_v47 = vrot.slane %v8642_v39, 4 }
0x106f   : > { %v8688_v21 = vsel %vm831_vm0, %v8687_v5, %v34762_v23  ;;  %v7841_v9 = vsel %vm831_vm0, 0.0, %v7840_v54  ;;  %v9454_v6 = vrot.slane %v34764_v13, 4 }
0x1070   : > { %7878 = vrot.lane.b32.xlu1 %v7839_v50, %s28226_s16  ;;  %34757 = vst [vmem:[#allocation46_spill] sm:$0xff] %v30046_v26  ;;  %v8632_v50 = vsel %vm831_vm0, %v8631_v56, %v34758_v49  ;;  %v8627_v28 = vrot.slane %v30046_v26, 4  ;;  %v8692_v19 = vperm.slane %v8688_v21, %v28351_v41  ;;  %v34767_v56 = vld [vmem:[#allocation114_spill] sm:$0xff] }
0x1071   : > { %v8636_v1 = vperm.slane %v8632_v50, %v28351_v41 }
0x1072   : > { %v8628_v14 = vsel %vm831_vm0, 0.0, %v8627_v28  ;;  %v8701_v11 = vrot.slane %v8692_v19, 4 }
0x1073   : > { %v8644_v0 = vsel %vm831_vm0, %v8643_v47, %v8636_v1  ;;  %v8645_v44 = vrot.slane %v8636_v1, 4  ;;  %v34768_v47 = vld [vmem:[#allocation115_spill] sm:$0xff] }
0x1074   : > { %v30070_v48 = vperm.slane %v8644_v0, %v28621_v57  ;;  %v34769_v0 = vld [vmem:[#allocation122_spill] sm:$0xff] }
0x1075   : > { %v9482_v23 = vrot.slane %v34769_v0, 4 }
0x1076   : > { %7876 = vrot.lane.b32.xlu0 %v7811_v61, %s28226_s16  ;;  %v8694_v61 = vsel %vm831_vm0, %v8693_v29, %v34761_v34  ;;  %34763 = vst [vmem:[#allocation23_spill] sm:$0xff] %v30070_v48  ;;  %v8655_v17 = vrot.slane %v30070_v48, 4 }
0x1078   : > { %7880 = vrot.lane.b32.xlu1 %v7867_v4, %s28226_s16  ;;  %v8698_v4 = vperm.slane %v8694_v61, %v28351_v41 }
0x107a   : > { %v8699_v43 = vrot.slane %v8698_v4, 4  ;;  %v8702_v50 = vsel %vm831_vm0, %v8698_v4, %v8701_v11 }
0x107b   : > { %v8710_v34 = vperm.slane %v8702_v50, %v28621_v57 }
0x107c   : > { %v8700_v16 = vsel %vm831_vm0, %v8699_v43, %v8692_v19  ;;  %v34773_v43 = vld [vmem:[#allocation120_spill] sm:$0xff] }
0x107d   : > { %v30089_v51 = vperm.slane %v8700_v16, %v28621_v57  ;;  %v8713_v54 = vrot.slane %v8710_v34, 4  ;;  %v30120_v16 = vpop.permute.xlu1 %6943 }
0x107e   : > { %7906 = vrot.lane.b32.xlu0 %v7785_v24, %s28228_s18  ;;  %v8646_v24 = vsel %vm831_vm0, %v8642_v39, %v8645_v44  ;;  %v9455_v39 = vsel %vm831_vm0, %v9454_v6, %v34765_v2  ;;  %v34771_v44 = vld [vmem:[#allocation117_spill] sm:$0xff] }
0x107f   : > { %v30079_v40 = vperm.slane %v8646_v24, %v28621_v57  ;;  %34766 = vst [vmem:[#allocation53_spill] sm:$0xff] %v30089_v51  ;;  %v9459_v63 = vperm.slane %v9455_v39, %v28351_v41  ;;  %v8711_v29 = vrot.slane %v30089_v51, 4  ;;  %v8714_v21 = vsel %vm831_vm0, 0.0, %v8713_v54  ;;  %v34775_v2 = vld [vmem:[#allocation109_spill] sm:$0xff] }
0x1080   : > { %7892 = vrot.lane.b32.xlu1 %v30031_v22, %s28227_s17 }
0x1081   : > { %v9460_v61 = vrot.slane %v9459_v63, 4  ;;  %v8712_v28 = vsel %vm831_vm0, 0.0, %v8711_v29 }
0x1086   : > { %7912 = vrot.lane.b32.xlu0 %v7869_v36, %s28228_s18  ;;  %v9448_v36 = vrot.slane %v34767_v56, 4 }
0x1088   : > { %7896 = vrot.lane.b32.xlu1 %v7865_v52, %s28227_s17  ;;  %v8618_v52 = vsel %vm831_vm0, %v8614_v15, %v8617_v25  ;;  %v8656_v15 = vsel %vm831_vm0, 0.0, %v8655_v17  ;;  %v9449_v3 = vsel %vm831_vm0, %v9448_v36, %v34768_v47  ;;  %v34772_v25 = vld [vmem:[#allocation110_spill] sm:$0xff] }
0x1089   : > { %v8626_v31 = vperm.slane %v8618_v52, %v28621_v57  ;;  %v9453_v1 = vperm.slane %v9449_v3, %v28351_v41  ;;  %v8673_v19 = vrot.slane %v34772_v25, 4  ;;  %v34774_v52 = vld [vmem:[#allocation118_spill] sm:$0xff] }
0x108a   : > { %v9483_v13 = vsel %vm831_vm0, %v9482_v23, %v34774_v52  ;;  %v34780_v23 = vld [vmem:[#allocation134_spill] sm:$0xff] }
0x108b   : > { %v8629_v49 = vrot.slane %v8626_v31, 4  ;;  %v9461_v4 = vsel %vm831_vm0, %v9460_v61, %v9453_v1  ;;  %v9487_v11 = vperm.slane %v9483_v13, %v28351_v41  ;;  %v8674_v39 = vsel %vm831_vm0, %v34775_v2, %v8673_v19  ;;  %v30147_v19 = vpop.permute.xlu1 %6957 }
0x108c   : > { %v30130_v29 = vperm.slane %v8674_v39, %v28621_v57  ;;  %v9462_v47 = vrot.slane %v9453_v1, 4 }
0x108d   : > { %v8630_v5 = vsel %vm831_vm0, 0.0, %v8629_v49  ;;  %v34777_v49 = vld [vmem:[#allocation123_spill] sm:$0xff]  ;;  %v9488_v3 = vrot.slane %v9487_v11, 4 }
0x108e   : > { %8719 = vrot.lane.b32.xlu0 %v8628_v14, %s28226_s16  ;;  %v30108_v14 = vperm.slane %v9461_v4, %v28621_v57  ;;  %v9538_v50 = vrot.slane %v34777_v49, 4  ;;  %v9463_v0 = vsel %vm831_vm0, %v9459_v63, %v9462_v47  ;;  %v34781_v63 = vld [vmem:[#allocation131_spill] sm:$0xff]  ;;  %v34784_v49 = vld [vmem:[#allocation130_spill] sm:$0xff] }
0x1090   : > { %7910 = vrot.lane.b32.xlu1 %v7841_v9, %s28228_s18  ;;  %34770 = vst [vmem:[#allocation61_spill] sm:$0xff] %v30108_v14  ;;  %v9476_v9 = vrot.slane %v34771_v44, 4  ;;  %v9472_v6 = vrot.slane %v30108_v14, 4  ;;  %v8685_v44 = vrot.slane %v30130_v29, 4  ;;  %v34820_v14 = vld [vmem:[#allocation172_spill] sm:$0xff] }
0x1092   : > { %v9477_v24 = vsel %vm831_vm0, %v9476_v9, %v34773_v43  ;;  %v9473_v36 = vsel %vm831_vm0, 0.0, %v9472_v6  ;;  %v9471_v43 = vperm.slane %v9463_v0, %v28621_v57  ;;  %v8686_v52 = vsel %vm831_vm0, 0.0, %v8685_v44 }
0x1093   : > { %v9481_v17 = vperm.slane %v9477_v24, %v28351_v41  ;;  %v30166_v47 = vpop.permute.xlu1 %6963 }
0x1094   : > { %v9474_v39 = vrot.slane %v9471_v43, 4 }
0x1095   : > { %v9489_v25 = vsel %vm831_vm0, %v9488_v3, %v9481_v17 }
0x1096   : > { %8737 = vrot.lane.b32.xlu0 %v30079_v40, %s28227_s17  ;;  %v30156_v13 = vperm.slane %v9489_v25, %v28621_v57  ;;  %v9475_v3 = vsel %vm831_vm0, 0.0, %v9474_v39  ;;  %v34787_v25 = vld [vmem:[#allocation132_spill] sm:$0xff]  ;;  %v34790_v39 = vld [vmem:[#allocation133_spill] sm:$0xff] }
0x1098   : > { %8721 = vrot.lane.b32.xlu1 %v8656_v15, %s28226_s16  ;;  %v34776_v15 = vld [vmem:[#allocation125_spill] sm:$0xff]  ;;  %34782 = vst [vmem:[#allocation58_spill] sm:$0xff] %v30156_v13 }
0x1099   : > { %v9532_v56 = vrot.slane %v34776_v15, 4 }
0x109e   : > { %8751 = vrot.lane.b32.xlu0 %v8630_v5, %s28228_s18  ;;  %v34778_v5 = vld [vmem:[#allocation121_spill] sm:$0xff] }
0x109f   : > { %v9533_v61 = vsel %vm831_vm0, %v9532_v56, %v34778_v5 }
0x10a0   : > { %8725 = vrot.lane.b32.xlu1 %v8712_v28, %s28226_s16  ;;  %v34779_v28 = vld [vmem:[#allocation128_spill] sm:$0xff]  ;;  %v9537_v9 = vperm.slane %v9533_v61, %v28351_v41 }
0x10a1   : > { %v9539_v54 = vsel %vm831_vm0, %v9538_v50, %v34779_v28 }
0x10a2   : > { %v9543_v1 = vperm.slane %v9539_v54, %v28351_v41  ;;  %v9546_v6 = vrot.slane %v9537_v9, 4  ;;  %v30179_v44 = vpop.permute.xlu1 %6977 }
0x10a4   : > { %v9547_v15 = vsel %vm831_vm0, %v9543_v1, %v9546_v6 }
0x10a5   : > { %v9555_v5 = vperm.slane %v9547_v15, %v28621_v57 }
0x10a6   : > { %8757 = vrot.lane.b32.xlu0 %v8714_v21, %s28228_s18  ;;  %v10299_v21 = vrot.slane %v34780_v23, 4 }
0x10a7   : > { %v9558_v0 = vrot.slane %v9555_v5, 4 }
0x10a8   : > { %8735 = vrot.lane.b32.xlu1 %v8626_v31, %s28227_s17  ;;  %v9490_v31 = vrot.slane %v9481_v17, 4  ;;  %v10300_v24 = vsel %vm831_vm0, %v10299_v21, %v34781_v63  ;;  %v34783_v17 = vld [vmem:[#allocation129_spill] sm:$0xff]  ;;  %v10321_v63 = vrot.slane %v34787_v25, 4  ;;  %v34793_v25 = vld [vmem:[#allocation138_spill] sm:$0xff] }
0x10a9   : > { %v10293_v2 = vrot.slane %v34783_v17, 4  ;;  %v10304_v56 = vperm.slane %v10300_v24, %v28351_v41  ;;  %v34788_v24 = vld [vmem:[#allocation137_spill] sm:$0xff] }
0x10aa   : > { %v9491_v4 = vsel %vm831_vm0, %v9487_v11, %v9490_v31  ;;  %v9544_v11 = vrot.slane %v9543_v1, 4 }
0x10ab   : > { %v10294_v50 = vsel %vm831_vm0, %v10293_v2, %v34784_v49  ;;  %v10305_v61 = vrot.slane %v10304_v56, 4 }
0x10ac   : > { %v9545_v31 = vsel %vm831_vm0, %v9544_v11, %v9537_v9  ;;  %v9559_v9 = vsel %vm831_vm0, 0.0, %v9558_v0  ;;  %v34789_v11 = vld [vmem:[#allocation135_spill] sm:$0xff] }
0x10ad   : > { %v30173_v54 = vperm.slane %v9545_v31, %v28621_v57  ;;  %v10322_v17 = vsel %vm831_vm0, %v10321_v63, %v34789_v11  ;;  %v30196_v31 = vpop.permute.xlu0 %6899  ;;  %v10383_v63 = vrot.slane %v34793_v25, 4 }
0x10ae   : > { %9564 = vrot.lane.b32.xlu0 %v9473_v36, %s28226_s16  ;;  %v9500_v36 = vrot.slane %v30156_v13, 4 }
0x10af   : > { %34785 = vst [vmem:[#allocation50_spill] sm:$0xff] %v30173_v54  ;;  %v9556_v21 = vrot.slane %v30173_v54, 4  ;;  %v34819_v54 = vld [vmem:[#allocation171_spill] sm:$0xff] }
0x10b0   : > { %8741 = vrot.lane.b32.xlu1 %v8710_v34, %s28227_s17  ;;  %v30144_v34 = vperm.slane %v9491_v4, %v28621_v57  ;;  %v9501_v28 = vsel %vm831_vm0, 0.0, %v9500_v36  ;;  %v10298_v4 = vperm.slane %v10294_v50, %v28351_v41  ;;  %v10326_v36 = vperm.slane %v10322_v17, %v28351_v41  ;;  %v34791_v50 = vld [vmem:[#allocation140_spill] sm:$0xff]  ;;  %v34795_v17 = vld [vmem:[#allocation143_spill] sm:$0xff] }
0x10b1   : > { %v9557_v6 = vsel %vm831_vm0, 0.0, %v9556_v21 }
0x10b2   : > { %v10306_v23 = vsel %vm831_vm0, %v10305_v61, %v10298_v4  ;;  %v10335_v0 = vrot.slane %v10326_v36, 4 }
0x10b3   : > { %v30183_v1 = vperm.slane %v10306_v23, %v28621_v57  ;;  %v34792_v23 = vld [vmem:[#allocation126_spill] sm:$0xff] }
0x10b4   : > { %v9518_v21 = vrot.slane %v34792_v23, 4 }
0x10b5   : > { %34786 = vst [vmem:[#allocation22_spill] sm:$0xff] %v30183_v1  ;;  %v10317_v2 = vrot.slane %v30183_v1, 4 }
0x10b6   : > { %9582 = vrot.lane.b32.xlu0 %v30144_v34, %s28227_s17 }
0x10b8   : > { %8755 = vrot.lane.b32.xlu1 %v8686_v52, %s28228_s18  ;;  %v10327_v52 = vrot.slane %v34788_v24, 4  ;;  %v34794_v24 = vld [vmem:[#allocation136_spill] sm:$0xff] }
0x10ba   : > { %v10328_v15 = vsel %vm831_vm0, %v10327_v52, %v34790_v39  ;;  %v34796_v39 = vld [vmem:[#allocation147_spill] sm:$0xff] }
0x10bb   : > { %v10332_v49 = vperm.slane %v10328_v15, %v28351_v41  ;;  %v11144_v15 = vrot.slane %v34796_v39, 4 }
0x10be   : > { %9596 = vrot.lane.b32.xlu0 %v9475_v3, %s28228_s18  ;;  %v10377_v3 = vrot.slane %v34791_v50, 4 }
0x10c0   : > { %9566 = vrot.lane.b32.xlu1 %v9501_v28, %s28226_s16  ;;  %v30200_v61 = vpop.permute.xlu1 %6991  ;;  %v10318_v28 = vsel %vm831_vm0, 0.0, %v10317_v2  ;;  %v10378_v52 = vsel %vm831_vm0, %v10377_v3, %v34794_v24  ;;  %v10384_v2 = vsel %vm831_vm0, %v10383_v63, %v34795_v17  ;;  %v10333_v24 = vrot.slane %v10332_v49, 4 }
0x10c1   : > { %v10382_v50 = vperm.slane %v10378_v52, %v28351_v41  ;;  %v10388_v3 = vperm.slane %v10384_v2, %v28351_v41 }
0x10c3   : > { %v10391_v52 = vrot.slane %v10382_v50, 4 }
0x10c5   : > { %v10392_v17 = vsel %vm831_vm0, %v10388_v3, %v10391_v52 }
0x10c6   : > { %9602 = vrot.lane.b32.xlu0 %v9559_v9, %s28228_s18  ;;  %v10307_v9 = vrot.slane %v10298_v4, 4 }
0x10c8   : > { %9570 = vrot.lane.b32.xlu1 %v9557_v6, %s28226_s16  ;;  %v10336_v6 = vsel %vm831_vm0, %v10332_v49, %v10335_v0  ;;  %v10308_v11 = vsel %vm831_vm0, %v10304_v56, %v10307_v9  ;;  %v30222_v0 = vpop.permute.xlu0 %6925  ;;  %v34798_v56 = vld [vmem:[#allocation145_spill] sm:$0xff]  ;;  %v30228_v25 = vpop.permute.xlu1 %7005 }
0x10c9   : > { %v30216_v4 = vperm.slane %v10336_v6, %v28621_v57  ;;  %v10316_v23 = vperm.slane %v10308_v11, %v28621_v57  ;;  %v11145_v9 = vsel %vm831_vm0, %v11144_v15, %v34798_v56  ;;  %v10334_v15 = vsel %vm831_vm0, %v10333_v24, %v10326_v36 }
0x10ca   : > { %v30237_v2 = vperm.slane %v11145_v9, %v28351_v41  ;;  %v10400_v56 = vperm.slane %v10392_v17, %v28621_v57  ;;  %v30249_v9 = vperm.slane %v10334_v15, %v28621_v57  ;;  %v34802_v15 = vld [vmem:[#allocation149_spill] sm:$0xff] }
0x10cb   : > { %v10319_v11 = vrot.slane %v10316_v23, 4 }
0x10cc   : > { %34801 = vst [vmem:[#allocation40_spill] sm:$0xff] %v30249_v9  ;;  %v10345_v17 = vrot.slane %v30249_v9, 4 }
0x10cd   : > { %v10320_v49 = vsel %vm831_vm0, 0.0, %v10319_v11 }
0x10ce   : > { %10409 = vrot.lane.b32.xlu0 %v10318_v28, %s28226_s16  ;;  %v10346_v55 = vsel %vm831_vm0, 0.0, %v10345_v17 }
0x10d0   : > { %9580 = vrot.lane.b32.xlu1 %v9471_v43, %s28227_s17  ;;  %v34797_v43 = vld [vmem:[#allocation124_spill] sm:$0xff]  ;;  %v30254_v36 = vpop.permute.xlu0 %6931  ;;  %v30257_v24 = vpop.permute.xlu1 %7011 }
0x10d1   : > { %v9519_v28 = vsel %vm831_vm0, %v34797_v43, %v9518_v21  ;;  %v34799_v21 = vld [vmem:[#allocation146_spill] sm:$0xff]  ;;  %v34800_v43 = vld [vmem:[#allocation144_spill] sm:$0xff] }
0x10d2   : > { %v30231_v63 = vperm.slane %v9519_v28, %v28621_v57  ;;  %v11138_v6 = vrot.slane %v34799_v21, 4  ;;  %v10389_v21 = vrot.slane %v10388_v3, 4 }
0x10d4   : > { %v9530_v39 = vrot.slane %v30231_v63, 4  ;;  %v11139_v28 = vsel %vm831_vm0, %v11138_v6, %v34800_v43  ;;  %v10403_v6 = vrot.slane %v10400_v56, 4  ;;  %v11166_v43 = vrot.slane %v34802_v15, 4  ;;  %v34807_v15 = vld [vmem:[#allocation148_spill] sm:$0xff] }
0x10d5   : > { %v30252_v12 = vperm.slane %v11139_v28, %v28351_v41 }
0x10d6   : > { %10427 = vrot.lane.b32.xlu0 %v30216_v4, %s28227_s17  ;;  %v9531_v52 = vsel %vm831_vm0, 0.0, %v9530_v39  ;;  %v10390_v39 = vsel %vm831_vm0, %v10389_v21, %v10382_v50  ;;  %v10404_v3 = vsel %vm831_vm0, 0.0, %v10403_v6 }
0x10d7   : > { %v30272_v33 = vperm.slane %v10390_v39, %v28621_v57  ;;  %v34808_v39 = vld [vmem:[#allocation153_spill] sm:$0xff] }
0x10d8   : > { %9586 = vrot.lane.b32.xlu1 %v9555_v5, %s28227_s17  ;;  %v11150_v5 = vrot.slane %v30237_v2, 4  ;;  %v11208_v9 = vrot.slane %v34808_v39, 4  ;;  %v34811_v39 = vld [vmem:[#allocation161_spill] sm:$0xff] }
0x10d9   : > { %34805 = vst [vmem:[#allocation38_spill] sm:$0xff] %v30272_v33 }
0x10da   : > { %v11151_v11 = vsel %vm831_vm0, %v11150_v5, %v30252_v12  ;;  %v34806_v5 = vld [vmem:[#allocation150_spill] sm:$0xff]  ;;  %v30277_v21 = vpop.permute.xlu1 %7025 }
0x10db   : > { %v30266_v28 = vperm.slane %v11151_v11, %v28621_v57  ;;  %v11167_v50 = vsel %vm831_vm0, %v11166_v43, %v34806_v5  ;;  %v30280_v11 = vpop.permute.xlu0 %6945 }
0x10dc   : > { %v11171_v17 = vperm.slane %v11167_v50, %v28351_v41 }
0x10dd   : > { %34803 = vst [vmem:[#allocation55_spill] sm:$0xff] %v30266_v28  ;;  %v11162_v6 = vrot.slane %v30266_v28, 4  ;;  %v34809_v28 = vld [vmem:[#allocation152_spill] sm:$0xff] }
0x10de   : > { %10441 = vrot.lane.b32.xlu0 %v10320_v49, %s28228_s18  ;;  %v34804_v49 = vld [vmem:[#allocation151_spill] sm:$0xff]  ;;  %v11180_v5 = vrot.slane %v11171_v17, 4 }
0x10e0   : > { %9600 = vrot.lane.b32.xlu1 %v9531_v52, %s28228_s18  ;;  %v11172_v52 = vrot.slane %v34804_v49, 4  ;;  %v10401_v49 = vrot.slane %v30272_v33, 4 }
0x10e2   : > { %v10402_v43 = vsel %vm831_vm0, 0.0, %v10401_v49  ;;  %v30295_v26 = vpop.permute.xlu1 %7878  ;;  %v11995_v49 = vrot.slane %v34811_v39, 4  ;;  %v34816_v39 = vld [vmem:[#allocation158_spill] sm:$0xff] }
0x10e3   : > { %34810 = vst [vmem:[#allocation71_spill] sm:$0xff] %v30295_v26  ;;  %v30297_v50 = vpop.permute.xlu0 %6959  ;;  %v34814_v26 = vld [vmem:[#allocation160_spill] sm:$0xff]  ;;  %v11228_v13 = vrot.slane %v34816_v39, 4 }
0x10e6   : > { %10447 = vrot.lane.b32.xlu0 %v10404_v3, %s28228_s18  ;;  %v11173_v3 = vsel %vm831_vm0, %v11172_v52, %v34807_v15  ;;  %v11209_v52 = vsel %vm831_vm0, %v34809_v28, %v11208_v9  ;;  %v34813_v28 = vld [vmem:[#allocation168_spill] sm:$0xff] }
0x10e7   : > { %v11177_v51 = vperm.slane %v11173_v3, %v28351_v41 }
0x10e8   : > { %10411 = vrot.lane.b32.xlu1 %v10346_v55, %s28226_s16  ;;  %v11163_v55 = vsel %vm831_vm0, 0.0, %v11162_v6  ;;  %v30300_v6 = vperm.slane %v11209_v52, %v28621_v57  ;;  %v11996_v52 = vsel %vm831_vm0, %v11995_v49, %v34814_v26 }
0x10e9   : > { %v11181_v15 = vsel %vm831_vm0, %v11177_v51, %v11180_v5  ;;  %v12067_v5 = vrot.slane %v34813_v28, 4  ;;  %v11178_v49 = vrot.slane %v11177_v51, 4 }
0x10ea   : > { %v30303_v3 = vperm.slane %v11181_v15, %v28621_v57  ;;  %v34815_v15 = vld [vmem:[#allocation139_spill] sm:$0xff]  ;;  %v30319_v30 = vpop.permute.xlu1 %7880 }
0x10eb   : > { %v30314_v33 = vpop.permute.xlu0 %6973  ;;  %34817 = vst [vmem:[#allocation75_spill] sm:$0xff] %v30319_v30  ;;  %v12068_v28 = vsel %vm831_vm0, %v12067_v5, %v34819_v54  ;;  %v34822_v30 = vld [vmem:[#allocation156_spill] sm:$0xff] }
0x10ec   : > { %v11192_v9 = vrot.slane %v30303_v3, 4  ;;  %v11222_v54 = vrot.slane %v34822_v30, 4 }
0x10ee   : > { %11254 = vrot.lane.b32.xlu0 %v11163_v55, %s28226_s16  ;;  %v34812_v55 = vld [vmem:[#allocation141_spill] sm:$0xff] }
0x10f0   : > { %10415 = vrot.lane.b32.xlu1 %v10402_v43, %s28226_s16  ;;  %v10363_v43 = vrot.slane %v34812_v55, 4  ;;  %v11193_v55 = vsel %vm831_vm0, 0.0, %v11192_v9  ;;  %v30336_v9 = vperm.slane %v12068_v28, %v28351_v41  ;;  %v34824_v28 = vld [vmem:[#allocation157_spill] sm:$0xff] }
0x10f1   : > { %v11223_v30 = vsel %vm831_vm0, %v11222_v54, %v34824_v28  ;;  %v34828_v28 = vld [vmem:[#allocation166_spill] sm:$0xff] }
0x10f2   : > { %v10364_v1 = vsel %vm831_vm0, %v34815_v15, %v10363_v43  ;;  %v12073_v43 = vrot.slane %v34820_v14, 4  ;;  %v34821_v15 = vld [vmem:[#allocation155_spill] sm:$0xff]  ;;  %v11179_v14 = vsel %vm831_vm0, %v11178_v49, %v11171_v17  ;;  %v11227_v54 = vperm.slane %v11223_v30, %v28351_v41 }
0x10f3   : > { %v30329_v26 = vperm.slane %v10364_v1, %v28621_v57  ;;  %v11229_v39 = vsel %vm831_vm0, %v11228_v13, %v34821_v15  ;;  %v30347_v15 = vpop.permute.xlu0 %6979  ;;  %v30359_v17 = vperm.slane %v11179_v14, %v28621_v57 }
0x10f4   : > { %v11233_v1 = vperm.slane %v11229_v39, %v28351_v41  ;;  %v30355_v39 = vpop.permute.xlu1 %7892 }
0x10f5   : > { %v10375_v5 = vrot.slane %v30329_v26, 4  ;;  %34825 = vst [vmem:[#allocation69_spill] sm:$0xff] %v30355_v39  ;;  %v11190_v39 = vrot.slane %v30359_v17, 4 }
0x10f6   : > { %11274 = vrot.lane.b32.xlu0 %v30300_v6, %s28227_s17  ;;  %34826 = vst [vmem:[#allocation33_spill] sm:$0xff] %v30359_v17  ;;  %v11234_v49 = vrot.slane %v11233_v1, 4 }
0x10f8   : > { %10425 = vrot.lane.b32.xlu1 %v10316_v23, %s28227_s17  ;;  %v30323_v23 = vperm.slane %v11996_v52, %v28621_v57  ;;  %v11235_v14 = vsel %vm831_vm0, %v11234_v49, %v11227_v54 }
0x10f9   : > { %v30383_v30 = vperm.slane %v11235_v14, %v28621_v57 }
0x10fa   : > { %34818 = vst [vmem:[#allocation95_spill] sm:$0xff] %v30323_v23  ;;  %v12007_v52 = vrot.slane %v30323_v23, 4 }
0x10fb   : > { %34830 = vst [vmem:[#allocation48_spill] sm:$0xff] %v30383_v30 }
0x10fc   : > { %v12008_v13 = vsel %vm831_vm0, 0.0, %v12007_v52 }
0x10fe   : > { %11288 = vrot.lane.b32.xlu0 %v11193_v55, %s28228_s18  ;;  %v34823_v55 = vld [vmem:[#allocation170_spill] sm:$0xff] }
0x10ff   : > { %v12074_v51 = vsel %vm831_vm0, %v12073_v43, %v34823_v55  ;;  %v10376_v43 = vsel %vm831_vm0, 0.0, %v10375_v5  ;;  %v34827_v55 = vld [vmem:[#allocation167_spill] sm:$0xff] }
0x1100   : > { %10431 = vrot.lane.b32.xlu1 %v10400_v56, %s28227_s17  ;;  %v12081_v56 = vrot.slane %v30336_v9, 4  ;;  %v30353_v23 = vperm.slane %v12074_v51, %v28351_v41  ;;  %v12053_v52 = vrot.slane %v34827_v55, 4  ;;  %v30377_v55 = vpop.permute.xlu0 %6993 }
0x1102   : > { %v12054_v51 = vsel %vm831_vm0, %v34828_v28, %v12053_v52  ;;  %v30386_v52 = vpop.permute.xlu1 %7896 }
0x1103   : > { %v30374_v48 = vperm.slane %v12054_v51, %v28621_v57  ;;  %34831 = vst [vmem:[#allocation29_spill] sm:$0xff] %v30386_v52 }
0x1105   : > { %v12065_v49 = vrot.slane %v30374_v48, 4 }
0x1106   : > { %12099 = vrot.lane.b32.xlu0 %v12008_v13, %s28226_s16  ;;  %v12082_v13 = vsel %vm831_vm0, %v30353_v23, %v12081_v56  ;;  %v11191_v56 = vsel %vm831_vm0, 0.0, %v11190_v39 }
0x1107   : > { %v30370_v5 = vperm.slane %v12082_v13, %v28621_v57  ;;  %v34832_v13 = vld [vmem:[#allocation175_spill] sm:$0xff]  ;;  %v12066_v51 = vsel %vm831_vm0, 0.0, %v12065_v49 }
0x1108   : > { %10445 = vrot.lane.b32.xlu1 %v10376_v43, %s28228_s18  ;;  %v12840_v43 = vrot.slane %v29616_v20, 4  ;;  %v11246_v20 = vrot.slane %v30383_v30, 4  ;;  %v30396_v39 = vpop.permute.xlu0 %7007  ;;  %v12926_v30 = vrot.slane %v29647_v35, 4 }
0x1109   : > { %34829 = vst [vmem:[#allocation94_spill] sm:$0xff] %v30370_v5 }
0x110a   : > { %v12841_v28 = vsel %vm831_vm0, %v12840_v43, %v34832_v13  ;;  %v11247_v14 = vsel %vm831_vm0, 0.0, %v11246_v20  ;;  %v30403_v43 = vpop.permute.xlu1 %7910  ;;  %v34835_v13 = vld [vmem:[#allocation164_spill] sm:$0xff]  ;;  %v12927_v35 = vsel %vm831_vm0, %v29638_v10, %v12926_v30  ;;  %v34840_v10 = vld [vmem:[#allocation159_spill] sm:$0xff] }
0x110b   : > { %v30394_v17 = vperm.slane %v12841_v28, %v28621_v57  ;;  %34834 = vst [vmem:[#allocation90_spill] sm:$0xff] %v30403_v43  ;;  %v12017_v28 = vrot.slane %v34835_v13, 4  ;;  %v30429_v13 = vperm.slane %v12927_v35, %v28621_v57  ;;  %v34841_v35 = vld [vmem:[#allocation9_spill] sm:$0xff] }
0x110d   : > { %34833 = vst [vmem:[#allocation88_spill] sm:$0xff] %v30394_v17  ;;  %v12852_v52 = vrot.slane %v30394_v17, 4 }
0x110e   : > { %12121 = vrot.lane.b32.xlu0 %v30370_v5, %s28227_s17  ;;  %34838 = vst [vmem:[#allocation56_spill] sm:$0xff] %v30429_v13 }
0x110f   : > { %v12853_v5 = vsel %vm831_vm0, 0.0, %v12852_v52 }
0x1110   : > { %11256 = vrot.lane.b32.xlu1 %v11191_v56, %s28226_s16  ;;  %v11152_v56 = vrot.slane %v30252_v12, 4  ;;  %v12898_v12 = vrot.slane %v29634_v62, 4 }
0x1112   : > { %v11153_v49 = vsel %vm831_vm0, %v30237_v2, %v11152_v56  ;;  %v34836_v2 = vld [vmem:[#allocation162_spill] sm:$0xff]  ;;  %v30431_v43 = vpop.permute.xlu1 %8721 }
0x1113   : > { %v30412_v20 = vperm.slane %v11153_v49, %v28621_v57  ;;  %v12018_v56 = vsel %vm831_vm0, %v12017_v28, %v34836_v2  ;;  %v34837_v49 = vld [vmem:[#allocation165_spill] sm:$0xff] }
0x1114   : > { %v12022_v62 = vperm.slane %v12018_v56, %v28351_v41  ;;  %v34839_v28 = vld [vmem:[#allocation181_spill] sm:$0xff] }
0x1115   : > { %v13685_v2 = vrot.slane %v34839_v28, 4 }
0x1116   : > { %12135 = vrot.lane.b32.xlu0 %v12066_v51, %s28228_s18  ;;  %v11236_v51 = vrot.slane %v11227_v54, 4  ;;  %v12011_v54 = vrot.slane %v34837_v49, 4  ;;  %v12023_v30 = vrot.slane %v12022_v62, 4  ;;  %v11220_v49 = vrot.slane %v30300_v6, 4 }
0x1118   : > { %11260 = vrot.lane.b32.xlu1 %v11247_v14, %s28226_s16  ;;  %v30415_v14 = vpop.permute.xlu0 %7021  ;;  %v11237_v52 = vsel %vm831_vm0, %v11233_v1, %v11236_v51  ;;  %v12012_v1 = vsel %vm831_vm0, %v12011_v54, %v34840_v10 }
0x111a   : > { %v30459_v10 = vpop.permute.xlu1 %8725 }
0x111b   : > { %34843 = vst [vmem:[#allocation77_spill] sm:$0xff] %v30459_v10  ;;  %v34858_v10 = vld [vmem:[#allocation174_spill] sm:$0xff] }
0x111e   : > { %12944 = vrot.lane.b32.xlu0 %v12853_v5, %s28226_s16  ;;  %v12899_v5 = vsel %vm831_vm0, %v29631_v45, %v12898_v12  ;;  %v30440_v45 = vperm.slane %v11237_v52, %v28621_v57  ;;  %v12016_v12 = vperm.slane %v12012_v1, %v28351_v41  ;;  %v11221_v1 = vsel %vm831_vm0, 0.0, %v11220_v49 }
0x111f   : > { %v30434_v17 = vperm.slane %v12899_v5, %v28621_v57  ;;  %v13686_v5 = vsel %vm831_vm0, %v13685_v2, %v34841_v35  ;;  %v12079_v2 = vrot.slane %v30353_v23, 4 }
0x1120   : > { %11270 = vrot.lane.b32.xlu1 %v30412_v20, %s28227_s17  ;;  %v30448_v56 = vpop.permute.xlu0 %7027  ;;  %v12024_v52 = vsel %vm831_vm0, %v12023_v30, %v12016_v12  ;;  %v30456_v54 = vperm.slane %v13686_v5, %v28621_v57  ;;  %v13771_v5 = vrot.slane %v29739_v27, 4 }
0x1121   : > { %v12910_v51 = vrot.slane %v30434_v17, 4  ;;  %v12080_v35 = vsel %vm831_vm0, %v12079_v2, %v30336_v9  ;;  %v34848_v9 = vld [vmem:[#allocation14_spill] sm:$0xff] }
0x1122   : > { %34842 = vst [vmem:[#allocation47_spill] sm:$0xff] %v30456_v54  ;;  %v13697_v6 = vrot.slane %v30456_v54, 4  ;;  %v34856_v54 = vld [vmem:[#allocation173_spill] sm:$0xff] }
0x1123   : > { %v12911_v28 = vsel %vm831_vm0, 0.0, %v12910_v51 }
0x1124   : > { %v13698_v49 = vsel %vm831_vm0, 0.0, %v13697_v6 }
0x1126   : > { %12966 = vrot.lane.b32.xlu0 %v30429_v13, %s28227_s17  ;;  %v30463_v13 = vperm.slane %v12024_v52, %v28621_v57  ;;  %v13743_v52 = vrot.slane %v29722_v53, 4 }
0x1128   : > { %11276 = vrot.lane.b32.xlu1 %v30440_v45, %s28227_s17  ;;  %34844 = vst [vmem:[#allocation97_spill] sm:$0xff] %v30463_v13  ;;  %v12035_v30 = vrot.slane %v30463_v13, 4  ;;  %v30469_v51 = vpop.permute.xlu0 %7876  ;;  %v13744_v27 = vsel %vm831_vm0, %v34848_v9, %v13743_v52  ;;  %v34867_v13 = vld [vmem:[#allocation177_spill] sm:$0xff] }
0x1129   : > { %34845 = vst [vmem:[#allocation89_spill] sm:$0xff] %v30469_v51  ;;  %v30484_v51 = vpop.permute.xlu1 %8735  ;;  %v30493_v6 = vperm.slane %v13744_v27, %v28621_v57  ;;  %v12025_v27 = vrot.slane %v12016_v12, 4 }
0x112a   : > { %v12036_v23 = vsel %vm831_vm0, 0.0, %v12035_v30  ;;  %34847 = vst [vmem:[#allocation92_spill] sm:$0xff] %v30484_v51 }
0x112e   : > { %12980 = vrot.lane.b32.xlu0 %v12911_v28, %s28228_s18  ;;  %v30479_v28 = vperm.slane %v12080_v35, %v28621_v57  ;;  %v13755_v35 = vrot.slane %v30493_v6, 4 }
0x1130   : > { %11290 = vrot.lane.b32.xlu1 %v11221_v1, %s28228_s18  ;;  %34846 = vst [vmem:[#allocation91_spill] sm:$0xff] %v30479_v28  ;;  %v13772_v1 = vsel %vm831_vm0, %v29732_v18, %v13771_v5  ;;  %v12091_v2 = vrot.slane %v30479_v28, 4  ;;  %v30495_v30 = vpop.permute.xlu0 %7906 }
0x1131   : > { %v30490_v53 = vperm.slane %v13772_v1, %v28621_v57  ;;  %34850 = vst [vmem:[#allocation78_spill] sm:$0xff] %v30495_v30  ;;  %v30502_v5 = vpop.permute.xlu1 %8741  ;;  %v34853_v1 = vld [vmem:[#allocation163_spill] sm:$0xff] }
0x1132   : > { %v12092_v18 = vsel %vm831_vm0, 0.0, %v12091_v2  ;;  %34851 = vst [vmem:[#allocation32_spill] sm:$0xff] %v30502_v5  ;;  %v30509_v9 = vperm.slane %v34853_v1, %v28621_v57  ;;  %v34855_v2 = vld [vmem:[#allocation176_spill] sm:$0xff]  ;;  %v12856_v5 = vrot.slane %v34856_v54, 4 }
0x1133   : > { %34849 = vst [vmem:[#allocation93_spill] sm:$0xff] %v30490_v53 }
0x1134   : > { %v12857_v1 = vsel %vm831_vm0, %v12856_v5, %v34858_v10 }
0x1136   : > { %13789 = vrot.lane.b32.xlu0 %v13698_v49, %s28226_s16  ;;  %v34852_v49 = vld [vmem:[#allocation178_spill] sm:$0xff] }
0x1137   : > { %v12862_v52 = vrot.slane %v34852_v49, 4 }
0x1138   : > { %12101 = vrot.lane.b32.xlu1 %v12036_v23, %s28226_s16  ;;  %v13756_v23 = vsel %vm831_vm0, 0.0, %v13755_v35  ;;  %v30511_v30 = vpop.permute.xlu0 %7912  ;;  %v12026_v35 = vsel %vm831_vm0, %v12022_v62, %v12025_v27 }
0x1139   : > { %34854 = vst [vmem:[#allocation87_spill] sm:$0xff] %v30511_v30  ;;  %v30525_v12 = vperm.slane %v12026_v35, %v28621_v57 }
0x113b   : > { %v12037_v54 = vrot.slane %v30525_v12, 4 }
0x113e   : > { %13811 = vrot.lane.b32.xlu0 %v30490_v53, %s28227_s17 }
0x1140   : > { %12105 = vrot.lane.b32.xlu1 %v12092_v18, %s28226_s16  ;;  %v12863_v18 = vsel %vm831_vm0, %v12862_v52, %v34855_v2  ;;  %v12861_v52 = vperm.slane %v12857_v1, %v28351_v41  ;;  %v30530_v2 = vpop.permute.xlu0 %8719  ;;  %v34862_v1 = vld [vmem:[#allocation180_spill] sm:$0xff] }
0x1141   : > { %v12867_v49 = vperm.slane %v12863_v18, %v28351_v41  ;;  %34859 = vst [vmem:[#allocation80_spill] sm:$0xff] %v30530_v2  ;;  %v12038_v18 = vsel %vm831_vm0, 0.0, %v12037_v54  ;;  %v30547_v51 = vperm.slane %v34862_v1, %v28621_v57  ;;  %v34866_v2 = vld [vmem:[#allocation185_spill] sm:$0xff]  ;;  %v30562_v1 = vperm.slane %v34867_v13, %v28621_v57 }
0x1142   : > { %v12870_v28 = vrot.slane %v12861_v52, 4 }
0x1143   : > { %v12868_v30 = vrot.slane %v12867_v49, 4  ;;  %34863 = vst [vmem:[#allocation82_spill] sm:$0xff] %v30547_v51  ;;  %v12936_v54 = vrot.slane %v30547_v51, 4  ;;  %v34870_v51 = vld [vmem:[#allocation10_spill] sm:$0xff] }
0x1144   : > { %34868 = vst [vmem:[#allocation96_spill] sm:$0xff] %v30562_v1 }
0x1145   : > { %v12869_v62 = vsel %vm831_vm0, %v12868_v30, %v12861_v52 }
0x1146   : > { %13825 = vrot.lane.b32.xlu0 %v13756_v23, %s28228_s18  ;;  %v30520_v23 = vpop.permute.xlu1 %8755  ;;  %v30538_v10 = vperm.slane %v12869_v62, %v28621_v57 }
0x1147   : > { %34857 = vst [vmem:[#allocation98_spill] sm:$0xff] %v30520_v23  ;;  %v12871_v23 = vsel %vm831_vm0, %v12867_v49, %v12870_v28 }
0x1148   : > { %12115 = vrot.lane.b32.xlu1 %v30509_v9, %s28227_s17  ;;  %34861 = vst [vmem:[#allocation64_spill] sm:$0xff] %v30538_v10  ;;  %v12880_v5 = vrot.slane %v30538_v10, 4  ;;  %v30578_v52 = vperm.slane %v12871_v23, %v28621_v57 }
0x114a   : > { %v12881_v35 = vsel %vm831_vm0, 0.0, %v12880_v5  ;;  %v13707_v5 = vrot.slane %v34866_v2, 4  ;;  %v34872_v2 = vld [vmem:[#allocation183_spill] sm:$0xff]  ;;  %34874 = vst [vmem:[#allocation45_spill] sm:$0xff] %v30578_v52 }
0x114e   : > { %v30534_v27 = vpop.permute.xlu1 %9566 }
0x114f   : > { %34860 = vst [vmem:[#allocation18_spill] sm:$0xff] %v30534_v27 }
0x1150   : > { %12119 = vrot.lane.b32.xlu1 %v30374_v48, %s28227_s17  ;;  %v30542_v48 = vpop.permute.xlu0 %8737 }
0x1156   : > { %v30550_v30 = vpop.permute.xlu1 %9570 }
0x1157   : > { %34864 = vst [vmem:[#allocation81_spill] sm:$0xff] %v30550_v30 }
0x1158   : > { %12133 = vrot.lane.b32.xlu1 %v12038_v18, %s28228_s18  ;;  %v30553_v62 = vpop.permute.xlu0 %8751  ;;  %v12937_v18 = vsel %vm831_vm0, 0.0, %v12936_v54  ;;  %v34871_v54 = vld [vmem:[#allocation182_spill] sm:$0xff] }
0x1159   : > { %34865 = vst [vmem:[#allocation20_spill] sm:$0xff] %v30553_v62  ;;  %v13708_v62 = vsel %vm831_vm0, %v13707_v5, %v34870_v51  ;;  %v13701_v27 = vrot.slane %v34871_v54, 4  ;;  %v30600_v54 = vperm.slane %v29743_v8, %v28621_v57 }
0x115b   : > { %v13702_v53 = vsel %vm831_vm0, %v13701_v27, %v34872_v2  ;;  %34878 = vst [vmem:[#allocation84_spill] sm:$0xff] %v30600_v54  ;;  %v13781_v2 = vrot.slane %v30600_v54, 4 }
0x115e   : > { %v30557_v10 = vpop.permute.xlu1 %9580 }
0x1160   : > { %12946 = vrot.lane.b32.xlu1 %v12881_v35, %s28226_s16  ;;  %v30564_v35 = vpop.permute.xlu0 %8757 }
0x1161   : > { %34869 = vst [vmem:[#allocation76_spill] sm:$0xff] %v30564_v35 }
0x1166   : > { %v30575_v13 = vpop.permute.xlu1 %9586 }
0x1167   : > { %34873 = vst [vmem:[#allocation79_spill] sm:$0xff] %v30575_v13 }
0x1168   : > { %12950 = vrot.lane.b32.xlu1 %v12937_v18, %s28226_s16  ;;  %v13712_v18 = vperm.slane %v13708_v62, %v28351_v41  ;;  %v30583_v51 = vpop.permute.xlu0 %9564  ;;  %v12882_v62 = vrot.slane %v30578_v52, 4 }
0x116a   : > { %v13713_v35 = vrot.slane %v13712_v18, 4  ;;  %v12883_v27 = vsel %vm831_vm0, 0.0, %v12882_v62 }
0x116e   : > { %v30587_v49 = vpop.permute.xlu1 %9600 }
0x116f   : > { %34875 = vst [vmem:[#allocation74_spill] sm:$0xff] %v30587_v49 }
0x1170   : > { %12960 = vrot.lane.b32.xlu1 %v30562_v1, %s28227_s17  ;;  %v13706_v1 = vperm.slane %v13702_v53, %v28351_v41  ;;  %v30595_v23 = vpop.permute.xlu0 %9582 }
0x1171   : > { %34877 = vst [vmem:[#allocation85_spill] sm:$0xff] %v30595_v23 }
0x1172   : > { %v13714_v28 = vsel %vm831_vm0, %v13713_v35, %v13706_v1  ;;  %v13715_v8 = vrot.slane %v13706_v1, 4 }
0x1173   : > { %v30591_v5 = vperm.slane %v13714_v28, %v28621_v57  ;;  %v13782_v28 = vsel %vm831_vm0, 0.0, %v13781_v2 }
0x1174   : > { %v13716_v54 = vsel %vm831_vm0, %v13712_v18, %v13715_v8 }
0x1175   : > { %34876 = vst [vmem:[#allocation83_spill] sm:$0xff] %v30591_v5  ;;  %v13725_v53 = vrot.slane %v30591_v5, 4 }
0x1176   : > { %v30603_v35 = vpop.permute.xlu1 %10411 }
0x1177   : > { %34879 = vst [vmem:[#allocation102_spill] sm:$0xff] %v30603_v35 }
0x1178   : > { %12964 = vrot.lane.b32.xlu1 %v30434_v17, %s28227_s17  ;;  %v13726_v17 = vsel %vm831_vm0, 0.0, %v13725_v53  ;;  %v30606_v62 = vpop.permute.xlu0 %9596  ;;  %v34881_v53 = vld [vmem:[#allocation184_spill] sm:$0xff] }
0x1179   : > { %v30614_v49 = vperm.slane %v34881_v53, %v28621_v57 }
0x117b   : > { %34882 = vst [vmem:[#allocation100_spill] sm:$0xff] %v30614_v49 }
0x1180   : > { %12978 = vrot.lane.b32.xlu1 %v12883_v27, %s28228_s18  ;;  %v30610_v27 = vpop.permute.xlu1 %10415  ;;  %v30616_v5 = vpop.permute.xlu0 %9602 }
0x1181   : > { %34880 = vst [vmem:[#allocation101_spill] sm:$0xff] %v30610_v27 }
0x1182   : > { %34883 = vst [vmem:[#allocation99_spill] sm:$0xff] %v30616_v5 }
0x1188   : > { %13791 = vrot.lane.b32.xlu1 %v13726_v17, %s28226_s16  ;;  %v27987_v17 = vld [vmem:[%s28325_s15 + $0x40] sm:$0xff]  ;;  %v30622_v2 = vpop.permute.xlu1 %10425  ;;  %v30629_v53 = vpop.permute.xlu0 %10409 }
0x1189   : > { %14012 = vxpose.xlu0.b32.start.end [1/1] (short) (narrow) %v27987_v17, 16  ;;  %34884 = vst [vmem:[#allocation106_spill] sm:$0xff] %v30622_v2  ;;  %v14008_v18 = vrot.slane %v27987_v17, 4 }
0x118a   : > { %34886 = vst [vmem:[#allocation103_spill] sm:$0xff] %v30629_v53  ;;  %v27988_v53 = vld [vmem:[%s28325_s15 + $0x48] sm:$0xff] }
0x118b   : > { %14044 = vxpose.xlu2.b32.start.end [1/1] (short) (narrow) %v14008_v18, 16 }
0x1190   : > { %13795 = vrot.lane.b32.xlu1 %v13782_v28, %s28226_s16  ;;  %v30625_v28 = vperm.slane %v13716_v54, %v28621_v57  ;;  %v30632_v35 = vpop.permute.xlu1 %10431  ;;  %v30636_v8 = vpop.permute.xlu0 %10427 }
0x1191   : > { %34887 = vst [vmem:[#allocation104_spill] sm:$0xff] %v30632_v35 }
0x1192   : > { %34885 = vst [vmem:[#allocation105_spill] sm:$0xff] %v30625_v28  ;;  %v13727_v1 = vrot.slane %v30625_v28, 4 }
0x1193   : > { %34888 = vst [vmem:[#allocation108_spill] sm:$0xff] %v30636_v8 }
0x1194   : > { %v13728_v27 = vsel %vm831_vm0, 0.0, %v13727_v1 }
0x1198   : > { %13805 = vrot.lane.b32.xlu1 %v30614_v49, %s28227_s17  ;;  %v30638_v2 = vpop.permute.xlu1 %10445  ;;  %v30640_v54 = vpop.permute.xlu0 %10441  ;;  %v14009_v49 = vrot.slane %v27988_v53, 4 }
0x1199   : > { %34889 = vst [vmem:[#allocation111_spill] sm:$0xff] %v30638_v2 }
0x119a   : > { %34890 = vst [vmem:[#allocation113_spill] sm:$0xff] %v30640_v54  ;;  %14108 = vxpose.xlu0.b32.start.end [1/1] (short) (narrow) %v14009_v49, 16 }
0x11a0   : > { %13809 = vrot.lane.b32.xlu1 %v30493_v6, %s28227_s17  ;;  %v30642_v23 = vpop.permute.xlu1 %11256  ;;  %v30644_v6 = vpop.permute.xlu0 %10447 }
0x11a1   : > { %34891 = vst [vmem:[#allocation107_spill] sm:$0xff] %v30642_v23 }
0x11a2   : > { %34892 = vst [vmem:[#allocation119_spill] sm:$0xff] %v30644_v6 }
0x11a8   : > { %13823 = vrot.lane.b32.xlu1 %v13728_v27, %s28228_s18  ;;  %v30647_v28 = vpop.permute.xlu1 %11260  ;;  %v30649_v1 = vpop.permute.xlu0 %11254 }
0x11a9   : > { %34893 = vst [vmem:[#allocation116_spill] sm:$0xff] %v30647_v28 }
0x11aa   : > { %34894 = vst [vmem:[#allocation114_spill] sm:$0xff] %v30649_v1 }
0x11b0   : > { %v30651_v27 = vpop.permute.xlu1 %11270  ;;  %v30653_v17 = vpop.permute.xlu0 %11274 }
0x11b1   : > { %34895 = vst [vmem:[#allocation115_spill] sm:$0xff] %v30651_v27 }
0x11b2   : > { %34896 = vst [vmem:[#allocation122_spill] sm:$0xff] %v30653_v17 }
0x11b8   : > { %v30655_v18 = vpop.permute.xlu1 %11276  ;;  %v30657_v8 = vpop.permute.xlu0 %11288 }
0x11b9   : > { %34897 = vst [vmem:[#allocation117_spill] sm:$0xff] %v30655_v18 }
0x11ba   : > { %34898 = vst [vmem:[#allocation110_spill] sm:$0xff] %v30657_v8 }
0x11c0   : > { %v30659_v35 = vpop.permute.xlu1 %11290  ;;  %v30661_v54 = vpop.permute.xlu0 %12099 }
0x11c1   : > { %34899 = vst [vmem:[#allocation120_spill] sm:$0xff] %v30659_v35 }
0x11c2   : > { %34900 = vst [vmem:[#allocation118_spill] sm:$0xff] %v30661_v54 }
0x11c8   : > { %v30663_v6 = vpop.permute.xlu1 %12101  ;;  %v30665_v23 = vpop.permute.xlu0 %12121 }
0x11c9   : > { %34901 = vst [vmem:[#allocation109_spill] sm:$0xff] %v30663_v6 }
0x11ca   : > { %34902 = vst [vmem:[#allocation125_spill] sm:$0xff] %v30665_v23 }
0x11d0   : > { %v30667_v49 = vpop.permute.xlu1 %12105  ;;  %v30669_v28 = vpop.permute.xlu0 %12135 }
0x11d1   : > { %34903 = vst [vmem:[#allocation123_spill] sm:$0xff] %v30667_v49 }
0x11d2   : > { %34904 = vst [vmem:[#allocation121_spill] sm:$0xff] %v30669_v28 }
0x11d8   : > { %v30671_v27 = vpop.permute.xlu1 %12115  ;;  %v30673_v1 = vpop.permute.xlu0 %12944 }
0x11d9   : > { %34905 = vst [vmem:[#allocation128_spill] sm:$0xff] %v30671_v27 }
0x11da   : > { %34906 = vst [vmem:[#allocation134_spill] sm:$0xff] %v30673_v1 }
0x11dd   : > { %14076 = vxpose.xlu1.b32.start.end [1/1] (short) (narrow) %v27988_v53, 16 }
0x11e0   : > { %v30675_v18 = vpop.permute.xlu1 %12119  ;;  %v30677_v53 = vpop.permute.xlu0 %12966 }
0x11e1   : > { %34907 = vst [vmem:[#allocation131_spill] sm:$0xff] %v30675_v18 }
0x11e2   : > { %34908 = vst [vmem:[#allocation129_spill] sm:$0xff] %v30677_v53 }
0x11e8   : > { %v30679_v17 = vpop.permute.xlu1 %12133  ;;  %v30681_v35 = vpop.permute.xlu0 %12980 }
0x11e9   : > { %34909 = vst [vmem:[#allocation130_spill] sm:$0xff] %v30679_v17 }
0x11ea   : > { %34910 = vst [vmem:[#allocation132_spill] sm:$0xff] %v30681_v35 }
0x11f0   : > { %v30683_v54 = vpop.permute.xlu1 %12946  ;;  %v30685_v6 = vpop.permute.xlu0 %13789 }
0x11f1   : > { %34911 = vst [vmem:[#allocation137_spill] sm:$0xff] %v30683_v54 }
0x11f2   : > { %34912 = vst [vmem:[#allocation135_spill] sm:$0xff] %v30685_v6 }
0x11f8   : > { %v30687_v23 = vpop.permute.xlu1 %12950  ;;  %v30689_v49 = vpop.permute.xlu0 %13811 }
0x11f9   : > { %34913 = vst [vmem:[#allocation133_spill] sm:$0xff] %v30687_v23 }
0x11fa   : > { %34914 = vst [vmem:[#allocation140_spill] sm:$0xff] %v30689_v49 }
0x1200   : > { %v30691_v28 = vpop.permute.xlu1 %12960  ;;  %v30693_v27 = vpop.permute.xlu0 %13825 }
0x1201   : > { %34915 = vst [vmem:[#allocation126_spill] sm:$0xff] %v30691_v28 }
0x1202   : > { %34916 = vst [vmem:[#allocation138_spill] sm:$0xff] %v30693_v27 }
0x1208   : > { %v30695_v1 = vpop.permute.xlu1 %12964 }
0x1209   : > { %34917 = vst [vmem:[#allocation136_spill] sm:$0xff] %v30695_v1 }
0x1210   : > { %v30697_v35 = vpop.permute.xlu1 %12978 }
0x1211   : > { %34918 = vst [vmem:[#allocation143_spill] sm:$0xff] %v30697_v35 }
0x1218   : > { %v30699_v28 = vpop.permute.xlu1 %13791 }
0x1219   : > { %34919 = vst [vmem:[#allocation147_spill] sm:$0xff] %v30699_v28 }
0x1220   : > { %v30701_v27 = vpop.permute.xlu1 %13795 }
0x1221   : > { %34920 = vst [vmem:[#allocation124_spill] sm:$0xff] %v30701_v27  ;;  %v27989_v27 = vld [vmem:[%s28325_s15 + $0x50] sm:$0xff] }
0x1224   : > { %v14060_v17 = vpop.trf.xlu2 }
0x1225   : > { %v14150_v23 = vrot.slane %v14060_v17, 4 }
0x122c   : > { %v14061_v6 = vpop.trf.xlu2 }
0x122d   : > { %v14028_v18 = vpop.trf.xlu0  ;;  %v14151_v49 = vrot.slane %v14061_v6, 4 }
0x122e   : > { %v14148_v53 = vrot.slane %v14028_v18, 4  ;;  %14164 = vxpose.xlu2.b32.start.end [1/1] (short) (narrow) %v14028_v18, 8  ;;  %v30703_v18 = vpop.permute.xlu1 %13805 }
0x122f   : > { %34921 = vst [vmem:[#allocation145_spill] sm:$0xff] %v30703_v18  ;;  %v27990_v18 = vld [vmem:[%s28325_s15 + $0x58] sm:$0xff] }
0x1230   : > { %14196 = vxpose.xlu0.b32.start.end [1/1] (short) (narrow) %v14148_v53, 8 }
0x1235   : > { %v14029_v54 = vpop.trf.xlu0 }
0x1236   : > { %v14149_v8 = vrot.slane %v14029_v54, 4  ;;  %14228 = vxpose.xlu1.b32.start.end [1/1] (short) (narrow) %v14029_v54, 8  ;;  %v30705_v53 = vpop.permute.xlu1 %13809 }
0x1237   : > { %34922 = vst [vmem:[#allocation146_spill] sm:$0xff] %v30705_v53 }
0x1238   : > { %14292 = vxpose.xlu0.b32.start.end [1/1] (short) (narrow) %v14060_v17, 8  ;;  %14260 = vxpose.xlu2.b32.start.end [1/1] (short) (narrow) %v14149_v8, 8 }
0x123e   : > { %14388 = vxpose.xlu1.b32.start.end [1/1] (short) (narrow) %v14151_v49, 8  ;;  %v30707_v35 = vpop.permute.xlu1 %13823  ;;  %v14124_v8 = vpop.trf.xlu0 }
0x123f   : > { %34923 = vst [vmem:[#allocation144_spill] sm:$0xff] %v30707_v35  ;;  %v14853_v35 = vrot.slane %v27989_v27, 4 }
0x1240   : > { %14356 = vxpose.xlu0.b32.start.end [1/1] (short) (narrow) %v14061_v6, 8  ;;  %14324 = vxpose.xlu2.b32.start.end [1/1] (short) (narrow) %v14150_v23, 8  ;;  %v14154_v6 = vrot.slane %v14124_v8, 4 }
0x1246   : > { %v14125_v23 = vpop.trf.xlu0 }
0x1247   : > { %v14155_v49 = vrot.slane %v14125_v23, 4 }
0x1281   : > { %v14092_v1 = vpop.trf.xlu1 }
0x1282   : > { %v14152_v54 = vrot.slane %v14092_v1, 4  ;;  %14420 = vxpose.xlu2.b32.start.end [1/1] (short) (narrow) %v14092_v1, 8  ;;  %v14854_v1 = vrot.slane %v27990_v18, 4 }
0x1284   : > { %14452 = vxpose.xlu0.b32.start.end [1/1] (short) (narrow) %v14152_v54, 8 }
0x1289   : > { %v14093_v17 = vpop.trf.xlu1 }
0x128a   : > { %v14153_v28 = vrot.slane %v14093_v17, 4  ;;  %14484 = vxpose.xlu1.b32.start.end [1/1] (short) (narrow) %v14093_v17, 8 }
0x128c   : > { %14516 = vxpose.xlu2.b32.start.end [1/1] (short) (narrow) %v14153_v28, 8  ;;  %14548 = vxpose.xlu0.b32.start.end [1/1] (short) (narrow) %v14124_v8, 8 }
0x1292   : > { %14580 = vxpose.xlu1.b32.start.end [1/1] (short) (narrow) %v14154_v6, 8 }
0x1294   : > { %14644 = vxpose.xlu0.b32.start.end [1/1] (short) (narrow) %v14155_v49, 8  ;;  %14612 = vxpose.xlu2.b32.start.end [1/1] (short) (narrow) %v14125_v23, 8 }
0x129a   : > { %14921 = vxpose.xlu1.b32.start.end [1/1] (short) (narrow) %v27990_v18, 16 }
0x129c   : > { %14857 = vxpose.xlu0.b32.start.end [1/1] (short) (narrow) %v27989_v27, 16  ;;  %14889 = vxpose.xlu2.b32.start.end [1/1] (short) (narrow) %v14853_v35, 16 }
0x12ac   : > { %14953 = vxpose.xlu0.b32.start.end [1/1] (short) (narrow) %v14854_v1, 16 }
0x12c7   : > { %v30711_v54 = vpop.trf.xlu2 }
0x12c8   : > { %34924 = vst [vmem:[#allocation149_spill] sm:$0xff] %v30711_v54 }
0x12d1   : > { %v30713_v53 = vpop.trf.xlu2 }
0x12d2   : > { %34925 = vst [vmem:[#allocation151_spill] sm:$0xff] %v30713_v53 }
0x12d4   : > { %v30715_v28 = vpop.trf.xlu0 }
0x12d5   : > { %34926 = vst [vmem:[#allocation150_spill] sm:$0xff] %v30715_v28 }
0x12d9   : > { %v30717_v17 = vpop.trf.xlu2 }
0x12da   : > { %34927 = vst [vmem:[#allocation148_spill] sm:$0xff] %v30717_v17  ;;  %v30723_v23 = vpop.trf.xlu1 }
0x12db   : > { %34930 = vst [vmem:[#allocation161_spill] sm:$0xff] %v30723_v23 }
0x12dc   : > { %v30719_v8 = vpop.trf.xlu0 }
0x12dd   : > { %34928 = vst [vmem:[#allocation153_spill] sm:$0xff] %v30719_v8 }
0x12e2   : > { %v30729_v35 = vpop.trf.xlu1 }
0x12e3   : > { %34933 = vst [vmem:[#allocation160_spill] sm:$0xff] %v30729_v35 }
0x12e4   : > { %v30725_v49 = vpop.trf.xlu0 }
0x12e5   : > { %34931 = vst [vmem:[#allocation141_spill] sm:$0xff] %v30725_v49 }
0x131b   : > { %v30721_v6 = vpop.trf.xlu2 }
0x131c   : > { %34929 = vst [vmem:[#allocation152_spill] sm:$0xff] %v30721_v6 }
0x1325   : > { %v30727_v27 = vpop.trf.xlu2 }
0x1326   : > { %34932 = vst [vmem:[#allocation168_spill] sm:$0xff] %v30727_v27 }
0x1328   : > { %v30731_v18 = vpop.trf.xlu0 }
0x1329   : > { %34934 = vst [vmem:[#allocation139_spill] sm:$0xff] %v30731_v18 }
0x132d   : > { %v14628_v1 = vpop.trf.xlu2 }
0x132e   : > { %v14760_v54 = vrot.slane %v14628_v1, 4  ;;  %v30733_v53 = vpop.trf.xlu1 }
0x132f   : > { %34935 = vst [vmem:[#allocation158_spill] sm:$0xff] %v30733_v53 }
0x1330   : > { %v14564_v28 = vpop.trf.xlu0 }
0x1331   : > { %v14761_v17 = vsel %vm831_vm0, %v14760_v54, %v14564_v28 }
0x1332   : > { %v30741_v27 = vperm.slane %v14761_v17, %v28351_v41 }
0x1334   : > { %34937 = vst [vmem:[#allocation172_spill] sm:$0xff] %v30741_v27 }
0x1335   : > { %v14905_v54 = vpop.trf.xlu2 }
0x1336   : > { %v14596_v2 = vpop.trf.xlu1  ;;  %v14995_v28 = vrot.slane %v14905_v54, 4 }
0x1338   : > { %v14660_v8 = vpop.trf.xlu0 }
0x1339   : > { %v14766_v6 = vrot.slane %v14660_v8, 4 }
0x133b   : > { %v14767_v23 = vsel %vm831_vm0, %v14766_v6, %v14596_v2 }
0x133c   : > { %v30738_v49 = vperm.slane %v14767_v23, %v28351_v41 }
0x133d   : > { %v14906_v17 = vpop.trf.xlu2 }
0x133e   : > { %34936 = vst [vmem:[#allocation171_spill] sm:$0xff] %v30738_v49  ;;  %v14772_v18 = vrot.slane %v30738_v49, 4  ;;  %v14937_v6 = vpop.trf.xlu1 }
0x1340   : > { %v14873_v35 = vpop.trf.xlu0  ;;  %v30746_v1 = vsel %vm831_vm0, %v14772_v18, %v30741_v27  ;;  %v14997_v18 = vrot.slane %v14937_v6, 4 }
0x1341   : > { %34938 = vst [vmem:[#allocation155_spill] sm:$0xff] %v30746_v1  ;;  %v14993_v53 = vrot.slane %v14873_v35, 4  ;;  %15009 = vxpose.xlu2.b32.start.end [1/1] (short) (narrow) %v14873_v35, 8  ;;  %v14996_v1 = vrot.slane %v14906_v17, 4 }
0x1343   : > { %15041 = vxpose.xlu0.b32.start.end [1/1] (short) (narrow) %v14993_v53, 8 }
0x1346   : > { %v14938_v23 = vpop.trf.xlu1 }
0x1347   : > { %v14998_v35 = vrot.slane %v14938_v23, 4 }
0x1348   : > { %v14874_v8 = vpop.trf.xlu0 }
0x1349   : > { %v14994_v2 = vrot.slane %v14874_v8, 4  ;;  %15073 = vxpose.xlu1.b32.start.end [1/1] (short) (narrow) %v14874_v8, 8  ;;  %v27991_v8 = vld [vmem:[%s28325_s15 + $0xc0] sm:$0xff] }
0x134a   : > { %v15698_v27 = vrot.slane %v27991_v8, 4 }
0x134b   : > { %15169 = vxpose.xlu0.b32.start.end [1/1] (short) (narrow) %v14995_v28, 8  ;;  %15105 = vxpose.xlu2.b32.start.end [1/1] (short) (narrow) %v14994_v2, 8 }
0x1350   : > { %v14969_v49 = vpop.trf.xlu0 }
0x1351   : > { %15201 = vxpose.xlu1.b32.start.end [1/1] (short) (narrow) %v14906_v17, 8  ;;  %v14999_v2 = vrot.slane %v14969_v49, 4 }
0x1353   : > { %15265 = vxpose.xlu0.b32.start.end [1/1] (short) (narrow) %v14937_v6, 8  ;;  %15137 = vxpose.xlu2.b32.start.end [1/1] (short) (narrow) %v14905_v54, 8  ;;  %v27992_v54 = vld [vmem:[%s28325_s15 + $0xc8] sm:$0xff] }
0x1354   : > { %v15699_v6 = vrot.slane %v27992_v54, 4 }
0x1358   : > { %v14970_v53 = vpop.trf.xlu0 }
0x1359   : > { %15297 = vxpose.xlu1.b32.start.end [1/1] (short) (narrow) %v14997_v18, 8  ;;  %v15000_v28 = vrot.slane %v14970_v53, 4 }
0x135b   : > { %15361 = vxpose.xlu0.b32.start.end [1/1] (short) (narrow) %v14998_v35, 8  ;;  %15233 = vxpose.xlu2.b32.start.end [1/1] (short) (narrow) %v14996_v1, 8 }
0x1361   : > { %15393 = vxpose.xlu1.b32.start.end [1/1] (short) (narrow) %v14969_v49, 8 }
0x1363   : > { %15329 = vxpose.xlu2.b32.start.end [1/1] (short) (narrow) %v14938_v23, 8  ;;  %15457 = vxpose.xlu0.b32.start.end [1/1] (short) (narrow) %v14970_v53, 8 }
0x1369   : > { %15489 = vxpose.xlu1.b32.start.end [1/1] (short) (narrow) %v15000_v28, 8 }
0x136b   : > { %15425 = vxpose.xlu2.b32.start.end [1/1] (short) (narrow) %v14999_v2, 8  ;;  %15702 = vxpose.xlu0.b32.start.end [1/1] (short) (narrow) %v27991_v8, 16 }
0x1371   : > { %15766 = vxpose.xlu1.b32.start.end [1/1] (short) (narrow) %v27992_v54, 16 }
0x1373   : > { %15734 = vxpose.xlu2.b32.start.end [1/1] (short) (narrow) %v15698_v27, 16 }
0x137b   : > { %15798 = vxpose.xlu0.b32.start.end [1/1] (short) (narrow) %v15699_v6, 16 }
0x13da   : > { %v30750_v17 = vpop.trf.xlu2 }
0x13db   : > { %34939 = vst [vmem:[#allocation156_spill] sm:$0xff] %v30750_v17 }
0x13e4   : > { %v30752_v18 = vpop.trf.xlu2 }
0x13e5   : > { %34940 = vst [vmem:[#allocation170_spill] sm:$0xff] %v30752_v18 }
0x13e7   : > { %v30754_v1 = vpop.trf.xlu0 }
0x13e8   : > { %34941 = vst [vmem:[#allocation157_spill] sm:$0xff] %v30754_v1 }
0x13ec   : > { %v30756_v23 = vpop.trf.xlu2 }
0x13ed   : > { %34942 = vst [vmem:[#allocation167_spill] sm:$0xff] %v30756_v23  ;;  %v30758_v35 = vpop.trf.xlu1 }
0x13ee   : > { %34943 = vst [vmem:[#allocation166_spill] sm:$0xff] %v30758_v35 }
0x13ef   : > { %v30760_v49 = vpop.trf.xlu0 }
0x13f0   : > { %34944 = vst [vmem:[#allocation175_spill] sm:$0xff] %v30760_v49 }
0x13f4   : > { %v30762_v53 = vpop.trf.xlu2 }
0x13f5   : > { %34945 = vst [vmem:[#allocation164_spill] sm:$0xff] %v30762_v53  ;;  %v30764_v28 = vpop.trf.xlu1 }
0x13f6   : > { %34946 = vst [vmem:[#allocation162_spill] sm:$0xff] %v30764_v28 }
0x13f7   : > { %v15281_v8 = vpop.trf.xlu0 }
0x13fc   : > { %v15345_v27 = vpop.trf.xlu2 }
0x13fd   : > { %v15313_v2 = vpop.trf.xlu1  ;;  %v15577_v54 = vrot.slane %v15345_v27, 4 }
0x13ff   : > { %v15377_v6 = vpop.trf.xlu0  ;;  %v15578_v18 = vsel %vm831_vm0, %v15577_v54, %v15281_v8 }
0x1400   : > { %v15583_v17 = vrot.slane %v15377_v6, 4  ;;  %v30772_v35 = vperm.slane %v15578_v18, %v28351_v41 }
0x1402   : > { %v15584_v1 = vsel %vm831_vm0, %v15583_v17, %v15313_v2  ;;  %34948 = vst [vmem:[#allocation181_spill] sm:$0xff] %v30772_v35 }
0x1403   : > { %v30769_v23 = vperm.slane %v15584_v1, %v28351_v41 }
0x1404   : > { %v15441_v27 = vpop.trf.xlu2 }
0x1405   : > { %34947 = vst [vmem:[#allocation165_spill] sm:$0xff] %v30769_v23  ;;  %v15589_v49 = vrot.slane %v30769_v23, 4  ;;  %v15409_v53 = vpop.trf.xlu1 }
0x1407   : > { %v15473_v28 = vpop.trf.xlu0  ;;  %v30777_v52 = vsel %vm831_vm0, %v15589_v49, %v30772_v35 }
0x1408   : > { %34949 = vst [vmem:[#allocation159_spill] sm:$0xff] %v30777_v52  ;;  %v15605_v6 = vrot.slane %v15473_v28, 4 }
0x140a   : > { %v15606_v17 = vsel %vm831_vm0, %v15605_v6, %v15409_v53 }
0x140b   : > { %v30785_v23 = vperm.slane %v15606_v17, %v28351_v41 }
0x140c   : > { %v15750_v52 = vpop.trf.xlu2 }
0x140d   : > { %v15505_v5 = vpop.trf.xlu1  ;;  %34951 = vst [vmem:[#allocation14_spill] sm:$0xff] %v30785_v23  ;;  %v15840_v28 = vrot.slane %v15750_v52, 4 }
0x140e   : > { %v15611_v8 = vrot.slane %v15505_v5, 4 }
0x140f   : > { %v15718_v54 = vpop.trf.xlu0 }
0x1410   : > { %v15612_v1 = vsel %vm831_vm0, %v15611_v8, %v15441_v27  ;;  %v15838_v2 = vrot.slane %v15718_v54, 4  ;;  %15854 = vxpose.xlu2.b32.start.end [1/1] (short) (narrow) %v15718_v54, 8 }
0x1411   : > { %v30782_v18 = vperm.slane %v15612_v1, %v28351_v41 }
0x1412   : > { %15886 = vxpose.xlu0.b32.start.end [1/1] (short) (narrow) %v15838_v2, 8 }
0x1413   : > { %34950 = vst [vmem:[#allocation9_spill] sm:$0xff] %v30782_v18  ;;  %v15617_v49 = vrot.slane %v30782_v18, 4 }
0x1414   : > { %v15751_v8 = vpop.trf.xlu2 }
0x1415   : > { %v30790_v5 = vsel %vm831_vm0, %v15617_v49, %v30785_v23  ;;  %v15782_v27 = vpop.trf.xlu1  ;;  %v15841_v1 = vrot.slane %v15751_v8, 4 }
0x1416   : > { %34952 = vst [vmem:[#allocation178_spill] sm:$0xff] %v30790_v5  ;;  %v15842_v2 = vrot.slane %v15782_v27, 4 }
0x1417   : > { %v15719_v53 = vpop.trf.xlu0 }
0x1418   : > { %v15839_v6 = vrot.slane %v15719_v53, 4  ;;  %15918 = vxpose.xlu1.b32.start.end [1/1] (short) (narrow) %v15719_v53, 8  ;;  %v27993_v53 = vld [vmem:[%s28325_s15 + $0xd0] sm:$0xff] }
0x1419   : > { %v16543_v5 = vrot.slane %v27993_v53, 4 }
0x141a   : > { %16014 = vxpose.xlu0.b32.start.end [1/1] (short) (narrow) %v15840_v28, 8  ;;  %15950 = vxpose.xlu2.b32.start.end [1/1] (short) (narrow) %v15839_v6, 8 }
0x141d   : > { %v15783_v54 = vpop.trf.xlu1 }
0x141e   : > { %v15843_v18 = vrot.slane %v15783_v54, 4 }
0x141f   : > { %v15814_v17 = vpop.trf.xlu0 }
0x1420   : > { %16046 = vxpose.xlu1.b32.start.end [1/1] (short) (narrow) %v15751_v8, 8  ;;  %v15844_v6 = vrot.slane %v15814_v17, 4 }
0x1422   : > { %16110 = vxpose.xlu0.b32.start.end [1/1] (short) (narrow) %v15782_v27, 8  ;;  %15982 = vxpose.xlu2.b32.start.end [1/1] (short) (narrow) %v15750_v52, 8  ;;  %v27994_v52 = vld [vmem:[%s28325_s15 + $0xd8] sm:$0xff] }
0x1423   : > { %v16544_v8 = vrot.slane %v27994_v52, 4 }
0x1427   : > { %v15815_v49 = vpop.trf.xlu0 }
0x1428   : > { %16142 = vxpose.xlu1.b32.start.end [1/1] (short) (narrow) %v15842_v2, 8  ;;  %v15845_v28 = vrot.slane %v15815_v49, 4 }
0x142a   : > { %16206 = vxpose.xlu0.b32.start.end [1/1] (short) (narrow) %v15843_v18, 8  ;;  %16078 = vxpose.xlu2.b32.start.end [1/1] (short) (narrow) %v15841_v1, 8 }
0x1430   : > { %16238 = vxpose.xlu1.b32.start.end [1/1] (short) (narrow) %v15814_v17, 8 }
0x1432   : > { %16174 = vxpose.xlu2.b32.start.end [1/1] (short) (narrow) %v15783_v54, 8  ;;  %16302 = vxpose.xlu0.b32.start.end [1/1] (short) (narrow) %v15815_v49, 8 }
0x1438   : > { %16334 = vxpose.xlu1.b32.start.end [1/1] (short) (narrow) %v15845_v28, 8 }
0x143a   : > { %16270 = vxpose.xlu2.b32.start.end [1/1] (short) (narrow) %v15844_v6, 8  ;;  %16547 = vxpose.xlu0.b32.start.end [1/1] (short) (narrow) %v27993_v53, 16 }
0x1440   : > { %16611 = vxpose.xlu1.b32.start.end [1/1] (short) (narrow) %v27994_v52, 16 }
0x1442   : > { %16579 = vxpose.xlu2.b32.start.end [1/1] (short) (narrow) %v16543_v5, 16 }
0x144a   : > { %16643 = vxpose.xlu0.b32.start.end [1/1] (short) (narrow) %v16544_v8, 16 }
0x14a9   : > { %v30794_v27 = vpop.trf.xlu2 }
0x14aa   : > { %34953 = vst [vmem:[#allocation163_spill] sm:$0xff] %v30794_v27 }
0x14b3   : > { %v30796_v18 = vpop.trf.xlu2 }
0x14b4   : > { %34954 = vst [vmem:[#allocation176_spill] sm:$0xff] %v30796_v18 }
0x14b6   : > { %v30798_v1 = vpop.trf.xlu0 }
0x14b7   : > { %34955 = vst [vmem:[#allocation173_spill] sm:$0xff] %v30798_v1 }
0x14bb   : > { %v30800_v54 = vpop.trf.xlu2 }
0x14bc   : > { %34956 = vst [vmem:[#allocation174_spill] sm:$0xff] %v30800_v54  ;;  %v30802_v2 = vpop.trf.xlu1 }
0x14bd   : > { %34957 = vst [vmem:[#allocation180_spill] sm:$0xff] %v30802_v2 }
0x14be   : > { %v30804_v17 = vpop.trf.xlu0 }
0x14bf   : > { %34958 = vst [vmem:[#allocation185_spill] sm:$0xff] %v30804_v17 }
0x14c3   : > { %v30806_v49 = vpop.trf.xlu2 }
0x14c4   : > { %34959 = vst [vmem:[#allocation177_spill] sm:$0xff] %v30806_v49  ;;  %v30808_v28 = vpop.trf.xlu1 }
0x14c5   : > { %34960 = vst [vmem:[#allocation10_spill] sm:$0xff] %v30808_v28 }
0x14c6   : > { %v16126_v53 = vpop.trf.xlu0 }
0x14cb   : > { %v16190_v5 = vpop.trf.xlu2 }
0x14cc   : > { %v16158_v6 = vpop.trf.xlu1  ;;  %v16422_v52 = vrot.slane %v16190_v5, 4 }
0x14ce   : > { %v16222_v8 = vpop.trf.xlu0  ;;  %v16423_v23 = vsel %vm831_vm0, %v16422_v52, %v16126_v53 }
0x14cf   : > { %v16428_v27 = vrot.slane %v16222_v8, 4  ;;  %v30816_v2 = vperm.slane %v16423_v23, %v28351_v41 }
0x14d1   : > { %v16429_v1 = vsel %vm831_vm0, %v16428_v27, %v16158_v6  ;;  %34962 = vst [vmem:[#allocation183_spill] sm:$0xff] %v30816_v2 }
0x14d2   : > { %v30813_v18 = vperm.slane %v16429_v1, %v28351_v41 }
0x14d3   : > { %v16286_v5 = vpop.trf.xlu2 }
0x14d4   : > { %34961 = vst [vmem:[#allocation182_spill] sm:$0xff] %v30813_v18  ;;  %v16434_v54 = vrot.slane %v30813_v18, 4  ;;  %v16254_v17 = vpop.trf.xlu1 }
0x14d6   : > { %v16318_v28 = vpop.trf.xlu0  ;;  %v30821_v35 = vsel %vm831_vm0, %v16434_v54, %v30816_v2 }
0x14d7   : > { %34963 = vst [vmem:[#allocation184_spill] sm:$0xff] %v30821_v35  ;;  %v16450_v8 = vrot.slane %v16318_v28, 4 }
0x14d9   : > { %v16451_v27 = vsel %vm831_vm0, %v16450_v8, %v16254_v17 }
0x14da   : > { %v30829_v18 = vperm.slane %v16451_v27, %v28351_v41 }
0x14db   : > { %v16595_v35 = vpop.trf.xlu2 }
0x14dc   : > { %v16350_v49 = vpop.trf.xlu1  ;;  %34965 = vst [vmem:[#allocation188_spill] sm:$0xff] %v30829_v18  ;;  %v16685_v28 = vrot.slane %v16595_v35, 4 }
0x14dd   : > { %v16456_v53 = vrot.slane %v16350_v49, 4 }
0x14de   : > { %v16563_v52 = vpop.trf.xlu0 }
0x14df   : > { %v16457_v1 = vsel %vm831_vm0, %v16456_v53, %v16286_v5  ;;  %v16683_v6 = vrot.slane %v16563_v52, 4  ;;  %16699 = vxpose.xlu2.b32.start.end [1/1] (short) (narrow) %v16563_v52, 8 }
0x14e0   : > { %v30826_v23 = vperm.slane %v16457_v1, %v28351_v41 }
0x14e1   : > { %16731 = vxpose.xlu0.b32.start.end [1/1] (short) (narrow) %v16683_v6, 8 }
0x14e2   : > { %34964 = vst [vmem:[#allocation187_spill] sm:$0xff] %v30826_v23  ;;  %v16462_v54 = vrot.slane %v30826_v23, 4 }
0x14e3   : > { %v16596_v53 = vpop.trf.xlu2 }
0x14e4   : > { %v30834_v49 = vsel %vm831_vm0, %v16462_v54, %v30829_v18  ;;  %v16627_v5 = vpop.trf.xlu1  ;;  %v16686_v1 = vrot.slane %v16596_v53, 4 }
0x14e5   : > { %34966 = vst [vmem:[#allocation189_spill] sm:$0xff] %v30834_v49  ;;  %v16687_v6 = vrot.slane %v16627_v5, 4 }
0x14e6   : > { %v16564_v17 = vpop.trf.xlu0 }
0x14e7   : > { %v16684_v8 = vrot.slane %v16564_v17, 4  ;;  %16763 = vxpose.xlu1.b32.start.end [1/1] (short) (narrow) %v16564_v17, 8  ;;  %v27995_v17 = vld [vmem:[%s28325_s15 + $0x140] sm:$0xff] }
0x14e8   : > { %v17388_v49 = vrot.slane %v27995_v17, 4 }
0x14e9   : > { %16859 = vxpose.xlu0.b32.start.end [1/1] (short) (narrow) %v16685_v28, 8  ;;  %16795 = vxpose.xlu2.b32.start.end [1/1] (short) (narrow) %v16684_v8, 8 }
0x14ec   : > { %v16628_v52 = vpop.trf.xlu1 }
0x14ed   : > { %v16688_v23 = vrot.slane %v16628_v52, 4 }
0x14ee   : > { %v16659_v27 = vpop.trf.xlu0 }
0x14ef   : > { %16891 = vxpose.xlu1.b32.start.end [1/1] (short) (narrow) %v16596_v53, 8  ;;  %v16689_v8 = vrot.slane %v16659_v27, 4 }
0x14f1   : > { %16955 = vxpose.xlu0.b32.start.end [1/1] (short) (narrow) %v16627_v5, 8  ;;  %16827 = vxpose.xlu2.b32.start.end [1/1] (short) (narrow) %v16595_v35, 8  ;;  %v27996_v35 = vld [vmem:[%s28325_s15 + $0x148] sm:$0xff] }
0x14f2   : > { %v17389_v53 = vrot.slane %v27996_v35, 4 }
0x14f6   : > { %v16660_v54 = vpop.trf.xlu0 }
0x14f7   : > { %16987 = vxpose.xlu1.b32.start.end [1/1] (short) (narrow) %v16687_v6, 8  ;;  %v16690_v28 = vrot.slane %v16660_v54, 4 }
0x14f9   : > { %17051 = vxpose.xlu0.b32.start.end [1/1] (short) (narrow) %v16688_v23, 8  ;;  %16923 = vxpose.xlu2.b32.start.end [1/1] (short) (narrow) %v16686_v1, 8 }
0x14ff   : > { %17083 = vxpose.xlu1.b32.start.end [1/1] (short) (narrow) %v16659_v27, 8 }
0x1501   : > { %17019 = vxpose.xlu2.b32.start.end [1/1] (short) (narrow) %v16628_v52, 8  ;;  %17147 = vxpose.xlu0.b32.start.end [1/1] (short) (narrow) %v16660_v54, 8 }
0x1507   : > { %17179 = vxpose.xlu1.b32.start.end [1/1] (short) (narrow) %v16690_v28, 8 }
0x1509   : > { %17115 = vxpose.xlu2.b32.start.end [1/1] (short) (narrow) %v16689_v8, 8  ;;  %17392 = vxpose.xlu0.b32.start.end [1/1] (short) (narrow) %v27995_v17, 16 }
0x150f   : > { %17456 = vxpose.xlu1.b32.start.end [1/1] (short) (narrow) %v27996_v35, 16 }
0x1511   : > { %17424 = vxpose.xlu2.b32.start.end [1/1] (short) (narrow) %v17388_v49, 16 }
0x1519   : > { %17488 = vxpose.xlu0.b32.start.end [1/1] (short) (narrow) %v17389_v53, 16 }
0x1578   : > { %v30838_v5 = vpop.trf.xlu2 }
0x1579   : > { %34967 = vst [vmem:[#allocation190_spill] sm:$0xff] %v30838_v5 }
0x1582   : > { %v30840_v23 = vpop.trf.xlu2 }
0x1583   : > { %34968 = vst [vmem:[#allocation191_spill] sm:$0xff] %v30840_v23 }
0x1585   : > { %v30842_v1 = vpop.trf.xlu0 }
0x1586   : > { %34969 = vst [vmem:[#allocation192_spill] sm:$0xff] %v30842_v1 }
0x158a   : > { %v30844_v52 = vpop.trf.xlu2 }
0x158b   : > { %34970 = vst [vmem:[#allocation193_spill] sm:$0xff] %v30844_v52  ;;  %v30846_v6 = vpop.trf.xlu1 }
0x158c   : > { %34971 = vst [vmem:[#allocation194_spill] sm:$0xff] %v30846_v6 }
0x158d   : > { %v30848_v27 = vpop.trf.xlu0 }
0x158e   : > { %34972 = vst [vmem:[#allocation195_spill] sm:$0xff] %v30848_v27 }
0x1592   : > { %v30850_v54 = vpop.trf.xlu2 }
0x1593   : > { %34973 = vst [vmem:[#allocation196_spill] sm:$0xff] %v30850_v54  ;;  %v30852_v28 = vpop.trf.xlu1 }
0x1594   : > { %34974 = vst [vmem:[#allocation197_spill] sm:$0xff] %v30852_v28 }
0x1595   : > { %v16971_v17 = vpop.trf.xlu0 }
0x159a   : > { %v17035_v49 = vpop.trf.xlu2 }
0x159b   : > { %v17003_v8 = vpop.trf.xlu1  ;;  %v17267_v35 = vrot.slane %v17035_v49, 4 }
0x159d   : > { %v17067_v53 = vpop.trf.xlu0  ;;  %v17268_v18 = vsel %vm831_vm0, %v17267_v35, %v16971_v17 }
0x159e   : > { %v17273_v5 = vrot.slane %v17067_v53, 4  ;;  %v30860_v6 = vperm.slane %v17268_v18, %v28351_v41 }
0x15a0   : > { %v17274_v1 = vsel %vm831_vm0, %v17273_v5, %v17003_v8  ;;  %34976 = vst [vmem:[#allocation199_spill] sm:$0xff] %v30860_v6 }
0x15a1   : > { %v30857_v23 = vperm.slane %v17274_v1, %v28351_v41 }
0x15a2   : > { %v17131_v49 = vpop.trf.xlu2 }
0x15a3   : > { %34975 = vst [vmem:[#allocation198_spill] sm:$0xff] %v30857_v23  ;;  %v17279_v52 = vrot.slane %v30857_v23, 4  ;;  %v17099_v27 = vpop.trf.xlu1 }
0x15a5   : > { %v17163_v28 = vpop.trf.xlu0  ;;  %v30865_v2 = vsel %vm831_vm0, %v17279_v52, %v30860_v6 }
0x15a6   : > { %34977 = vst [vmem:[#allocation200_spill] sm:$0xff] %v30865_v2  ;;  %v17295_v53 = vrot.slane %v17163_v28, 4 }
0x15a8   : > { %v17296_v5 = vsel %vm831_vm0, %v17295_v53, %v17099_v27 }
0x15a9   : > { %v30873_v23 = vperm.slane %v17296_v5, %v28351_v41 }
0x15aa   : > { %v17440_v2 = vpop.trf.xlu2 }
0x15ab   : > { %v17195_v54 = vpop.trf.xlu1  ;;  %34979 = vst [vmem:[#allocation202_spill] sm:$0xff] %v30873_v23  ;;  %v17530_v28 = vrot.slane %v17440_v2, 4 }
0x15ac   : > { %v17301_v17 = vrot.slane %v17195_v54, 4 }
0x15ad   : > { %v17408_v35 = vpop.trf.xlu0 }
0x15ae   : > { %v17302_v1 = vsel %vm831_vm0, %v17301_v17, %v17131_v49  ;;  %v17528_v8 = vrot.slane %v17408_v35, 4  ;;  %17544 = vxpose.xlu2.b32.start.end [1/1] (short) (narrow) %v17408_v35, 8 }
0x15af   : > { %v30870_v18 = vperm.slane %v17302_v1, %v28351_v41 }
0x15b0   : > { %17576 = vxpose.xlu0.b32.start.end [1/1] (short) (narrow) %v17528_v8, 8 }
0x15b1   : > { %34978 = vst [vmem:[#allocation201_spill] sm:$0xff] %v30870_v18  ;;  %v17307_v52 = vrot.slane %v30870_v18, 4 }
0x15b2   : > { %v17441_v17 = vpop.trf.xlu2 }
0x15b3   : > { %v30878_v54 = vsel %vm831_vm0, %v17307_v52, %v30873_v23  ;;  %v17472_v49 = vpop.trf.xlu1  ;;  %v17531_v8 = vrot.slane %v17441_v17, 4 }
0x15b4   : > { %34980 = vst [vmem:[#allocation203_spill] sm:$0xff] %v30878_v54  ;;  %v17532_v5 = vrot.slane %v17472_v49, 4 }
0x15b5   : > { %v17409_v27 = vpop.trf.xlu0 }
0x15b6   : > { %v17529_v53 = vrot.slane %v17409_v27, 4  ;;  %17608 = vxpose.xlu1.b32.start.end [1/1] (short) (narrow) %v17409_v27, 8 }
0x15b8   : > { %17704 = vxpose.xlu0.b32.start.end [1/1] (short) (narrow) %v17530_v28, 8  ;;  %17640 = vxpose.xlu2.b32.start.end [1/1] (short) (narrow) %v17529_v53, 8  ;;  %v27997_v28 = vld [vmem:[%s28325_s15 + $0x150] sm:$0xff] }
0x15b9   : > { %v18233_v53 = vrot.slane %v27997_v28, 4 }
0x15bb   : > { %v17473_v35 = vpop.trf.xlu1 }
0x15bc   : > { %v17533_v18 = vrot.slane %v17473_v35, 4 }
0x15bd   : > { %v17504_v1 = vpop.trf.xlu0 }
0x15be   : > { %17736 = vxpose.xlu1.b32.start.end [1/1] (short) (narrow) %v17441_v17, 8  ;;  %v17534_v54 = vrot.slane %v17504_v1, 4 }
0x15c0   : > { %17800 = vxpose.xlu0.b32.start.end [1/1] (short) (narrow) %v17472_v49, 8  ;;  %17672 = vxpose.xlu2.b32.start.end [1/1] (short) (narrow) %v17440_v2, 8  ;;  %v27998_v2 = vld [vmem:[%s28325_s15 + $0x158] sm:$0xff] }
0x15c1   : > { %v18234_v49 = vrot.slane %v27998_v2, 4 }
0x15c5   : > { %v17505_v52 = vpop.trf.xlu0 }
0x15c6   : > { %17832 = vxpose.xlu1.b32.start.end [1/1] (short) (narrow) %v17532_v5, 8  ;;  %v17535_v27 = vrot.slane %v17505_v52, 4 }
0x15c8   : > { %17896 = vxpose.xlu0.b32.start.end [1/1] (short) (narrow) %v17533_v18, 8  ;;  %17768 = vxpose.xlu2.b32.start.end [1/1] (short) (narrow) %v17531_v8, 8 }
0x15ce   : > { %17928 = vxpose.xlu1.b32.start.end [1/1] (short) (narrow) %v17504_v1, 8 }
0x15d0   : > { %17864 = vxpose.xlu2.b32.start.end [1/1] (short) (narrow) %v17473_v35, 8  ;;  %17992 = vxpose.xlu0.b32.start.end [1/1] (short) (narrow) %v17505_v52, 8 }
0x15d6   : > { %18024 = vxpose.xlu1.b32.start.end [1/1] (short) (narrow) %v17535_v27, 8 }
0x15d8   : > { %17960 = vxpose.xlu2.b32.start.end [1/1] (short) (narrow) %v17534_v54, 8  ;;  %18269 = vxpose.xlu0.b32.start.end [1/1] (short) (narrow) %v18233_v53, 16 }
0x15de   : > { %18301 = vxpose.xlu1.b32.start.end [1/1] (short) (narrow) %v27998_v2, 16 }
0x15e0   : > { %18237 = vxpose.xlu2.b32.start.end [1/1] (short) (narrow) %v27997_v28, 16 }
0x15e8   : > { %18333 = vxpose.xlu0.b32.start.end [1/1] (short) (narrow) %v18234_v49, 16 }
0x1647   : > { %v30882_v17 = vpop.trf.xlu2 }
0x1648   : > { %34981 = vst [vmem:[#allocation204_spill] sm:$0xff] %v30882_v17 }
0x1651   : > { %v30884_v18 = vpop.trf.xlu2 }
0x1652   : > { %34982 = vst [vmem:[#allocation205_spill] sm:$0xff] %v30884_v18 }
0x1654   : > { %v30886_v5 = vpop.trf.xlu0 }
0x1655   : > { %34983 = vst [vmem:[#allocation206_spill] sm:$0xff] %v30886_v5 }
0x1659   : > { %v30888_v35 = vpop.trf.xlu2 }
0x165a   : > { %34984 = vst [vmem:[#allocation207_spill] sm:$0xff] %v30888_v35  ;;  %v30890_v8 = vpop.trf.xlu1 }
0x165b   : > { %34985 = vst [vmem:[#allocation208_spill] sm:$0xff] %v30890_v8 }
0x165c   : > { %v30892_v52 = vpop.trf.xlu0 }
0x165d   : > { %34986 = vst [vmem:[#allocation209_spill] sm:$0xff] %v30892_v52 }
0x1661   : > { %v30894_v1 = vpop.trf.xlu2 }
0x1662   : > { %34987 = vst [vmem:[#allocation210_spill] sm:$0xff] %v30894_v1  ;;  %v30896_v54 = vpop.trf.xlu1 }
0x1663   : > { %34988 = vst [vmem:[#allocation211_spill] sm:$0xff] %v30896_v54 }
0x1664   : > { %v17816_v27 = vpop.trf.xlu0 }
0x1669   : > { %v17880_v28 = vpop.trf.xlu2 }
0x166a   : > { %v17848_v53 = vpop.trf.xlu1  ;;  %v18112_v2 = vrot.slane %v17880_v28, 4 }
0x166c   : > { %v17912_v49 = vpop.trf.xlu0  ;;  %v18113_v23 = vsel %vm831_vm0, %v18112_v2, %v17816_v27 }
0x166d   : > { %v18118_v17 = vrot.slane %v17912_v49, 4  ;;  %v30904_v35 = vperm.slane %v18113_v23, %v28351_v41 }
0x166f   : > { %v18119_v5 = vsel %vm831_vm0, %v18118_v17, %v17848_v53  ;;  %34990 = vst [vmem:[#allocation213_spill] sm:$0xff] %v30904_v35 }
0x1670   : > { %v30901_v18 = vperm.slane %v18119_v5, %v28351_v41 }
0x1671   : > { %v17976_v8 = vpop.trf.xlu2 }
0x1672   : > { %34989 = vst [vmem:[#allocation212_spill] sm:$0xff] %v30901_v18  ;;  %v18124_v52 = vrot.slane %v30901_v18, 4  ;;  %v17944_v54 = vpop.trf.xlu1 }
0x1674   : > { %v18008_v6 = vpop.trf.xlu0  ;;  %v30909_v28 = vsel %vm831_vm0, %v18124_v52, %v30904_v35 }
0x1675   : > { %34991 = vst [vmem:[#allocation214_spill] sm:$0xff] %v30909_v28  ;;  %v18140_v49 = vrot.slane %v18008_v6, 4 }
0x1677   : > { %v18141_v5 = vsel %vm831_vm0, %v18140_v49, %v17944_v54 }
0x1678   : > { %v30917_v13 = vperm.slane %v18141_v5, %v28351_v41 }
0x1679   : > { %v18253_v1 = vpop.trf.xlu2 }
0x167a   : > { %v18373_v27 = vrot.slane %v18253_v1, 4  ;;  %18389 = vxpose.xlu2.b32.start.end [1/1] (short) (narrow) %v18253_v1, 8  ;;  %v18040_v17 = vpop.trf.xlu1  ;;  %34993 = vst [vmem:[#allocation216_spill] sm:$0xff] %v30917_v13 }
0x167b   : > { %v18146_v53 = vrot.slane %v18040_v17, 4 }
0x167c   : > { %18421 = vxpose.xlu0.b32.start.end [1/1] (short) (narrow) %v18373_v27, 8  ;;  %v18285_v2 = vpop.trf.xlu0 }
0x167d   : > { %v18147_v23 = vsel %vm831_vm0, %v18146_v53, %v17976_v8  ;;  %v18375_v6 = vrot.slane %v18285_v2, 4 }
0x167e   : > { %v30914_v18 = vperm.slane %v18147_v23, %v28351_v41  ;;  %v28000_v23 = vld [vmem:[%s28325_s15 + $0x1c8] sm:$0xff] }
0x1680   : > { %34992 = vst [vmem:[#allocation215_spill] sm:$0xff] %v30914_v18  ;;  %v18152_v52 = vrot.slane %v30914_v18, 4 }
0x1681   : > { %v18254_v28 = vpop.trf.xlu2 }
0x1682   : > { %v18374_v35 = vrot.slane %v18254_v28, 4  ;;  %18453 = vxpose.xlu1.b32.start.end [1/1] (short) (narrow) %v18254_v28, 8  ;;  %v30922_v1 = vsel %vm831_vm0, %v18152_v52, %v30917_v13  ;;  %v18317_v54 = vpop.trf.xlu1 }
0x1683   : > { %34994 = vst [vmem:[#allocation217_spill] sm:$0xff] %v30922_v1  ;;  %v18377_v27 = vrot.slane %v18317_v54, 4 }
0x1684   : > { %18485 = vxpose.xlu2.b32.start.end [1/1] (short) (narrow) %v18374_v35, 8  ;;  %18549 = vxpose.xlu0.b32.start.end [1/1] (short) (narrow) %v18375_v6, 8  ;;  %v18286_v8 = vpop.trf.xlu0  ;;  %v27999_v6 = vld [vmem:[%s28325_s15 + $0x1c0] sm:$0xff] }
0x1685   : > { %v18376_v5 = vrot.slane %v18286_v8, 4 }
0x168a   : > { %18581 = vxpose.xlu1.b32.start.end [1/1] (short) (narrow) %v18286_v8, 8  ;;  %v18318_v49 = vpop.trf.xlu1 }
0x168b   : > { %v18378_v53 = vrot.slane %v18318_v49, 4 }
0x168c   : > { %18645 = vxpose.xlu0.b32.start.end [1/1] (short) (narrow) %v18317_v54, 8  ;;  %18517 = vxpose.xlu2.b32.start.end [1/1] (short) (narrow) %v18285_v2, 8  ;;  %v18349_v17 = vpop.trf.xlu0  ;;  %v19078_v2 = vrot.slane %v27999_v6, 4  ;;  %v19079_v54 = vrot.slane %v28000_v23, 4 }
0x168d   : > { %v18379_v52 = vrot.slane %v18349_v17, 4 }
0x1692   : > { %18677 = vxpose.xlu1.b32.start.end [1/1] (short) (narrow) %v18377_v27, 8 }
0x1694   : > { %18741 = vxpose.xlu0.b32.start.end [1/1] (short) (narrow) %v18378_v53, 8  ;;  %18613 = vxpose.xlu2.b32.start.end [1/1] (short) (narrow) %v18376_v5, 8  ;;  %v18350_v28 = vpop.trf.xlu0 }
0x1695   : > { %v18380_v35 = vrot.slane %v18350_v28, 4 }
0x169a   : > { %18773 = vxpose.xlu1.b32.start.end [1/1] (short) (narrow) %v18349_v17, 8 }
0x169c   : > { %18709 = vxpose.xlu2.b32.start.end [1/1] (short) (narrow) %v18318_v49, 8  ;;  %18837 = vxpose.xlu0.b32.start.end [1/1] (short) (narrow) %v18350_v28, 8 }
0x16a2   : > { %18869 = vxpose.xlu1.b32.start.end [1/1] (short) (narrow) %v18380_v35, 8 }
0x16a4   : > { %18805 = vxpose.xlu2.b32.start.end [1/1] (short) (narrow) %v18379_v52, 8  ;;  %19146 = vxpose.xlu0.b32.start.end [1/1] (short) (narrow) %v28000_v23, 16 }
0x16aa   : > { %19114 = vxpose.xlu1.b32.start.end [1/1] (short) (narrow) %v19078_v2, 16 }
0x16ac   : > { %19082 = vxpose.xlu2.b32.start.end [1/1] (short) (narrow) %v27999_v6, 16 }
0x16b4   : > { %19178 = vxpose.xlu0.b32.start.end [1/1] (short) (narrow) %v19079_v54, 16 }
0x1713   : > { %v30926_v8 = vpop.trf.xlu2 }
0x1714   : > { %34995 = vst [vmem:[#allocation218_spill] sm:$0xff] %v30926_v8 }
0x171d   : > { %v30928_v27 = vpop.trf.xlu2 }
0x171e   : > { %34996 = vst [vmem:[#allocation219_spill] sm:$0xff] %v30928_v27 }
0x1720   : > { %v30930_v53 = vpop.trf.xlu0 }
0x1721   : > { %34997 = vst [vmem:[#allocation220_spill] sm:$0xff] %v30930_v53 }
0x1725   : > { %v18533_v49 = vpop.trf.xlu2 }
0x1726   : > { %v30932_v5 = vpop.trf.xlu1 }
0x1727   : > { %34998 = vst [vmem:[#allocation221_spill] sm:$0xff] %v30932_v5 }
0x1728   : > { %v18565_v28 = vpop.trf.xlu0 }
0x172d   : > { %v18629_v17 = vpop.trf.xlu2 }
0x172e   : > { %v18935_v35 = vrot.slane %v18629_v17, 4  ;;  %v18597_v1 = vpop.trf.xlu1 }
0x172f   : > { %v18929_v52 = vrot.slane %v18597_v1, 4 }
0x1730   : > { %v18661_v18 = vpop.trf.xlu0  ;;  %v18936_v2 = vsel %vm831_vm0, %v18935_v35, %v18565_v28 }
0x1731   : > { %v18930_v23 = vsel %vm831_vm0, %v18929_v52, %v18533_v49  ;;  %v30940_v54 = vperm.slane %v18936_v2, %v28351_v41 }
0x1732   : > { %v30937_v6 = vperm.slane %v18930_v23, %v28351_v41 }
0x1734   : > { %34999 = vst [vmem:[#allocation222_spill] sm:$0xff] %v30937_v6  ;;  %v18943_v53 = vrot.slane %v30937_v6, 4 }
0x1735   : > { %v18725_v27 = vpop.trf.xlu2 }
0x1736   : > { %v18693_v8 = vpop.trf.xlu1  ;;  %v30945_v17 = vsel %vm831_vm0, %v30940_v54, %v18943_v53  ;;  %v18957_v1 = vrot.slane %v18725_v27, 4 }
0x1737   : > { %35000 = vst [vmem:[#allocation223_spill] sm:$0xff] %v30945_v17 }
0x1738   : > { %v18757_v5 = vpop.trf.xlu0  ;;  %v18958_v28 = vsel %vm831_vm0, %v18957_v1, %v18661_v18 }
0x1739   : > { %v18963_v13 = vrot.slane %v18757_v5, 4  ;;  %v30953_v2 = vperm.slane %v18958_v28, %v28351_v41 }
0x173b   : > { %v18964_v49 = vsel %vm831_vm0, %v18963_v13, %v18693_v8  ;;  %35002 = vst [vmem:[#allocation225_spill] sm:$0xff] %v30953_v2 }
0x173c   : > { %v30950_v35 = vperm.slane %v18964_v49, %v28351_v41 }
0x173d   : > { %v18821_v52 = vpop.trf.xlu2 }
0x173e   : > { %35001 = vst [vmem:[#allocation224_spill] sm:$0xff] %v30950_v35  ;;  %v18969_v23 = vrot.slane %v30950_v35, 4  ;;  %v18789_v6 = vpop.trf.xlu1 }
0x1740   : > { %v18853_v30 = vpop.trf.xlu0  ;;  %v30958_v27 = vsel %vm831_vm0, %v18969_v23, %v30953_v2 }
0x1741   : > { %35003 = vst [vmem:[#allocation226_spill] sm:$0xff] %v30958_v27  ;;  %v18985_v53 = vrot.slane %v18853_v30, 4 }
0x1743   : > { %v18986_v49 = vsel %vm831_vm0, %v18985_v53, %v18789_v6 }
0x1744   : > { %v30966_v35 = vperm.slane %v18986_v49, %v28351_v41 }
0x1745   : > { %v19098_v5 = vpop.trf.xlu2 }
0x1746   : > { %v19218_v18 = vrot.slane %v19098_v5, 4  ;;  %19234 = vxpose.xlu2.b32.start.end [1/1] (short) (narrow) %v19098_v5, 8  ;;  %v18885_v13 = vpop.trf.xlu1  ;;  %35005 = vst [vmem:[#allocation228_spill] sm:$0xff] %v30966_v35 }
0x1747   : > { %v18991_v8 = vrot.slane %v18885_v13, 4 }
0x1748   : > { %19266 = vxpose.xlu0.b32.start.end [1/1] (short) (narrow) %v19218_v18, 8  ;;  %v19162_v1 = vpop.trf.xlu0 }
0x1749   : > { %v18992_v28 = vsel %vm831_vm0, %v18991_v8, %v18821_v52  ;;  %v19222_v49 = vrot.slane %v19162_v1, 4 }
0x174a   : > { %v30963_v17 = vperm.slane %v18992_v28, %v28351_v41 }
0x174c   : > { %35004 = vst [vmem:[#allocation227_spill] sm:$0xff] %v30963_v17  ;;  %v18997_v23 = vrot.slane %v30963_v17, 4 }
0x174d   : > { %v19099_v30 = vpop.trf.xlu2 }
0x174e   : > { %v19219_v27 = vrot.slane %v19099_v30, 4  ;;  %19298 = vxpose.xlu1.b32.start.end [1/1] (short) (narrow) %v19099_v30, 8  ;;  %v19130_v5 = vpop.trf.xlu1  ;;  %v30971_v18 = vsel %vm831_vm0, %v18997_v23, %v30966_v35 }
0x174f   : > { %35006 = vst [vmem:[#allocation229_spill] sm:$0xff] %v30971_v18  ;;  %v19220_v13 = vrot.slane %v19130_v5, 4  ;;  %v28001_v18 = vld [vmem:[%s28325_s15 + $0x1d0] sm:$0xff] }
0x1750   : > { %19330 = vxpose.xlu2.b32.start.end [1/1] (short) (narrow) %v19219_v27, 8  ;;  %v19163_v6 = vpop.trf.xlu0 }
0x1751   : > { %19394 = vxpose.xlu0.b32.start.end [1/1] (short) (narrow) %v19220_v13, 8  ;;  %v19223_v28 = vrot.slane %v19163_v6, 4  ;;  %v28002_v13 = vld [vmem:[%s28325_s15 + $0x1d8] sm:$0xff] }
0x1756   : > { %v19131_v52 = vpop.trf.xlu1 }
0x1757   : > { %19426 = vxpose.xlu1.b32.start.end [1/1] (short) (narrow) %v19131_v52, 8  ;;  %v19221_v53 = vrot.slane %v19131_v52, 4  ;;  %v19924_v52 = vrot.slane %v28002_v13, 4 }
0x1758   : > { %19362 = vxpose.xlu2.b32.start.end [1/1] (short) (narrow) %v19130_v5, 8  ;;  %v19194_v8 = vpop.trf.xlu0  ;;  %v19923_v5 = vrot.slane %v28001_v18, 4 }
0x1759   : > { %19490 = vxpose.xlu0.b32.start.end [1/1] (short) (narrow) %v19162_v1, 8  ;;  %v19224_v23 = vrot.slane %v19194_v8, 4 }
0x175f   : > { %19522 = vxpose.xlu1.b32.start.end [1/1] (short) (narrow) %v19222_v49, 8 }
0x1760   : > { %19458 = vxpose.xlu2.b32.start.end [1/1] (short) (narrow) %v19221_v53, 8  ;;  %v19195_v30 = vpop.trf.xlu0 }
0x1761   : > { %19586 = vxpose.xlu0.b32.start.end [1/1] (short) (narrow) %v19223_v28, 8  ;;  %v19225_v27 = vrot.slane %v19195_v30, 4 }
0x1767   : > { %19618 = vxpose.xlu1.b32.start.end [1/1] (short) (narrow) %v19194_v8, 8 }
0x1768   : > { %19554 = vxpose.xlu2.b32.start.end [1/1] (short) (narrow) %v19163_v6, 8 }
0x1769   : > { %19682 = vxpose.xlu0.b32.start.end [1/1] (short) (narrow) %v19195_v30, 8 }
0x176f   : > { %19714 = vxpose.xlu1.b32.start.end [1/1] (short) (narrow) %v19225_v27, 8 }
0x1770   : > { %19650 = vxpose.xlu2.b32.start.end [1/1] (short) (narrow) %v19224_v23, 8 }
0x1771   : > { %19991 = vxpose.xlu0.b32.start.end [1/1] (short) (narrow) %v28002_v13, 16 }
0x1777   : > { %19959 = vxpose.xlu1.b32.start.end [1/1] (short) (narrow) %v19923_v5, 16 }
0x1778   : > { %19927 = vxpose.xlu2.b32.start.end [1/1] (short) (narrow) %v28001_v18, 16 }
0x1781   : > { %20023 = vxpose.xlu0.b32.start.end [1/1] (short) (narrow) %v19924_v52, 16 }
0x17df   : > { %v30975_v1 = vpop.trf.xlu2 }
0x17e0   : > { %35007 = vst [vmem:[#allocation230_spill] sm:$0xff] %v30975_v1 }
0x17e9   : > { %v30977_v53 = vpop.trf.xlu2 }
0x17ea   : > { %35008 = vst [vmem:[#allocation231_spill] sm:$0xff] %v30977_v53 }
0x17ec   : > { %v30979_v49 = vpop.trf.xlu0 }
0x17ed   : > { %35009 = vst [vmem:[#allocation232_spill] sm:$0xff] %v30979_v49 }
0x17f1   : > { %v19378_v6 = vpop.trf.xlu2 }
0x17f2   : > { %v30981_v28 = vpop.trf.xlu1 }
0x17f3   : > { %35010 = vst [vmem:[#allocation233_spill] sm:$0xff] %v30981_v28 }
0x17f5   : > { %v19410_v8 = vpop.trf.xlu0 }
0x17f9   : > { %v19474_v30 = vpop.trf.xlu2 }
0x17fa   : > { %v19780_v27 = vrot.slane %v19474_v30, 4 }
0x17fb   : > { %v19442_v23 = vpop.trf.xlu1 }
0x17fc   : > { %v19774_v2 = vrot.slane %v19442_v23, 4  ;;  %v19781_v5 = vsel %vm831_vm0, %v19780_v27, %v19410_v8 }
0x17fd   : > { %v19506_v17 = vpop.trf.xlu0  ;;  %v30989_v52 = vperm.slane %v19781_v5, %v28351_v41 }
0x17fe   : > { %v19775_v18 = vsel %vm831_vm0, %v19774_v2, %v19378_v6 }
0x17ff   : > { %v30986_v13 = vperm.slane %v19775_v18, %v28351_v41  ;;  %35012 = vst [vmem:[#allocation235_spill] sm:$0xff] %v30989_v52 }
0x1801   : > { %35011 = vst [vmem:[#allocation234_spill] sm:$0xff] %v30986_v13  ;;  %v19788_v49 = vrot.slane %v30986_v13, 4  ;;  %v19570_v53 = vpop.trf.xlu2 }
0x1802   : > { %v19802_v23 = vrot.slane %v19570_v53, 4 }
0x1803   : > { %v19538_v1 = vpop.trf.xlu1  ;;  %v30994_v30 = vsel %vm831_vm0, %v30989_v52, %v19788_v49  ;;  %v35046_v52 = vld [vmem:[#allocation59_spill] sm:$0xff] }
0x1804   : > { %35013 = vst [vmem:[#allocation236_spill] sm:$0xff] %v30994_v30  ;;  %v19803_v8 = vsel %vm831_vm0, %v19802_v23, %v19506_v17 }
0x1805   : > { %v19602_v28 = vpop.trf.xlu0  ;;  %v31002_v5 = vperm.slane %v19803_v8, %v28351_v41 }
0x1806   : > { %v19808_v35 = vrot.slane %v19602_v28, 4 }
0x1807   : > { %35015 = vst [vmem:[#allocation238_spill] sm:$0xff] %v31002_v5 }
0x1808   : > { %v19809_v2 = vsel %vm831_vm0, %v19808_v35, %v19538_v1 }
0x1809   : > { %v30999_v6 = vperm.slane %v19809_v2, %v28351_v41  ;;  %v19666_v27 = vpop.trf.xlu2 }
0x180b   : > { %35014 = vst [vmem:[#allocation237_spill] sm:$0xff] %v30999_v6  ;;  %v19814_v18 = vrot.slane %v30999_v6, 4  ;;  %v19634_v13 = vpop.trf.xlu1 }
0x180d   : > { %v31007_v49 = vsel %vm831_vm0, %v19814_v18, %v31002_v5  ;;  %v19698_v53 = vpop.trf.xlu0 }
0x180e   : > { %35016 = vst [vmem:[#allocation239_spill] sm:$0xff] %v31007_v49  ;;  %v19830_v30 = vrot.slane %v19698_v53, 4 }
0x1810   : > { %v19831_v23 = vsel %vm831_vm0, %v19830_v30, %v19634_v13 }
0x1811   : > { %v19943_v28 = vpop.trf.xlu2  ;;  %v31015_v6 = vperm.slane %v19831_v23, %v28351_v41 }
0x1812   : > { %v20063_v17 = vrot.slane %v19943_v28, 4  ;;  %20079 = vxpose.xlu2.b32.start.end [1/1] (short) (narrow) %v19943_v28, 8 }
0x1813   : > { %v19730_v35 = vpop.trf.xlu1  ;;  %35018 = vst [vmem:[#allocation241_spill] sm:$0xff] %v31015_v6 }
0x1814   : > { %v19836_v1 = vrot.slane %v19730_v35, 4  ;;  %20111 = vxpose.xlu0.b32.start.end [1/1] (short) (narrow) %v20063_v17, 8 }
0x1815   : > { %v20007_v30 = vpop.trf.xlu0 }
0x1816   : > { %v19837_v8 = vsel %vm831_vm0, %v19836_v1, %v19666_v27  ;;  %v20067_v1 = vrot.slane %v20007_v30, 4 }
0x1817   : > { %v31012_v2 = vperm.slane %v19837_v8, %v28351_v41  ;;  %v35021_v8 = vld [vmem:[#allocation65_spill] sm:$0xff] }
0x1819   : > { %35017 = vst [vmem:[#allocation240_spill] sm:$0xff] %v31012_v2  ;;  %v19842_v18 = vrot.slane %v31012_v2, 4  ;;  %v19944_v49 = vpop.trf.xlu2 }
0x181a   : > { %v20064_v5 = vrot.slane %v19944_v49, 4  ;;  %20143 = vxpose.xlu1.b32.start.end [1/1] (short) (narrow) %v19944_v49, 8  ;;  %v35020_v49 = vld [vmem:[#allocation30_spill] sm:$0xff] }
0x181b   : > { %v19975_v53 = vpop.trf.xlu1  ;;  %v31020_v28 = vsel %vm831_vm0, %v19842_v18, %v31015_v6  ;;  %v1840_v18 = vsel %vm991_vm1, %v35021_v8, %v35020_v49 }
0x181c   : > { %35019 = vst [vmem:[#allocation242_spill] sm:$0xff] %v31020_v28  ;;  %20175 = vxpose.xlu2.b32.start.end [1/1] (short) (narrow) %v20064_v5, 8  ;;  %v20065_v13 = vrot.slane %v19975_v53, 4  ;;  %v35022_v5 = vld [vmem:[#allocation39_spill] sm:$0xff] }
0x181d   : > { %v20008_v17 = vpop.trf.xlu0  ;;  %v1844_v28 = vsel %vm996_vm2, %v1840_v18, %v35022_v5  ;;  %v35029_v18 = vld [vmem:[#allocation35_spill] sm:$0xff] }
0x181e   : > { %20239 = vxpose.xlu0.b32.start.end [1/1] (short) (narrow) %v20065_v13, 8  ;;  %v20068_v23 = vrot.slane %v20008_v17, 4  ;;  %v35023_v13 = vld [vmem:[#allocation27_spill] sm:$0xff] }
0x181f   : > { %v35030_v5 = vld [vmem:[#allocation67_spill] sm:$0xff] }
0x1823   : > { %v19976_v27 = vpop.trf.xlu1 }
0x1824   : > { %20207 = vxpose.xlu2.b32.start.end [1/1] (short) (narrow) %v19975_v53, 8  ;;  %20271 = vxpose.xlu1.b32.start.end [1/1] (short) (narrow) %v19976_v27, 8  ;;  %v20066_v35 = vrot.slane %v19976_v27, 4  ;;  %v1848_v53 = vsel %vm1001_vm3, %v1844_v28, %v35023_v13  ;;  %v35026_v27 = vld [vmem:[#allocation66_spill] sm:$0xff]  ;;  %v2687_v13 = vsel %vm991_vm1, %v35030_v5, %v35029_v18  ;;  %v35038_v18 = vld [vmem:[#allocation41_spill] sm:$0xff] }
0x1825   : > { %v31030_v2 = vpop.trf.xlu0 }
0x1826   : > { %20335 = vxpose.xlu0.b32.start.end [1/1] (short) (narrow) %v20007_v30, 8  ;;  %35024 = vst [vmem:[#allocation30_spill] sm:$0xff] %v31030_v2  ;;  %v35025_v30 = vld [vmem:[#allocation26_spill] sm:$0xff] }
0x182c   : > { %20303 = vxpose.xlu2.b32.start.end [1/1] (short) (narrow) %v20066_v35, 8  ;;  %20367 = vxpose.xlu1.b32.start.end [1/1] (short) (narrow) %v20067_v1, 8  ;;  %v35027_v35 = vld [vmem:[#allocation37_spill] sm:$0xff] }
0x182d   : > { %v20040_v8 = vpop.trf.xlu0 }
0x182e   : > { %20431 = vxpose.xlu0.b32.start.end [1/1] (short) (narrow) %v20068_v23, 8  ;;  %v35028_v23 = vld [vmem:[#allocation34_spill] sm:$0xff]  ;;  %v20070_v28 = vrot.slane %v20040_v8, 4 }
0x1834   : > { %20399 = vxpose.xlu2.b32.start.end [1/1] (short) (narrow) %v20008_v17, 8  ;;  %20463 = vxpose.xlu1.b32.start.end [1/1] (short) (narrow) %v31030_v2, 8  ;;  %v2684_v17 = vsel %vm991_vm1, %v35026_v27, %v35025_v30  ;;  %v35032_v27 = vld [vmem:[#allocation36_spill] sm:$0xff] }
0x1835   : > { %v2688_v1 = vsel %vm996_vm2, %v2684_v17, %v35027_v35 }
0x1836   : > { %v2692_v49 = vsel %vm1001_vm3, %v2688_v1, %v35028_v23  ;;  %20527 = vxpose.xlu0.b32.start.end [1/1] (short) (narrow) %v20040_v8, 8  ;;  %v35034_v1 = vld [vmem:[#allocation44_spill] sm:$0xff]  ;;  %v35035_v23 = vld [vmem:[#allocation13_spill] sm:$0xff] }
0x183c   : > { %20559 = vxpose.xlu1.b32.start.end [1/1] (short) (narrow) %v20070_v28, 8  ;;  %v35037_v28 = vld [vmem:[#allocation42_spill] sm:$0xff] }
0x189d   : > { %6927 = vrot.lane.b32.xlu2 %v1848_v53, %s28229_s22  ;;  %v2691_v53 = vsel %vm996_vm2, %v2687_v13, %v29826_v38 }
0x189e   : > { %v2695_v17 = vsel %vm1001_vm3, %v2691_v53, %v35032_v27  ;;  %v35041_v27 = vld [vmem:[#allocation19_spill] sm:$0xff] }
0x18a5   : > { %6941 = vrot.lane.b32.xlu2 %v2692_v49, %s28230_s23  ;;  %v4375_v49 = vsel %vm991_vm1, %v35035_v23, %v35034_v1  ;;  %v35043_v23 = vld [vmem:[#allocation51_spill] sm:$0xff] }
0x18a6   : > { %v4379_v38 = vsel %vm996_vm2, %v4375_v49, %v35037_v28 }
0x18a7   : > { %v4383_v5 = vsel %vm1001_vm3, %v4379_v38, %v35038_v18  ;;  %v35044_v38 = vld [vmem:[#allocation52_spill] sm:$0xff]  ;;  %v35045_v18 = vld [vmem:[#allocation17_spill] sm:$0xff] }
0x18ab   : > { %v31046_v30 = vpop.trf.xlu2 }
0x18ac   : > { %35031 = vst [vmem:[#allocation65_spill] sm:$0xff] %v31046_v30 }
0x18ad   : > { %6947 = vrot.lane.b32.xlu2 %v2695_v17, %s28230_s23 }
0x18b5   : > { %6961 = vrot.lane.b32.xlu2 %v29864_v58, %s28231_s24  ;;  %v31053_v35 = vpop.trf.xlu2  ;;  %v35040_v58 = vld [vmem:[#allocation54_spill] sm:$0xff] }
0x18b6   : > { %35033 = vst [vmem:[#allocation39_spill] sm:$0xff] %v31053_v35  ;;  %v5219_v17 = vsel %vm991_vm1, %v35041_v27, %v35040_v58  ;;  %v35042_v35 = vld [vmem:[#allocation60_spill] sm:$0xff] }
0x18b7   : > { %v5223_v1 = vsel %vm996_vm2, %v5219_v17, %v35042_v35  ;;  %v35047_v17 = vld [vmem:[#allocation49_spill] sm:$0xff] }
0x18b8   : > { %v31058_v8 = vpop.trf.xlu0 }
0x18b9   : > { %35036 = vst [vmem:[#allocation27_spill] sm:$0xff] %v31058_v8  ;;  %v5227_v8 = vsel %vm1001_vm3, %v5223_v1, %v35043_v23 }
0x18bd   : > { %6975 = vrot.lane.b32.xlu2 %v4383_v5, %s28232_s25  ;;  %v20223_v13 = vpop.trf.xlu2  ;;  %v5222_v5 = vsel %vm991_vm1, %v35045_v18, %v35044_v38 }
0x18be   : > { %v31065_v53 = vpop.trf.xlu1  ;;  %v5226_v58 = vsel %vm996_vm2, %v5222_v5, %v35046_v52 }
0x18bf   : > { %35039 = vst [vmem:[#allocation26_spill] sm:$0xff] %v31065_v53  ;;  %v5230_v1 = vsel %vm1001_vm3, %v5226_v58, %v35047_v17 }
0x18c2   : > { %v20255_v2 = vpop.trf.xlu0 }
0x18c5   : > { %6989 = vrot.lane.b32.xlu2 %v5227_v8, %s28233_s26  ;;  %v20319_v49 = vpop.trf.xlu2 }
0x18c6   : > { %v20625_v28 = vrot.slane %v20319_v49, 4  ;;  %v35048_v49 = vld [vmem:[#allocation73_spill] sm:$0xff] }
0x18c8   : > { %v20287_v30 = vpop.trf.xlu1  ;;  %v20626_v35 = vsel %vm831_vm0, %v20625_v28, %v20255_v2 }
0x18c9   : > { %v20619_v53 = vrot.slane %v20287_v30, 4  ;;  %v6066_v30 = vsel %vm991_vm1, %v29776_v46, %v29906_v37  ;;  %v31093_v52 = vperm.slane %v20626_v35, %v28351_v41  ;;  %v35049_v46 = vld [vmem:[#allocation68_spill] sm:$0xff] }
0x18ca   : > { %v20351_v6 = vpop.trf.xlu0  ;;  %v6070_v28 = vsel %vm996_vm2, %v6066_v30, %v35048_v49  ;;  %v35050_v30 = vld [vmem:[#allocation70_spill] sm:$0xff] }
0x18cb   : > { %v20620_v27 = vsel %vm831_vm0, %v20619_v53, %v20223_v13  ;;  %v6074_v37 = vsel %vm1001_vm3, %v6070_v28, %v35049_v46 }
0x18cc   : > { %v31085_v8 = vperm.slane %v20620_v27, %v28351_v41 }
0x18cd   : > { %6995 = vrot.lane.b32.xlu2 %v5230_v1, %s28233_s26  ;;  %v20415_v13 = vpop.trf.xlu2 }
0x18ce   : > { %v20633_v23 = vrot.slane %v31085_v8, 4  ;;  %v20647_v53 = vrot.slane %v20415_v13, 4 }
0x18d0   : > { %v31097_v2 = vsel %vm831_vm0, %v31093_v52, %v20633_v23  ;;  %v20383_v18 = vpop.trf.xlu1  ;;  %v20648_v5 = vsel %vm831_vm0, %v20647_v53, %v20351_v6  ;;  %v35051_v23 = vld [vmem:[#allocation25_spill] sm:$0xff]  ;;  %v35053_v53 = vld [vmem:[#allocation72_spill] sm:$0xff] }
0x18d1   : > { %v31107_v35 = vperm.slane %v20648_v5, %v28351_v41  ;;  %v6910_v6 = vsel %vm991_vm1, %v35051_v23, %v35050_v30 }
0x18d2   : > { %v20447_v38 = vpop.trf.xlu0  ;;  %v6914_v49 = vsel %vm996_vm2, %v6910_v6, %v35053_v53  ;;  %v35056_v53 = vld [vmem:[#allocation8_spill] sm:$0xff] }
0x18d3   : > { %v20653_v58 = vrot.slane %v20447_v38, 4  ;;  %v6918_v28 = vsel %vm1001_vm3, %v6914_v49, %v30196_v31  ;;  %v35054_v38 = vld [vmem:[#allocation86_spill] sm:$0xff]  ;;  %v7812_v31 = vrot.slane %v30031_v22, 4  ;;  %v992_v49 = vsel %vm991_vm1, %v35056_v53, %v29765_v7 }
0x18d5   : > { %7009 = vrot.lane.b32.xlu2 %v6074_v37, %s28234_s27  ;;  %v20654_v27 = vsel %vm831_vm0, %v20653_v58, %v20383_v18  ;;  %v31126_v18 = vperm.slane %v35054_v38, %v28621_v57  ;;  %v7813_v37 = vsel %vm831_vm0, 0.0, %v7812_v31 }
0x18d6   : > { %v31110_v17 = vperm.slane %v20654_v27, %v28351_v41  ;;  %v35055_v27 = vld [vmem:[#allocation112_spill] sm:$0xff] }
0x18d7   : > { %v7782_v5 = vrot.slane %v31126_v18, 4 }
0x18d8   : > { %v20659_v1 = vrot.slane %v31110_v17, 4 }
0x18d9   : > { %v7783_v58 = vsel %vm831_vm0, 0.0, %v7782_v5 }
0x18da   : > { %v31118_v13 = vsel %vm831_vm0, %v20659_v1, %v31107_v35  ;;  %v31140_v1 = vperm.slane %v35055_v27, %v28621_v57 }
0x18db   : > { %35052 = vst [vmem:[#allocation66_spill] sm:$0xff] %v31118_v13 }
0x18dc   : > { %v8683_v23 = vrot.slane %v31140_v1, 4 }
0x18dd   : > { %7023 = vrot.lane.b32.xlu2 %v6918_v28, %s28235_s28  ;;  %v35057_v28 = vld [vmem:[#allocation24_spill] sm:$0xff] }
0x18de   : > { %v8684_v6 = vsel %vm831_vm0, 0.0, %v8683_v23  ;;  %v997_v38 = vsel %vm996_vm2, %v992_v49, %v35057_v28 }
0x18e5   : > { %7874 = vrot.lane.b32.xlu2 %v7783_v58, %s28226_s16  ;;  %v35058_v58 = vld [vmem:[#allocation127_spill] sm:$0xff] }
0x18e6   : > { %v31157_v31 = vperm.slane %v35058_v58, %v28621_v57 }
0x18e8   : > { %v9528_v7 = vrot.slane %v31157_v31, 4 }
0x18ed   : > { %7890 = vrot.lane.b32.xlu2 %v30012_v32, %s28227_s17 }
0x18f5   : > { %7894 = vrot.lane.b32.xlu2 %v30053_v60, %s28227_s17  ;;  %v8657_v60 = vrot.slane %v30079_v40, 4 }
0x18f7   : > { %v6928_v46 = vpop.permute.xlu2 %6927  ;;  %v8658_v5 = vsel %vm831_vm0, 0.0, %v8657_v60  ;;  %v35061_v60 = vld [vmem:[#allocation63_spill] sm:$0xff] }
0x18fd   : > { %7908 = vrot.lane.b32.xlu2 %v7813_v37, %s28228_s18  ;;  %v35059_v37 = vld [vmem:[#allocation11_spill] sm:$0xff] }
0x18ff   : > { %v6942_v30 = vpop.permute.xlu2 %6941 }
0x1905   : > { %8723 = vrot.lane.b32.xlu2 %v8684_v6, %s28226_s16  ;;  %v35060_v6 = vld [vmem:[#allocation16_spill] sm:$0xff] }
0x1906   : > { %v995_v53 = vsel %vm991_vm1, %v35061_v60, %v35060_v6  ;;  %v35065_v60 = vld [vmem:[#allocation21_spill] sm:$0xff] }
0x1907   : > { %v6948_v32 = vpop.permute.xlu2 %6947  ;;  %v1000_v49 = vsel %vm996_vm2, %v995_v53, %v29770_v59  ;;  %v9502_v53 = vrot.slane %v30144_v34, 4 }
0x1909   : > { %v9503_v34 = vsel %vm831_vm0, 0.0, %v9502_v53 }
0x190d   : > { %8739 = vrot.lane.b32.xlu2 %v30130_v29, %s28227_s17  ;;  %v1002_v29 = vsel %vm1001_vm3, %v997_v38, %v35059_v37  ;;  %v9529_v38 = vsel %vm831_vm0, 0.0, %v9528_v7  ;;  %v35063_v7 = vld [vmem:[#allocation15_spill] sm:$0xff] }
0x190e   : > { %v7034_v40 = vsel %vm7033_vm4, %v1002_v29, %v30222_v0  ;;  %v35062_v0 = vld [vmem:[#allocation31_spill] sm:$0xff] }
0x190f   : > { %v6962_v22 = vpop.permute.xlu2 %6961  ;;  %v7039_v23 = vsel %vm7038_vm5, %v7034_v40, %v6942_v30 }
0x1910   : > { %v7044_v28 = vsel %vm7043_vm6, %v7039_v23, %v30147_v19 }
0x1911   : > { %v7049_v30 = vsel %vm7048_vm7, %v7044_v28, %v30314_v33 }
0x1915   : > { %8753 = vrot.lane.b32.xlu2 %v8658_v5, %s28228_s18  ;;  %v1005_v5 = vsel %vm1001_vm3, %v1000_v49, %v35062_v0 }
0x1916   : > { %v7037_v59 = vsel %vm7033_vm4, %v1005_v5, %v30254_v36  ;;  %v35064_v36 = vld [vmem:[#allocation62_spill] sm:$0xff] }
0x1917   : > { %v6976_v27 = vpop.permute.xlu2 %6975  ;;  %v7042_v37 = vsel %vm7038_vm5, %v7037_v59, %v6948_v32  ;;  %v993_v23 = vsel %vm991_vm1, %v35064_v36, %v35063_v7 }
0x1918   : > { %v7047_v33 = vsel %vm7043_vm6, %v7042_v37, %v30166_v47 }
0x1919   : > { %v7052_v32 = vsel %vm7048_vm7, %v7047_v33, %v30347_v15 }
0x191d   : > { %9568 = vrot.lane.b32.xlu2 %v9529_v38, %s28226_s16 }
0x191f   : > { %v6990_v58 = vpop.permute.xlu2 %6989 }
0x1920   : > { %v7054_v19 = vsel %vm7053_vm8, %v7049_v30, %v6990_v58 }
0x1921   : > { %v7059_v29 = vsel %vm7058_vm10, %v7054_v19, %v30228_v25  ;;  %v998_v25 = vsel %vm996_vm2, %v993_v23, %v35065_v60 }
0x1922   : > { %v7064_v40 = vsel %vm7063_vm9, %v7059_v29, %v30415_v14  ;;  %v7041_v14 = vsel %vm7038_vm5, %v29985_v42, %v30280_v11  ;;  %v35067_v11 = vld [vmem:[#allocation142_spill] sm:$0xff] }
0x1923   : > { %7072 = vst [vmem:[#allocation1] ss:$2 sm:$0xff] %v7064_v40  ;;  %v7046_v28 = vsel %vm7043_vm6, %v7041_v14, %v6962_v22  ;;  %v31216_v5 = vperm.slane %v35067_v11, %v28621_v57  ;;  %v35068_v40 = vld [vmem:[#allocation154_spill] sm:$0xff]  ;;  %v12009_v11 = vrot.slane %v30509_v9, 4 }
0x1924   : > { %v7051_v42 = vsel %vm7048_vm7, %v7046_v28, %v30179_v44  ;;  %v31250_v33 = vperm.slane %v35068_v40, %v28621_v57  ;;  %v35079_v40 = vld [vmem:[#allocation96_spill] sm:$0xff] }
0x1925   : > { %9584 = vrot.lane.b32.xlu2 %v30231_v63, %s28227_s17  ;;  %v35066_v63 = vld [vmem:[#allocation12_spill] sm:$0xff]  ;;  %v10373_v30 = vrot.slane %v31216_v5, 4 }
0x1926   : > { %v1003_v49 = vsel %vm1001_vm3, %v998_v25, %v35066_v63  ;;  %v11218_v36 = vrot.slane %v31250_v33, 4  ;;  %v11248_v25 = vrot.slane %v30440_v45, 4  ;;  %v35070_v63 = vld [vmem:[#allocation23_spill] sm:$0xff] }
0x1927   : > { %v6996_v6 = vpop.permute.xlu2 %6995  ;;  %v7035_v38 = vsel %vm7033_vm4, %v1003_v49, %v6928_v46  ;;  %v10374_v19 = vsel %vm831_vm0, 0.0, %v10373_v30  ;;  %v8764_v49 = vsel %vm991_vm1, %v35070_v63, %v30431_v43  ;;  %v35076_v30 = vld [vmem:[#allocation94_spill] sm:$0xff] }
0x1928   : > { %v7057_v47 = vsel %vm7053_vm8, %v7052_v32, %v6996_v6  ;;  %v7040_v22 = vsel %vm7038_vm5, %v7035_v38, %v30120_v16  ;;  %v11164_v32 = vrot.slane %v30412_v20, 4  ;;  %v11249_v14 = vsel %vm831_vm0, 0.0, %v11248_v25 }
0x1929   : > { %v7062_v15 = vsel %vm7058_vm10, %v7057_v47, %v30257_v24  ;;  %v7056_v24 = vsel %vm7053_vm8, %v7051_v42, %v30377_v55  ;;  %v7045_v46 = vsel %vm7043_vm6, %v7040_v22, %v30297_v50  ;;  %v35069_v47 = vld [vmem:[#allocation169_spill] sm:$0xff]  ;;  %v8768_v45 = vsel %vm996_vm2, %v8764_v49, %v30542_v48 }
0x192a   : > { %v7067_v0 = vsel %vm7063_vm9, %v7062_v15, %v30448_v56  ;;  %v7050_v58 = vsel %vm7048_vm7, %v7045_v46, %v6976_v27  ;;  %v11165_v6 = vsel %vm831_vm0, 0.0, %v11164_v32  ;;  %v31273_v53 = vperm.slane %v35069_v47, %v28621_v57  ;;  %v35072_v22 = vld [vmem:[#allocation81_spill] sm:$0xff]  ;;  %v35074_v46 = vld [vmem:[#allocation79_spill] sm:$0xff] }
0x192b   : > { %7078 = vst [vmem:[#allocation1 + $0x11] ss:$2 sm:$0xff] %v7067_v0  ;;  %v7055_v16 = vsel %vm7053_vm8, %v7050_v58, %v30200_v61  ;;  %v35071_v0 = vld [vmem:[#allocation61_spill] sm:$0xff]  ;;  %v12093_v9 = vrot.slane %v35076_v30, 4 }
0x192c   : > { %v7060_v50 = vsel %vm7058_vm10, %v7055_v16, %v30396_v39  ;;  %v12063_v20 = vrot.slane %v31273_v53, 4  ;;  %v9608_v42 = vsel %vm991_vm1, %v35071_v0, %v30583_v51  ;;  %v12010_v51 = vsel %vm831_vm0, 0.0, %v12009_v11 }
0x192d   : > { %9598 = vrot.lane.b32.xlu2 %v9503_v34, %s28228_s18  ;;  %v9612_v34 = vsel %vm996_vm2, %v9608_v42, %v30557_v10  ;;  %v12094_v58 = vsel %vm831_vm0, 0.0, %v12093_v9 }
0x192e   : > { %v12064_v28 = vsel %vm831_vm0, 0.0, %v12063_v20  ;;  %v9616_v48 = vsel %vm1001_vm3, %v9612_v34, %v30606_v62  ;;  %v35082_v20 = vld [vmem:[#allocation186_spill] sm:$0xff] }
0x192f   : > { %v7010_v56 = vpop.permute.xlu2 %7009  ;;  %v31340_v63 = vperm.slane %v35082_v20, %v28621_v57 }
0x1930   : > { %v7061_v44 = vsel %vm7058_vm10, %v7056_v24, %v7010_v56  ;;  %v35073_v24 = vld [vmem:[#allocation50_spill] sm:$0xff] }
0x1931   : > { %v7066_v59 = vsel %vm7063_vm9, %v7061_v44, %v30277_v21  ;;  %v10347_v21 = vrot.slane %v30216_v4, 4  ;;  %v9611_v56 = vsel %vm991_vm1, %v35073_v24, %v35072_v22  ;;  %v35075_v44 = vld [vmem:[#allocation99_spill] sm:$0xff]  ;;  %v35086_v22 = vld [vmem:[#allocation105_spill] sm:$0xff] }
0x1932   : > { %7076 = vst [vmem:[#allocation1 + $0x10] ss:$2 sm:$0xff] %v7066_v59  ;;  %v9615_v10 = vsel %vm996_vm2, %v9611_v56, %v35074_v46  ;;  %v35077_v59 = vld [vmem:[#allocation179_spill] sm:$0xff]  ;;  %v35087_v56 = vld [vmem:[#allocation100_spill] sm:$0xff] }
0x1933   : > { %v10348_v39 = vsel %vm831_vm0, 0.0, %v10347_v21  ;;  %v9619_v62 = vsel %vm1001_vm3, %v9615_v10, %v35075_v44  ;;  %v31317_v16 = vperm.slane %v35077_v59, %v28621_v57  ;;  %v35088_v44 = vld [vmem:[#allocation93_spill] sm:$0xff] }
0x1935   : > { %10413 = vrot.lane.b32.xlu2 %v10374_v19, %s28226_s16 }
0x1937   : > { %v7024_v55 = vpop.permute.xlu2 %7023 }
0x1938   : > { %v7065_v37 = vsel %vm7063_vm9, %v7060_v50, %v7024_v55  ;;  %v12908_v50 = vrot.slane %v31317_v16, 4 }
0x1939   : > { %7074 = vst [vmem:[#allocation1 + $0x1] ss:$2 sm:$0xff] %v7065_v37  ;;  %v7080_v27 = vld.sshfl [vmem:[#allocation1 + $0x10] sm:$0xff pattern:$0x75316420] }
0x193a   : > { %7084 = vst [vmem:[%s31238_s30 + $0x8] sm:$0xff] %v7080_v27  ;;  %v12909_v55 = vsel %vm831_vm0, 0.0, %v12908_v50  ;;  %v35078_v27 = vld [vmem:[#allocation45_spill] sm:$0xff]  ;;  %v35089_v50 = vld [vmem:[#allocation98_spill] sm:$0xff] }
0x193d   : > { %10429 = vrot.lane.b32.xlu2 %v30329_v26, %s28227_s17  ;;  %v11219_v26 = vsel %vm831_vm0, 0.0, %v11218_v36  ;;  %v12854_v36 = vrot.slane %v35079_v40, 4 }
0x193f   : > { %v31243_v61 = vpop.permute.xlu2 %7874 }
0x1940   : > { %v7079_v29 = vld.sshfl [vmem:[#allocation1] sm:$0xff pattern:$0x75316420] }
0x1941   : > { %7083 = vst [vmem:[%s31238_s30] sm:$0xff] %v7079_v29 }
0x1945   : > { %10443 = vrot.lane.b32.xlu2 %v10348_v39, %s28228_s18 }
0x1947   : > { %v31253_v7 = vpop.permute.xlu2 %7890 }
0x194d   : > { %11258 = vrot.lane.b32.xlu2 %v11219_v26, %s28226_s16  ;;  %v35080_v26 = vld [vmem:[#allocation111_spill] sm:$0xff] }
0x194f   : > { %v31258_v23 = vpop.permute.xlu2 %7894 }
0x1955   : > { %11272 = vrot.lane.b32.xlu2 %v30303_v3, %s28227_s17 }
0x1957   : > { %v31262_v4 = vpop.permute.xlu2 %7908 }
0x195d   : > { %11286 = vrot.lane.b32.xlu2 %v11165_v6, %s28228_s18  ;;  %v12855_v6 = vsel %vm831_vm0, 0.0, %v12854_v36 }
0x195f   : > { %v31267_v60 = vpop.permute.xlu2 %8723 }
0x1965   : > { %11292 = vrot.lane.b32.xlu2 %v11249_v14, %s28228_s18  ;;  %v35081_v14 = vld [vmem:[#allocation56_spill] sm:$0xff] }
0x1966   : > { %v12938_v47 = vrot.slane %v35081_v14, 4  ;;  %v35096_v14 = vld [vmem:[#allocation103_spill] sm:$0xff] }
0x1967   : > { %v31276_v3 = vpop.permute.xlu2 %8739 }
0x196d   : > { %12103 = vrot.lane.b32.xlu2 %v12064_v28, %s28226_s16  ;;  %v13753_v28 = vrot.slane %v31340_v63, 4 }
0x196f   : > { %v8754_v15 = vpop.permute.xlu2 %8753 }
0x1970   : > { %v8772_v38 = vsel %vm1001_vm3, %v8768_v45, %v8754_v15  ;;  %v13754_v45 = vsel %vm831_vm0, 0.0, %v13753_v28  ;;  %v35083_v15 = vld [vmem:[#allocation107_spill] sm:$0xff]  ;;  %v35098_v28 = vld [vmem:[#allocation106_spill] sm:$0xff] }
0x1971   : > { %13851 = vrot.lane.b32.xlu0 %v8772_v38, %s28229_s22  ;;  %v35084_v38 = vld [vmem:[#allocation33_spill] sm:$0xff] }
0x1972   : > { %v11299_v0 = vsel %vm991_vm1, %v35084_v38, %v35083_v15  ;;  %v35100_v15 = vld [vmem:[#allocation91_spill] sm:$0xff] }
0x1975   : > { %12117 = vrot.lane.b32.xlu2 %v30525_v12, %s28227_s17 }
0x1977   : > { %v31295_v43 = vpop.permute.xlu2 %9568 }
0x1979   : > { %13865 = vrot.lane.b32.xlu0 %v9616_v48, %s28230_s23  ;;  %v35085_v48 = vld [vmem:[#allocation110_spill] sm:$0xff] }
0x197d   : > { %12131 = vrot.lane.b32.xlu2 %v12010_v51, %s28228_s18  ;;  %v13699_v51 = vrot.slane %v35087_v56, 4  ;;  %v35104_v56 = vld [vmem:[#allocation38_spill] sm:$0xff] }
0x197f   : > { %v31308_v12 = vpop.permute.xlu2 %9584  ;;  %v13700_v46 = vsel %vm831_vm0, 0.0, %v13699_v51 }
0x1981   : > { %13871 = vrot.lane.b32.xlu0 %v9619_v62, %s28230_s23  ;;  %v13783_v62 = vrot.slane %v35088_v44, 4  ;;  %v35105_v44 = vld [vmem:[#allocation104_spill] sm:$0xff] }
0x1983   : > { %v13784_v30 = vsel %vm831_vm0, 0.0, %v13783_v62 }
0x1985   : > { %12137 = vrot.lane.b32.xlu2 %v12094_v58, %s28228_s18  ;;  %v8765_v58 = vsel %vm991_vm1, %v31140_v1, %v31267_v60  ;;  %v35093_v1 = vld [vmem:[#allocation118_spill] sm:$0xff]  ;;  %v35094_v60 = vld [vmem:[#allocation95_spill] sm:$0xff] }
0x1986   : > { %v8769_v59 = vsel %vm996_vm2, %v8765_v58, %v31276_v3  ;;  %v12143_v3 = vsel %vm991_vm1, %v35094_v60, %v35093_v1  ;;  %v35110_v1 = vld [vmem:[#allocation120_spill] sm:$0xff] }
0x1987   : > { %v9599_v19 = vpop.permute.xlu2 %9598 }
0x198d   : > { %12948 = vrot.lane.b32.xlu2 %v12909_v55, %s28226_s16  ;;  %v8773_v55 = vsel %vm1001_vm3, %v8769_v59, %v35089_v50 }
0x198f   : > { %v10414_v37 = vpop.permute.xlu2 %10413 }
0x1990   : > { %v10455_v21 = vsel %vm991_vm1, %v31216_v5, %v10414_v37  ;;  %v12939_v5 = vsel %vm831_vm0, 0.0, %v12938_v47  ;;  %v35097_v47 = vld [vmem:[#allocation22_spill] sm:$0xff] }
0x1995   : > { %12962 = vrot.lane.b32.xlu2 %v35078_v27, %s28227_s17  ;;  %v35090_v27 = vld [vmem:[#allocation18_spill] sm:$0xff] }
0x1997   : > { %v10430_v29 = vpop.permute.xlu2 %10429 }
0x1998   : > { %v10459_v39 = vsel %vm996_vm2, %v10455_v21, %v10430_v29  ;;  %v35091_v21 = vld [vmem:[#allocation58_spill] sm:$0xff] }
0x1999   : > { %v10463_v32 = vsel %vm1001_vm3, %v10459_v39, %v35080_v26  ;;  %v9609_v29 = vsel %vm991_vm1, %v35091_v21, %v35090_v27  ;;  %v35092_v39 = vld [vmem:[#allocation85_spill] sm:$0xff]  ;;  %v35095_v26 = vld [vmem:[#allocation128_spill] sm:$0xff]  ;;  %v35107_v27 = vld [vmem:[#allocation122_spill] sm:$0xff] }
0x199a   : > { %13885 = vrot.lane.b32.xlu0 %v10463_v32, %s28231_s24  ;;  %v9613_v40 = vsel %vm996_vm2, %v9609_v29, %v35092_v39  ;;  %v12147_v32 = vsel %vm996_vm2, %v12143_v3, %v35095_v26  ;;  %v35108_v29 = vld [vmem:[#allocation136_spill] sm:$0xff] }
0x199b   : > { %v9617_v36 = vsel %vm1001_vm3, %v9613_v40, %v9599_v19  ;;  %v35099_v19 = vld [vmem:[#allocation123_spill] sm:$0xff]  ;;  %v35109_v40 = vld [vmem:[#allocation132_spill] sm:$0xff] }
0x199c   : > { %v12146_v38 = vsel %vm991_vm1, %v35100_v15, %v35099_v19  ;;  %v35117_v19 = vld [vmem:[#allocation126_spill] sm:$0xff] }
0x199d   : > { %12976 = vrot.lane.b32.xlu2 %v12855_v6, %s28228_s18 }
0x199f   : > { %v31334_v25 = vpop.permute.xlu2 %10443 }
0x19a5   : > { %12982 = vrot.lane.b32.xlu2 %v12939_v5, %s28228_s18  ;;  %v10453_v5 = vsel %vm991_vm1, %v35097_v47, %v35096_v14  ;;  %v35114_v47 = vld [vmem:[#allocation134_spill] sm:$0xff] }
0x19a7   : > { %v11259_v49 = vpop.permute.xlu2 %11258 }
0x19a8   : > { %v11300_v59 = vsel %vm991_vm1, %v31250_v33, %v11259_v49  ;;  %v35111_v49 = vld [vmem:[#allocation109_spill] sm:$0xff] }
0x19a9   : > { %v11304_v21 = vsel %vm996_vm2, %v11300_v59, %v35107_v27 }
0x19aa   : > { %v11308_v60 = vsel %vm1001_vm3, %v11304_v21, %v35110_v1 }
0x19ad   : > { %13793 = vrot.lane.b32.xlu2 %v13754_v45, %s28226_s16  ;;  %v10457_v45 = vsel %vm996_vm2, %v10453_v5, %v35098_v28  ;;  %v35115_v5 = vld [vmem:[#allocation88_spill] sm:$0xff] }
0x19ae   : > { %v35116_v28 = vld [vmem:[#allocation160_spill] sm:$0xff] }
0x19af   : > { %v11273_v42 = vpop.permute.xlu2 %11272 }
0x19b0   : > { %v11303_v34 = vsel %vm996_vm2, %v11299_v0, %v11273_v42  ;;  %v35101_v0 = vld [vmem:[#allocation113_spill] sm:$0xff] }
0x19b1   : > { %v11307_v11 = vsel %vm1001_vm3, %v11303_v34, %v35085_v48  ;;  %v10461_v42 = vsel %vm1001_vm3, %v10457_v45, %v35101_v0  ;;  %v35102_v34 = vld [vmem:[#allocation125_spill] sm:$0xff]  ;;  %v14710_v45 = vrot.slane %v35116_v28, 4 }
0x19b2   : > { %13899 = vrot.lane.b32.xlu0 %v11307_v11, %s28232_s25  ;;  %v12150_v48 = vsel %vm996_vm2, %v12146_v38, %v35102_v34 }
0x19b5   : > { %13807 = vrot.lane.b32.xlu2 %v35086_v22, %s28227_s17  ;;  %v35103_v22 = vld [vmem:[#allocation101_spill] sm:$0xff] }
0x19b6   : > { %v10456_v51 = vsel %vm991_vm1, %v35104_v56, %v35103_v22  ;;  %v35121_v22 = vld [vmem:[#allocation82_spill] sm:$0xff] }
0x19b7   : > { %v31355_v24 = vpop.permute.xlu2 %11286  ;;  %v10460_v62 = vsel %vm996_vm2, %v10456_v51, %v35105_v44 }
0x19bd   : > { %13821 = vrot.lane.b32.xlu2 %v13700_v46, %s28228_s18 }
0x19bf   : > { %v31360_v10 = vpop.permute.xlu2 %11292 }
0x19c5   : > { %13827 = vrot.lane.b32.xlu2 %v13784_v30, %s28228_s18  ;;  %v35106_v30 = vld [vmem:[#allocation119_spill] sm:$0xff] }
0x19c6   : > { %v10464_v58 = vsel %vm1001_vm3, %v10460_v62, %v35106_v30  ;;  %v35123_v62 = vld [vmem:[#allocation153_spill] sm:$0xff] }
0x19c7   : > { %v31365_v9 = vpop.permute.xlu2 %12103 }
0x19cd   : > { %13853 = vrot.lane.b32.xlu2 %v8773_v55, %s28229_s22 }
0x19cf   : > { %v12118_v37 = vpop.permute.xlu2 %12117 }
0x19d5   : > { %13867 = vrot.lane.b32.xlu2 %v9617_v36, %s28230_s23 }
0x19d7   : > { %v12132_v6 = vpop.permute.xlu2 %12131 }
0x19d8   : > { %v12151_v20 = vsel %vm1001_vm3, %v12147_v32, %v12132_v6  ;;  %v35113_v32 = vld [vmem:[#allocation130_spill] sm:$0xff] }
0x19d9   : > { %13913 = vrot.lane.b32.xlu0 %v12151_v20, %s28233_s26  ;;  %v12988_v20 = vsel %vm991_vm1, %v35115_v5, %v35114_v47  ;;  %v35129_v47 = vld [vmem:[#allocation138_spill] sm:$0xff] }
0x19da   : > { %v12992_v15 = vsel %vm996_vm2, %v12988_v20, %v35117_v19 }
0x19dd   : > { %13881 = vrot.lane.b32.xlu2 %v10461_v42, %s28231_s24  ;;  %v35119_v42 = vld [vmem:[#allocation141_spill] sm:$0xff] }
0x19de   : > { %v14704_v34 = vrot.slane %v35119_v42, 4 }
0x19df   : > { %v12138_v11 = vpop.permute.xlu2 %12137 }
0x19e0   : > { %v12154_v46 = vsel %vm1001_vm3, %v12150_v48, %v12138_v11  ;;  %v35120_v11 = vld [vmem:[#allocation133_spill] sm:$0xff]  ;;  %v14705_v30 = vsel %vm831_vm0, %v14704_v34, %v35123_v62  ;;  %v35133_v34 = vld [vmem:[#allocation144_spill] sm:$0xff] }
0x19e1   : > { %13919 = vrot.lane.b32.xlu0 %v12154_v46, %s28233_s26  ;;  %v12991_v56 = vsel %vm991_vm1, %v35121_v22, %v35120_v11  ;;  %v35122_v46 = vld [vmem:[#allocation168_spill] sm:$0xff] }
0x19e2   : > { %v14738_v44 = vrot.slane %v35122_v46, 4 }
0x19e5   : > { %13887 = vrot.lane.b32.xlu2 %v10464_v58, %s28231_s24  ;;  %v35124_v58 = vld [vmem:[#allocation158_spill] sm:$0xff] }
0x19e6   : > { %v14732_v59 = vrot.slane %v35124_v58, 4 }
0x19e7   : > { %v12949_v50 = vpop.permute.xlu2 %12948 }
0x19e8   : > { %v12990_v55 = vsel %vm991_vm1, %v31317_v16, %v12949_v50  ;;  %v35112_v16 = vld [vmem:[#allocation97_spill] sm:$0xff] }
0x19e9   : > { %v12994_v39 = vsel %vm996_vm2, %v12990_v55, %v35108_v29  ;;  %v12144_v3 = vsel %vm991_vm1, %v35112_v16, %v35111_v49  ;;  %v35125_v50 = vld [vmem:[#allocation129_spill] sm:$0xff]  ;;  %v14709_v29 = vperm.slane %v14705_v30, %v28351_v41 }
0x19ea   : > { %v12998_v36 = vsel %vm1001_vm3, %v12994_v39, %v35109_v40  ;;  %v12148_v26 = vsel %vm996_vm2, %v12144_v3, %v12118_v37  ;;  %v35118_v37 = vld [vmem:[#allocation148_spill] sm:$0xff]  ;;  %v12995_v55 = vsel %vm996_vm2, %v12991_v56, %v35125_v50  ;;  %v35126_v39 = vld [vmem:[#allocation139_spill] sm:$0xff]  ;;  %v35128_v3 = vld [vmem:[#allocation146_spill] sm:$0xff] }
0x19eb   : > { %13933 = vrot.lane.b32.xlu0 %v12998_v36, %s28234_s27  ;;  %v12152_v6 = vsel %vm1001_vm3, %v12148_v26, %v35113_v32  ;;  %v14711_v0 = vsel %vm831_vm0, %v14710_v45, %v35118_v37  ;;  %v14739_v40 = vsel %vm831_vm0, %v14738_v44, %v35126_v39  ;;  %v35127_v36 = vld [vmem:[#allocation152_spill] sm:$0xff]  ;;  %v35130_v45 = vld [vmem:[#allocation147_spill] sm:$0xff]  ;;  %v14718_v22 = vrot.slane %v14709_v29, 4  ;;  %v35136_v44 = vld [vmem:[#allocation162_spill] sm:$0xff] }
0x19ec   : > { %v14715_v51 = vperm.slane %v14711_v0, %v28351_v41  ;;  %v14733_v1 = vsel %vm831_vm0, %v14732_v59, %v35127_v36  ;;  %v14743_v49 = vperm.slane %v14739_v40, %v28351_v41  ;;  %v35135_v56 = vld [vmem:[#allocation175_spill] sm:$0xff]  ;;  %v15549_v62 = vrot.slane %v35136_v44, 4 }
0x19ed   : > { %13901 = vrot.lane.b32.xlu2 %v11308_v60, %s28232_s25 }
0x19ee   : > { %v14716_v21 = vrot.slane %v14715_v51, 4  ;;  %v14719_v50 = vsel %vm831_vm0, %v14715_v51, %v14718_v22 }
0x19ef   : > { %v31426_v33 = vpop.permute.xlu2 %12962  ;;  %v14727_v39 = vperm.slane %v14719_v50, %v28621_v57 }
0x19f0   : > { %v14717_v32 = vsel %vm831_vm0, %v14716_v21, %v14709_v29 }
0x19f1   : > { %v31473_v20 = vperm.slane %v14717_v32, %v28621_v57  ;;  %v14730_v51 = vrot.slane %v14727_v39, 4  ;;  %v35140_v32 = vld [vmem:[#allocation166_spill] sm:$0xff] }
0x19f3   : > { %v14728_v42 = vrot.slane %v31473_v20, 4 }
0x19f5   : > { %13915 = vrot.lane.b32.xlu2 %v12152_v6, %s28233_s26  ;;  %v14737_v6 = vperm.slane %v14733_v1, %v28351_v41  ;;  %v14729_v30 = vsel %vm831_vm0, 0.0, %v14728_v42  ;;  %v35138_v1 = vld [vmem:[#allocation170_spill] sm:$0xff] }
0x19f7   : > { %v12977_v14 = vpop.permute.xlu2 %12976 }
0x19f8   : > { %v12996_v38 = vsel %vm1001_vm3, %v12992_v15, %v12977_v14  ;;  %v14744_v14 = vrot.slane %v14743_v49, 4  ;;  %v35132_v15 = vld [vmem:[#allocation164_spill] sm:$0xff] }
0x19fa   : > { %v14745_v28 = vsel %vm831_vm0, %v14744_v14, %v14737_v6  ;;  %v15521_v14 = vrot.slane %v35140_v32, 4 }
0x19fb   : > { %v31486_v11 = vperm.slane %v14745_v28, %v28621_v57 }
0x19fd   : > { %13929 = vrot.lane.b32.xlu2 %v12996_v38, %s28234_s27  ;;  %v15555_v38 = vrot.slane %v35132_v15, 4  ;;  %35134 = vst [vmem:[#allocation37_spill] sm:$0xff] %v31486_v11  ;;  %v14756_v58 = vrot.slane %v31486_v11, 4 }
0x19ff   : > { %v12983_v48 = vpop.permute.xlu2 %12982  ;;  %v15556_v46 = vsel %vm831_vm0, %v15555_v38, %v35135_v56  ;;  %v14757_v29 = vsel %vm831_vm0, 0.0, %v14756_v58  ;;  %v35144_v38 = vld [vmem:[#allocation156_spill] sm:$0xff] }
0x1a00   : > { %v12999_v27 = vsel %vm1001_vm3, %v12995_v55, %v12983_v48  ;;  %v15560_v59 = vperm.slane %v15556_v46, %v28351_v41  ;;  %v35137_v55 = vld [vmem:[#allocation167_spill] sm:$0xff]  ;;  %v35145_v46 = vld [vmem:[#allocation177_spill] sm:$0xff] }
0x1a01   : > { %v16400_v44 = vrot.slane %v35145_v46, 4 }
0x1a02   : > { %v15561_v40 = vrot.slane %v15560_v59, 4 }
0x1a05   : > { %13935 = vrot.lane.b32.xlu2 %v12999_v27, %s28234_s27  ;;  %v15550_v27 = vsel %vm831_vm0, %v15549_v62, %v35137_v55 }
0x1a06   : > { %v15554_v36 = vperm.slane %v15550_v27, %v28351_v41 }
0x1a07   : > { %v13794_v60 = vpop.permute.xlu2 %13793 }
0x1a08   : > { %v13835_v16 = vsel %vm991_vm1, %v31340_v63, %v13794_v60  ;;  %v35131_v63 = vld [vmem:[#allocation83_spill] sm:$0xff]  ;;  %v15527_v60 = vrot.slane %v35138_v1, 4  ;;  %v15563_v27 = vrot.slane %v15554_v36, 4 }
0x1a09   : > { %v13839_v26 = vsel %vm996_vm2, %v13835_v16, %v35128_v3  ;;  %v13834_v19 = vsel %vm991_vm1, %v35131_v63, %v35130_v45  ;;  %v14746_v16 = vrot.slane %v14737_v6, 4  ;;  %v35139_v3 = vld [vmem:[#allocation172_spill] sm:$0xff]  ;;  %v35142_v45 = vld [vmem:[#allocation157_spill] sm:$0xff] }
0x1a0a   : > { %v13843_v5 = vsel %vm1001_vm3, %v13839_v26, %v35129_v47  ;;  %v14774_v26 = vrot.slane %v35139_v3, 4  ;;  %v15562_v47 = vsel %vm831_vm0, %v15561_v40, %v15554_v36  ;;  %v15528_v63 = vsel %vm831_vm0, %v15527_v60, %v35142_v45  ;;  %v35148_v40 = vld [vmem:[#allocation10_spill] sm:$0xff]  ;;  %v35150_v3 = vld [vmem:[#allocation165_spill] sm:$0xff] }
0x1a0b   : > { %v31516_v15 = vperm.slane %v15562_v47, %v28621_v57  ;;  %v14747_v6 = vsel %vm831_vm0, %v14743_v49, %v14746_v16  ;;  %v16394_v1 = vrot.slane %v35148_v40, 4  ;;  %v15564_v32 = vsel %vm831_vm0, %v15560_v59, %v15563_v27  ;;  %v35156_v40 = vld [vmem:[#allocation196_spill] sm:$0xff] }
0x1a0c   : > { %v31560_v45 = vperm.slane %v15564_v32, %v28621_v57 }
0x1a0d   : > { %13949 = vrot.lane.b32.xlu2 %v13843_v5, %s28235_s28  ;;  %v35141_v5 = vld [vmem:[#allocation171_spill] sm:$0xff]  ;;  %35143 = vst [vmem:[#allocation34_spill] sm:$0xff] %v31516_v15  ;;  %v15573_v49 = vrot.slane %v31516_v15, 4 }
0x1a0e   : > { %v14775_v28 = vsel %vm831_vm0, %v35141_v5, %v14774_v26 }
0x1a0f   : > { %v13808_v37 = vpop.permute.xlu2 %13807  ;;  %v15574_v50 = vsel %vm831_vm0, 0.0, %v15573_v49 }
0x1a10   : > { %v13838_v0 = vsel %vm996_vm2, %v13834_v19, %v13808_v37  ;;  %v14731_v19 = vsel %vm831_vm0, 0.0, %v14730_v51  ;;  %v15522_v37 = vsel %vm831_vm0, %v15521_v14, %v35144_v38  ;;  %v35151_v14 = vld [vmem:[#allocation174_spill] sm:$0xff]  ;;  %v31564_v38 = vpop.trf.xlu0 }
0x1a11   : > { %v13842_v48 = vsel %vm1001_vm3, %v13838_v0, %v35133_v34  ;;  %v15532_v0 = vperm.slane %v15528_v63, %v28351_v41  ;;  %v31526_v34 = vperm.slane %v14775_v28, %v28621_v57  ;;  %v15526_v22 = vperm.slane %v15522_v37, %v28351_v41 }
0x1a12   : > { %13947 = vrot.lane.b32.xlu0 %v13842_v48, %s28235_s28  ;;  %v31529_v48 = vperm.slane %v14747_v6, %v28621_v57  ;;  %v16395_v47 = vsel %vm831_vm0, %v16394_v1, %v35151_v14  ;;  %v15575_v37 = vrot.slane %v31560_v45, 4  ;;  %v17245_v1 = vrot.slane %v35156_v40, 4  ;;  %v35159_v14 = vld [vmem:[#allocation183_spill] sm:$0xff] }
0x1a13   : > { %v15533_v56 = vrot.slane %v15532_v0, 4  ;;  %v15535_v6 = vrot.slane %v15526_v22, 4 }
0x1a14   : > { %v14758_v62 = vrot.slane %v31529_v48, 4 }
0x1a15   : > { %14794 = vrot.lane.b32.xlu2 %v14729_v30, %s28226_s16  ;;  %v35146_v30 = vld [vmem:[#allocation181_spill] sm:$0xff]  ;;  %v15534_v55 = vsel %vm831_vm0, %v15533_v56, %v15526_v22  ;;  %v15536_v46 = vsel %vm831_vm0, %v15532_v0, %v15535_v6  ;;  %v35155_v0 = vld [vmem:[#allocation180_spill] sm:$0xff]  ;;  %v35161_v6 = vld [vmem:[#allocation163_spill] sm:$0xff] }
0x1a16   : > { %v15591_v58 = vrot.slane %v35146_v30, 4  ;;  %v14759_v60 = vsel %vm831_vm0, 0.0, %v14758_v62  ;;  %v31546_v16 = vperm.slane %v15534_v55, %v28621_v57  ;;  %v31579_v22 = vperm.slane %v15536_v46, %v28621_v57  ;;  %v35153_v30 = vld [vmem:[#allocation176_spill] sm:$0xff]  ;;  %v35154_v55 = vld [vmem:[#allocation14_spill] sm:$0xff]  ;;  %v35162_v46 = vld [vmem:[#allocation195_spill] sm:$0xff] }
0x1a17   : > { %v31499_v21 = vpop.permute.xlu2 %13821  ;;  %v15619_v27 = vrot.slane %v35154_v55, 4 }
0x1a18   : > { %35149 = vst [vmem:[#allocation35_spill] sm:$0xff] %v31546_v16  ;;  %v15592_v26 = vsel %vm831_vm0, %v35150_v3, %v15591_v58  ;;  %v15545_v28 = vrot.slane %v31546_v16, 4  ;;  %v16372_v58 = vrot.slane %v35153_v30, 4  ;;  %v35163_v30 = vld [vmem:[#allocation197_spill] sm:$0xff]  ;;  %v35192_v16 = vld [vmem:[#allocation216_spill] sm:$0xff] }
0x1a19   : > { %v15600_v5 = vperm.slane %v15592_v26, %v28621_v57  ;;  %v35158_v26 = vld [vmem:[#allocation173_spill] sm:$0xff]  ;;  %v17239_v55 = vrot.slane %v35163_v30, 4 }
0x1a1a   : > { %14796 = vrot.lane.b32.xlu0 %v14757_v29, %s28226_s16  ;;  %v35147_v29 = vld [vmem:[#allocation185_spill] sm:$0xff]  ;;  %v15546_v59 = vsel %vm831_vm0, 0.0, %v15545_v28  ;;  %v16373_v32 = vsel %vm831_vm0, %v16372_v58, %v35158_v26 }
0x1a1d   : > { %14810 = vrot.lane.b32.xlu2 %v14727_v39, %s28227_s17  ;;  %v16401_v39 = vsel %vm831_vm0, %v16400_v44, %v35147_v29  ;;  %v15576_v44 = vsel %vm831_vm0, 0.0, %v15575_v37  ;;  %v16366_v29 = vrot.slane %v35155_v0, 4 }
0x1a1e   : > { %v16405_v36 = vperm.slane %v16401_v39, %v28351_v41  ;;  %v31587_v39 = vpop.permute.xlu0 %13851 }
0x1a1f   : > { %v31523_v42 = vpop.permute.xlu2 %13827 }
0x1a20   : > { %v16406_v63 = vrot.slane %v16405_v36, 4 }
0x1a22   : > { %14826 = vrot.lane.b32.xlu0 %v14731_v19, %s28228_s18  ;;  %v16399_v19 = vperm.slane %v16395_v47, %v28351_v41  ;;  %v16436_v47 = vrot.slane %v35159_v14, 4 }
0x1a24   : > { %v16407_v49 = vsel %vm831_vm0, %v16406_v63, %v16399_v19  ;;  %v16408_v37 = vrot.slane %v16399_v19, 4 }
0x1a25   : > { %14814 = vrot.lane.b32.xlu2 %v31526_v34, %s28227_s17  ;;  %v31575_v62 = vperm.slane %v16407_v49, %v28621_v57  ;;  %v16377_v49 = vperm.slane %v16373_v32, %v28351_v41  ;;  %v15603_v32 = vrot.slane %v15600_v5, 4 }
0x1a26   : > { %v31617_v26 = vpop.permute.xlu0 %13865 }
0x1a27   : > { %v31548_v51 = vpop.permute.xlu2 %13853  ;;  %35152 = vst [vmem:[#allocation67_spill] sm:$0xff] %v31575_v62  ;;  %v16378_v40 = vrot.slane %v16377_v49, 4 }
0x1a28   : > { %35166 = vst [vmem:[#allocation44_spill] sm:$0xff] %v31617_v26 }
0x1a2a   : > { %15639 = vrot.lane.b32.xlu0 %v15574_v50, %s28226_s16  ;;  %v16418_v50 = vrot.slane %v31575_v62, 4  ;;  %v35184_v62 = vld [vmem:[#allocation192_spill] sm:$0xff] }
0x1a2c   : > { %v16419_v63 = vsel %vm831_vm0, 0.0, %v16418_v50  ;;  %v35164_v50 = vld [vmem:[#allocation182_spill] sm:$0xff] }
0x1a2d   : > { %14828 = vrot.lane.b32.xlu2 %v14759_v60, %s28228_s18  ;;  %v35157_v60 = vld [vmem:[#allocation9_spill] sm:$0xff]  ;;  %v16437_v19 = vsel %vm831_vm0, %v35164_v50, %v16436_v47 }
0x1a2e   : > { %v15620_v3 = vsel %vm831_vm0, %v35157_v60, %v15619_v27  ;;  %v35165_v60 = vld [vmem:[#allocation193_spill] sm:$0xff]  ;;  %v31643_v50 = vpop.permute.xlu0 %13871 }
0x1a2f   : > { %v31570_v56 = vpop.permute.xlu2 %13867  ;;  %v31606_v58 = vperm.slane %v15620_v3, %v28621_v57  ;;  %v31620_v3 = vperm.slane %v16437_v19, %v28621_v57  ;;  %35171 = vst [vmem:[#allocation19_spill] sm:$0xff] %v31643_v50  ;;  %v35209_v50 = vld [vmem:[#allocation220_spill] sm:$0xff] }
0x1a32   : > { %15657 = vrot.lane.b32.xlu0 %v15600_v5, %s28227_s17 }
0x1a35   : > { %15637 = vrot.lane.b32.xlu2 %v15546_v59, %s28226_s16  ;;  %v16367_v59 = vsel %vm831_vm0, %v16366_v29, %v35161_v6  ;;  %v16409_v29 = vsel %vm831_vm0, %v16405_v36, %v16408_v37 }
0x1a36   : > { %v16371_v27 = vperm.slane %v16367_v59, %v28351_v41  ;;  %v31623_v14 = vperm.slane %v16409_v29, %v28621_v57  ;;  %v15604_v59 = vsel %vm831_vm0, 0.0, %v15603_v32 }
0x1a37   : > { %v31595_v28 = vpop.permute.xlu2 %13881 }
0x1a38   : > { %35160 = vst [vmem:[#allocation36_spill] sm:$0xff] %v31595_v28  ;;  %v16420_v5 = vrot.slane %v31623_v14, 4  ;;  %v16380_v19 = vrot.slane %v16371_v27, 4 }
0x1a39   : > { %35167 = vst [vmem:[#allocation13_spill] sm:$0xff] %v31623_v14 }
0x1a3a   : > { %15671 = vrot.lane.b32.xlu0 %v15576_v44, %s28228_s18  ;;  %v17246_v44 = vsel %vm831_vm0, %v17245_v1, %v35162_v46  ;;  %v17240_v1 = vsel %vm831_vm0, %v17239_v55, %v35165_v60  ;;  %v16421_v30 = vsel %vm831_vm0, 0.0, %v16420_v5 }
0x1a3b   : > { %v17250_v0 = vperm.slane %v17246_v44, %v28351_v41  ;;  %v17244_v6 = vperm.slane %v17240_v1, %v28351_v41  ;;  %v35172_v1 = vld [vmem:[#allocation210_spill] sm:$0xff] }
0x1a3c   : > { %v18090_v32 = vrot.slane %v35172_v1, 4  ;;  %v35177_v1 = vld [vmem:[#allocation191_spill] sm:$0xff] }
0x1a3d   : > { %15653 = vrot.lane.b32.xlu2 %v31579_v22, %s28227_s17  ;;  %v17251_v47 = vrot.slane %v17250_v0, 4  ;;  %v17217_v11 = vrot.slane %v35177_v1, 4  ;;  %v35183_v1 = vld [vmem:[#allocation187_spill] sm:$0xff] }
0x1a3f   : > { %v31629_v36 = vpop.permute.xlu2 %13887  ;;  %v17252_v46 = vsel %vm831_vm0, %v17251_v47, %v17244_v6  ;;  %v35173_v47 = vld [vmem:[#allocation199_spill] sm:$0xff] }
0x1a40   : > { %35168 = vst [vmem:[#allocation42_spill] sm:$0xff] %v31629_v36  ;;  %v31641_v55 = vperm.slane %v17252_v46, %v28621_v57  ;;  %v17253_v46 = vrot.slane %v17244_v6, 4  ;;  %v35208_v36 = vld [vmem:[#allocation206_spill] sm:$0xff] }
0x1a42   : > { %16484 = vrot.lane.b32.xlu0 %v16419_v63, %s28226_s16  ;;  %v16379_v63 = vsel %vm831_vm0, %v16378_v40, %v16371_v27  ;;  %35170 = vst [vmem:[#allocation54_spill] sm:$0xff] %v31641_v55  ;;  %v17263_v60 = vrot.slane %v31641_v55, 4  ;;  %v35174_v27 = vld [vmem:[#allocation209_spill] sm:$0xff] }
0x1a43   : > { %v31633_v37 = vperm.slane %v16379_v63, %v28621_v57  ;;  %v16381_v63 = vsel %vm831_vm0, %v16377_v49, %v16380_v19  ;;  %v35178_v49 = vld [vmem:[#allocation198_spill] sm:$0xff]  ;;  %v35179_v19 = vld [vmem:[#allocation188_spill] sm:$0xff] }
0x1a44   : > { %v17264_v5 = vsel %vm831_vm0, 0.0, %v17263_v60  ;;  %v31662_v15 = vperm.slane %v16381_v63, %v28621_v57  ;;  %v16464_v60 = vrot.slane %v35179_v19, 4 }
0x1a45   : > { %15659 = vrot.lane.b32.xlu2 %v31606_v58, %s28227_s17  ;;  %35169 = vst [vmem:[#allocation41_spill] sm:$0xff] %v31633_v37  ;;  %v16390_v44 = vrot.slane %v31633_v37, 4  ;;  %v31655_v37 = vpop.permute.xlu0 %13885 }
0x1a46   : > { %35176 = vst [vmem:[#allocation60_spill] sm:$0xff] %v31662_v15  ;;  %v16465_v55 = vsel %vm831_vm0, %v35183_v1, %v16464_v60 }
0x1a47   : > { %v16391_v29 = vsel %vm831_vm0, 0.0, %v16390_v44  ;;  %v31647_v40 = vpop.permute.xlu2 %13901  ;;  %v18091_v44 = vsel %vm831_vm0, %v18090_v32, %v35174_v27  ;;  %v17254_v32 = vsel %vm831_vm0, %v17250_v0, %v17253_v46  ;;  %v35181_v27 = vld [vmem:[#allocation207_spill] sm:$0xff] }
0x1a48   : > { %v31672_v13 = vperm.slane %v18091_v44, %v28351_v41  ;;  %v31687_v19 = vperm.slane %v17254_v32, %v28621_v57  ;;  %v35186_v44 = vld [vmem:[#allocation190_spill] sm:$0xff] }
0x1a4a   : > { %16502 = vrot.lane.b32.xlu0 %v31620_v3, %s28227_s17  ;;  %35185 = vst [vmem:[#allocation52_spill] sm:$0xff] %v31687_v19  ;;  %v18096_v46 = vrot.slane %v31672_v13, 4  ;;  %v17265_v60 = vrot.slane %v31687_v19, 4 }
0x1a4c   : > { %v17266_v1 = vsel %vm831_vm0, 0.0, %v17265_v60 }
0x1a4d   : > { %15673 = vrot.lane.b32.xlu2 %v15604_v59, %s28228_s18  ;;  %v17281_v59 = vrot.slane %v35173_v47, 4  ;;  %v35180_v47 = vld [vmem:[#allocation194_spill] sm:$0xff] }
0x1a4f   : > { %v17282_v6 = vsel %vm831_vm0, %v35178_v49, %v17281_v59  ;;  %v17218_v59 = vsel %vm831_vm0, %v17217_v11, %v35184_v62  ;;  %v31701_v62 = vperm.slane %v16465_v55, %v28621_v57 }
0x1a50   : > { %v31684_v49 = vperm.slane %v17282_v6, %v28621_v57  ;;  %v17222_v11 = vperm.slane %v17218_v59, %v28351_v41 }
0x1a51   : > { %35187 = vst [vmem:[#allocation17_spill] sm:$0xff] %v31701_v62 }
0x1a52   : > { %16516 = vrot.lane.b32.xlu0 %v16421_v30, %s28228_s18  ;;  %v35175_v30 = vld [vmem:[#allocation211_spill] sm:$0xff]  ;;  %v17223_v32 = vrot.slane %v17222_v11, 4 }
0x1a55   : > { %16482 = vrot.lane.b32.xlu2 %v16391_v29, %s28226_s16  ;;  %v18084_v29 = vrot.slane %v35175_v30, 4  ;;  %v31677_v30 = vpop.permute.xlu2 %13915 }
0x1a56   : > { %35182 = vst [vmem:[#allocation51_spill] sm:$0xff] %v31677_v30 }
0x1a57   : > { %v18085_v63 = vsel %vm831_vm0, %v18084_v29, %v35181_v27  ;;  %v16448_v27 = vrot.slane %v31620_v3, 4 }
0x1a58   : > { %v31693_v29 = vperm.slane %v18085_v63, %v28351_v41 }
0x1a5a   : > { %17329 = vrot.lane.b32.xlu0 %v17264_v5, %s28226_s16  ;;  %v17211_v5 = vrot.slane %v35180_v47, 4  ;;  %v31695_v47 = vpop.permute.xlu0 %13899 }
0x1a5c   : > { %v17212_v0 = vsel %vm831_vm0, %v17211_v5, %v35186_v44  ;;  %v18097_v5 = vsel %vm831_vm0, %v18096_v46, %v31693_v29 }
0x1a5d   : > { %16498 = vrot.lane.b32.xlu2 %v31662_v15, %s28227_s17  ;;  %v17216_v6 = vperm.slane %v17212_v0, %v28351_v41  ;;  %v31710_v63 = vpop.permute.xlu2 %13929  ;;  %v31714_v55 = vperm.slane %v18097_v5, %v28621_v57  ;;  %v16449_v0 = vsel %vm831_vm0, 0.0, %v16448_v27  ;;  %v18154_v5 = vrot.slane %v35192_v16, 4 }
0x1a5e   : > { %35188 = vst [vmem:[#allocation59_spill] sm:$0xff] %v31710_v63 }
0x1a5f   : > { %35189 = vst [vmem:[#allocation49_spill] sm:$0xff] %v31714_v55  ;;  %v17224_v59 = vsel %vm831_vm0, %v17223_v32, %v17216_v6  ;;  %v18108_v3 = vrot.slane %v31714_v55, 4  ;;  %v35193_v32 = vld [vmem:[#allocation213_spill] sm:$0xff]  ;;  %v17225_v27 = vrot.slane %v17216_v6, 4 }
0x1a60   : > { %v31722_v46 = vperm.slane %v17224_v59, %v28621_v57 }
0x1a61   : > { %v18109_v19 = vsel %vm831_vm0, 0.0, %v18108_v3  ;;  %v35198_v3 = vld [vmem:[#allocation221_spill] sm:$0xff] }
0x1a62   : > { %17347 = vrot.lane.b32.xlu0 %v31684_v49, %s28227_s17  ;;  %v31717_v44 = vpop.permute.xlu0 %13913  ;;  %35191 = vst [vmem:[#allocation68_spill] sm:$0xff] %v31722_v46  ;;  %v17235_v60 = vrot.slane %v31722_v46, 4  ;;  %v35197_v46 = vld [vmem:[#allocation212_spill] sm:$0xff]  ;;  %v18901_v14 = vrot.slane %v35198_v3, 4  ;;  %v35203_v3 = vld [vmem:[#allocation219_spill] sm:$0xff] }
0x1a63   : > { %35190 = vst [vmem:[#allocation73_spill] sm:$0xff] %v31717_v44 }
0x1a64   : > { %v17236_v59 = vsel %vm831_vm0, 0.0, %v17235_v60  ;;  %v18941_v60 = vrot.slane %v30940_v54, 4 }
0x1a65   : > { %16504 = vrot.lane.b32.xlu2 %v31701_v62, %s28227_s17  ;;  %v18126_v62 = vrot.slane %v35193_v32, 4 }
0x1a67   : > { %v18127_v16 = vsel %vm831_vm0, %v35197_v46, %v18126_v62  ;;  %v35202_v46 = vld [vmem:[#allocation205_spill] sm:$0xff] }
0x1a68   : > { %v31747_v6 = vperm.slane %v18127_v16, %v28621_v57  ;;  %v35204_v16 = vld [vmem:[#allocation202_spill] sm:$0xff] }
0x1a6a   : > { %17361 = vrot.lane.b32.xlu0 %v17266_v1, %s28228_s18  ;;  %v31731_v1 = vpop.permute.xlu2 %13935  ;;  %v31733_v15 = vpop.permute.xlu0 %13919  ;;  %v18138_v54 = vrot.slane %v31747_v6, 4 }
0x1a6b   : > { %35194 = vst [vmem:[#allocation70_spill] sm:$0xff] %v31731_v1  ;;  %v35205_v1 = vld [vmem:[#allocation208_spill] sm:$0xff] }
0x1a6c   : > { %35195 = vst [vmem:[#allocation25_spill] sm:$0xff] %v31733_v15  ;;  %v35207_v15 = vld [vmem:[#allocation201_spill] sm:$0xff]  ;;  %v18139_v44 = vsel %vm831_vm0, 0.0, %v18138_v54  ;;  %v17293_v54 = vrot.slane %v31684_v49, 4 }
0x1a6d   : > { %16518 = vrot.lane.b32.xlu2 %v16449_v0, %s28228_s18  ;;  %v35196_v0 = vld [vmem:[#allocation215_spill] sm:$0xff] }
0x1a6e   : > { %v18155_v55 = vsel %vm831_vm0, %v35196_v0, %v18154_v5  ;;  %v18062_v0 = vrot.slane %v35202_v46, 4 }
0x1a6f   : > { %v31743_v32 = vperm.slane %v18155_v55, %v28621_v57 }
0x1a70   : > { %v18063_v63 = vsel %vm831_vm0, %v18062_v0, %v35208_v36 }
0x1a71   : > { %35199 = vst [vmem:[#allocation72_spill] sm:$0xff] %v31743_v32 }
0x1a72   : > { %18174 = vrot.lane.b32.xlu0 %v18109_v19, %s28226_s16  ;;  %v17226_v19 = vsel %vm831_vm0, %v17222_v11, %v17225_v27  ;;  %v31758_v55 = vpop.permute.xlu0 %13933  ;;  %v18907_v11 = vrot.slane %v35203_v3, 4  ;;  %v31761_v27 = vpop.permute.xlu2 %13949 }
0x1a73   : > { %v31755_v62 = vperm.slane %v17226_v19, %v28621_v57 }
0x1a75   : > { %17327 = vrot.lane.b32.xlu2 %v17236_v59, %s28226_s16  ;;  %v35200_v59 = vld [vmem:[#allocation218_spill] sm:$0xff]  ;;  %35201 = vst [vmem:[#allocation86_spill] sm:$0xff] %v31755_v62 }
0x1a76   : > { %v18902_v5 = vsel %vm831_vm0, %v18901_v14, %v35200_v59  ;;  %v18056_v14 = vrot.slane %v35205_v1, 4  ;;  %v35206_v59 = vld [vmem:[#allocation222_spill] sm:$0xff]  ;;  %v35211_v1 = vld [vmem:[#allocation204_spill] sm:$0xff] }
0x1a77   : > { %v31769_v19 = vperm.slane %v18902_v5, %v28351_v41  ;;  %v18942_v46 = vsel %vm831_vm0, %v18941_v60, %v35206_v59 }
0x1a78   : > { %v18057_v5 = vsel %vm831_vm0, %v18056_v14, %v35211_v1 }
0x1a79   : > { %v18915_v28 = vrot.slane %v31769_v19, 4  ;;  %v18061_v60 = vperm.slane %v18057_v5, %v28351_v41  ;;  %v17294_v5 = vsel %vm831_vm0, 0.0, %v17293_v54  ;;  %v35219_v54 = vld [vmem:[#allocation235_spill] sm:$0xff] }
0x1a7a   : > { %18194 = vrot.lane.b32.xlu0 %v31743_v32, %s28227_s17  ;;  %v17309_v32 = vrot.slane %v35204_v16, 4  ;;  %v31781_v16 = vperm.slane %v18942_v46, %v28621_v57  ;;  %v35214_v46 = vld [vmem:[#allocation228_spill] sm:$0xff] }
0x1a7c   : > { %v17310_v3 = vsel %vm831_vm0, %v35207_v15, %v17309_v32  ;;  %35210 = vst [vmem:[#allocation112_spill] sm:$0xff] %v31781_v16  ;;  %v18067_v15 = vperm.slane %v18063_v63, %v28351_v41  ;;  %v18953_v0 = vrot.slane %v31781_v16, 4  ;;  %v14795_v63 = vpop.permute.xlu2 %14794  ;;  %v35218_v16 = vld [vmem:[#allocation233_spill] sm:$0xff] }
0x1a7d   : > { %17343 = vrot.lane.b32.xlu2 %v31755_v62, %s28227_s17  ;;  %v18908_v62 = vsel %vm831_vm0, %v18907_v11, %v35209_v50  ;;  %v31789_v32 = vperm.slane %v17310_v3, %v28621_v57  ;;  %v18999_v3 = vrot.slane %v35214_v46, 4 }
0x1a7e   : > { %v31792_v36 = vperm.slane %v18908_v62, %v28351_v41  ;;  %v18068_v11 = vrot.slane %v18067_v15, 4  ;;  %v18954_v14 = vsel %vm831_vm0, 0.0, %v18953_v0  ;;  %v35217_v0 = vld [vmem:[#allocation227_spill] sm:$0xff] }
0x1a7f   : > { %35212 = vst [vmem:[#allocation8_spill] sm:$0xff] %v31789_v32 }
0x1a80   : > { %v18069_v59 = vsel %vm831_vm0, %v18068_v11, %v18061_v60  ;;  %v19746_v11 = vrot.slane %v35218_v16, 4 }
0x1a82   : > { %18208 = vrot.lane.b32.xlu0 %v18139_v44, %s28228_s18  ;;  %v18916_v44 = vsel %vm831_vm0, %v31792_v36, %v18915_v28  ;;  %v31814_v28 = vperm.slane %v18069_v59, %v28621_v57  ;;  %v19786_v59 = vrot.slane %v35219_v54, 4  ;;  %v35223_v54 = vld [vmem:[#allocation234_spill] sm:$0xff] }
0x1a83   : > { %v31805_v62 = vperm.slane %v18916_v44, %v28621_v57  ;;  %v19000_v44 = vsel %vm831_vm0, %v35217_v0, %v18999_v3  ;;  %v14837_v3 = vsel %vm991_vm1, %v31473_v20, %v14795_v63  ;;  %v18070_v0 = vrot.slane %v18061_v60, 4  ;;  %v35224_v60 = vld [vmem:[#allocation232_spill] sm:$0xff] }
0x1a84   : > { %v31794_v50 = vpop.permute.xlu0 %13947  ;;  %35216 = vst [vmem:[#allocation11_spill] sm:$0xff] %v31814_v28  ;;  %v19787_v20 = vsel %vm831_vm0, %v19786_v59, %v35223_v54  ;;  %v18098_v59 = vrot.slane %v31693_v29, 4 }
0x1a85   : > { %35213 = vst [vmem:[#allocation24_spill] sm:$0xff] %v31794_v50  ;;  %17349 = vrot.lane.b32.xlu2 %v31789_v32, %s28227_s17  ;;  %v18927_v49 = vrot.slane %v31805_v62, 4  ;;  %v14811_v32 = vpop.permute.xlu2 %14810 }
0x1a86   : > { %v14841_v16 = vsel %vm996_vm2, %v14837_v3, %v14811_v32  ;;  %v18071_v32 = vsel %vm831_vm0, %v18067_v15, %v18070_v0 }
0x1a87   : > { %v18928_v46 = vsel %vm831_vm0, 0.0, %v18927_v49  ;;  %v35221_v49 = vld [vmem:[#allocation231_spill] sm:$0xff] }
0x1a88   : > { %v19752_v26 = vrot.slane %v35221_v49, 4 }
0x1a8a   : > { %19019 = vrot.lane.b32.xlu0 %v18954_v14, %s28226_s16  ;;  %v18080_v14 = vrot.slane %v31814_v28, 4  ;;  %v19753_v63 = vsel %vm831_vm0, %v19752_v26, %v35224_v60 }
0x1a8c   : > { %v31810_v1 = vpop.permute.xlu0 %14796  ;;  %v18081_v30 = vsel %vm831_vm0, 0.0, %v18080_v14 }
0x1a8d   : > { %35215 = vst [vmem:[#allocation127_spill] sm:$0xff] %v31810_v1  ;;  %17363 = vrot.lane.b32.xlu2 %v17294_v5, %s28228_s18  ;;  %v31824_v1 = vperm.slane %v19000_v44, %v28621_v57  ;;  %v35220_v5 = vld [vmem:[#allocation230_spill] sm:$0xff]  ;;  %v31867_v49 = vpop.permute.xlu2 %14814 }
0x1a8e   : > { %v19747_v50 = vsel %vm831_vm0, %v19746_v11, %v35220_v5  ;;  %v19757_v5 = vperm.slane %v19753_v63, %v28351_v41  ;;  %35226 = vst [vmem:[#allocation31_spill] sm:$0xff] %v31867_v49  ;;  %v18913_v63 = vrot.slane %v31792_v36, 4 }
0x1a8f   : > { %v31841_v11 = vperm.slane %v19747_v50, %v28351_v41  ;;  %v31855_v50 = vperm.slane %v18071_v32, %v28621_v57  ;;  %v35228_v32 = vld [vmem:[#allocation240_spill] sm:$0xff] }
0x1a92   : > { %19049 = vrot.lane.b32.xlu0 %v18928_v46, %s28228_s18  ;;  %v19011_v46 = vrot.slane %v31824_v1, 4 }
0x1a94   : > { %v14827_v28 = vpop.permute.xlu0 %14826  ;;  %v19012_v14 = vsel %vm831_vm0, 0.0, %v19011_v46  ;;  %v35227_v46 = vld [vmem:[#allocation241_spill] sm:$0xff] }
0x1a95   : > { %v31836_v44 = vsel %vm1001_vm3, %v14841_v16, %v14827_v28  ;;  %18172 = vrot.lane.b32.xlu2 %v18081_v30, %s28226_s16  ;;  %v31850_v28 = vperm.slane %v19787_v20, %v28621_v57  ;;  %v19760_v30 = vrot.slane %v31841_v11, 4  ;;  %v18099_v16 = vsel %vm831_vm0, %v31672_v13, %v18098_v59  ;;  %v31891_v36 = vpop.permute.xlu2 %14828 }
0x1a96   : > { %35222 = vst [vmem:[#allocation16_spill] sm:$0xff] %v31836_v44  ;;  %v19844_v29 = vrot.slane %v35227_v46, 4  ;;  %v31872_v54 = vperm.slane %v18099_v16, %v28621_v57 }
0x1a97   : > { %35225 = vst [vmem:[#allocation63_spill] sm:$0xff] %v31850_v28  ;;  %v19798_v26 = vrot.slane %v31850_v28, 4  ;;  %v19761_v15 = vsel %vm831_vm0, %v19757_v5, %v19760_v30 }
0x1a98   : > { %v19769_v0 = vperm.slane %v19761_v15, %v28621_v57  ;;  %v19845_v60 = vsel %vm831_vm0, %v35228_v32, %v19844_v29  ;;  %v18110_v30 = vrot.slane %v31872_v54, 4  ;;  %v18914_v15 = vsel %vm831_vm0, %v18913_v63, %v31769_v19  ;;  %35232 = vst [vmem:[#allocation62_spill] sm:$0xff] %v31891_v36 }
0x1a99   : > { %v19799_v3 = vsel %vm831_vm0, 0.0, %v19798_v26  ;;  %v31883_v26 = vperm.slane %v19845_v60, %v28621_v57  ;;  %v31895_v29 = vperm.slane %v18914_v15, %v28621_v57 }
0x1a9a   : > { %19055 = vrot.lane.b32.xlu0 %v19012_v14, %s28228_s18  ;;  %v19772_v20 = vrot.slane %v19769_v0, 4  ;;  %v35229_v14 = vld [vmem:[#allocation26_spill] sm:$0xff]  ;;  %v18111_v46 = vsel %vm831_vm0, 0.0, %v18110_v30 }
0x1a9b   : > { %v20591_v13 = vrot.slane %v35229_v14, 4  ;;  %35230 = vst [vmem:[#allocation15_spill] sm:$0xff] %v31883_v26  ;;  %v19856_v19 = vrot.slane %v31883_v26, 4  ;;  %v18925_v63 = vrot.slane %v31895_v29, 4  ;;  %v35235_v14 = vld [vmem:[#allocation27_spill] sm:$0xff]  ;;  %v35402_v26 = vld [vmem:[#allocation20_spill] sm:$0xff] }
0x1a9c   : > { %v19773_v59 = vsel %vm831_vm0, 0.0, %v19772_v20  ;;  %35233 = vst [vmem:[#allocation21_spill] sm:$0xff] %v31895_v29  ;;  %v35234_v20 = vld [vmem:[#allocation39_spill] sm:$0xff] }
0x1a9d   : > { %18188 = vrot.lane.b32.xlu2 %v31855_v50, %s28227_s17  ;;  %v20597_v32 = vrot.slane %v35234_v20, 4  ;;  %v19857_v30 = vsel %vm831_vm0, 0.0, %v19856_v19  ;;  %v35237_v19 = vld [vmem:[#allocation225_spill] sm:$0xff] }
0x1aa2   : > { %19864 = vrot.lane.b32.xlu0 %v19799_v3, %s28226_s16  ;;  %v35231_v3 = vld [vmem:[#allocation65_spill] sm:$0xff] }
0x1aa3   : > { %v20592_v16 = vsel %vm831_vm0, %v20591_v13, %v35231_v3  ;;  %v20598_v13 = vsel %vm831_vm0, %v20597_v32, %v35235_v14 }
0x1aa4   : > { %v20602_v3 = vperm.slane %v20598_v13, %v28351_v41  ;;  %v35238_v13 = vld [vmem:[#allocation224_spill] sm:$0xff] }
0x1aa5   : > { %18192 = vrot.lane.b32.xlu2 %v31747_v6, %s28227_s17  ;;  %v20631_v6 = vrot.slane %v31093_v52, 4  ;;  %v20596_v52 = vperm.slane %v20592_v16, %v28351_v41  ;;  %v18926_v16 = vsel %vm831_vm0, 0.0, %v18925_v63 }
0x1aa7   : > { %v20632_v60 = vsel %vm831_vm0, %v20631_v6, %v31085_v8  ;;  %v20605_v15 = vrot.slane %v20596_v52, 4 }
0x1aa9   : > { %v20606_v6 = vsel %vm831_vm0, %v20602_v3, %v20605_v15 }
0x1aaa   : > { %19894 = vrot.lane.b32.xlu0 %v19773_v59, %s28228_s18  ;;  %v31908_v59 = vperm.slane %v20632_v60, %v28621_v57  ;;  %v20614_v32 = vperm.slane %v20606_v6, %v28621_v57  ;;  %v18971_v60 = vrot.slane %v35237_v19, 4 }
0x1aac   : > { %35236 = vst [vmem:[#allocation12_spill] sm:$0xff] %v31908_v59  ;;  %v20643_v8 = vrot.slane %v31908_v59, 4  ;;  %v20617_v63 = vrot.slane %v20614_v32, 4  ;;  %v20603_v59 = vrot.slane %v20602_v3, 4 }
0x1aad   : > { %18206 = vrot.lane.b32.xlu2 %v18111_v46, %s28228_s18  ;;  %v31916_v46 = vpop.permute.xlu2 %15637 }
0x1aae   : > { %v20644_v20 = vsel %vm831_vm0, 0.0, %v20643_v8  ;;  %v20618_v15 = vsel %vm831_vm0, 0.0, %v20617_v63  ;;  %v35239_v8 = vld [vmem:[#allocation223_spill] sm:$0xff] }
0x1aaf   : > { %v31935_v6 = vperm.slane %v35239_v8, %v28621_v57 }
0x1ab2   : > { %19900 = vrot.lane.b32.xlu0 %v19857_v30, %s28228_s18  ;;  %v18972_v30 = vsel %vm831_vm0, %v35238_v13, %v18971_v60 }
0x1ab5   : > { %19017 = vrot.lane.b32.xlu2 %v18926_v16, %s28226_s16  ;;  %v31924_v14 = vpop.permute.xlu2 %15653  ;;  %v31931_v16 = vperm.slane %v18972_v30, %v28621_v57 }
0x1aba   : > { %20709 = vrot.lane.b32.xlu0 %v20644_v20, %s28226_s16  ;;  %v18955_v20 = vrot.slane %v31935_v6, 4 }
0x1abc   : > { %v18956_v63 = vsel %vm831_vm0, 0.0, %v18955_v20  ;;  %v35243_v20 = vld [vmem:[#allocation237_spill] sm:$0xff] }
0x1abd   : > { %19033 = vrot.lane.b32.xlu2 %v31805_v62, %s28227_s17  ;;  %v19758_v62 = vrot.slane %v19757_v5, 4  ;;  %v31942_v60 = vpop.permute.xlu2 %15659 }
0x1abf   : > { %v19759_v19 = vsel %vm831_vm0, %v19758_v62, %v31841_v11  ;;  %v35241_v11 = vld [vmem:[#allocation238_spill] sm:$0xff] }
0x1ac0   : > { %v31946_v13 = vperm.slane %v19759_v19, %v28621_v57  ;;  %v19816_v8 = vrot.slane %v35241_v11, 4 }
0x1ac2   : > { %20739 = vrot.lane.b32.xlu0 %v20618_v15, %s28228_s18  ;;  %35240 = vst [vmem:[#allocation142_spill] sm:$0xff] %v31946_v13  ;;  %v19770_v30 = vrot.slane %v31946_v13, 4  ;;  %v19817_v19 = vsel %vm831_vm0, %v35243_v20, %v19816_v8 }
0x1ac3   : > { %v31961_v49 = vperm.slane %v19817_v19, %v28621_v57 }
0x1ac4   : > { %v19771_v5 = vsel %vm831_vm0, 0.0, %v19770_v30 }
0x1ac5   : > { %19037 = vrot.lane.b32.xlu2 %v31931_v16, %s28227_s17  ;;  %v31950_v15 = vpop.permute.xlu2 %15673  ;;  %35244 = vst [vmem:[#allocation169_spill] sm:$0xff] %v31961_v49 }
0x1acd   : > { %19051 = vrot.lane.b32.xlu2 %v18956_v63, %s28228_s18  ;;  %v31956_v62 = vpop.permute.xlu2 %16482  ;;  %v35245_v63 = vld [vmem:[#allocation236_spill] sm:$0xff] }
0x1ace   : > { %35242 = vst [vmem:[#allocation154_spill] sm:$0xff] %v31956_v62  ;;  %v31965_v44 = vperm.slane %v35245_v63, %v28621_v57  ;;  %v20661_v63 = vrot.slane %v31107_v35, 4 }
0x1ad5   : > { %19862 = vrot.lane.b32.xlu2 %v19771_v5, %s28226_s16  ;;  %v31969_v30 = vpop.permute.xlu2 %16498  ;;  %v20604_v5 = vsel %vm831_vm0, %v20603_v59, %v20596_v52  ;;  %v20662_v52 = vsel %vm831_vm0, %v31110_v17, %v20661_v63 }
0x1ad6   : > { %35246 = vst [vmem:[#allocation23_spill] sm:$0xff] %v31969_v30  ;;  %v31975_v8 = vperm.slane %v20604_v5, %v28621_v57  ;;  %v31990_v59 = vperm.slane %v20662_v52, %v28621_v57 }
0x1ad8   : > { %35247 = vst [vmem:[#allocation61_spill] sm:$0xff] %v31975_v8  ;;  %v20615_v20 = vrot.slane %v31975_v8, 4 }
0x1ad9   : > { %35249 = vst [vmem:[#allocation50_spill] sm:$0xff] %v31990_v59 }
0x1ada   : > { %v20616_v3 = vsel %vm831_vm0, 0.0, %v20615_v20 }
0x1add   : > { %19878 = vrot.lane.b32.xlu2 %v19769_v0, %s28227_s17  ;;  %v19800_v0 = vrot.slane %v31965_v44, 4  ;;  %v31979_v19 = vpop.permute.xlu2 %16504 }
0x1ade   : > { %35248 = vst [vmem:[#allocation81_spill] sm:$0xff] %v31979_v19 }
0x1adf   : > { %v19801_v11 = vsel %vm831_vm0, 0.0, %v19800_v0  ;;  %v31994_v0 = vperm.slane %v31097_v2, %v28621_v57  ;;  %v35254_v2 = vld [vmem:[#allocation30_spill] sm:$0xff] }
0x1ae0   : > { %v20069_v63 = vrot.slane %v35254_v2, 4 }
0x1ae1   : > { %35250 = vst [vmem:[#allocation79_spill] sm:$0xff] %v31994_v0  ;;  %v20645_v35 = vrot.slane %v31994_v0, 4 }
0x1ae5   : > { %19882 = vrot.lane.b32.xlu2 %v31961_v49, %s28227_s17  ;;  %v31984_v28 = vpop.permute.xlu2 %16518 }
0x1aed   : > { %19896 = vrot.lane.b32.xlu2 %v19801_v11, %s28228_s18  ;;  %v31998_v5 = vpop.permute.xlu2 %17327  ;;  %v20646_v11 = vsel %vm831_vm0, 0.0, %v20645_v35 }
0x1af5   : > { %20707 = vrot.lane.b32.xlu2 %v20616_v3, %s28226_s16 }
0x1afd   : > { %20723 = vrot.lane.b32.xlu2 %v20614_v32, %s28227_s17  ;;  %v32003_v32 = vpop.permute.xlu2 %17343 }
0x1b05   : > { %20727 = vrot.lane.b32.xlu2 %v31990_v59, %s28227_s17  ;;  %v32005_v17 = vpop.permute.xlu2 %17349 }
0x1b06   : > { %35251 = vst [vmem:[#allocation99_spill] sm:$0xff] %v32005_v17  ;;  %v28009_v17 = vld [vmem:[%s28325_s15 + $0xe0] sm:$0xff] }
0x1b0d   : > { %20741 = vrot.lane.b32.xlu2 %v20646_v11, %s28228_s18  ;;  %v32007_v20 = vpop.permute.xlu2 %17363 }
0x1b0e   : > { %35252 = vst [vmem:[#allocation94_spill] sm:$0xff] %v32007_v20 }
0x1b15   : > { %v32009_v3 = vpop.permute.xlu2 %18172 }
0x1b16   : > { %35253 = vst [vmem:[#allocation179_spill] sm:$0xff] %v32009_v3 }
0x1b1d   : > { %v32012_v52 = vpop.permute.xlu2 %18188 }
0x1b1e   : > { %35255 = vst [vmem:[#allocation45_spill] sm:$0xff] %v32012_v52  ;;  %v32049_v52 = vpop.permute.xlu0 %15639 }
0x1b1f   : > { %35271 = vst [vmem:[#allocation95_spill] sm:$0xff] %v32049_v52 }
0x1b25   : > { %v32014_v8 = vpop.permute.xlu2 %18192 }
0x1b26   : > { %35256 = vst [vmem:[#allocation96_spill] sm:$0xff] %v32014_v8 }
0x1b2d   : > { %v32016_v29 = vpop.permute.xlu2 %18206 }
0x1b2e   : > { %35257 = vst [vmem:[#allocation111_spill] sm:$0xff] %v32016_v29  ;;  %v28005_v29 = vld [vmem:[%s28325_s15 + $0x60] sm:$0xff] }
0x1b2f   : > { %20930 = vxpose.xlu1.b32.start.end [1/1] (short) (narrow) %v28005_v29, 16 }
0x1b33   : > { %20495 = vxpose.xlu2.b32.start.end [1/1] (short) (narrow) %v20069_v63, 8 }
0x1b35   : > { %v32018_v35 = vpop.permute.xlu2 %19017 }
0x1b36   : > { %35258 = vst [vmem:[#allocation56_spill] sm:$0xff] %v32018_v35 }
0x1b3d   : > { %v32020_v11 = vpop.permute.xlu2 %19033 }
0x1b3e   : > { %35259 = vst [vmem:[#allocation186_spill] sm:$0xff] %v32020_v11  ;;  %v20479_v11 = vpop.trf.xlu1 }
0x1b45   : > { %v32022_v13 = vpop.permute.xlu2 %19037 }
0x1b46   : > { %35260 = vst [vmem:[#allocation107_spill] sm:$0xff] %v32022_v13  ;;  %v20675_v13 = vrot.slane %v31564_v38, 4 }
0x1b4d   : > { %v32024_v19 = vpop.permute.xlu2 %19051 }
0x1b4e   : > { %35261 = vst [vmem:[#allocation33_spill] sm:$0xff] %v32024_v19 }
0x1b55   : > { %v32026_v20 = vpop.permute.xlu2 %19862 }
0x1b56   : > { %35262 = vst [vmem:[#allocation110_spill] sm:$0xff] %v32026_v20  ;;  %v20575_v20 = vpop.trf.xlu1 }
0x1b5d   : > { %v32028_v30 = vpop.permute.xlu2 %19878 }
0x1b5e   : > { %35263 = vst [vmem:[#allocation105_spill] sm:$0xff] %v32028_v30  ;;  %v20676_v30 = vsel %vm831_vm0, %v20675_v13, %v20479_v11 }
0x1b65   : > { %v32030_v2 = vpop.permute.xlu2 %19882 }
0x1b66   : > { %35264 = vst [vmem:[#allocation100_spill] sm:$0xff] %v32030_v2  ;;  %v20681_v2 = vrot.slane %v20575_v20, 4  ;;  %v28006_v20 = vld [vmem:[%s28325_s15 + $0x68] sm:$0xff] }
0x1b67   : > { %20994 = vxpose.xlu2.b32.start.end [1/1] (short) (narrow) %v28006_v20, 16 }
0x1b6d   : > { %v32032_v63 = vpop.permute.xlu2 %19896 }
0x1b6e   : > { %35265 = vst [vmem:[#allocation93_spill] sm:$0xff] %v32032_v63  ;;  %v32046_v63 = vperm.slane %v20676_v30, %v28351_v41 }
0x1b70   : > { %35270 = vst [vmem:[#allocation118_spill] sm:$0xff] %v32046_v63 }
0x1b75   : > { %v32034_v62 = vpop.permute.xlu2 %20707 }
0x1b76   : > { %35266 = vst [vmem:[#allocation98_spill] sm:$0xff] %v32034_v62 }
0x1b7d   : > { %v32036_v59 = vpop.permute.xlu2 %20723 }
0x1b7e   : > { %35267 = vst [vmem:[#allocation18_spill] sm:$0xff] %v32036_v59 }
0x1b85   : > { %v32039_v35 = vpop.permute.xlu2 %20727 }
0x1b86   : > { %35268 = vst [vmem:[#allocation58_spill] sm:$0xff] %v32039_v35  ;;  %v20689_v35 = vrot.slane %v32046_v63, 4 }
0x1b8d   : > { %v32042_v19 = vpop.permute.xlu2 %20741 }
0x1b8e   : > { %35269 = vst [vmem:[#allocation85_spill] sm:$0xff] %v32042_v19 }
0x1bcc   : > { %v20511_v62 = vpop.trf.xlu2 }
0x1bcd   : > { %v20682_v59 = vsel %vm831_vm0, %v20681_v2, %v20511_v62  ;;  %v32063_v62 = vpop.permute.xlu0 %15657  ;;  %v20926_v2 = vrot.slane %v28005_v29, 4 }
0x1bce   : > { %v32053_v3 = vperm.slane %v20682_v59, %v28351_v41 }
0x1bd0   : > { %35272 = vst [vmem:[#allocation128_spill] sm:$0xff] %v32053_v3  ;;  %v20690_v38 = vsel %vm831_vm0, %v32053_v3, %v20689_v35 }
0x1bd1   : > { %v32058_v19 = vperm.slane %v20690_v38, %v28621_v57  ;;  %v20927_v38 = vrot.slane %v28006_v20, 4 }
0x1bd3   : > { %35273 = vst [vmem:[#allocation103_spill] sm:$0xff] %v32058_v19  ;;  %v20701_v13 = vrot.slane %v32058_v19, 4  ;;  %v20946_v20 = vpop.trf.xlu1 }
0x1bd4   : > { %21082 = vxpose.xlu2.b32.start.end [1/1] (short) (narrow) %v20946_v20, 8 }
0x1bd5   : > { %v20702_v30 = vsel %vm831_vm0, 0.0, %v20701_v13  ;;  %v32066_v11 = vpop.permute.xlu0 %15671 }
0x1bd6   : > { %20745 = vrot.lane.b32.xlu0 %v20702_v30, %s28228_s18  ;;  %35274 = vst [vmem:[#allocation22_spill] sm:$0xff] %v32066_v11 }
0x1bdb   : > { %v20947_v8 = vpop.trf.xlu1 }
0x1bdc   : > { %v21067_v3 = vrot.slane %v20947_v8, 4  ;;  %21146 = vxpose.xlu1.b32.start.end [1/1] (short) (narrow) %v20947_v8, 8 }
0x1bdd   : > { %v32068_v59 = vpop.permute.xlu0 %16484 }
0x1bde   : > { %21178 = vxpose.xlu2.b32.start.end [1/1] (short) (narrow) %v21067_v3, 8 }
0x1be5   : > { %v32070_v52 = vpop.permute.xlu0 %16502 }
0x1bed   : > { %v32072_v35 = vpop.permute.xlu0 %16516 }
0x1bf5   : > { %v32074_v19 = vpop.permute.xlu0 %17329 }
0x1bf8   : > { %20962 = vxpose.xlu0.b32.start.end [1/1] (short) (narrow) %v20926_v2, 16 }
0x1bfd   : > { %v32076_v13 = vpop.permute.xlu0 %17347 }
0x1bfe   : > { %35275 = vst [vmem:[#allocation106_spill] sm:$0xff] %v32076_v13 }
0x1c05   : > { %v32078_v30 = vpop.permute.xlu0 %17361 }
0x1c08   : > { %21026 = vxpose.xlu0.b32.start.end [1/1] (short) (narrow) %v20927_v38, 16  ;;  %v21066_v38 = vrot.slane %v20946_v20, 4  ;;  %v21010_v20 = vpop.trf.xlu2 }
0x1c09   : > { %v21070_v3 = vrot.slane %v21010_v20, 4 }
0x1c0d   : > { %v32080_v0 = vpop.permute.xlu0 %18174 }
0x1c0e   : > { %35276 = vst [vmem:[#allocation123_spill] sm:$0xff] %v32080_v0 }
0x1c10   : > { %v21011_v8 = vpop.trf.xlu2 }
0x1c15   : > { %v32082_v36 = vpop.permute.xlu0 %18194 }
0x1c16   : > { %35277 = vst [vmem:[#allocation91_spill] sm:$0xff] %v32082_v36 }
0x1c18   : > { %21114 = vxpose.xlu0.b32.start.end [1/1] (short) (narrow) %v21066_v38, 8 }
0x1c1d   : > { %v32084_v11 = vpop.permute.xlu0 %18208 }
0x1c1e   : > { %35278 = vst [vmem:[#allocation113_spill] sm:$0xff] %v32084_v11 }
0x1c25   : > { %v32086_v29 = vpop.permute.xlu0 %19019 }
0x1c26   : > { %35279 = vst [vmem:[#allocation125_spill] sm:$0xff] %v32086_v29 }
0x1c2d   : > { %v32088_v63 = vpop.permute.xlu0 %19049 }
0x1c2e   : > { %35280 = vst [vmem:[#allocation101_spill] sm:$0xff] %v32088_v63 }
0x1c35   : > { %v32090_v2 = vpop.permute.xlu0 %19055 }
0x1c36   : > { %35281 = vst [vmem:[#allocation38_spill] sm:$0xff] %v32090_v2 }
0x1c3d   : > { %v32092_v13 = vpop.permute.xlu0 %19864 }
0x1c3e   : > { %35282 = vst [vmem:[#allocation104_spill] sm:$0xff] %v32092_v13 }
0x1c45   : > { %v32094_v0 = vpop.permute.xlu0 %19894 }
0x1c46   : > { %35283 = vst [vmem:[#allocation119_spill] sm:$0xff] %v32094_v0 }
0x1c4d   : > { %v32096_v36 = vpop.permute.xlu0 %19900 }
0x1c4e   : > { %35284 = vst [vmem:[#allocation122_spill] sm:$0xff] %v32096_v36  ;;  %v21071_v36 = vrot.slane %v21011_v8, 4 }
0x1c55   : > { %v32098_v11 = vpop.permute.xlu0 %20709 }
0x1c56   : > { %35285 = vst [vmem:[#allocation136_spill] sm:$0xff] %v32098_v11 }
0x1c5d   : > { %v32100_v29 = vpop.permute.xlu0 %20739 }
0x1c5e   : > { %35286 = vst [vmem:[#allocation132_spill] sm:$0xff] %v32100_v29 }
0x1c65   : > { %v32102_v63 = vpop.permute.xlu0 %20745 }
0x1c66   : > { %35287 = vst [vmem:[#allocation120_spill] sm:$0xff] %v32102_v63 }
0x1c9c   : > { %v20978_v2 = vpop.trf.xlu0 }
0x1c9d   : > { %v21068_v49 = vrot.slane %v20978_v2, 4  ;;  %21210 = vxpose.xlu0.b32.start.end [1/1] (short) (narrow) %v20978_v2, 8 }
0x1c9f   : > { %21242 = vxpose.xlu1.b32.start.end [1/1] (short) (narrow) %v21068_v49, 8  ;;  %v28007_v49 = vld [vmem:[%s28325_s15 + $0x70] sm:$0xff] }
0x1ca0   : > { %v21771_v0 = vrot.slane %v28007_v49, 4 }
0x1ca4   : > { %v20979_v38 = vpop.trf.xlu0 }
0x1ca5   : > { %v21069_v13 = vrot.slane %v20979_v38, 4  ;;  %21274 = vxpose.xlu2.b32.start.end [1/1] (short) (narrow) %v20979_v38, 8  ;;  %v32106_v38 = vpop.trf.xlu2 }
0x1ca6   : > { %35288 = vst [vmem:[#allocation109_spill] sm:$0xff] %v32106_v38 }
0x1ca7   : > { %21338 = vxpose.xlu1.b32.start.end [1/1] (short) (narrow) %v21010_v20, 8  ;;  %21306 = vxpose.xlu0.b32.start.end [1/1] (short) (narrow) %v21069_v13, 8  ;;  %v28008_v13 = vld [vmem:[%s28325_s15 + $0x78] sm:$0xff] }
0x1ca8   : > { %v21772_v20 = vrot.slane %v28008_v13, 4 }
0x1cac   : > { %v21042_v11 = vpop.trf.xlu0 }
0x1cad   : > { %21370 = vxpose.xlu2.b32.start.end [1/1] (short) (narrow) %v21070_v3, 8  ;;  %v21072_v29 = vrot.slane %v21042_v11, 4 }
0x1caf   : > { %21434 = vxpose.xlu1.b32.start.end [1/1] (short) (narrow) %v21071_v36, 8  ;;  %21402 = vxpose.xlu0.b32.start.end [1/1] (short) (narrow) %v21011_v8, 8  ;;  %v32110_v36 = vpop.trf.xlu1  ;;  %v32112_v8 = vpop.trf.xlu2 }
0x1cb0   : > { %35290 = vst [vmem:[#allocation130_spill] sm:$0xff] %v32110_v36 }
0x1cb1   : > { %35291 = vst [vmem:[#allocation134_spill] sm:$0xff] %v32112_v8 }
0x1cb4   : > { %v21043_v63 = vpop.trf.xlu0 }
0x1cb5   : > { %21466 = vxpose.xlu2.b32.start.end [1/1] (short) (narrow) %v21042_v11, 8  ;;  %v21073_v2 = vrot.slane %v21043_v63, 4 }
0x1cb7   : > { %21498 = vxpose.xlu0.b32.start.end [1/1] (short) (narrow) %v21072_v29, 8  ;;  %21530 = vxpose.xlu1.b32.start.end [1/1] (short) (narrow) %v21043_v63, 8 }
0x1cbc   : > { %v32108_v3 = vpop.trf.xlu0 }
0x1cbd   : > { %21562 = vxpose.xlu2.b32.start.end [1/1] (short) (narrow) %v21073_v2, 8  ;;  %35289 = vst [vmem:[#allocation97_spill] sm:$0xff] %v32108_v3 }
0x1cbf   : > { %21775 = vxpose.xlu1.b32.start.end [1/1] (short) (narrow) %v28007_v49, 16  ;;  %21807 = vxpose.xlu0.b32.start.end [1/1] (short) (narrow) %v21771_v0, 16 }
0x1cc5   : > { %21839 = vxpose.xlu2.b32.start.end [1/1] (short) (narrow) %v28008_v13, 16 }
0x1ccf   : > { %21871 = vxpose.xlu0.b32.start.end [1/1] (short) (narrow) %v21772_v20, 16 }
0x1d3e   : > { %v32118_v63 = vpop.trf.xlu2 }
0x1d3f   : > { %35294 = vst [vmem:[#allocation126_spill] sm:$0xff] %v32118_v63 }
0x1d41   : > { %v32114_v11 = vpop.trf.xlu0 }
0x1d42   : > { %35292 = vst [vmem:[#allocation88_spill] sm:$0xff] %v32114_v11 }
0x1d43   : > { %v32116_v29 = vpop.trf.xlu1 }
0x1d44   : > { %35293 = vst [vmem:[#allocation160_spill] sm:$0xff] %v32116_v29 }
0x1d46   : > { %v32128_v20 = vpop.trf.xlu2 }
0x1d47   : > { %35299 = vst [vmem:[#allocation168_spill] sm:$0xff] %v32128_v20 }
0x1d4b   : > { %v32120_v49 = vpop.trf.xlu1  ;;  %v32122_v0 = vpop.trf.xlu0 }
0x1d4c   : > { %35295 = vst [vmem:[#allocation148_spill] sm:$0xff] %v32120_v49 }
0x1d4d   : > { %35296 = vst [vmem:[#allocation141_spill] sm:$0xff] %v32122_v0 }
0x1d4e   : > { %v32134_v3 = vpop.trf.xlu2 }
0x1d4f   : > { %35302 = vst [vmem:[#allocation129_spill] sm:$0xff] %v32134_v3 }
0x1d53   : > { %v32124_v2 = vpop.trf.xlu1  ;;  %v32126_v13 = vpop.trf.xlu0 }
0x1d54   : > { %35297 = vst [vmem:[#allocation133_spill] sm:$0xff] %v32124_v2 }
0x1d55   : > { %35298 = vst [vmem:[#allocation82_spill] sm:$0xff] %v32126_v13 }
0x1d56   : > { %v32136_v49 = vpop.trf.xlu2 }
0x1d57   : > { %35303 = vst [vmem:[#allocation139_spill] sm:$0xff] %v32136_v49 }
0x1d5b   : > { %v32130_v38 = vpop.trf.xlu1  ;;  %v32132_v36 = vpop.trf.xlu0 }
0x1d5c   : > { %35300 = vst [vmem:[#allocation153_spill] sm:$0xff] %v32130_v38 }
0x1d5d   : > { %35301 = vst [vmem:[#allocation158_spill] sm:$0xff] %v32132_v36 }
0x1d5e   : > { %v21855_v20 = vpop.trf.xlu2 }
0x1d5f   : > { %v21915_v3 = vrot.slane %v21855_v20, 4 }
0x1d63   : > { %v21791_v8 = vpop.trf.xlu1  ;;  %v21823_v63 = vpop.trf.xlu0 }
0x1d64   : > { %v21911_v11 = vrot.slane %v21791_v8, 4  ;;  %21927 = vxpose.xlu2.b32.start.end [1/1] (short) (narrow) %v21791_v8, 8  ;;  %v21913_v38 = vrot.slane %v21823_v63, 4 }
0x1d66   : > { %21959 = vxpose.xlu1.b32.start.end [1/1] (short) (narrow) %v21911_v11, 8  ;;  %v21856_v36 = vpop.trf.xlu2 }
0x1d67   : > { %v21916_v49 = vrot.slane %v21856_v36, 4 }
0x1d6b   : > { %v21792_v29 = vpop.trf.xlu1  ;;  %v21824_v13 = vpop.trf.xlu0 }
0x1d6c   : > { %v21912_v0 = vrot.slane %v21792_v29, 4  ;;  %21991 = vxpose.xlu0.b32.start.end [1/1] (short) (narrow) %v21792_v29, 8  ;;  %v21914_v2 = vrot.slane %v21824_v13, 4 }
0x1d6e   : > { %22023 = vxpose.xlu2.b32.start.end [1/1] (short) (narrow) %v21912_v0, 8  ;;  %22055 = vxpose.xlu1.b32.start.end [1/1] (short) (narrow) %v21823_v63, 8  ;;  %v28010_v63 = vld [vmem:[%s28325_s15 + $0xe8] sm:$0xff] }
0x1d73   : > { %v21887_v8 = vpop.trf.xlu0 }
0x1d74   : > { %22119 = vxpose.xlu0.b32.start.end [1/1] (short) (narrow) %v21824_v13, 8  ;;  %v21917_v11 = vrot.slane %v21887_v8, 4 }
0x1d76   : > { %22087 = vxpose.xlu2.b32.start.end [1/1] (short) (narrow) %v21913_v38, 8  ;;  %22151 = vxpose.xlu1.b32.start.end [1/1] (short) (narrow) %v21914_v2, 8  ;;  %v22616_v38 = vrot.slane %v28009_v17, 4  ;;  %v22617_v2 = vrot.slane %v28010_v63, 4 }
0x1d7b   : > { %v21888_v29 = vpop.trf.xlu0 }
0x1d7c   : > { %22215 = vxpose.xlu0.b32.start.end [1/1] (short) (narrow) %v21915_v3, 8  ;;  %v21918_v0 = vrot.slane %v21888_v29, 4 }
0x1d7e   : > { %22183 = vxpose.xlu2.b32.start.end [1/1] (short) (narrow) %v21855_v20, 8  ;;  %22247 = vxpose.xlu1.b32.start.end [1/1] (short) (narrow) %v21856_v36, 8 }
0x1d84   : > { %22311 = vxpose.xlu0.b32.start.end [1/1] (short) (narrow) %v21887_v8, 8 }
0x1d86   : > { %22279 = vxpose.xlu2.b32.start.end [1/1] (short) (narrow) %v21916_v49, 8  ;;  %22343 = vxpose.xlu1.b32.start.end [1/1] (short) (narrow) %v21917_v11, 8 }
0x1d8c   : > { %22407 = vxpose.xlu0.b32.start.end [1/1] (short) (narrow) %v21918_v0, 8 }
0x1d8e   : > { %22620 = vxpose.xlu1.b32.start.end [1/1] (short) (narrow) %v28009_v17, 16  ;;  %22375 = vxpose.xlu2.b32.start.end [1/1] (short) (narrow) %v21888_v29, 8 }
0x1d94   : > { %22652 = vxpose.xlu0.b32.start.end [1/1] (short) (narrow) %v22616_v38, 16 }
0x1d96   : > { %22684 = vxpose.xlu2.b32.start.end [1/1] (short) (narrow) %v28010_v63, 16 }
0x1da4   : > { %22716 = vxpose.xlu0.b32.start.end [1/1] (short) (narrow) %v22617_v2, 16 }
0x1dfd   : > { %v32140_v3 = vpop.trf.xlu2 }
0x1dfe   : > { %35304 = vst [vmem:[#allocation152_spill] sm:$0xff] %v32140_v3 }
0x1e07   : > { %v32144_v36 = vpop.trf.xlu2 }
0x1e08   : > { %35306 = vst [vmem:[#allocation138_spill] sm:$0xff] %v32144_v36 }
0x1e0a   : > { %v32142_v13 = vpop.trf.xlu1 }
0x1e0b   : > { %35305 = vst [vmem:[#allocation146_spill] sm:$0xff] %v32142_v13 }
0x1e0f   : > { %v32152_v11 = vpop.trf.xlu2 }
0x1e10   : > { %v32146_v20 = vpop.trf.xlu0  ;;  %35310 = vst [vmem:[#allocation144_spill] sm:$0xff] %v32152_v11 }
0x1e11   : > { %35307 = vst [vmem:[#allocation147_spill] sm:$0xff] %v32146_v20 }
0x1e12   : > { %v32148_v49 = vpop.trf.xlu1 }
0x1e13   : > { %35308 = vst [vmem:[#allocation83_spill] sm:$0xff] %v32148_v49 }
0x1e17   : > { %v32160_v38 = vpop.trf.xlu2 }
0x1e18   : > { %v32150_v8 = vpop.trf.xlu0  ;;  %35314 = vst [vmem:[#allocation170_spill] sm:$0xff] %v32160_v38 }
0x1e19   : > { %35309 = vst [vmem:[#allocation164_spill] sm:$0xff] %v32150_v8 }
0x1e1a   : > { %v32154_v17 = vpop.trf.xlu1 }
0x1e1b   : > { %35311 = vst [vmem:[#allocation175_spill] sm:$0xff] %v32154_v17 }
0x1e1f   : > { %v32166_v3 = vpop.trf.xlu2 }
0x1e20   : > { %v32156_v29 = vpop.trf.xlu0  ;;  %35317 = vst [vmem:[#allocation171_spill] sm:$0xff] %v32166_v3  ;;  %v28011_v3 = vld [vmem:[%s28325_s15 + $0xf0] sm:$0xff] }
0x1e21   : > { %35312 = vst [vmem:[#allocation162_spill] sm:$0xff] %v32156_v29 }
0x1e22   : > { %v32158_v0 = vpop.trf.xlu1 }
0x1e23   : > { %35313 = vst [vmem:[#allocation167_spill] sm:$0xff] %v32158_v0 }
0x1e27   : > { %v32170_v11 = vpop.trf.xlu2 }
0x1e28   : > { %v32162_v63 = vpop.trf.xlu0  ;;  %35319 = vst [vmem:[#allocation156_spill] sm:$0xff] %v32170_v11 }
0x1e29   : > { %35315 = vst [vmem:[#allocation172_spill] sm:$0xff] %v32162_v63 }
0x1e2a   : > { %v32164_v2 = vpop.trf.xlu1 }
0x1e2b   : > { %35316 = vst [vmem:[#allocation166_spill] sm:$0xff] %v32164_v2 }
0x1e2f   : > { %v22700_v63 = vpop.trf.xlu2 }
0x1e30   : > { %v32168_v13 = vpop.trf.xlu0 }
0x1e31   : > { %35318 = vst [vmem:[#allocation157_spill] sm:$0xff] %v32168_v13  ;;  %v22760_v13 = vrot.slane %v22700_v63, 4 }
0x1e32   : > { %v22636_v49 = vpop.trf.xlu1 }
0x1e33   : > { %v22756_v8 = vrot.slane %v22636_v49, 4  ;;  %22772 = vxpose.xlu2.b32.start.end [1/1] (short) (narrow) %v22636_v49, 8 }
0x1e35   : > { %22804 = vxpose.xlu1.b32.start.end [1/1] (short) (narrow) %v22756_v8, 8 }
0x1e37   : > { %v22701_v17 = vpop.trf.xlu2 }
0x1e38   : > { %v22668_v20 = vpop.trf.xlu0  ;;  %v22761_v11 = vrot.slane %v22701_v17, 4 }
0x1e39   : > { %v22758_v2 = vrot.slane %v22668_v20, 4 }
0x1e3a   : > { %v22637_v29 = vpop.trf.xlu1 }
0x1e3b   : > { %v22757_v36 = vrot.slane %v22637_v29, 4  ;;  %22836 = vxpose.xlu0.b32.start.end [1/1] (short) (narrow) %v22637_v29, 8 }
0x1e3d   : > { %22868 = vxpose.xlu2.b32.start.end [1/1] (short) (narrow) %v22757_v36, 8  ;;  %22900 = vxpose.xlu1.b32.start.end [1/1] (short) (narrow) %v22668_v20, 8  ;;  %v23461_v20 = vrot.slane %v28011_v3, 4 }
0x1e40   : > { %v22669_v38 = vpop.trf.xlu0 }
0x1e41   : > { %v22759_v0 = vrot.slane %v22669_v38, 4 }
0x1e43   : > { %22964 = vxpose.xlu0.b32.start.end [1/1] (short) (narrow) %v22669_v38, 8 }
0x1e45   : > { %22932 = vxpose.xlu2.b32.start.end [1/1] (short) (narrow) %v22758_v2, 8  ;;  %22996 = vxpose.xlu1.b32.start.end [1/1] (short) (narrow) %v22759_v0, 8  ;;  %v28012_v0 = vld [vmem:[%s28325_s15 + $0xf8] sm:$0xff] }
0x1e46   : > { %v23462_v38 = vrot.slane %v28012_v0, 4 }
0x1e48   : > { %v22732_v49 = vpop.trf.xlu0 }
0x1e49   : > { %v22762_v8 = vrot.slane %v22732_v49, 4 }
0x1e4b   : > { %23060 = vxpose.xlu0.b32.start.end [1/1] (short) (narrow) %v22760_v13, 8 }
0x1e4d   : > { %23028 = vxpose.xlu2.b32.start.end [1/1] (short) (narrow) %v22700_v63, 8  ;;  %23092 = vxpose.xlu1.b32.start.end [1/1] (short) (narrow) %v22701_v17, 8 }
0x1e50   : > { %v22733_v36 = vpop.trf.xlu0 }
0x1e51   : > { %v22763_v29 = vrot.slane %v22733_v36, 4 }
0x1e53   : > { %23156 = vxpose.xlu0.b32.start.end [1/1] (short) (narrow) %v22732_v49, 8 }
0x1e55   : > { %23124 = vxpose.xlu2.b32.start.end [1/1] (short) (narrow) %v22761_v11, 8  ;;  %23188 = vxpose.xlu1.b32.start.end [1/1] (short) (narrow) %v22762_v8, 8 }
0x1e5b   : > { %23252 = vxpose.xlu0.b32.start.end [1/1] (short) (narrow) %v22763_v29, 8 }
0x1e5d   : > { %23465 = vxpose.xlu1.b32.start.end [1/1] (short) (narrow) %v28011_v3, 16  ;;  %23220 = vxpose.xlu2.b32.start.end [1/1] (short) (narrow) %v22733_v36, 8 }
0x1e63   : > { %23497 = vxpose.xlu0.b32.start.end [1/1] (short) (narrow) %v23461_v20, 16 }
0x1e65   : > { %23529 = vxpose.xlu2.b32.start.end [1/1] (short) (narrow) %v28012_v0, 16 }
0x1e73   : > { %23561 = vxpose.xlu0.b32.start.end [1/1] (short) (narrow) %v23462_v38, 16 }
0x1ecc   : > { %v32174_v13 = vpop.trf.xlu2 }
0x1ecd   : > { %35320 = vst [vmem:[#allocation177_spill] sm:$0xff] %v32174_v13 }
0x1ed6   : > { %v32178_v17 = vpop.trf.xlu2 }
0x1ed7   : > { %35322 = vst [vmem:[#allocation185_spill] sm:$0xff] %v32178_v17 }
0x1ed9   : > { %v32176_v63 = vpop.trf.xlu1 }
0x1eda   : > { %35321 = vst [vmem:[#allocation181_spill] sm:$0xff] %v32176_v63 }
0x1ede   : > { %v32186_v8 = vpop.trf.xlu2 }
0x1edf   : > { %v32180_v2 = vpop.trf.xlu0  ;;  %35326 = vst [vmem:[#allocation176_spill] sm:$0xff] %v32186_v8 }
0x1ee0   : > { %35323 = vst [vmem:[#allocation10_spill] sm:$0xff] %v32180_v2 }
0x1ee1   : > { %v32182_v11 = vpop.trf.xlu1 }
0x1ee2   : > { %35324 = vst [vmem:[#allocation165_spill] sm:$0xff] %v32182_v11 }
0x1ee6   : > { %v32194_v20 = vpop.trf.xlu2 }
0x1ee7   : > { %v32184_v49 = vpop.trf.xlu0  ;;  %35330 = vst [vmem:[#allocation9_spill] sm:$0xff] %v32194_v20 }
0x1ee8   : > { %35325 = vst [vmem:[#allocation174_spill] sm:$0xff] %v32184_v49 }
0x1ee9   : > { %v32188_v3 = vpop.trf.xlu1 }
0x1eea   : > { %35327 = vst [vmem:[#allocation14_spill] sm:$0xff] %v32188_v3 }
0x1eee   : > { %v32200_v13 = vpop.trf.xlu2 }
0x1eef   : > { %v32190_v36 = vpop.trf.xlu0  ;;  %35333 = vst [vmem:[#allocation163_spill] sm:$0xff] %v32200_v13  ;;  %v28013_v13 = vld [vmem:[%s28325_s15 + $0x160] sm:$0xff] }
0x1ef0   : > { %35328 = vst [vmem:[#allocation180_spill] sm:$0xff] %v32190_v36 }
0x1ef1   : > { %v32192_v29 = vpop.trf.xlu1 }
0x1ef2   : > { %35329 = vst [vmem:[#allocation196_spill] sm:$0xff] %v32192_v29 }
0x1ef6   : > { %v32204_v17 = vpop.trf.xlu2 }
0x1ef7   : > { %v32196_v0 = vpop.trf.xlu0  ;;  %35335 = vst [vmem:[#allocation197_spill] sm:$0xff] %v32204_v17 }
0x1ef8   : > { %35331 = vst [vmem:[#allocation173_spill] sm:$0xff] %v32196_v0 }
0x1ef9   : > { %v32198_v38 = vpop.trf.xlu1 }
0x1efa   : > { %35332 = vst [vmem:[#allocation183_spill] sm:$0xff] %v32198_v38 }
0x1efe   : > { %v23545_v0 = vpop.trf.xlu2 }
0x1eff   : > { %v32202_v63 = vpop.trf.xlu0 }
0x1f00   : > { %35334 = vst [vmem:[#allocation195_spill] sm:$0xff] %v32202_v63  ;;  %v23605_v63 = vrot.slane %v23545_v0, 4 }
0x1f01   : > { %v23481_v2 = vpop.trf.xlu1 }
0x1f02   : > { %v23601_v11 = vrot.slane %v23481_v2, 4  ;;  %23617 = vxpose.xlu2.b32.start.end [1/1] (short) (narrow) %v23481_v2, 8 }
0x1f04   : > { %23649 = vxpose.xlu1.b32.start.end [1/1] (short) (narrow) %v23601_v11, 8 }
0x1f06   : > { %v23546_v36 = vpop.trf.xlu2 }
0x1f07   : > { %v23513_v49 = vpop.trf.xlu0  ;;  %v23606_v17 = vrot.slane %v23546_v36, 4 }
0x1f08   : > { %v23603_v38 = vrot.slane %v23513_v49, 4 }
0x1f09   : > { %v23482_v8 = vpop.trf.xlu1 }
0x1f0a   : > { %v23602_v3 = vrot.slane %v23482_v8, 4  ;;  %23681 = vxpose.xlu0.b32.start.end [1/1] (short) (narrow) %v23482_v8, 8 }
0x1f0c   : > { %23713 = vxpose.xlu2.b32.start.end [1/1] (short) (narrow) %v23602_v3, 8  ;;  %23745 = vxpose.xlu1.b32.start.end [1/1] (short) (narrow) %v23513_v49, 8  ;;  %v24306_v49 = vrot.slane %v28013_v13, 4 }
0x1f0f   : > { %v23514_v20 = vpop.trf.xlu0 }
0x1f10   : > { %v23604_v29 = vrot.slane %v23514_v20, 4 }
0x1f12   : > { %23809 = vxpose.xlu0.b32.start.end [1/1] (short) (narrow) %v23514_v20, 8 }
0x1f14   : > { %23777 = vxpose.xlu2.b32.start.end [1/1] (short) (narrow) %v23603_v38, 8  ;;  %23841 = vxpose.xlu1.b32.start.end [1/1] (short) (narrow) %v23604_v29, 8  ;;  %v28014_v29 = vld [vmem:[%s28325_s15 + $0x168] sm:$0xff] }
0x1f15   : > { %v24307_v20 = vrot.slane %v28014_v29, 4 }
0x1f17   : > { %v23577_v2 = vpop.trf.xlu0 }
0x1f18   : > { %v23607_v11 = vrot.slane %v23577_v2, 4 }
0x1f1a   : > { %23905 = vxpose.xlu0.b32.start.end [1/1] (short) (narrow) %v23605_v63, 8 }
0x1f1c   : > { %23873 = vxpose.xlu2.b32.start.end [1/1] (short) (narrow) %v23545_v0, 8  ;;  %23937 = vxpose.xlu1.b32.start.end [1/1] (short) (narrow) %v23546_v36, 8 }
0x1f1f   : > { %v23578_v8 = vpop.trf.xlu0 }
0x1f20   : > { %v23608_v3 = vrot.slane %v23578_v8, 4 }
0x1f22   : > { %24001 = vxpose.xlu0.b32.start.end [1/1] (short) (narrow) %v23577_v2, 8 }
0x1f24   : > { %23969 = vxpose.xlu2.b32.start.end [1/1] (short) (narrow) %v23606_v17, 8  ;;  %24033 = vxpose.xlu1.b32.start.end [1/1] (short) (narrow) %v23607_v11, 8 }
0x1f2a   : > { %24097 = vxpose.xlu0.b32.start.end [1/1] (short) (narrow) %v23608_v3, 8 }
0x1f2c   : > { %24310 = vxpose.xlu1.b32.start.end [1/1] (short) (narrow) %v28013_v13, 16  ;;  %24065 = vxpose.xlu2.b32.start.end [1/1] (short) (narrow) %v23578_v8, 8 }
0x1f32   : > { %24342 = vxpose.xlu0.b32.start.end [1/1] (short) (narrow) %v24306_v49, 16 }
0x1f34   : > { %24374 = vxpose.xlu2.b32.start.end [1/1] (short) (narrow) %v28014_v29, 16 }
0x1f42   : > { %24406 = vxpose.xlu0.b32.start.end [1/1] (short) (narrow) %v24307_v20, 16 }
0x1f9b   : > { %v32208_v63 = vpop.trf.xlu2 }
0x1f9c   : > { %35336 = vst [vmem:[#allocation182_spill] sm:$0xff] %v32208_v63 }
0x1fa5   : > { %v32212_v36 = vpop.trf.xlu2 }
0x1fa6   : > { %35338 = vst [vmem:[#allocation210_spill] sm:$0xff] %v32212_v36 }
0x1fa8   : > { %v32210_v0 = vpop.trf.xlu1 }
0x1fa9   : > { %35337 = vst [vmem:[#allocation193_spill] sm:$0xff] %v32210_v0 }
0x1fad   : > { %v32220_v11 = vpop.trf.xlu2 }
0x1fae   : > { %v32214_v38 = vpop.trf.xlu0  ;;  %35342 = vst [vmem:[#allocation191_spill] sm:$0xff] %v32220_v11 }
0x1faf   : > { %35339 = vst [vmem:[#allocation199_spill] sm:$0xff] %v32214_v38 }
0x1fb0   : > { %v32216_v17 = vpop.trf.xlu1 }
0x1fb1   : > { %35340 = vst [vmem:[#allocation209_spill] sm:$0xff] %v32216_v17 }
0x1fb5   : > { %v32228_v49 = vpop.trf.xlu2 }
0x1fb6   : > { %v32218_v2 = vpop.trf.xlu0  ;;  %35346 = vst [vmem:[#allocation207_spill] sm:$0xff] %v32228_v49 }
0x1fb7   : > { %35341 = vst [vmem:[#allocation211_spill] sm:$0xff] %v32218_v2 }
0x1fb8   : > { %v32222_v13 = vpop.trf.xlu1 }
0x1fb9   : > { %35343 = vst [vmem:[#allocation198_spill] sm:$0xff] %v32222_v13 }
0x1fbd   : > { %v32234_v0 = vpop.trf.xlu2 }
0x1fbe   : > { %v32224_v8 = vpop.trf.xlu0  ;;  %35349 = vst [vmem:[#allocation190_spill] sm:$0xff] %v32234_v0  ;;  %v28015_v0 = vld [vmem:[%s28325_s15 + $0x170] sm:$0xff] }
0x1fbf   : > { %35344 = vst [vmem:[#allocation188_spill] sm:$0xff] %v32224_v8 }
0x1fc0   : > { %v32226_v3 = vpop.trf.xlu1 }
0x1fc1   : > { %35345 = vst [vmem:[#allocation194_spill] sm:$0xff] %v32226_v3 }
0x1fc5   : > { %v32238_v17 = vpop.trf.xlu2 }
0x1fc6   : > { %v32230_v29 = vpop.trf.xlu0  ;;  %35351 = vst [vmem:[#allocation213_spill] sm:$0xff] %v32238_v17 }
0x1fc7   : > { %35347 = vst [vmem:[#allocation187_spill] sm:$0xff] %v32230_v29 }
0x1fc8   : > { %v32232_v20 = vpop.trf.xlu1 }
0x1fc9   : > { %35348 = vst [vmem:[#allocation192_spill] sm:$0xff] %v32232_v20 }
0x1fcd   : > { %v24390_v29 = vpop.trf.xlu2 }
0x1fce   : > { %v32236_v63 = vpop.trf.xlu0 }
0x1fcf   : > { %35350 = vst [vmem:[#allocation216_spill] sm:$0xff] %v32236_v63  ;;  %v24450_v63 = vrot.slane %v24390_v29, 4 }
0x1fd0   : > { %v24326_v36 = vpop.trf.xlu1 }
0x1fd1   : > { %v24446_v38 = vrot.slane %v24326_v36, 4  ;;  %24462 = vxpose.xlu2.b32.start.end [1/1] (short) (narrow) %v24326_v36, 8 }
0x1fd3   : > { %24494 = vxpose.xlu1.b32.start.end [1/1] (short) (narrow) %v24446_v38, 8 }
0x1fd5   : > { %v24391_v8 = vpop.trf.xlu2 }
0x1fd6   : > { %v24358_v2 = vpop.trf.xlu0  ;;  %v24451_v17 = vrot.slane %v24391_v8, 4 }
0x1fd7   : > { %v24448_v20 = vrot.slane %v24358_v2, 4 }
0x1fd8   : > { %v24327_v11 = vpop.trf.xlu1 }
0x1fd9   : > { %v24447_v13 = vrot.slane %v24327_v11, 4  ;;  %24526 = vxpose.xlu0.b32.start.end [1/1] (short) (narrow) %v24327_v11, 8 }
0x1fdb   : > { %24558 = vxpose.xlu2.b32.start.end [1/1] (short) (narrow) %v24447_v13, 8  ;;  %24590 = vxpose.xlu1.b32.start.end [1/1] (short) (narrow) %v24358_v2, 8  ;;  %v28016_v2 = vld [vmem:[%s28325_s15 + $0x178] sm:$0xff] }
0x1fde   : > { %v24359_v49 = vpop.trf.xlu0 }
0x1fdf   : > { %v24449_v3 = vrot.slane %v24359_v49, 4 }
0x1fe1   : > { %24654 = vxpose.xlu0.b32.start.end [1/1] (short) (narrow) %v24359_v49, 8  ;;  %v25152_v49 = vrot.slane %v28016_v2, 4 }
0x1fe3   : > { %24622 = vxpose.xlu2.b32.start.end [1/1] (short) (narrow) %v24448_v20, 8  ;;  %24686 = vxpose.xlu1.b32.start.end [1/1] (short) (narrow) %v24449_v3, 8  ;;  %v25151_v3 = vrot.slane %v28015_v0, 4 }
0x1fe6   : > { %v24422_v36 = vpop.trf.xlu0 }
0x1fe7   : > { %v24452_v38 = vrot.slane %v24422_v36, 4 }
0x1fe9   : > { %24750 = vxpose.xlu0.b32.start.end [1/1] (short) (narrow) %v24450_v63, 8 }
0x1feb   : > { %24718 = vxpose.xlu2.b32.start.end [1/1] (short) (narrow) %v24390_v29, 8  ;;  %24782 = vxpose.xlu1.b32.start.end [1/1] (short) (narrow) %v24391_v8, 8 }
0x1fee   : > { %v24423_v11 = vpop.trf.xlu0 }
0x1fef   : > { %v24453_v13 = vrot.slane %v24423_v11, 4 }
0x1ff1   : > { %24846 = vxpose.xlu0.b32.start.end [1/1] (short) (narrow) %v24422_v36, 8 }
0x1ff3   : > { %24814 = vxpose.xlu2.b32.start.end [1/1] (short) (narrow) %v24451_v17, 8  ;;  %24878 = vxpose.xlu1.b32.start.end [1/1] (short) (narrow) %v24452_v38, 8 }
0x1ff9   : > { %24942 = vxpose.xlu0.b32.start.end [1/1] (short) (narrow) %v24453_v13, 8 }
0x1ffb   : > { %25155 = vxpose.xlu1.b32.start.end [1/1] (short) (narrow) %v28015_v0, 16  ;;  %24910 = vxpose.xlu2.b32.start.end [1/1] (short) (narrow) %v24423_v11, 8 }
0x2001   : > { %25219 = vxpose.xlu0.b32.start.end [1/1] (short) (narrow) %v28016_v2, 16 }
0x2003   : > { %25187 = vxpose.xlu2.b32.start.end [1/1] (short) (narrow) %v25151_v3, 16 }
0x2011   : > { %25251 = vxpose.xlu0.b32.start.end [1/1] (short) (narrow) %v25152_v49, 16 }
0x206a   : > { %v32242_v63 = vpop.trf.xlu2 }
0x206b   : > { %35352 = vst [vmem:[#allocation215_spill] sm:$0xff] %v32242_v63 }
0x2074   : > { %v32244_v29 = vpop.trf.xlu2 }
0x2075   : > { %35353 = vst [vmem:[#allocation212_spill] sm:$0xff] %v32244_v29 }
0x2077   : > { %v32246_v8 = vpop.trf.xlu1 }
0x2078   : > { %35354 = vst [vmem:[#allocation221_spill] sm:$0xff] %v32246_v8 }
0x207c   : > { %v32248_v20 = vpop.trf.xlu2 }
0x207d   : > { %35355 = vst [vmem:[#allocation218_spill] sm:$0xff] %v32248_v20  ;;  %v32250_v17 = vpop.trf.xlu0 }
0x207e   : > { %35356 = vst [vmem:[#allocation205_spill] sm:$0xff] %v32250_v17 }
0x207f   : > { %v32252_v36 = vpop.trf.xlu1 }
0x2080   : > { %35357 = vst [vmem:[#allocation219_spill] sm:$0xff] %v32252_v36 }
0x2084   : > { %v32256_v11 = vpop.trf.xlu2 }
0x2085   : > { %v32254_v38 = vpop.trf.xlu0  ;;  %35359 = vst [vmem:[#allocation208_spill] sm:$0xff] %v32256_v11 }
0x2086   : > { %35358 = vst [vmem:[#allocation202_spill] sm:$0xff] %v32254_v38 }
0x2087   : > { %v32258_v0 = vpop.trf.xlu1 }
0x2088   : > { %35360 = vst [vmem:[#allocation222_spill] sm:$0xff] %v32258_v0 }
0x208c   : > { %v32264_v3 = vpop.trf.xlu2 }
0x208d   : > { %v32260_v13 = vpop.trf.xlu0  ;;  %35363 = vst [vmem:[#allocation220_spill] sm:$0xff] %v32264_v3 }
0x208e   : > { %35361 = vst [vmem:[#allocation201_spill] sm:$0xff] %v32260_v13 }
0x208f   : > { %v32262_v2 = vpop.trf.xlu1 }
0x2090   : > { %35362 = vst [vmem:[#allocation206_spill] sm:$0xff] %v32262_v2 }
0x2094   : > { %v32270_v20 = vpop.trf.xlu2 }
0x2095   : > { %v32266_v49 = vpop.trf.xlu0  ;;  %35366 = vst [vmem:[#allocation227_spill] sm:$0xff] %v32270_v20  ;;  %v28018_v20 = vld [vmem:[%s28325_s15 + $0x1e8] sm:$0xff] }
0x2096   : > { %35364 = vst [vmem:[#allocation204_spill] sm:$0xff] %v32266_v49 }
0x2097   : > { %v32268_v8 = vpop.trf.xlu1 }
0x2098   : > { %35365 = vst [vmem:[#allocation228_spill] sm:$0xff] %v32268_v8 }
0x209c   : > { %v25203_v63 = vpop.trf.xlu2 }
0x209d   : > { %v32272_v29 = vpop.trf.xlu0  ;;  %v25293_v3 = vrot.slane %v25203_v63, 4 }
0x209e   : > { %35367 = vst [vmem:[#allocation233_spill] sm:$0xff] %v32272_v29 }
0x209f   : > { %v25171_v36 = vpop.trf.xlu1 }
0x20a0   : > { %v25291_v38 = vrot.slane %v25171_v36, 4  ;;  %25307 = vxpose.xlu2.b32.start.end [1/1] (short) (narrow) %v25171_v36, 8 }
0x20a2   : > { %25339 = vxpose.xlu1.b32.start.end [1/1] (short) (narrow) %v25291_v38, 8 }
0x20a4   : > { %v25204_v2 = vpop.trf.xlu2 }
0x20a5   : > { %v25235_v0 = vpop.trf.xlu0  ;;  %v25294_v49 = vrot.slane %v25204_v2, 4 }
0x20a6   : > { %v25295_v8 = vrot.slane %v25235_v0, 4 }
0x20a7   : > { %v25172_v11 = vpop.trf.xlu1 }
0x20a8   : > { %v25292_v17 = vrot.slane %v25172_v11, 4  ;;  %25371 = vxpose.xlu0.b32.start.end [1/1] (short) (narrow) %v25172_v11, 8 }
0x20aa   : > { %25403 = vxpose.xlu2.b32.start.end [1/1] (short) (narrow) %v25292_v17, 8  ;;  %25435 = vxpose.xlu1.b32.start.end [1/1] (short) (narrow) %v25203_v63, 8  ;;  %v28017_v63 = vld [vmem:[%s28325_s15 + $0x1e0] sm:$0xff] }
0x20ad   : > { %v25236_v13 = vpop.trf.xlu0 }
0x20ae   : > { %v25296_v36 = vrot.slane %v25236_v13, 4 }
0x20b0   : > { %25499 = vxpose.xlu0.b32.start.end [1/1] (short) (narrow) %v25204_v2, 8  ;;  %v25996_v2 = vrot.slane %v28017_v63, 4 }
0x20b2   : > { %25467 = vxpose.xlu2.b32.start.end [1/1] (short) (narrow) %v25293_v3, 8  ;;  %25531 = vxpose.xlu1.b32.start.end [1/1] (short) (narrow) %v25294_v49, 8  ;;  %v25997_v3 = vrot.slane %v28018_v20, 4 }
0x20b5   : > { %v25267_v29 = vpop.trf.xlu0 }
0x20b6   : > { %v25297_v38 = vrot.slane %v25267_v29, 4 }
0x20b8   : > { %25595 = vxpose.xlu0.b32.start.end [1/1] (short) (narrow) %v25295_v8, 8 }
0x20ba   : > { %25563 = vxpose.xlu2.b32.start.end [1/1] (short) (narrow) %v25235_v0, 8  ;;  %25627 = vxpose.xlu1.b32.start.end [1/1] (short) (narrow) %v25236_v13, 8 }
0x20bd   : > { %v25268_v11 = vpop.trf.xlu0 }
0x20be   : > { %v25298_v17 = vrot.slane %v25268_v11, 4 }
0x20c0   : > { %25691 = vxpose.xlu0.b32.start.end [1/1] (short) (narrow) %v25267_v29, 8 }
0x20c2   : > { %25659 = vxpose.xlu2.b32.start.end [1/1] (short) (narrow) %v25296_v36, 8  ;;  %25723 = vxpose.xlu1.b32.start.end [1/1] (short) (narrow) %v25297_v38, 8 }
0x20c8   : > { %25787 = vxpose.xlu0.b32.start.end [1/1] (short) (narrow) %v25298_v17, 8 }
0x20ca   : > { %25755 = vxpose.xlu2.b32.start.end [1/1] (short) (narrow) %v25268_v11, 8  ;;  %26064 = vxpose.xlu1.b32.start.end [1/1] (short) (narrow) %v28018_v20, 16 }
0x20d0   : > { %26000 = vxpose.xlu0.b32.start.end [1/1] (short) (narrow) %v28017_v63, 16 }
0x20d2   : > { %26032 = vxpose.xlu2.b32.start.end [1/1] (short) (narrow) %v25996_v2, 16 }
0x20e0   : > { %26096 = vxpose.xlu0.b32.start.end [1/1] (short) (narrow) %v25997_v3, 16 }
0x2139   : > { %v32276_v8 = vpop.trf.xlu2 }
0x213a   : > { %35368 = vst [vmem:[#allocation235_spill] sm:$0xff] %v32276_v8 }
0x2143   : > { %v32278_v0 = vpop.trf.xlu2 }
0x2144   : > { %35369 = vst [vmem:[#allocation230_spill] sm:$0xff] %v32278_v0 }
0x2146   : > { %v32284_v49 = vpop.trf.xlu1 }
0x2147   : > { %35372 = vst [vmem:[#allocation232_spill] sm:$0xff] %v32284_v49 }
0x214b   : > { %v32282_v29 = vpop.trf.xlu2 }
0x214c   : > { %v32280_v13 = vpop.trf.xlu0  ;;  %35371 = vst [vmem:[#allocation234_spill] sm:$0xff] %v32282_v29 }
0x214d   : > { %35370 = vst [vmem:[#allocation231_spill] sm:$0xff] %v32280_v13 }
0x214e   : > { %v32290_v11 = vpop.trf.xlu1 }
0x214f   : > { %35375 = vst [vmem:[#allocation26_spill] sm:$0xff] %v32290_v11 }
0x2153   : > { %v32288_v38 = vpop.trf.xlu2 }
0x2154   : > { %v32286_v36 = vpop.trf.xlu0  ;;  %35374 = vst [vmem:[#allocation240_spill] sm:$0xff] %v32288_v38 }
0x2155   : > { %35373 = vst [vmem:[#allocation241_spill] sm:$0xff] %v32286_v36 }
0x2156   : > { %v32298_v2 = vpop.trf.xlu1 }
0x2157   : > { %35379 = vst [vmem:[#allocation225_spill] sm:$0xff] %v32298_v2 }
0x215b   : > { %v32294_v20 = vpop.trf.xlu2 }
0x215c   : > { %v32292_v17 = vpop.trf.xlu0  ;;  %35377 = vst [vmem:[#allocation39_spill] sm:$0xff] %v32294_v20 }
0x215d   : > { %35376 = vst [vmem:[#allocation65_spill] sm:$0xff] %v32292_v17 }
0x215e   : > { %v32304_v13 = vpop.trf.xlu1 }
0x215f   : > { %35382 = vst [vmem:[#allocation238_spill] sm:$0xff] %v32304_v13 }
0x2163   : > { %v32300_v3 = vpop.trf.xlu2 }
0x2164   : > { %v32296_v63 = vpop.trf.xlu0  ;;  %35380 = vst [vmem:[#allocation224_spill] sm:$0xff] %v32300_v3 }
0x2165   : > { %35378 = vst [vmem:[#allocation27_spill] sm:$0xff] %v32296_v63 }
0x2166   : > { %v32306_v11 = vpop.trf.xlu1 }
0x2167   : > { %35383 = vst [vmem:[#allocation237_spill] sm:$0xff] %v32306_v11 }
0x216b   : > { %v26048_v0 = vpop.trf.xlu2 }
0x216c   : > { %v32302_v8 = vpop.trf.xlu0  ;;  %v26138_v3 = vrot.slane %v26048_v0, 4 }
0x216d   : > { %35381 = vst [vmem:[#allocation223_spill] sm:$0xff] %v32302_v8 }
0x216e   : > { %v26080_v63 = vpop.trf.xlu1 }
0x216f   : > { %v26140_v13 = vrot.slane %v26080_v63, 4 }
0x2173   : > { %v26049_v17 = vpop.trf.xlu2 }
0x2174   : > { %v26016_v49 = vpop.trf.xlu0  ;;  %v26139_v2 = vrot.slane %v26049_v17, 4 }
0x2175   : > { %v26136_v29 = vrot.slane %v26016_v49, 4  ;;  %26152 = vxpose.xlu2.b32.start.end [1/1] (short) (narrow) %v26016_v49, 8 }
0x2176   : > { %v26081_v8 = vpop.trf.xlu1 }
0x2177   : > { %26184 = vxpose.xlu0.b32.start.end [1/1] (short) (narrow) %v26136_v29, 8  ;;  %v26141_v11 = vrot.slane %v26081_v8, 4 }
0x217c   : > { %v26017_v38 = vpop.trf.xlu0 }
0x217d   : > { %v26137_v36 = vrot.slane %v26017_v38, 4  ;;  %26216 = vxpose.xlu1.b32.start.end [1/1] (short) (narrow) %v26017_v38, 8  ;;  %v28020_v38 = vld [vmem:[%s28325_s15 + $0x1f8] sm:$0xff] }
0x217f   : > { %26280 = vxpose.xlu0.b32.start.end [1/1] (short) (narrow) %v26048_v0, 8  ;;  %26248 = vxpose.xlu2.b32.start.end [1/1] (short) (narrow) %v26137_v36, 8  ;;  %v28019_v0 = vld [vmem:[%s28325_s15 + $0x1f0] sm:$0xff]  ;;  %s27857_s15 = sshll.u32 %s27854_s12, 4  ;;  %s27858_s15 = int_to_ptr.hbm [resolvable:$true] %s27857_s15 }
0x2184   : > { %v26112_v29 = vpop.trf.xlu0 }
0x2185   : > { %26376 = vxpose.xlu1.b32.start.end [1/1] (short) (narrow) %v26139_v2, 8  ;;  %v26142_v49 = vrot.slane %v26112_v29, 4  ;;  %v26842_v2 = vrot.slane %v28020_v38, 4 }
0x2187   : > { %26344 = vxpose.xlu0.b32.start.end [1/1] (short) (narrow) %v26049_v17, 8  ;;  %26312 = vxpose.xlu2.b32.start.end [1/1] (short) (narrow) %v26138_v3, 8  ;;  %v26841_v17 = vrot.slane %v28019_v0, 4 }
0x218c   : > { %v26113_v36 = vpop.trf.xlu0 }
0x218d   : > { %26472 = vxpose.xlu1.b32.start.end [1/1] (short) (narrow) %v26081_v8, 8  ;;  %v26143_v20 = vrot.slane %v26113_v36, 4 }
0x218f   : > { %26440 = vxpose.xlu0.b32.start.end [1/1] (short) (narrow) %v26140_v13, 8  ;;  %26408 = vxpose.xlu2.b32.start.end [1/1] (short) (narrow) %v26080_v63, 8 }
0x2195   : > { %26568 = vxpose.xlu1.b32.start.end [1/1] (short) (narrow) %v26142_v49, 8 }
0x2197   : > { %26504 = vxpose.xlu2.b32.start.end [1/1] (short) (narrow) %v26141_v11, 8  ;;  %26536 = vxpose.xlu0.b32.start.end [1/1] (short) (narrow) %v26112_v29, 8 }
0x219d   : > { %26909 = vxpose.xlu1.b32.start.end [1/1] (short) (narrow) %v28020_v38, 16 }
0x219f   : > { %26632 = vxpose.xlu0.b32.start.end [1/1] (short) (narrow) %v26143_v20, 8  ;;  %26600 = vxpose.xlu2.b32.start.end [1/1] (short) (narrow) %v26113_v36, 8 }
0x21a7   : > { %26845 = vxpose.xlu0.b32.start.end [1/1] (short) (narrow) %v28019_v0, 16  ;;  %26877 = vxpose.xlu2.b32.start.end [1/1] (short) (narrow) %v26841_v17, 16 }
0x21b7   : > { %26941 = vxpose.xlu0.b32.start.end [1/1] (short) (narrow) %v26842_v2, 16 }
0x220e   : > { %v32310_v3 = vpop.trf.xlu2 }
0x220f   : > { %35384 = vst [vmem:[#allocation236_spill] sm:$0xff] %v32310_v3 }
0x2218   : > { %v32312_v13 = vpop.trf.xlu2 }
0x2219   : > { %35385 = vst [vmem:[#allocation30_spill] sm:$0xff] %v32312_v13 }
0x221b   : > { %v32314_v8 = vpop.trf.xlu0 }
0x221c   : > { %35386 = vst [vmem:[#allocation243_spill] sm:$0xff] %v32314_v8 }
0x2220   : > { %v32316_v11 = vpop.trf.xlu2 }
0x2221   : > { %35387 = vst [vmem:[#allocation244_spill] sm:$0xff] %v32316_v11  ;;  %v32318_v63 = vpop.trf.xlu1 }
0x2222   : > { %35388 = vst [vmem:[#allocation245_spill] sm:$0xff] %v32318_v63 }
0x2223   : > { %v32320_v29 = vpop.trf.xlu0 }
0x2224   : > { %35389 = vst [vmem:[#allocation246_spill] sm:$0xff] %v32320_v29 }
0x2228   : > { %v26424_v20 = vpop.trf.xlu2 }
0x2229   : > { %v32322_v49 = vpop.trf.xlu1 }
0x222a   : > { %35390 = vst [vmem:[#allocation247_spill] sm:$0xff] %v32322_v49 }
0x222b   : > { %v32324_v36 = vpop.trf.xlu0 }
0x222c   : > { %35391 = vst [vmem:[#allocation248_spill] sm:$0xff] %v32324_v36 }
0x2230   : > { %v26520_v0 = vpop.trf.xlu2 }
0x2231   : > { %v26726_v38 = vrot.slane %v26520_v0, 4  ;;  %v26488_v17 = vpop.trf.xlu1 }
0x2232   : > { %v26720_v2 = vrot.slane %v26488_v17, 4 }
0x2233   : > { %v26456_v3 = vpop.trf.xlu0 }
0x2234   : > { %v26721_v13 = vsel %vm831_vm0, %v26720_v2, %v26424_v20  ;;  %v26727_v8 = vsel %vm831_vm0, %v26726_v38, %v26456_v3 }
0x2235   : > { %v32329_v11 = vperm.slane %v26721_v13, %v28351_v41  ;;  %v32333_v29 = vperm.slane %v26727_v8, %v28351_v41 }
0x2237   : > { %35392 = vst [vmem:[#allocation249_spill] sm:$0xff] %v32329_v11  ;;  %v26734_v63 = vrot.slane %v32329_v11, 4 }
0x2238   : > { %35393 = vst [vmem:[#allocation250_spill] sm:$0xff] %v32333_v29  ;;  %v32341_v17 = vpop.trf.xlu2 }
0x2239   : > { %v32337_v49 = vsel %vm831_vm0, %v32333_v29, %v26734_v63  ;;  %35396 = vst [vmem:[#allocation253_spill] sm:$0xff] %v32341_v17  ;;  %v32345_v13 = vpop.trf.xlu1 }
0x223a   : > { %35394 = vst [vmem:[#allocation251_spill] sm:$0xff] %v32337_v49 }
0x223b   : > { %v32339_v0 = vpop.trf.xlu0  ;;  %35398 = vst [vmem:[#allocation255_spill] sm:$0xff] %v32345_v13 }
0x223c   : > { %35395 = vst [vmem:[#allocation252_spill] sm:$0xff] %v32339_v0 }
0x2240   : > { %v26893_v3 = vpop.trf.xlu2 }
0x2241   : > { %v26925_v63 = vpop.trf.xlu1  ;;  %v26983_v0 = vrot.slane %v26893_v3, 4 }
0x2242   : > { %v26985_v17 = vrot.slane %v26925_v63, 4 }
0x2243   : > { %v32343_v36 = vpop.trf.xlu0 }
0x2244   : > { %35397 = vst [vmem:[#allocation254_spill] sm:$0xff] %v32343_v36 }
0x2248   : > { %v26894_v11 = vpop.trf.xlu2 }
0x2249   : > { %v26984_v49 = vrot.slane %v26894_v11, 4  ;;  %v26926_v36 = vpop.trf.xlu1 }
0x224b   : > { %v26861_v20 = vpop.trf.xlu0 }
0x224c   : > { %v26981_v38 = vrot.slane %v26861_v20, 4  ;;  %26997 = vxpose.xlu2.b32.start.end [1/1] (short) (narrow) %v26861_v20, 8 }
0x224e   : > { %27029 = vxpose.xlu0.b32.start.end [1/1] (short) (narrow) %v26981_v38, 8  ;;  %v26986_v38 = vrot.slane %v26926_v36, 4 }
0x2253   : > { %v26862_v2 = vpop.trf.xlu0 }
0x2254   : > { %v26982_v8 = vrot.slane %v26862_v2, 4  ;;  %27061 = vxpose.xlu1.b32.start.end [1/1] (short) (narrow) %v26862_v2, 8 }
0x2256   : > { %27125 = vxpose.xlu0.b32.start.end [1/1] (short) (narrow) %v26893_v3, 8  ;;  %27093 = vxpose.xlu2.b32.start.end [1/1] (short) (narrow) %v26982_v8, 8  ;;  %v35399_v8 = vld [vmem:[#allocation80_spill] sm:$0xff]  ;;  %v35400_v3 = vld [vmem:[#allocation46_spill] sm:$0xff] }
0x225b   : > { %v26957_v29 = vpop.trf.xlu0 }
0x225c   : > { %27221 = vxpose.xlu1.b32.start.end [1/1] (short) (narrow) %v26984_v49, 8  ;;  %v26987_v20 = vrot.slane %v26957_v29, 4  ;;  %v35401_v49 = vld [vmem:[#allocation92_spill] sm:$0xff] }
0x225e   : > { %27189 = vxpose.xlu0.b32.start.end [1/1] (short) (narrow) %v26894_v11, 8  ;;  %27157 = vxpose.xlu2.b32.start.end [1/1] (short) (narrow) %v26983_v0, 8  ;;  %v8763_v11 = vsel %vm991_vm1, %v35400_v3, %v35399_v8  ;;  %v9610_v8 = vsel %vm991_vm1, %v31157_v31, %v31295_v43  ;;  %v35407_v3 = vld [vmem:[#allocation74_spill] sm:$0xff]  ;;  %v35412_v43 = vld [vmem:[#allocation55_spill] sm:$0xff] }
0x225f   : > { %v8767_v0 = vsel %vm996_vm2, %v8763_v11, %v35401_v49  ;;  %v35408_v49 = vld [vmem:[#allocation102_spill] sm:$0xff] }
0x2260   : > { %v35411_v31 = vld [vmem:[#allocation114_spill] sm:$0xff] }
0x2263   : > { %v26958_v2 = vpop.trf.xlu0 }
0x2264   : > { %27317 = vxpose.xlu1.b32.start.end [1/1] (short) (narrow) %v26926_v36, 8  ;;  %v26988_v13 = vrot.slane %v26958_v2, 4  ;;  %v35403_v36 = vld [vmem:[#allocation77_spill] sm:$0xff] }
0x2266   : > { %27285 = vxpose.xlu0.b32.start.end [1/1] (short) (narrow) %v26985_v17, 8  ;;  %27253 = vxpose.xlu2.b32.start.end [1/1] (short) (narrow) %v26925_v63, 8  ;;  %v8771_v17 = vsel %vm1001_vm3, %v8767_v0, %v35402_v26  ;;  %v35404_v63 = vld [vmem:[#allocation53_spill] sm:$0xff]  ;;  %v9614_v26 = vsel %vm996_vm2, %v9610_v8, %v31308_v12  ;;  %v35409_v0 = vld [vmem:[#allocation40_spill] sm:$0xff]  ;;  %v11298_v12 = vsel %vm991_vm1, %v35412_v43, %v35411_v31 }
0x2267   : > { %v9618_v11 = vsel %vm1001_vm3, %v9614_v26, %v35407_v3  ;;  %v35415_v8 = vld [vmem:[#allocation116_spill] sm:$0xff]  ;;  %v35417_v3 = vld [vmem:[#allocation117_spill] sm:$0xff] }
0x2268   : > { %v35416_v26 = vld [vmem:[#allocation48_spill] sm:$0xff] }
0x226c   : > { %27413 = vxpose.xlu1.b32.start.end [1/1] (short) (narrow) %v26987_v20, 8  ;;  %v35405_v20 = vld [vmem:[#allocation32_spill] sm:$0xff] }
0x226e   : > { %27349 = vxpose.xlu2.b32.start.end [1/1] (short) (narrow) %v26986_v38, 8  ;;  %27381 = vxpose.xlu0.b32.start.end [1/1] (short) (narrow) %v26957_v29, 8  ;;  %v8766_v29 = vsel %vm991_vm1, %v35404_v63, %v35403_v36  ;;  %v35406_v38 = vld [vmem:[#allocation76_spill] sm:$0xff] }
0x226f   : > { %v35410_v36 = vld [vmem:[#allocation108_spill] sm:$0xff] }
0x2276   : > { %27477 = vxpose.xlu0.b32.start.end [1/1] (short) (narrow) %v26988_v13, 8  ;;  %27445 = vxpose.xlu2.b32.start.end [1/1] (short) (narrow) %v26958_v2, 8  ;;  %v8770_v13 = vsel %vm996_vm2, %v8766_v29, %v35405_v20  ;;  %v35413_v20 = vld [vmem:[#allocation115_spill] sm:$0xff] }
0x2277   : > { %v8774_v2 = vsel %vm1001_vm3, %v8770_v13, %v35406_v38  ;;  %v11302_v13 = vsel %vm996_vm2, %v11298_v12, %v35413_v20  ;;  %v35423_v12 = vld [vmem:[#allocation137_spill] sm:$0xff]  ;;  %v35424_v20 = vld [vmem:[#allocation64_spill] sm:$0xff] }
0x2278   : > { %v11306_v38 = vsel %vm1001_vm3, %v11302_v13, %v31355_v24  ;;  %v12145_v24 = vsel %vm991_vm1, %v31273_v53, %v31365_v9  ;;  %v12989_v53 = vsel %vm991_vm1, %v35424_v20, %v35423_v12  ;;  %v35430_v12 = vld [vmem:[#allocation47_spill] sm:$0xff] }
0x2279   : > { %v12993_v9 = vsel %vm996_vm2, %v12989_v53, %v31426_v33  ;;  %v35429_v33 = vld [vmem:[#allocation135_spill] sm:$0xff] }
0x227a   : > { %v13833_v20 = vsel %vm991_vm1, %v35430_v12, %v35429_v33  ;;  %v35434_v12 = vld [vmem:[#allocation84_spill] sm:$0xff] }
0x22c6   : > { %13849 = vrot.lane.b32.xlu1 %v8771_v17, %s28229_s22  ;;  %v10454_v17 = vsel %vm991_vm1, %v35409_v0, %v35408_v49 }
0x22c7   : > { %v10458_v63 = vsel %vm996_vm2, %v10454_v17, %v35410_v36  ;;  %v35419_v17 = vld [vmem:[#allocation131_spill] sm:$0xff] }
0x22c8   : > { %v10462_v29 = vsel %vm1001_vm3, %v10458_v63, %v31334_v25  ;;  %v11301_v25 = vsel %vm991_vm1, %v35416_v26, %v35415_v8  ;;  %v12149_v36 = vsel %vm996_vm2, %v12145_v24, %v35419_v17  ;;  %v35426_v26 = vld [vmem:[#allocation143_spill] sm:$0xff]  ;;  %v35428_v17 = vld [vmem:[#allocation161_spill] sm:$0xff] }
0x22ce   : > { %13855 = vrot.lane.b32.xlu1 %v8774_v2, %s28229_s22 }
0x22d6   : > { %13869 = vrot.lane.b32.xlu1 %v9618_v11, %s28230_s23  ;;  %v11305_v11 = vsel %vm996_vm2, %v11301_v25, %v35417_v3  ;;  %v12997_v25 = vsel %vm1001_vm3, %v12993_v9, %v35426_v26  ;;  %v35427_v3 = vld [vmem:[#allocation150_spill] sm:$0xff]  ;;  %v35432_v26 = vld [vmem:[#allocation149_spill] sm:$0xff] }
0x22d7   : > { %v11309_v49 = vsel %vm1001_vm3, %v11305_v11, %v31360_v10 }
0x22de   : > { %13883 = vrot.lane.b32.xlu1 %v10462_v29, %s28231_s24  ;;  %v35421_v29 = vld [vmem:[#allocation121_spill] sm:$0xff] }
0x22df   : > { %v12153_v31 = vsel %vm1001_vm3, %v12149_v36, %v35421_v29  ;;  %v14676_v36 = vrot.slane %v35428_v17, 4 }
0x22e5   : > { %v32386_v2 = vpop.trf.xlu2 }
0x22e6   : > { %35414 = vst [vmem:[#allocation80_spill] sm:$0xff] %v32386_v2  ;;  %13897 = vrot.lane.b32.xlu1 %v11306_v38, %s28232_s25  ;;  %v35425_v38 = vld [vmem:[#allocation151_spill] sm:$0xff] }
0x22e7   : > { %v14682_v8 = vrot.slane %v35425_v38, 4  ;;  %v35431_v38 = vld [vmem:[#allocation145_spill] sm:$0xff] }
0x22e8   : > { %v13837_v9 = vsel %vm996_vm2, %v13833_v20, %v35431_v38 }
0x22e9   : > { %v14683_v11 = vsel %vm831_vm0, %v14682_v8, %v35427_v3  ;;  %v13841_v8 = vsel %vm1001_vm3, %v13837_v9, %v31499_v21  ;;  %v35435_v9 = vld [vmem:[#allocation140_spill] sm:$0xff] }
0x22ea   : > { %v14687_v29 = vperm.slane %v14683_v11, %v28351_v41 }
0x22ec   : > { %v14688_v17 = vrot.slane %v14687_v29, 4 }
0x22ee   : > { %13903 = vrot.lane.b32.xlu1 %v11309_v49, %s28232_s25 }
0x22ef   : > { %v32400_v0 = vpop.trf.xlu2 }
0x22f0   : > { %35418 = vst [vmem:[#allocation46_spill] sm:$0xff] %v32400_v0  ;;  %v35443_v0 = vld [vmem:[#allocation89_spill] sm:$0xff] }
0x22f2   : > { %v32404_v63 = vpop.trf.xlu0 }
0x22f3   : > { %35420 = vst [vmem:[#allocation92_spill] sm:$0xff] %v32404_v63 }
0x22f6   : > { %13917 = vrot.lane.b32.xlu1 %v12153_v31, %s28233_s26 }
0x22f7   : > { %v32409_v43 = vpop.trf.xlu2 }
0x22f8   : > { %v32411_v10 = vpop.trf.xlu1 }
0x22f9   : > { %35422 = vst [vmem:[#allocation20_spill] sm:$0xff] %v32411_v10 }
0x22fa   : > { %v27141_v13 = vpop.trf.xlu0 }
0x22fe   : > { %13931 = vrot.lane.b32.xlu1 %v12997_v25, %s28234_s27  ;;  %v14677_v25 = vsel %vm831_vm0, %v14676_v36, %v35432_v26 }
0x22ff   : > { %v27269_v49 = vpop.trf.xlu2  ;;  %v14681_v11 = vperm.slane %v14677_v25, %v28351_v41 }
0x2300   : > { %v32424_v24 = vpop.trf.xlu1 }
0x2301   : > { %v14689_v36 = vsel %vm831_vm0, %v14688_v17, %v14681_v11 }
0x2302   : > { %v27205_v31 = vpop.trf.xlu0 }
0x2303   : > { %v27537_v53 = vrot.slane %v27205_v31, 4  ;;  %v35433_v31 = vld [vmem:[#allocation124_spill] sm:$0xff] }
0x2304   : > { %v13836_v20 = vsel %vm991_vm1, %v35434_v12, %v35433_v31  ;;  %v35437_v31 = vld [vmem:[#allocation155_spill] sm:$0xff] }
0x2305   : > { %v32438_v3 = vsel %vm831_vm0, %v27537_v53, %v27141_v13  ;;  %v13840_v13 = vsel %vm996_vm2, %v13836_v20, %v35435_v9  ;;  %v32471_v12 = vperm.slane %v35437_v31, %v28621_v57 }
0x2306   : > { %13945 = vrot.lane.b32.xlu1 %v13841_v8, %s28235_s28  ;;  %v13844_v25 = vsel %vm1001_vm3, %v13840_v13, %v31523_v42  ;;  %v32455_v8 = vperm.slane %v14689_v36, %v28621_v57 }
0x2307   : > { %v27365_v2 = vpop.trf.xlu2  ;;  %v14784_v20 = vrot.slane %v32471_v12, 4 }
0x2308   : > { %v27333_v33 = vpop.trf.xlu1  ;;  %v27571_v38 = vrot.slane %v27365_v2, 4 }
0x2309   : > { %v27565_v10 = vrot.slane %v27333_v33, 4  ;;  %v14785_v36 = vsel %vm831_vm0, 0.0, %v14784_v20  ;;  %v35439_v20 = vld [vmem:[#allocation178_spill] sm:$0xff] }
0x230a   : > { %v27301_v53 = vpop.trf.xlu0 }
0x230b   : > { %v27566_v21 = vsel %vm831_vm0, %v27565_v10, %v27269_v49  ;;  %v27572_v2 = vsel %vm831_vm0, %v27571_v38, %v27301_v53  ;;  %v14700_v49 = vrot.slane %v32455_v8, 4  ;;  %v14690_v38 = vrot.slane %v14681_v11, 4 }
0x230c   : > { %v32450_v26 = vperm.slane %v27566_v21, %v28351_v41  ;;  %v32461_v10 = vperm.slane %v27572_v2, %v28351_v41  ;;  %v14786_v2 = vrot.slane %v31526_v34, 4 }
0x230d   : > { %v14701_v42 = vsel %vm831_vm0, 0.0, %v14700_v49  ;;  %v14691_v21 = vsel %vm831_vm0, %v14687_v29, %v14690_v38  ;;  %v35438_v29 = vld [vmem:[#allocation159_spill] sm:$0xff]  ;;  %v32497_v38 = vperm.slane %v35439_v20, %v28621_v57  ;;  %v35442_v20 = vld [vmem:[#allocation90_spill] sm:$0xff] }
0x230e   : > { %13951 = vrot.lane.b32.xlu1 %v13844_v25, %s28235_s28  ;;  %v27579_v17 = vrot.slane %v32450_v26, 4  ;;  %v14699_v9 = vperm.slane %v14691_v21, %v28621_v57  ;;  %v32490_v49 = vperm.slane %v35438_v29, %v28621_v57 }
0x2310   : > { %v32466_v33 = vsel %vm831_vm0, %v32461_v10, %v27579_v17  ;;  %v32482_v13 = vpop.trf.xlu1  ;;  %v14702_v53 = vrot.slane %v14699_v9, 4  ;;  %v14787_v17 = vsel %vm831_vm0, 0.0, %v14786_v2  ;;  %v35440_v2 = vld [vmem:[#allocation71_spill] sm:$0xff] }
0x2311   : > { %35436 = vst [vmem:[#allocation77_spill] sm:$0xff] %v32466_v33 }
0x2312   : > { %v14703_v25 = vsel %vm831_vm0, 0.0, %v14702_v53 }
0x2316   : > { %14792 = vrot.lane.b32.xlu1 %v14701_v42, %s28226_s16 }
0x231e   : > { %14798 = vrot.lane.b32.xlu1 %v14785_v36, %s28226_s16  ;;  %v15629_v36 = vrot.slane %v32497_v38, 4 }
0x2320   : > { %v15630_v21 = vsel %vm831_vm0, 0.0, %v15629_v36 }
0x2326   : > { %14808 = vrot.lane.b32.xlu1 %v14699_v9, %s28227_s17 }
0x232e   : > { %14812 = vrot.lane.b32.xlu1 %v31529_v48, %s28227_s17  ;;  %v15601_v48 = vrot.slane %v32490_v49, 4 }
0x2330   : > { %v15602_v31 = vsel %vm831_vm0, 0.0, %v15601_v48 }
0x2336   : > { %14824 = vrot.lane.b32.xlu1 %v14703_v25, %s28228_s18  ;;  %v15547_v25 = vrot.slane %v31579_v22, 4  ;;  %v15631_v22 = vrot.slane %v31606_v58, 4  ;;  %v7918_v58 = vsel %vm991_vm1, %v31126_v18, %v31243_v61 }
0x2338   : > { %v13850_v11 = vpop.permute.xlu1 %13849 }
0x233e   : > { %14830 = vrot.lane.b32.xlu1 %v14787_v17, %s28228_s18  ;;  %v35441_v17 = vld [vmem:[#allocation28_spill] sm:$0xff] }
0x233f   : > { %v7920_v29 = vsel %vm991_vm1, %v35441_v17, %v35440_v2  ;;  %v35444_v2 = vld [vmem:[#allocation43_spill] sm:$0xff] }
0x2340   : > { %v13856_v42 = vpop.permute.xlu1 %13855  ;;  %v7924_v48 = vsel %vm996_vm2, %v7920_v29, %v31258_v23  ;;  %v7919_v17 = vsel %vm991_vm1, %v35444_v2, %v35443_v0  ;;  %v35445_v29 = vld [vmem:[#allocation184_spill] sm:$0xff]  ;;  %v7922_v0 = vsel %vm996_vm2, %v7918_v58, %v31253_v7 }
0x2341   : > { %v7928_v36 = vsel %vm1001_vm3, %v7924_v48, %v35442_v20  ;;  %v32527_v48 = vperm.slane %v35445_v29, %v28621_v57 }
0x2343   : > { %v16446_v61 = vrot.slane %v32527_v48, 4 }
0x2345   : > { %v16447_v2 = vsel %vm831_vm0, 0.0, %v16446_v61  ;;  %v35456_v61 = vld [vmem:[#allocation24_spill] sm:$0xff] }
0x2346   : > { %15641 = vrot.lane.b32.xlu1 %v15602_v31, %s28226_s16  ;;  %v15548_v31 = vsel %vm831_vm0, 0.0, %v15547_v25  ;;  %v15632_v25 = vsel %vm831_vm0, 0.0, %v15631_v22 }
0x2348   : > { %v13870_v34 = vpop.permute.xlu1 %13869 }
0x234e   : > { %15643 = vrot.lane.b32.xlu1 %v15630_v21, %s28226_s16 }
0x2350   : > { %v13884_v9 = vpop.permute.xlu1 %13883 }
0x2356   : > { %15655 = vrot.lane.b32.xlu1 %v31560_v45, %s28227_s17  ;;  %v13959_v45 = vsel %vm7033_vm4, %v7928_v36, %v31548_v51 }
0x2357   : > { %v13963_v63 = vsel %vm7038_vm5, %v13959_v45, %v13870_v34  ;;  %v35447_v45 = vld [vmem:[#allocation78_spill] sm:$0xff] }
0x2358   : > { %v13898_v53 = vpop.permute.xlu1 %13897  ;;  %v13967_v23 = vsel %vm7043_vm6, %v13963_v63, %v31655_v37  ;;  %v7926_v7 = vsel %vm1001_vm3, %v7922_v0, %v35447_v45  ;;  %v35454_v0 = vld [vmem:[#allocation36_spill] sm:$0xff] }
0x2359   : > { %v13971_v34 = vsel %vm7048_vm7, %v13967_v23, %v31647_v40 }
0x235e   : > { %15669 = vrot.lane.b32.xlu1 %v15548_v31, %s28228_s18  ;;  %v35446_v31 = vld [vmem:[#allocation69_spill] sm:$0xff] }
0x235f   : > { %v7923_v51 = vsel %vm996_vm2, %v7919_v17, %v35446_v31  ;;  %v35448_v17 = vld [vmem:[#allocation189_spill] sm:$0xff] }
0x2360   : > { %v13904_v21 = vpop.permute.xlu1 %13903  ;;  %v7927_v37 = vsel %vm1001_vm3, %v7923_v51, %v31262_v4  ;;  %v32560_v23 = vperm.slane %v35448_v17, %v28621_v57  ;;  %v35453_v51 = vld [vmem:[#allocation51_spill] sm:$0xff] }
0x2361   : > { %v13958_v63 = vsel %vm7033_vm4, %v7927_v37, %v31587_v39  ;;  %v13957_v39 = vsel %vm7033_vm4, %v7926_v7, %v13850_v11 }
0x2362   : > { %v13962_v36 = vsel %vm7038_vm5, %v13958_v63, %v31570_v56 }
0x2363   : > { %v13966_v22 = vsel %vm7043_vm6, %v13962_v36, %v13884_v9  ;;  %v35450_v9 = vld [vmem:[#allocation57_spill] sm:$0xff] }
0x2364   : > { %v13970_v56 = vsel %vm7048_vm7, %v13966_v22, %v31695_v47  ;;  %v35457_v22 = vld [vmem:[#allocation73_spill] sm:$0xff] }
0x2365   : > { %v13974_v47 = vsel %vm7053_vm8, %v13970_v56, %v35453_v51 }
0x2366   : > { %15675 = vrot.lane.b32.xlu1 %v15632_v25, %s28228_s18  ;;  %v35449_v25 = vld [vmem:[#allocation75_spill] sm:$0xff] }
0x2367   : > { %v7921_v29 = vsel %vm991_vm1, %v35450_v9, %v35449_v25  ;;  %v35460_v25 = vld [vmem:[#allocation42_spill] sm:$0xff] }
0x2368   : > { %v13918_v20 = vpop.permute.xlu1 %13917 }
0x2369   : > { %v13975_v18 = vsel %vm7053_vm8, %v13971_v34, %v13918_v20  ;;  %v16474_v34 = vrot.slane %v32560_v23, 4  ;;  %v35455_v20 = vld [vmem:[#allocation87_spill] sm:$0xff] }
0x236a   : > { %v13979_v4 = vsel %vm7058_vm10, %v13975_v18, %v31758_v55  ;;  %v35451_v55 = vld [vmem:[#allocation44_spill] sm:$0xff] }
0x236b   : > { %v13983_v40 = vsel %vm7063_vm9, %v13979_v4, %v31761_v27  ;;  %v13961_v11 = vsel %vm7038_vm5, %v13957_v39, %v35451_v55  ;;  %v35452_v27 = vld [vmem:[#allocation29_spill] sm:$0xff]  ;;  %v16475_v39 = vsel %vm831_vm0, 0.0, %v16474_v34 }
0x236c   : > { %13993 = vst [vmem:[#allocation1 + $0x10] ss:$2 sm:$0xff] %v13983_v40  ;;  %v7925_v31 = vsel %vm996_vm2, %v7921_v29, %v35452_v27  ;;  %v13965_v37 = vsel %vm7043_vm6, %v13961_v11, %v35454_v0  ;;  %v35458_v40 = vld [vmem:[#allocation19_spill] sm:$0xff]  ;;  %v35461_v55 = vld [vmem:[#allocation25_spill] sm:$0xff]  ;;  %v35464_v0 = vld [vmem:[#allocation60_spill] sm:$0xff] }
0x236d   : > { %v7929_v36 = vsel %vm1001_vm3, %v7925_v31, %v35455_v20  ;;  %v13969_v18 = vsel %vm7048_vm7, %v13965_v37, %v13898_v53  ;;  %v35462_v27 = vld [vmem:[#allocation13_spill] sm:$0xff]  ;;  %v35463_v31 = vld [vmem:[#allocation70_spill] sm:$0xff]  ;;  %v16392_v37 = vrot.slane %v35464_v0, 4 }
0x236e   : > { %16486 = vrot.lane.b32.xlu1 %v16447_v2, %s28226_s16  ;;  %v13960_v7 = vsel %vm7033_vm4, %v7929_v36, %v13856_v42  ;;  %v13973_v4 = vsel %vm7053_vm8, %v13969_v18, %v35457_v22  ;;  %v35459_v2 = vld [vmem:[#allocation59_spill] sm:$0xff]  ;;  %v35465_v20 = vld [vmem:[#allocation17_spill] sm:$0xff] }
0x236f   : > { %v13964_v56 = vsel %vm7038_vm5, %v13960_v7, %v35458_v40  ;;  %v13977_v53 = vsel %vm7058_vm10, %v13973_v4, %v35459_v2  ;;  %v16476_v36 = vrot.slane %v35465_v20, 4  ;;  %v35467_v40 = vld [vmem:[#allocation203_spill] sm:$0xff] }
0x2370   : > { %v13932_v58 = vpop.permute.xlu1 %13931  ;;  %v13968_v9 = vsel %vm7043_vm6, %v13964_v56, %v35460_v25  ;;  %v32621_v56 = vperm.slane %v35467_v40, %v28621_v57 }
0x2371   : > { %v13978_v63 = vsel %vm7058_vm10, %v13974_v47, %v13932_v58  ;;  %v13972_v29 = vsel %vm7048_vm7, %v13968_v9, %v13904_v21  ;;  %v16393_v21 = vsel %vm831_vm0, 0.0, %v16392_v37  ;;  %v35468_v9 = vld [vmem:[#allocation52_spill] sm:$0xff] }
0x2372   : > { %v13982_v45 = vsel %vm7063_vm9, %v13978_v63, %v35456_v61  ;;  %v13976_v11 = vsel %vm7053_vm8, %v13972_v29, %v35461_v55  ;;  %v16477_v61 = vsel %vm831_vm0, 0.0, %v16476_v36  ;;  %v35469_v29 = vld [vmem:[#allocation86_spill] sm:$0xff] }
0x2373   : > { %13991 = vst [vmem:[#allocation1 + $0x1] ss:$2 sm:$0xff] %v13982_v45  ;;  %v13980_v51 = vsel %vm7058_vm10, %v13976_v11, %v35463_v31  ;;  %v35466_v45 = vld [vmem:[#allocation200_spill] sm:$0xff]  ;;  %v17237_v55 = vrot.slane %v35469_v29, 4  ;;  %v18082_v29 = vrot.slane %v31855_v50, 4 }
0x2374   : > { %v32612_v7 = vperm.slane %v35466_v45, %v28621_v57  ;;  %v35470_v31 = vld [vmem:[#allocation8_spill] sm:$0xff] }
0x2375   : > { %v17238_v11 = vsel %vm831_vm0, 0.0, %v17237_v55 }
0x2376   : > { %16488 = vrot.lane.b32.xlu1 %v16475_v39, %s28226_s16  ;;  %v17291_v4 = vrot.slane %v32612_v7, 4 }
0x2378   : > { %v13946_v17 = vpop.permute.xlu1 %13945  ;;  %v17292_v39 = vsel %vm831_vm0, 0.0, %v17291_v4 }
0x2379   : > { %v13981_v42 = vsel %vm7063_vm9, %v13977_v53, %v13946_v17  ;;  %v17319_v53 = vrot.slane %v32621_v56, 4 }
0x237a   : > { %13989 = vst [vmem:[#allocation1] ss:$2 sm:$0xff] %v13981_v42 }
0x237b   : > { %v17320_v17 = vsel %vm831_vm0, 0.0, %v17319_v53 }
0x237e   : > { %16500 = vrot.lane.b32.xlu1 %v35462_v27, %s28227_s17 }
0x2380   : > { %v13952_v47 = vpop.permute.xlu1 %13951 }
0x2381   : > { %v13984_v58 = vsel %vm7063_vm9, %v13980_v51, %v13952_v47  ;;  %v13996_v63 = vld.sshfl [vmem:[#allocation1] sm:$0xff pattern:$0x75316420]  ;;  %v17321_v51 = vrot.slane %v35470_v31, 4  ;;  %v35474_v31 = vld [vmem:[#allocation72_spill] sm:$0xff] }
0x2382   : > { %13995 = vst [vmem:[#allocation1 + $0x11] ss:$2 sm:$0xff] %v13984_v58  ;;  %v35471_v58 = vld [vmem:[#allocation214_spill] sm:$0xff] }
0x2383   : > { %27985 = vst [vmem:[%s31238_s30 + $0x10] sm:$0xff] %v13996_v63  ;;  %v17322_v47 = vsel %vm831_vm0, 0.0, %v17321_v51  ;;  %v32644_v0 = vperm.slane %v35471_v58, %v28621_v57  ;;  %v18166_v51 = vrot.slane %v35474_v31, 4 }
0x2385   : > { %v18167_v50 = vsel %vm831_vm0, 0.0, %v18166_v51 }
0x2386   : > { %16514 = vrot.lane.b32.xlu1 %v16393_v21, %s28228_s18  ;;  %v18136_v21 = vrot.slane %v32644_v0, 4 }
0x2388   : > { %v32605_v34 = vpop.permute.xlu1 %14792 }
0x2389   : > { %v13997_v18 = vld.sshfl [vmem:[#allocation1 + $0x10] sm:$0xff pattern:$0x75316420] }
0x238a   : > { %27986 = vst [vmem:[%s31238_s30 + $0x18] sm:$0xff] %v13997_v18  ;;  %v18137_v18 = vsel %vm831_vm0, 0.0, %v18136_v21 }
0x238e   : > { %16520 = vrot.lane.b32.xlu1 %v16477_v61, %s28228_s18  ;;  %v35472_v61 = vld [vmem:[#allocation217_spill] sm:$0xff] }
0x238f   : > { %v32658_v45 = vperm.slane %v35472_v61, %v28621_v57 }
0x2390   : > { %v32615_v22 = vpop.permute.xlu1 %14798 }
0x2396   : > { %17331 = vrot.lane.b32.xlu1 %v17292_v39, %s28226_s16 }
0x2398   : > { %v32624_v2 = vpop.permute.xlu1 %14808 }
0x239e   : > { %17333 = vrot.lane.b32.xlu1 %v17320_v17, %s28226_s16 }
0x23a0   : > { %v32629_v25 = vpop.permute.xlu1 %14812 }
0x23a6   : > { %17345 = vrot.lane.b32.xlu1 %v35468_v9, %s28227_s17 }
0x23a8   : > { %v32633_v42 = vpop.permute.xlu1 %14824 }
0x23ae   : > { %17359 = vrot.lane.b32.xlu1 %v17238_v11, %s28228_s18  ;;  %v18083_v11 = vsel %vm831_vm0, 0.0, %v18082_v29 }
0x23b0   : > { %v32638_v27 = vpop.permute.xlu1 %14830 }
0x23b6   : > { %17365 = vrot.lane.b32.xlu1 %v17322_v47, %s28228_s18  ;;  %v35475_v47 = vld [vmem:[#allocation226_spill] sm:$0xff] }
0x23b7   : > { %v32688_v58 = vperm.slane %v35475_v47, %v28621_v57 }
0x23b8   : > { %v15642_v37 = vpop.permute.xlu1 %15641 }
0x23b9   : > { %v15683_v63 = vsel %vm991_vm1, %v32490_v49, %v15642_v37  ;;  %v18164_v49 = vrot.slane %v32658_v45, 4 }
0x23ba   : > { %v15687_v20 = vsel %vm996_vm2, %v15683_v63, %v32063_v62 }
0x23bb   : > { %v15691_v36 = vsel %vm1001_vm3, %v15687_v20, %v31950_v15  ;;  %v18165_v39 = vsel %vm831_vm0, 0.0, %v18164_v49  ;;  %v35473_v15 = vld [vmem:[#allocation35_spill] sm:$0xff] }
0x23bc   : > { %20771 = vrot.lane.b32.xlu0 %v15691_v36, %s28229_s22  ;;  %v15681_v40 = vsel %vm991_vm1, %v35473_v15, %v31916_v46  ;;  %v35476_v36 = vld [vmem:[#allocation229_spill] sm:$0xff] }
0x23bd   : > { %v15685_v53 = vsel %vm996_vm2, %v15681_v40, %v31924_v14 }
0x23be   : > { %18176 = vrot.lane.b32.xlu1 %v18137_v18, %s28226_s16  ;;  %v32702_v18 = vperm.slane %v35476_v36, %v28621_v57 }
0x23c0   : > { %v15644_v4 = vpop.permute.xlu1 %15643 }
0x23c1   : > { %v15684_v55 = vsel %vm991_vm1, %v32497_v38, %v15644_v4 }
0x23c6   : > { %18178 = vrot.lane.b32.xlu1 %v18165_v39, %s28226_s16 }
0x23c8   : > { %v32664_v62 = vpop.permute.xlu1 %15655 }
0x23ce   : > { %18190 = vrot.lane.b32.xlu1 %v31872_v54, %s28227_s17  ;;  %v15688_v54 = vsel %vm996_vm2, %v15684_v55, %v31942_v60  ;;  %v18981_v60 = vrot.slane %v32688_v58, 4 }
0x23d0   : > { %v15670_v17 = vpop.permute.xlu1 %15669  ;;  %v18982_v20 = vsel %vm831_vm0, 0.0, %v18981_v60 }
0x23d1   : > { %v15689_v9 = vsel %vm1001_vm3, %v15685_v53, %v15670_v17 }
0x23d2   : > { %20767 = vrot.lane.b32.xlu2 %v15689_v9, %s28229_s22  ;;  %v35478_v9 = vld [vmem:[#allocation239_spill] sm:$0xff] }
0x23d3   : > { %v32729_v29 = vperm.slane %v35478_v9, %v28621_v57 }
0x23d6   : > { %18204 = vrot.lane.b32.xlu1 %v18083_v11, %s28228_s18 }
0x23d8   : > { %v15676_v46 = vpop.permute.xlu1 %15675 }
0x23d9   : > { %v15692_v14 = vsel %vm1001_vm3, %v15688_v54, %v15676_v46 }
0x23da   : > { %20773 = vrot.lane.b32.xlu2 %v15692_v14, %s28229_s22  ;;  %v35480_v14 = vld [vmem:[#allocation54_spill] sm:$0xff] }
0x23db   : > { %v17372_v31 = vsel %vm991_vm1, %v35480_v14, %v32074_v19  ;;  %v35489_v14 = vld [vmem:[#allocation113_spill] sm:$0xff] }
0x23de   : > { %18210 = vrot.lane.b32.xlu1 %v18167_v50, %s28228_s18 }
0x23e0   : > { %v16487_v38 = vpop.permute.xlu1 %16486 }
0x23e1   : > { %v16528_v37 = vsel %vm991_vm1, %v32527_v48, %v16487_v38  ;;  %v19009_v48 = vrot.slane %v32702_v18, 4  ;;  %v35481_v38 = vld [vmem:[#allocation68_spill] sm:$0xff] }
0x23e2   : > { %v16532_v63 = vsel %vm996_vm2, %v16528_v37, %v32070_v52  ;;  %v17371_v37 = vsel %vm991_vm1, %v35481_v38, %v31998_v5  ;;  %v35490_v38 = vld [vmem:[#allocation127_spill] sm:$0xff] }
0x23e3   : > { %v16536_v21 = vsel %vm1001_vm3, %v16532_v63, %v31984_v28  ;;  %v19010_v4 = vsel %vm831_vm0, 0.0, %v19009_v48  ;;  %v35477_v28 = vld [vmem:[#allocation67_spill] sm:$0xff]  ;;  %v17375_v60 = vsel %vm996_vm2, %v17371_v37, %v32003_v32  ;;  %v32768_v48 = vpop.trf.xlu0  ;;  %v35491_v37 = vld [vmem:[#allocation37_spill] sm:$0xff] }
0x23e4   : > { %20787 = vrot.lane.b32.xlu2 %v16536_v21, %s28230_s23  ;;  %v16527_v52 = vsel %vm991_vm1, %v35477_v28, %v32068_v59  ;;  %v18983_v59 = vrot.slane %v31931_v16, 4  ;;  %v32760_v21 = vpop.trf.xlu2 }
0x23e6   : > { %19021 = vrot.lane.b32.xlu1 %v18982_v20, %s28226_s16  ;;  %v18984_v17 = vsel %vm831_vm0, 0.0, %v18983_v59  ;;  %v35482_v20 = vld [vmem:[#allocation15_spill] sm:$0xff] }
0x23e8   : > { %v32705_v61 = vpop.permute.xlu1 %16488 }
0x23ee   : > { %19023 = vrot.lane.b32.xlu1 %v19010_v4, %s28226_s16  ;;  %v35484_v4 = vld [vmem:[#allocation169_spill] sm:$0xff] }
0x23ef   : > { %v19828_v28 = vrot.slane %v35484_v4, 4 }
0x23f0   : > { %v16501_v49 = vpop.permute.xlu1 %16500 }
0x23f1   : > { %v16531_v39 = vsel %vm996_vm2, %v16527_v52, %v16501_v49  ;;  %v19829_v49 = vsel %vm831_vm0, 0.0, %v19828_v28 }
0x23f2   : > { %v16535_v15 = vsel %vm1001_vm3, %v16531_v39, %v32072_v35 }
0x23f3   : > { %20785 = vrot.lane.b32.xlu0 %v16535_v15, %s28230_s23  ;;  %v35486_v15 = vld [vmem:[#allocation128_spill] sm:$0xff] }
0x23f4   : > { %v20687_v59 = vrot.slane %v35486_v15, 4 }
0x23f6   : > { %19035 = vrot.lane.b32.xlu1 %v31935_v6, %s28227_s17  ;;  %v19826_v6 = vrot.slane %v32729_v29, 4 }
0x23f8   : > { %v32719_v40 = vpop.permute.xlu1 %16514  ;;  %v19827_v55 = vsel %vm831_vm0, 0.0, %v19826_v6 }
0x23fe   : > { %19039 = vrot.lane.b32.xlu1 %v31824_v1, %s28227_s17  ;;  %v35479_v1 = vld [vmem:[#allocation242_spill] sm:$0xff] }
0x23ff   : > { %v32738_v11 = vperm.slane %v35479_v1, %v28621_v57 }
0x2400   : > { %v32723_v53 = vpop.permute.xlu1 %16520 }
0x2401   : > { %v19854_v54 = vrot.slane %v32738_v11, 4 }
0x2403   : > { %v19855_v46 = vsel %vm831_vm0, 0.0, %v19854_v54 }
0x2406   : > { %19053 = vrot.lane.b32.xlu1 %v18984_v17, %s28228_s18 }
0x2408   : > { %v32732_v35 = vpop.permute.xlu1 %17331 }
0x240e   : > { %19866 = vrot.lane.b32.xlu1 %v19827_v55, %s28226_s16  ;;  %v35487_v55 = vld [vmem:[#allocation96_spill] sm:$0xff] }
0x2410   : > { %v17334_v16 = vpop.permute.xlu1 %17333 }
0x2416   : > { %19868 = vrot.lane.b32.xlu1 %v19855_v46, %s28226_s16  ;;  %v32789_v46 = vpop.trf.xlu0 }
0x2418   : > { %v17346_v51 = vpop.permute.xlu1 %17345 }
0x2419   : > { %v17376_v50 = vsel %vm996_vm2, %v17372_v31, %v17346_v51 }
0x241a   : > { %v17380_v47 = vsel %vm1001_vm3, %v17376_v50, %v32078_v30  ;;  %v17374_v30 = vsel %vm991_vm1, %v32621_v56, %v17334_v16  ;;  %v35485_v56 = vld [vmem:[#allocation66_spill] sm:$0xff] }
0x241b   : > { %20801 = vrot.lane.b32.xlu2 %v17380_v47, %s28231_s24  ;;  %v32778_v39 = vperm.slane %v35485_v56, %v28621_v57  ;;  %v35488_v16 = vld [vmem:[#allocation118_spill] sm:$0xff]  ;;  %v35494_v56 = vld [vmem:[#allocation179_spill] sm:$0xff] }
0x241c   : > { %v20688_v54 = vsel %vm831_vm0, %v20687_v59, %v35488_v16  ;;  %v35496_v59 = vld [vmem:[#allocation45_spill] sm:$0xff]  ;;  %v35498_v16 = vld [vmem:[#allocation91_spill] sm:$0xff] }
0x241d   : > { %v20671_v6 = vrot.slane %v32778_v39, 4  ;;  %v32796_v50 = vperm.slane %v20688_v54, %v28621_v57 }
0x241e   : > { %19880 = vrot.lane.b32.xlu1 %v31965_v44, %s28227_s17  ;;  %v35483_v44 = vld [vmem:[#allocation99_spill] sm:$0xff] }
0x241f   : > { %v17378_v36 = vsel %vm996_vm2, %v17374_v30, %v35483_v44  ;;  %v20672_v51 = vsel %vm831_vm0, 0.0, %v20671_v6 }
0x2420   : > { %v17360_v63 = vpop.permute.xlu1 %17359 }
0x2421   : > { %v17379_v19 = vsel %vm1001_vm3, %v17375_v60, %v17360_v63  ;;  %v14838_v60 = vsel %vm991_vm1, %v35491_v37, %v35490_v38  ;;  %v20699_v63 = vrot.slane %v32796_v50, 4 }
0x2422   : > { %20799 = vrot.lane.b32.xlu0 %v17379_v19, %s28231_s24  ;;  %v14842_v19 = vsel %vm996_vm2, %v14838_v60, %v32629_v25  ;;  %v35495_v25 = vld [vmem:[#allocation11_spill] sm:$0xff] }
0x2423   : > { %v18216_v15 = vsel %vm991_vm1, %v35495_v25, %v35494_v56 }
0x2426   : > { %19884 = vrot.lane.b32.xlu1 %v35482_v20, %s28227_s17  ;;  %v35492_v20 = vld [vmem:[#allocation62_spill] sm:$0xff] }
0x2427   : > { %v14846_v44 = vsel %vm1001_vm3, %v14842_v19, %v35492_v20 }
0x2428   : > { %v17366_v5 = vpop.permute.xlu1 %17365 }
0x2429   : > { %v17382_v32 = vsel %vm1001_vm3, %v17378_v36, %v17366_v5  ;;  %v20700_v36 = vsel %vm831_vm0, 0.0, %v20699_v63  ;;  %v35500_v63 = vld [vmem:[#allocation95_spill] sm:$0xff] }
0x242a   : > { %20805 = vrot.lane.b32.xlu0 %v17382_v32, %s28231_s24 }
0x242c   : > { %v32773_v52 = vpop.permute.xlu2 %20767 }
0x242e   : > { %19898 = vrot.lane.b32.xlu1 %v19829_v49, %s28228_s18  ;;  %v20772_v30 = vpop.permute.xlu0 %20771  ;;  %v35493_v49 = vld [vmem:[#allocation79_spill] sm:$0xff] }
0x242f   : > { %v20877_v5 = vsel %vm7033_vm4, %v14846_v44, %v20772_v30  ;;  %v35502_v30 = vld [vmem:[#allocation22_spill] sm:$0xff] }
0x2430   : > { %v18177_v17 = vpop.permute.xlu1 %18176 }
0x2431   : > { %v18218_v9 = vsel %vm991_vm1, %v32644_v0, %v18177_v17  ;;  %v18220_v17 = vsel %vm996_vm2, %v18216_v15, %v35496_v59  ;;  %v35506_v15 = vld [vmem:[#allocation125_spill] sm:$0xff] }
0x2432   : > { %v18222_v1 = vsel %vm996_vm2, %v18218_v9, %v35487_v55 }
0x2433   : > { %v18226_v31 = vsel %vm1001_vm3, %v18222_v1, %v35489_v14  ;;  %v35497_v1 = vld [vmem:[#allocation103_spill] sm:$0xff] }
0x2434   : > { %20819 = vrot.lane.b32.xlu0 %v18226_v31, %s28232_s25  ;;  %v32798_v0 = vpop.permute.xlu2 %20773 }
0x2436   : > { %20711 = vrot.lane.b32.xlu1 %v20672_v51, %s28226_s16  ;;  %v35499_v51 = vld [vmem:[#allocation50_spill] sm:$0xff] }
0x2437   : > { %v20673_v38 = vrot.slane %v35499_v51, 4 }
0x2438   : > { %v18179_v47 = vpop.permute.xlu1 %18178 }
0x2439   : > { %v18219_v55 = vsel %vm991_vm1, %v32658_v45, %v18179_v47  ;;  %v20674_v37 = vsel %vm831_vm0, 0.0, %v20673_v38  ;;  %v35501_v45 = vld [vmem:[#allocation34_spill] sm:$0xff]  ;;  %v17373_v38 = vsel %vm991_vm1, %v32612_v7, %v32732_v35 }
0x243a   : > { %v18223_v54 = vsel %vm996_vm2, %v18219_v55, %v35498_v16  ;;  %v15682_v47 = vsel %vm991_vm1, %v35501_v45, %v35500_v63  ;;  %v35508_v55 = vld [vmem:[#allocation33_spill] sm:$0xff]  ;;  %v35513_v63 = vld [vmem:[#allocation106_spill] sm:$0xff] }
0x243b   : > { %v15686_v19 = vsel %vm996_vm2, %v15682_v47, %v32664_v62  ;;  %v35507_v62 = vld [vmem:[#allocation112_spill] sm:$0xff]  ;;  %v35509_v16 = vld [vmem:[#allocation81_spill] sm:$0xff]  ;;  %v17377_v45 = vsel %vm996_vm2, %v17373_v38, %v35513_v63  ;;  %v35514_v47 = vld [vmem:[#allocation119_spill] sm:$0xff] }
0x243c   : > { %v15690_v20 = vsel %vm1001_vm3, %v15686_v19, %v35502_v30  ;;  %v19062_v59 = vsel %vm991_vm1, %v35507_v62, %v35506_v15  ;;  %v35515_v30 = vld [vmem:[#allocation94_spill] sm:$0xff]  ;;  %v35520_v62 = vld [vmem:[#allocation56_spill] sm:$0xff]  ;;  %v35527_v63 = vld [vmem:[#allocation93_spill] sm:$0xff] }
0x243e   : > { %20713 = vrot.lane.b32.xlu1 %v20700_v36, %s28226_s16  ;;  %v20788_v32 = vpop.permute.xlu2 %20787  ;;  %v35503_v36 = vld [vmem:[#allocation154_spill] sm:$0xff] }
0x243f   : > { %v32813_v4 = vsel %vm7038_vm5, %v20877_v5, %v20788_v32  ;;  %v35504_v5 = vld [vmem:[#allocation41_spill] sm:$0xff] }
0x2440   : > { %v18191_v28 = vpop.permute.xlu1 %18190  ;;  %v16526_v32 = vsel %vm991_vm1, %v35504_v5, %v35503_v36  ;;  %v35516_v36 = vld [vmem:[#allocation107_spill] sm:$0xff] }
0x2441   : > { %v35517_v5 = vld [vmem:[#allocation123_spill] sm:$0xff] }
0x2446   : > { %20725 = vrot.lane.b32.xlu1 %v35493_v49, %s28227_s17  ;;  %v35505_v49 = vld [vmem:[#allocation23_spill] sm:$0xff] }
0x2447   : > { %v16530_v56 = vsel %vm996_vm2, %v16526_v32, %v35505_v49  ;;  %v35518_v32 = vld [vmem:[#allocation49_spill] sm:$0xff] }
0x2448   : > { %v18205_v9 = vpop.permute.xlu1 %18204  ;;  %v16534_v25 = vsel %vm1001_vm3, %v16530_v56, %v32719_v40  ;;  %v18217_v49 = vsel %vm991_vm1, %v35518_v32, %v35517_v5 }
0x2449   : > { %v18224_v6 = vsel %vm1001_vm3, %v18220_v17, %v18205_v9  ;;  %v16529_v9 = vsel %vm991_vm1, %v32560_v23, %v32705_v61  ;;  %v35512_v23 = vld [vmem:[#allocation105_spill] sm:$0xff] }
0x244a   : > { %20815 = vrot.lane.b32.xlu2 %v18224_v6, %s28232_s25  ;;  %v16533_v40 = vsel %vm996_vm2, %v16529_v9, %v35509_v16  ;;  %v35522_v9 = vld [vmem:[#allocation186_spill] sm:$0xff] }
0x244e   : > { %20729 = vrot.lane.b32.xlu1 %v35497_v1, %s28227_s17 }
0x2450   : > { %v18211_v14 = vpop.permute.xlu1 %18210 }
0x2451   : > { %v18227_v31 = vsel %vm1001_vm3, %v18223_v54, %v18211_v14  ;;  %v16537_v54 = vsel %vm1001_vm3, %v16533_v40, %v32723_v53  ;;  %v35510_v14 = vld [vmem:[#allocation110_spill] sm:$0xff] }
0x2452   : > { %20821 = vrot.lane.b32.xlu2 %v18227_v31, %s28232_s25  ;;  %v35511_v31 = vld [vmem:[#allocation142_spill] sm:$0xff] }
0x2453   : > { %v19906_v51 = vsel %vm991_vm1, %v35511_v31, %v35510_v14  ;;  %v35525_v31 = vld [vmem:[#allocation104_spill] sm:$0xff] }
0x2454   : > { %v19910_v61 = vsel %vm996_vm2, %v19906_v51, %v35512_v23  ;;  %v35526_v51 = vld [vmem:[#allocation63_spill] sm:$0xff] }
0x2455   : > { %v19914_v53 = vsel %vm1001_vm3, %v19910_v61, %v35514_v47  ;;  %v19907_v23 = vsel %vm991_vm1, %v35526_v51, %v35525_v31  ;;  %v35530_v47 = vld [vmem:[#allocation18_spill] sm:$0xff]  ;;  %v35540_v31 = vld [vmem:[#allocation168_spill] sm:$0xff] }
0x2456   : > { %20743 = vrot.lane.b32.xlu1 %v20674_v37, %s28228_s18 }
0x2458   : > { %v19022_v60 = vpop.permute.xlu1 %19021 }
0x2459   : > { %v19063_v19 = vsel %vm991_vm1, %v32688_v58, %v19022_v60  ;;  %v35519_v58 = vld [vmem:[#allocation111_spill] sm:$0xff] }
0x245a   : > { %v19067_v7 = vsel %vm996_vm2, %v19063_v19, %v35516_v36  ;;  %v35531_v36 = vld [vmem:[#allocation122_spill] sm:$0xff] }
0x245e   : > { %20769 = vrot.lane.b32.xlu1 %v15690_v20, %s28229_s22  ;;  %v17381_v20 = vsel %vm1001_vm3, %v17377_v45, %v35515_v30 }
0x2460   : > { %v19024_v44 = vpop.permute.xlu1 %19023 }
0x2461   : > { %v19064_v16 = vsel %vm991_vm1, %v32702_v18, %v19024_v44  ;;  %v35528_v18 = vld [vmem:[#allocation98_spill] sm:$0xff]  ;;  %v35529_v44 = vld [vmem:[#allocation61_spill] sm:$0xff] }
0x2466   : > { %20783 = vrot.lane.b32.xlu1 %v16534_v25, %s28230_s23  ;;  %v18221_v25 = vsel %vm996_vm2, %v18217_v49, %v18191_v28  ;;  %v35533_v49 = vld [vmem:[#allocation100_spill] sm:$0xff] }
0x2467   : > { %v18225_v60 = vsel %vm1001_vm3, %v18221_v25, %v35519_v58  ;;  %v35534_v58 = vld [vmem:[#allocation141_spill] sm:$0xff] }
0x2468   : > { %v19036_v17 = vpop.permute.xlu1 %19035 }
0x2469   : > { %v19066_v6 = vsel %vm996_vm2, %v19062_v59, %v19036_v17  ;;  %v35521_v59 = vld [vmem:[#allocation21_spill] sm:$0xff] }
0x246a   : > { %v19070_v1 = vsel %vm1001_vm3, %v19066_v6, %v35508_v55  ;;  %v19061_v17 = vsel %vm991_vm1, %v35521_v59, %v35520_v62  ;;  %v35523_v55 = vld [vmem:[#allocation101_spill] sm:$0xff]  ;;  %v35535_v59 = vld [vmem:[#allocation160_spill] sm:$0xff] }
0x246b   : > { %20833 = vrot.lane.b32.xlu0 %v19070_v1, %s28233_s26  ;;  %v19065_v6 = vsel %vm996_vm2, %v19061_v17, %v35522_v9  ;;  %v35536_v9 = vld [vmem:[#allocation126_spill] sm:$0xff] }
0x246c   : > { %v19069_v1 = vsel %vm1001_vm3, %v19065_v6, %v35523_v55  ;;  %v21622_v6 = vrot.slane %v35536_v9, 4 }
0x246e   : > { %20789 = vrot.lane.b32.xlu1 %v16537_v54, %s28230_s23  ;;  %v35524_v54 = vld [vmem:[#allocation38_spill] sm:$0xff] }
0x2470   : > { %v19040_v37 = vpop.permute.xlu1 %19039 }
0x2471   : > { %v19068_v40 = vsel %vm996_vm2, %v19064_v16, %v19040_v37  ;;  %v20751_v37 = vsel %vm991_vm1, %v35529_v44, %v35528_v18 }
0x2472   : > { %v19072_v14 = vsel %vm1001_vm3, %v19068_v40, %v35524_v54  ;;  %v35539_v40 = vld [vmem:[#allocation88_spill] sm:$0xff] }
0x2473   : > { %20847 = vrot.lane.b32.xlu0 %v19914_v53, %s28234_s27  ;;  %v20755_v53 = vsel %vm996_vm2, %v20751_v37, %v35530_v47  ;;  %v21623_v54 = vsel %vm831_vm0, %v21622_v6, %v35539_v40  ;;  %v35544_v37 = vld [vmem:[#allocation82_spill] sm:$0xff] }
0x2474   : > { %v21627_v44 = vperm.slane %v21623_v54, %v28351_v41  ;;  %v21650_v47 = vrot.slane %v35544_v37, 4  ;;  %v35552_v54 = vld [vmem:[#allocation109_spill] sm:$0xff] }
0x2476   : > { %20803 = vrot.lane.b32.xlu1 %v17381_v20, %s28231_s24 }
0x2478   : > { %v19054_v35 = vpop.permute.xlu1 %19053 }
0x2479   : > { %v19071_v56 = vsel %vm1001_vm3, %v19067_v7, %v19054_v35  ;;  %v35532_v35 = vld [vmem:[#allocation132_spill] sm:$0xff] }
0x247a   : > { %20835 = vrot.lane.b32.xlu2 %v19071_v56, %s28233_s26  ;;  %v20759_v5 = vsel %vm1001_vm3, %v20755_v53, %v35532_v35  ;;  %v35547_v35 = vld [vmem:[#allocation129_spill] sm:$0xff] }
0x247e   : > { %20817 = vrot.lane.b32.xlu1 %v18225_v60, %s28232_s25  ;;  %v21628_v60 = vrot.slane %v35534_v58, 4 }
0x2480   : > { %v19867_v15 = vpop.permute.xlu1 %19866  ;;  %v21629_v17 = vsel %vm831_vm0, %v21628_v60, %v35535_v59  ;;  %v35550_v60 = vld [vmem:[#allocation148_spill] sm:$0xff] }
0x2481   : > { %v19908_v32 = vsel %vm991_vm1, %v32729_v29, %v19867_v15  ;;  %v32941_v55 = vperm.slane %v21629_v17, %v28351_v41  ;;  %v35537_v29 = vld [vmem:[#allocation133_spill] sm:$0xff]  ;;  %v21651_v59 = vsel %vm831_vm0, %v21650_v47, %v35550_v60  ;;  %v35553_v47 = vld [vmem:[#allocation120_spill] sm:$0xff] }
0x2482   : > { %v19912_v56 = vsel %vm996_vm2, %v19908_v32, %v35533_v49  ;;  %v21656_v15 = vrot.slane %v35537_v29, 4  ;;  %v35548_v49 = vld [vmem:[#allocation97_spill] sm:$0xff]  ;;  %v32985_v40 = vperm.slane %v21651_v59, %v28351_v41 }
0x2483   : > { %v35551_v17 = vld [vmem:[#allocation85_spill] sm:$0xff] }
0x2484   : > { %v21657_v51 = vsel %vm831_vm0, %v21656_v15, %v35540_v31 }
0x2485   : > { %v32957_v53 = vperm.slane %v21657_v51, %v28351_v41 }
0x2486   : > { %20831 = vrot.lane.b32.xlu1 %v19069_v1, %s28233_s26  ;;  %v35538_v1 = vld [vmem:[#allocation139_spill] sm:$0xff] }
0x2487   : > { %v21662_v29 = vrot.slane %v32957_v53, 4 }
0x2488   : > { %v19869_v28 = vpop.permute.xlu1 %19868 }
0x2489   : > { %v19909_v19 = vsel %vm991_vm1, %v32738_v11, %v19869_v28  ;;  %v21684_v28 = vrot.slane %v35538_v1, 4 }
0x248e   : > { %20837 = vrot.lane.b32.xlu1 %v19072_v14, %s28233_s26  ;;  %v21634_v14 = vrot.slane %v32941_v55, 4 }
0x2490   : > { %v19881_v61 = vpop.permute.xlu1 %19880 }
0x2491   : > { %v19911_v38 = vsel %vm996_vm2, %v19907_v23, %v19881_v61  ;;  %v35541_v23 = vld [vmem:[#allocation153_spill] sm:$0xff] }
0x2492   : > { %v19915_v45 = vsel %vm1001_vm3, %v19911_v38, %v35527_v63  ;;  %v21678_v61 = vrot.slane %v35541_v23, 4  ;;  %v35542_v38 = vld [vmem:[#allocation158_spill] sm:$0xff]  ;;  %v21663_v23 = vsel %vm831_vm0, %v21662_v29, %v32985_v40 }
0x2493   : > { %20849 = vrot.lane.b32.xlu2 %v19915_v45, %s28234_s27  ;;  %v21685_v63 = vsel %vm831_vm0, %v21684_v28, %v35542_v38  ;;  %v35543_v45 = vld [vmem:[#allocation134_spill] sm:$0xff] }
0x2494   : > { %v21600_v18 = vrot.slane %v35543_v45, 4 }
0x2498   : > { %v19885_v30 = vpop.permute.xlu1 %19884 }
0x2499   : > { %v19913_v20 = vsel %vm996_vm2, %v19909_v19, %v19885_v30  ;;  %v32960_v19 = vperm.slane %v21685_v63, %v28351_v41  ;;  %v21635_v30 = vsel %vm831_vm0, %v21634_v14, %v21627_v44 }
0x249a   : > { %v19917_v7 = vsel %vm1001_vm3, %v19913_v20, %v35531_v36  ;;  %v35545_v20 = vld [vmem:[#allocation136_spill] sm:$0xff]  ;;  %v32977_v6 = vperm.slane %v21635_v30, %v28621_v57 }
0x249b   : > { %20853 = vrot.lane.b32.xlu0 %v19917_v7, %s28234_s27  ;;  %20863 = vrot.lane.b32.xlu2 %v20759_v5, %s28235_s28  ;;  %v35546_v36 = vld [vmem:[#allocation12_spill] sm:$0xff]  ;;  %v21679_v5 = vsel %vm831_vm0, %v21678_v61, %v35547_v35  ;;  %v21690_v1 = vrot.slane %v32960_v19, 4 }
0x249c   : > { %v20752_v7 = vsel %vm991_vm1, %v35546_v36, %v35545_v20  ;;  %v21683_v15 = vperm.slane %v21679_v5, %v28351_v41  ;;  %v21646_v31 = vrot.slane %v32977_v6, 4  ;;  %v33004_v36 = vperm.slane %v21663_v23, %v28621_v57  ;;  %v35554_v5 = vld [vmem:[#allocation58_spill] sm:$0xff] }
0x249e   : > { %v21691_v51 = vsel %vm831_vm0, %v21690_v1, %v21683_v15  ;;  %v21647_v37 = vsel %vm831_vm0, 0.0, %v21646_v31  ;;  %v21674_v35 = vrot.slane %v33004_v36, 4 }
0x249f   : > { %v33001_v20 = vperm.slane %v21691_v51, %v28621_v57 }
0x24a0   : > { %v19899_v11 = vpop.permute.xlu1 %19898 }
0x24a1   : > { %v19916_v25 = vsel %vm1001_vm3, %v19912_v56, %v19899_v11  ;;  %v21601_v56 = vsel %vm831_vm0, %v21600_v18, %v35548_v49 }
0x24a2   : > { %20851 = vrot.lane.b32.xlu1 %v19916_v25, %s28234_s27  ;;  %v35549_v25 = vld [vmem:[#allocation130_spill] sm:$0xff]  ;;  %v21605_v28 = vperm.slane %v21601_v56, %v28351_v41 }
0x24a3   : > { %v21594_v58 = vrot.slane %v35549_v25, 4 }
0x24a4   : > { %v21606_v45 = vrot.slane %v21605_v28, 4 }
0x24a5   : > { %v21595_v14 = vsel %vm831_vm0, %v21594_v58, %v35552_v54  ;;  %v21636_v58 = vrot.slane %v21627_v44, 4  ;;  %v35555_v44 = vld [vmem:[#allocation171_spill] sm:$0xff] }
0x24a6   : > { %v21599_v63 = vperm.slane %v21595_v14, %v28351_v41  ;;  %v22501_v1 = vrot.slane %v35555_v44, 4  ;;  %v35556_v54 = vld [vmem:[#allocation175_spill] sm:$0xff]  ;;  %v35566_v44 = vld [vmem:[#allocation170_spill] sm:$0xff] }
0x24a7   : > { %v21637_v29 = vsel %vm831_vm0, %v32941_v55, %v21636_v58  ;;  %v22473_v14 = vrot.slane %v35556_v54, 4 }
0x24a8   : > { %v20712_v62 = vpop.permute.xlu1 %20711 }
0x24b0   : > { %v20714_v16 = vpop.permute.xlu1 %20713 }
0x24b1   : > { %v20754_v61 = vsel %vm991_vm1, %v32796_v50, %v20714_v16  ;;  %v20753_v50 = vsel %vm991_vm1, %v32778_v39, %v20712_v62  ;;  %v21607_v16 = vsel %vm831_vm0, %v21606_v45, %v21599_v63  ;;  %v21675_v62 = vsel %vm831_vm0, 0.0, %v21674_v35  ;;  %v35558_v45 = vld [vmem:[#allocation16_spill] sm:$0xff] }
0x24b2   : > { %v33016_v56 = vperm.slane %v21607_v16, %v28621_v57 }
0x24b4   : > { %v21618_v60 = vrot.slane %v33016_v56, 4 }
0x24b6   : > { %v21619_v51 = vsel %vm831_vm0, 0.0, %v21618_v60 }
0x24b8   : > { %v20726_v32 = vpop.permute.xlu1 %20725 }
0x24b9   : > { %v20756_v11 = vsel %vm996_vm2, %v20752_v7, %v20726_v32  ;;  %v21702_v7 = vrot.slane %v33001_v20, 4  ;;  %v20757_v32 = vsel %vm996_vm2, %v20753_v50, %v35554_v5  ;;  %v35560_v50 = vld [vmem:[#allocation162_spill] sm:$0xff]  ;;  %v35562_v5 = vld [vmem:[#allocation144_spill] sm:$0xff] }
0x24ba   : > { %v20760_v9 = vsel %vm1001_vm3, %v20756_v11, %v35551_v17  ;;  %v21608_v11 = vrot.slane %v21599_v63, 4  ;;  %v20786_v17 = vpop.permute.xlu0 %20785  ;;  %v22502_v16 = vsel %vm831_vm0, %v22501_v1, %v35560_v50 }
0x24bb   : > { %20865 = vrot.lane.b32.xlu1 %v20760_v9, %s28235_s28  ;;  %v21703_v39 = vsel %vm831_vm0, 0.0, %v21702_v7  ;;  %v20802_v9 = vpop.permute.xlu2 %20801  ;;  %v35561_v7 = vld [vmem:[#allocation167_spill] sm:$0xff]  ;;  %v33058_v60 = vperm.slane %v22502_v16, %v28351_v41 }
0x24bc   : > { %v21609_v59 = vsel %vm831_vm0, %v21605_v28, %v21608_v11 }
0x24bd   : > { %v21617_v23 = vperm.slane %v21609_v59, %v28621_v57 }
0x24bf   : > { %v21620_v58 = vrot.slane %v21617_v23, 4 }
0x24c0   : > { %v20730_v38 = vpop.permute.xlu1 %20729 }
0x24c1   : > { %v20758_v18 = vsel %vm996_vm2, %v20754_v61, %v20730_v38  ;;  %v21692_v61 = vrot.slane %v21683_v15, 4  ;;  %v35557_v38 = vld [vmem:[#allocation138_spill] sm:$0xff]  ;;  %v22495_v15 = vrot.slane %v35561_v7, 4 }
0x24c2   : > { %v20762_v30 = vsel %vm1001_vm3, %v20758_v18, %v35553_v47  ;;  %v22445_v63 = vrot.slane %v35557_v38, 4  ;;  %v21645_v18 = vperm.slane %v21637_v29, %v28621_v57  ;;  %v35559_v47 = vld [vmem:[#allocation147_spill] sm:$0xff] }
0x24c3   : > { %21712 = vrot.lane.b32.xlu1 %v21647_v37, %s28226_s16  ;;  %20869 = vrot.lane.b32.xlu2 %v20762_v30, %s28235_s28  ;;  %v21664_v37 = vrot.slane %v32985_v40, 4  ;;  %v22439_v30 = vrot.slane %v35559_v47, 4  ;;  %v22474_v40 = vsel %vm831_vm0, %v22473_v14, %v35562_v5  ;;  %v33060_v59 = vpop.permute.xlu2 %20815  ;;  %v22496_v1 = vsel %vm831_vm0, %v22495_v15, %v35566_v44  ;;  %v35567_v14 = vld [vmem:[#allocation157_spill] sm:$0xff]  ;;  %v35570_v5 = vld [vmem:[#allocation156_spill] sm:$0xff] }
0x24c4   : > { %v21648_v15 = vrot.slane %v21645_v18, 4 }
0x24c8   : > { %v20744_v49 = vpop.permute.xlu1 %20743 }
0x24c9   : > { %v20761_v25 = vsel %vm1001_vm3, %v20757_v32, %v20744_v49  ;;  %v21693_v32 = vsel %vm831_vm0, %v32960_v19, %v21692_v61  ;;  %v35563_v49 = vld [vmem:[#allocation146_spill] sm:$0xff]  ;;  %v33067_v19 = vperm.slane %v22474_v40, %v28351_v41  ;;  %v21621_v61 = vsel %vm831_vm0, 0.0, %v21620_v58 }
0x24ca   : > { %20867 = vrot.lane.b32.xlu0 %v20761_v25, %s28235_s28  ;;  %v22446_v11 = vsel %vm831_vm0, %v22445_v63, %v35563_v49  ;;  %v33054_v25 = vpop.permute.xlu0 %20799  ;;  %v35568_v63 = vld [vmem:[#allocation83_spill] sm:$0xff]  ;;  %v22523_v40 = vrot.slane %v35570_v5, 4 }
0x24cb   : > { %21716 = vrot.lane.b32.xlu1 %v21703_v39, %s28226_s16  ;;  %21714 = vrot.lane.b32.xlu2 %v21675_v62, %s28226_s16  ;;  %v35564_v39 = vld [vmem:[#allocation164_spill] sm:$0xff]  ;;  %v33072_v54 = vperm.slane %v22446_v11, %v28351_v41 }
0x24cc   : > { %v22467_v62 = vrot.slane %v35564_v39, 4 }
0x24cd   : > { %v22451_v47 = vrot.slane %v33072_v54, 4 }
0x24d0   : > { %v20770_v31 = vpop.permute.xlu1 %20769 }
0x24d1   : > { %v20876_v28 = vsel %vm7033_vm4, %v35558_v45, %v20770_v31  ;;  %v22529_v31 = vrot.slane %v35567_v14, 4  ;;  %v22468_v45 = vsel %vm831_vm0, %v22467_v62, %v35568_v63 }
0x24d2   : > { %v20880_v55 = vsel %vm7038_vm5, %v20876_v28, %v20786_v17  ;;  %21710 = vrot.lane.b32.xlu0 %v21619_v51, %s28226_s16  ;;  %v21665_v17 = vsel %vm831_vm0, %v32957_v53, %v21664_v37  ;;  %v22507_v28 = vrot.slane %v33058_v60, 4  ;;  %v33085_v37 = vperm.slane %v22496_v1, %v28351_v41  ;;  %v33100_v39 = vpop.permute.xlu0 %20805  ;;  %v35571_v1 = vld [vmem:[#allocation172_spill] sm:$0xff] }
0x24d3   : > { %21726 = vrot.lane.b32.xlu1 %v21617_v23, %s28227_s17  ;;  %21728 = vrot.lane.b32.xlu2 %v21645_v18, %s28227_s17  ;;  %v33046_v35 = vsel %vm7043_vm6, %v20880_v55, %v20802_v9  ;;  %v35565_v9 = vld [vmem:[#allocation152_spill] sm:$0xff]  ;;  %v21701_v23 = vperm.slane %v21693_v32, %v28621_v57  ;;  %v21673_v53 = vperm.slane %v21665_v17, %v28621_v57  ;;  %v22479_v55 = vrot.slane %v33067_v19, 4  ;;  %v33103_v17 = vpop.permute.xlu2 %20821 }
0x24d4   : > { %v22440_v29 = vsel %vm831_vm0, %v22439_v30, %v35565_v9  ;;  %v35569_v30 = vld [vmem:[#allocation166_spill] sm:$0xff]  ;;  %v22472_v16 = vperm.slane %v22468_v45, %v28351_v41  ;;  %v22508_v49 = vsel %vm831_vm0, %v22507_v28, %v33085_v37  ;;  %v22524_v14 = vsel %vm831_vm0, %v22523_v40, %v35571_v1 }
0x24d5   : > { %v22444_v38 = vperm.slane %v22440_v29, %v28351_v41  ;;  %v22530_v50 = vsel %vm831_vm0, %v22529_v31, %v35569_v30  ;;  %v21676_v7 = vrot.slane %v21673_v53, 4  ;;  %v21704_v32 = vrot.slane %v21701_v23, 4 }
0x24d6   : > { %v22534_v58 = vperm.slane %v22530_v50, %v28351_v41  ;;  %v22480_v62 = vsel %vm831_vm0, %v22479_v55, %v22472_v16  ;;  %v33109_v29 = vperm.slane %v22508_v49, %v28621_v57  ;;  %v21649_v31 = vsel %vm831_vm0, 0.0, %v21648_v15 }
0x24d7   : > { %v22452_v11 = vsel %vm831_vm0, %v22451_v47, %v22444_v38  ;;  %v21677_v18 = vsel %vm831_vm0, 0.0, %v21676_v7  ;;  %v22528_v63 = vperm.slane %v22524_v14, %v28351_v41  ;;  %v35572_v47 = vld [vmem:[#allocation163_spill] sm:$0xff]  ;;  %v22453_v15 = vrot.slane %v22444_v38, 4 }
0x24d8   : > { %v33075_v51 = vpop.permute.xlu1 %20783  ;;  %v33112_v44 = vperm.slane %v22452_v11, %v28621_v57  ;;  %v22519_v45 = vrot.slane %v33109_v29, 4  ;;  %v23346_v30 = vrot.slane %v35572_v47, 4  ;;  %v14836_v47 = vsel %vm991_vm1, %v32455_v8, %v32605_v34 }
0x24da   : > { %21732 = vrot.lane.b32.xlu0 %v21701_v23, %s28227_s17  ;;  %v21705_v23 = vsel %vm831_vm0, 0.0, %v21704_v32  ;;  %v22463_v28 = vrot.slane %v33112_v44, 4  ;;  %v20820_v50 = vpop.permute.xlu0 %20819  ;;  %v22481_v32 = vrot.slane %v22472_v16, 4  ;;  %v22520_v11 = vsel %vm831_vm0, 0.0, %v22519_v45  ;;  %v35573_v16 = vld [vmem:[#allocation180_spill] sm:$0xff] }
0x24db   : > { %21730 = vrot.lane.b32.xlu1 %v21673_v53, %s28227_s17  ;;  %21742 = vrot.lane.b32.xlu2 %v21621_v61, %s28228_s18  ;;  %v33120_v53 = vperm.slane %v22480_v62, %v28621_v57  ;;  %v22535_v61 = vrot.slane %v22534_v58, 4  ;;  %v20836_v5 = vpop.permute.xlu2 %20835 }
0x24dc   : > { %v22464_v62 = vsel %vm831_vm0, 0.0, %v22463_v28  ;;  %v22482_v28 = vsel %vm831_vm0, %v33067_v19, %v22481_v32  ;;  %v14840_v19 = vsel %vm996_vm2, %v14836_v47, %v32624_v2 }
0x24dd   : > { %v22491_v55 = vrot.slane %v33120_v53, 4  ;;  %v22536_v7 = vsel %vm831_vm0, %v22535_v61, %v22528_v63 }
0x24de   : > { %v33139_v38 = vperm.slane %v22536_v7, %v28621_v57  ;;  %v35575_v7 = vld [vmem:[#allocation9_spill] sm:$0xff] }
0x24df   : > { %v22492_v14 = vsel %vm831_vm0, 0.0, %v22491_v55 }
0x24e0   : > { %v33105_v9 = vpop.permute.xlu1 %20789 }
0x24e2   : > { %21746 = vrot.lane.b32.xlu0 %v21677_v18, %s28228_s18  ;;  %v22509_v18 = vrot.slane %v33085_v37, 4 }
0x24e3   : > { %21744 = vrot.lane.b32.xlu1 %v21649_v31, %s28228_s18  ;;  %21748 = vrot.lane.b32.xlu2 %v21705_v23, %s28228_s18  ;;  %v22537_v31 = vrot.slane %v22528_v63, 4  ;;  %v23347_v23 = vsel %vm831_vm0, %v23346_v30, %v35573_v16  ;;  %v22454_v63 = vsel %vm831_vm0, %v33072_v54, %v22453_v15  ;;  %v22547_v30 = vrot.slane %v33139_v38, 4  ;;  %v35576_v54 = vld [vmem:[#allocation14_spill] sm:$0xff] }
0x24e4   : > { %v33155_v55 = vperm.slane %v23347_v23, %v28351_v41  ;;  %v23318_v15 = vrot.slane %v35576_v54, 4  ;;  %v35578_v23 = vld [vmem:[#allocation174_spill] sm:$0xff] }
0x24e5   : > { %v22538_v45 = vsel %vm831_vm0, %v22534_v58, %v22537_v31 }
0x24e6   : > { %v22546_v34 = vperm.slane %v22538_v45, %v28621_v57 }
0x24e8   : > { %v20804_v40 = vpop.permute.xlu1 %20803 }
0x24e9   : > { %v20885_v49 = vsel %vm7043_vm6, %v32813_v4, %v20804_v40  ;;  %v35574_v4 = vld [vmem:[#allocation196_spill] sm:$0xff]  ;;  %v14844_v40 = vsel %vm1001_vm3, %v14840_v19, %v32633_v42 }
0x24ea   : > { %v20889_v1 = vsel %vm7048_vm7, %v20885_v49, %v20820_v50  ;;  %22559 = vrot.lane.b32.xlu0 %v22520_v11, %s28226_s16  ;;  %v23340_v61 = vrot.slane %v35574_v4, 4  ;;  %v22510_v50 = vsel %vm831_vm0, %v33058_v60, %v22509_v18  ;;  %v20875_v60 = vsel %vm7033_vm4, %v14844_v40, %v32773_v52  ;;  %v35577_v52 = vld [vmem:[#allocation176_spill] sm:$0xff] }
0x24eb   : > { %22555 = vrot.lane.b32.xlu1 %v22464_v62, %s28226_s16  ;;  %22557 = vrot.lane.b32.xlu2 %v22492_v14, %s28226_s16  ;;  %v33147_v37 = vsel %vm7053_vm8, %v20889_v1, %v20836_v5  ;;  %v33167_v5 = vpop.permute.xlu0 %20833  ;;  %v33180_v49 = vperm.slane %v22482_v28, %v28621_v57  ;;  %v22518_v2 = vperm.slane %v22510_v50, %v28621_v57  ;;  %v23352_v62 = vrot.slane %v33155_v55, 4  ;;  %v35579_v28 = vld [vmem:[#allocation197_spill] sm:$0xff] }
0x24ec   : > { %v23341_v58 = vsel %vm831_vm0, %v23340_v61, %v35575_v7  ;;  %v22462_v11 = vperm.slane %v22454_v63, %v28621_v57  ;;  %v20879_v18 = vsel %vm7038_vm5, %v20875_v60, %v33075_v51  ;;  %v22548_v1 = vsel %vm831_vm0, 0.0, %v22547_v30  ;;  %v35580_v50 = vld [vmem:[#allocation185_spill] sm:$0xff]  ;;  %v35582_v60 = vld [vmem:[#allocation195_spill] sm:$0xff] }
0x24ed   : > { %v33172_v32 = vpop.permute.xlu2 %20849  ;;  %v33186_v42 = vperm.slane %v23341_v58, %v28351_v41  ;;  %v23319_v14 = vsel %vm831_vm0, %v23318_v15, %v35577_v52  ;;  %v20883_v31 = vsel %vm7043_vm6, %v20879_v18, %v33054_v25  ;;  %v22521_v16 = vrot.slane %v22518_v2, 4  ;;  %v35581_v15 = vld [vmem:[#allocation165_spill] sm:$0xff]  ;;  %v35583_v52 = vld [vmem:[#allocation10_spill] sm:$0xff] }
0x24ee   : > { %v23312_v4 = vrot.slane %v35578_v23, 4  ;;  %v22465_v61 = vrot.slane %v22462_v11, 4  ;;  %v33203_v45 = vperm.slane %v23319_v14, %v28351_v41  ;;  %v23368_v63 = vrot.slane %v35579_v28, 4  ;;  %v35584_v23 = vld [vmem:[#allocation173_spill] sm:$0xff] }
0x24ef   : > { %v23353_v51 = vsel %vm831_vm0, %v23352_v62, %v33186_v42  ;;  %v20887_v30 = vsel %vm7048_vm7, %v20883_v31, %v33060_v59  ;;  %v23290_v7 = vrot.slane %v35580_v50, 4  ;;  %v22522_v19 = vsel %vm831_vm0, 0.0, %v22521_v16 }
0x24f0   : > { %v33174_v8 = vpop.permute.xlu1 %20817  ;;  %v33212_v54 = vperm.slane %v23353_v51, %v28621_v57  ;;  %v23313_v40 = vsel %vm831_vm0, %v23312_v4, %v35581_v15  ;;  %v23374_v62 = vrot.slane %v35582_v60, 4  ;;  %v22466_v59 = vsel %vm831_vm0, 0.0, %v22465_v61  ;;  %v35585_v51 = vld [vmem:[#allocation181_spill] sm:$0xff]  ;;  %v35588_v15 = vld [vmem:[#allocation190_spill] sm:$0xff] }
0x24f1   : > { %v23284_v14 = vrot.slane %v35583_v52, 4  ;;  %v23324_v31 = vrot.slane %v33203_v45, 4  ;;  %v23369_v4 = vsel %vm831_vm0, %v23368_v63, %v35584_v23  ;;  %v23291_v28 = vsel %vm831_vm0, %v23290_v7, %v35585_v51 }
0x24f2   : > { %22577 = vrot.lane.b32.xlu0 %v22546_v34, %s28227_s17  ;;  %v23364_v61 = vrot.slane %v33212_v54, 4  ;;  %v24191_v60 = vrot.slane %v35588_v15, 4  ;;  %v22493_v51 = vrot.slane %v33180_v49, 4 }
0x24f3   : > { %22561 = vrot.lane.b32.xlu1 %v22548_v1, %s28226_s16  ;;  %22573 = vrot.lane.b32.xlu2 %v33180_v49, %s28227_s17  ;;  %v20848_v58 = vpop.permute.xlu0 %20847 }
0x24f4   : > { %v22494_v15 = vsel %vm831_vm0, 0.0, %v22493_v51 }
0x24f5   : > { %v20864_v18 = vpop.permute.xlu2 %20863 }
0x24f8   : > { %v20832_v47 = vpop.permute.xlu1 %20831 }
0x24f9   : > { %v20891_v25 = vsel %vm7053_vm8, %v20887_v30, %v20832_v47  ;;  %v23317_v47 = vperm.slane %v23313_v40, %v28351_v41  ;;  %v35586_v30 = vld [vmem:[#allocation183_spill] sm:$0xff]  ;;  %v23365_v40 = vsel %vm831_vm0, 0.0, %v23364_v61 }
0x24fa   : > { %v20895_v1 = vsel %vm7058_vm10, %v20891_v25, %v20848_v58  ;;  %22591 = vrot.lane.b32.xlu0 %v22522_v19, %s28228_s18  ;;  %v23375_v50 = vsel %vm831_vm0, %v23374_v62, %v35586_v30  ;;  %v22549_v58 = vrot.slane %v22546_v34, 4  ;;  %v35587_v25 = vld [vmem:[#allocation177_spill] sm:$0xff]  ;;  %v23373_v19 = vperm.slane %v23369_v4, %v28351_v41 }
0x24fb   : > { %v20899_v16 = vsel %vm7063_vm9, %v20895_v1, %v20864_v18  ;;  %22571 = vrot.lane.b32.xlu1 %v22462_v11, %s28227_s17  ;;  %22587 = vrot.lane.b32.xlu2 %v22466_v59, %s28228_s18  ;;  %v23285_v11 = vsel %vm831_vm0, %v23284_v14, %v35587_v25  ;;  %v23325_v63 = vsel %vm831_vm0, %v23324_v31, %v23317_v47  ;;  %v23354_v62 = vrot.slane %v33186_v42, 4  ;;  %v35589_v14 = vld [vmem:[#allocation188_spill] sm:$0xff] }
0x24fc   : > { %20907 = vst [vmem:[#allocation1] ss:$2 sm:$0xff] %v20899_v16  ;;  %v23295_v18 = vperm.slane %v23291_v28, %v28351_v41  ;;  %v23379_v7 = vperm.slane %v23375_v50, %v28351_v41  ;;  %v23289_v1 = vperm.slane %v23285_v11, %v28351_v41  ;;  %v22550_v34 = vsel %vm831_vm0, 0.0, %v22549_v58  ;;  %v35590_v16 = vld [vmem:[#allocation194_spill] sm:$0xff]  ;;  %v35591_v58 = vld [vmem:[#allocation207_spill] sm:$0xff] }
0x24fd   : > { %v33246_v59 = vperm.slane %v23325_v63, %v28621_v57  ;;  %v23382_v52 = vrot.slane %v23373_v19, 4  ;;  %v24192_v31 = vsel %vm831_vm0, %v24191_v60, %v35589_v14  ;;  %v24185_v23 = vrot.slane %v35590_v16, 4  ;;  %v35593_v16 = vld [vmem:[#allocation198_spill] sm:$0xff] }
0x24fe   : > { %v23296_v4 = vrot.slane %v23295_v18, 4  ;;  %v33256_v28 = vperm.slane %v24192_v31, %v28351_v41  ;;  %v23355_v30 = vsel %vm831_vm0, %v33155_v55, %v23354_v62  ;;  %v23298_v11 = vrot.slane %v23289_v1, 4 }
0x24ff   : > { %v23383_v42 = vsel %vm831_vm0, %v23379_v7, %v23382_v52  ;;  %v23336_v61 = vrot.slane %v33246_v59, 4  ;;  %v33269_v49 = vperm.slane %v23355_v30, %v28621_v57  ;;  %v23326_v63 = vrot.slane %v23317_v47, 4 }
0x2500   : > { %v23297_v50 = vsel %vm831_vm0, %v23296_v4, %v23289_v1  ;;  %v33265_v25 = vperm.slane %v23383_v42, %v28621_v57  ;;  %v24197_v55 = vrot.slane %v33256_v28, 4  ;;  %v23380_v1 = vrot.slane %v23379_v7, 4  ;;  %v35594_v42 = vld [vmem:[#allocation213_spill] sm:$0xff] }
0x2501   : > { %v33272_v60 = vperm.slane %v23297_v50, %v28621_v57  ;;  %v23337_v62 = vsel %vm831_vm0, 0.0, %v23336_v61  ;;  %v23327_v47 = vsel %vm831_vm0, %v33203_v45, %v23326_v63  ;;  %v23299_v31 = vsel %vm831_vm0, %v23295_v18, %v23298_v11  ;;  %v35596_v50 = vld [vmem:[#allocation216_spill] sm:$0xff]  ;;  %v35598_v11 = vld [vmem:[#allocation191_spill] sm:$0xff] }
0x2502   : > { %23404 = vrot.lane.b32.xlu0 %v23365_v40, %s28226_s16  ;;  %v14839_v7 = vsel %vm991_vm1, %v32471_v12, %v32615_v22  ;;  %v23381_v4 = vsel %vm831_vm0, %v23380_v1, %v23373_v19  ;;  %v24213_v51 = vrot.slane %v35594_v42, 4  ;;  %v33298_v30 = vperm.slane %v23327_v47, %v28621_v57 }
0x2503   : > { %22575 = vrot.lane.b32.xlu1 %v22518_v2, %s28227_s17  ;;  %22593 = vrot.lane.b32.xlu2 %v22550_v34, %s28228_s18  ;;  %v24186_v2 = vsel %vm831_vm0, %v24185_v23, %v35591_v58  ;;  %35592 = vst [vmem:[#allocation53_spill] sm:$0xff] %v33272_v60  ;;  %v23366_v34 = vrot.slane %v33269_v49, 4  ;;  %v23308_v52 = vrot.slane %v33272_v60, 4  ;;  %v24163_v23 = vrot.slane %v35593_v16, 4  ;;  %v35601_v16 = vld [vmem:[#allocation192_spill] sm:$0xff] }
0x2504   : > { %v33276_v40 = vperm.slane %v24186_v2, %v28351_v41  ;;  %v33304_v18 = vperm.slane %v23299_v31, %v28621_v57  ;;  %v24219_v58 = vrot.slane %v35596_v50, 4  ;;  %v35597_v2 = vld [vmem:[#allocation31_spill] sm:$0xff]  ;;  %v33312_v19 = vperm.slane %v23381_v4, %v28621_v57 }
0x2505   : > { %v23367_v61 = vsel %vm831_vm0, 0.0, %v23366_v34  ;;  %v14843_v12 = vsel %vm996_vm2, %v14839_v7, %v35597_v2  ;;  %v23309_v22 = vsel %vm831_vm0, 0.0, %v23308_v52 }
0x2506   : > { %v24198_v14 = vsel %vm831_vm0, %v24197_v55, %v33276_v40  ;;  %v14847_v63 = vsel %vm1001_vm3, %v14843_v12, %v32638_v27  ;;  %v35599_v55 = vld [vmem:[#allocation187_spill] sm:$0xff]  ;;  %v23310_v47 = vrot.slane %v33304_v18, 4  ;;  %v23392_v7 = vrot.slane %v33312_v19, 4  ;;  %v35603_v12 = vld [vmem:[#allocation209_spill] sm:$0xff] }
0x2507   : > { %v33301_v45 = vperm.slane %v24198_v14, %v28621_v57  ;;  %v20878_v1 = vsel %vm7033_vm4, %v14847_v63, %v32798_v0  ;;  %v35600_v14 = vld [vmem:[#allocation211_spill] sm:$0xff]  ;;  %v35602_v0 = vld [vmem:[#allocation220_spill] sm:$0xff] }
0x2508   : > { %v20882_v34 = vsel %vm7038_vm5, %v20878_v1, %v33105_v9  ;;  %v24157_v27 = vrot.slane %v35600_v14, 4  ;;  %v25036_v42 = vrot.slane %v35602_v0, 4  ;;  %v23311_v2 = vsel %vm831_vm0, 0.0, %v23310_v47  ;;  %v35605_v1 = vld [vmem:[#allocation206_spill] sm:$0xff] }
0x2509   : > { %35595 = vst [vmem:[#allocation32_spill] sm:$0xff] %v33301_v45  ;;  %v24209_v52 = vrot.slane %v33301_v45, 4  ;;  %v20886_v9 = vsel %vm7043_vm6, %v20882_v34, %v33100_v39  ;;  %v23393_v39 = vsel %vm831_vm0, 0.0, %v23392_v7  ;;  %v25030_v34 = vrot.slane %v35605_v1, 4  ;;  %v35606_v7 = vld [vmem:[#allocation199_spill] sm:$0xff] }
0x250a   : > { %23422 = vrot.lane.b32.xlu0 %v33265_v25, %s28227_s17  ;;  %v24129_v0 = vrot.slane %v35606_v7, 4 }
0x250b   : > { %22589 = vrot.lane.b32.xlu1 %v22494_v15, %s28228_s18  ;;  %23402 = vrot.lane.b32.xlu2 %v23337_v62, %s28226_s16  ;;  %v24164_v15 = vsel %vm831_vm0, %v24163_v23, %v35598_v11  ;;  %v24214_v62 = vsel %vm831_vm0, %v24213_v51, %v35599_v55  ;;  %v24220_v23 = vsel %vm831_vm0, %v24219_v58, %v35601_v16  ;;  %v24210_v50 = vsel %vm831_vm0, 0.0, %v24209_v52  ;;  %v35604_v55 = vld [vmem:[#allocation201_spill] sm:$0xff] }
0x250c   : > { %v33331_v31 = vperm.slane %v24164_v15, %v28351_v41  ;;  %v33337_v4 = vperm.slane %v24214_v62, %v28351_v41  ;;  %v33343_v51 = vperm.slane %v24220_v23, %v28351_v41  ;;  %v24158_v58 = vsel %vm831_vm0, %v24157_v27, %v35603_v12 }
0x250d   : > { %v24199_v11 = vrot.slane %v33276_v40, 4  ;;  %v20854_v15 = vpop.permute.xlu0 %20853  ;;  %v25037_v62 = vsel %vm831_vm0, %v25036_v42, %v35604_v55  ;;  %v20890_v52 = vsel %vm7048_vm7, %v20886_v9, %v33103_v17  ;;  %v33363_v47 = vperm.slane %v24158_v58, %v28351_v41 }
0x250e   : > { %v24227_v63 = vrot.slane %v33337_v4, 4  ;;  %v23394_v23 = vrot.slane %v33265_v25, 4  ;;  %v33371_v17 = vperm.slane %v25037_v62, %v28351_v41  ;;  %v35609_v25 = vld [vmem:[#allocation210_spill] sm:$0xff] }
0x250f   : > { %v24200_v9 = vsel %vm831_vm0, %v33256_v28, %v24199_v11  ;;  %v35610_v28 = vld [vmem:[#allocation182_spill] sm:$0xff] }
0x2510   : > { %v24228_v16 = vsel %vm831_vm0, %v33343_v51, %v24227_v63  ;;  %v23395_v63 = vsel %vm831_vm0, 0.0, %v23394_v23  ;;  %v33387_v55 = vperm.slane %v24200_v9, %v28621_v57  ;;  %v24130_v11 = vsel %vm831_vm0, %v24129_v0, %v35610_v28 }
0x2511   : > { %v25042_v62 = vrot.slane %v33371_v17, 4 }
0x2512   : > { %23436 = vrot.lane.b32.xlu0 %v23367_v61, %s28228_s18  ;;  %v20838_v61 = vpop.permute.xlu1 %20837 }
0x2513   : > { %23400 = vrot.lane.b32.xlu1 %v23309_v22, %s28226_s16  ;;  %23418 = vrot.lane.b32.xlu2 %v33298_v30, %s28227_s17  ;;  %v24169_v22 = vrot.slane %v33331_v31, 4  ;;  %v20894_v40 = vsel %vm7053_vm8, %v20890_v52, %v20838_v61  ;;  %v35607_v61 = vld [vmem:[#allocation205_spill] sm:$0xff] }
0x2514   : > { %v20898_v14 = vsel %vm7058_vm10, %v20894_v40, %v20854_v15  ;;  %v24135_v15 = vrot.slane %v35609_v25, 4  ;;  %v35613_v40 = vld [vmem:[#allocation193_spill] sm:$0xff] }
0x2515   : > { %v24170_v58 = vsel %vm831_vm0, %v24169_v22, %v33363_v47 }
0x2516   : > { %v33398_v22 = vperm.slane %v24170_v58, %v28621_v57  ;;  %v20888_v58 = vsel %vm7048_vm7, %v33046_v35, %v33174_v8 }
0x2518   : > { %35611 = vst [vmem:[#allocation76_spill] sm:$0xff] %v33398_v22 }
0x251a   : > { %24249 = vrot.lane.b32.xlu0 %v24210_v50, %s28226_s16  ;;  %v24974_v50 = vrot.slane %v35607_v61, 4  ;;  %v33409_v7 = vpop.permute.xlu1 %20851 }
0x251b   : > { %23406 = vrot.lane.b32.xlu1 %v23393_v39, %s28226_s16  ;;  %23432 = vrot.lane.b32.xlu2 %v23311_v2, %s28228_s18  ;;  %v35608_v2 = vld [vmem:[#allocation208_spill] sm:$0xff]  ;;  %v33383_v39 = vperm.slane %v24228_v16, %v28621_v57 }
0x251c   : > { %v25031_v12 = vsel %vm831_vm0, %v25030_v34, %v35608_v2  ;;  %v35612_v34 = vld [vmem:[#allocation215_spill] sm:$0xff]  ;;  %v35614_v16 = vld [vmem:[#allocation212_spill] sm:$0xff] }
0x251d   : > { %v20870_v27 = vpop.permute.xlu2 %20869  ;;  %v33393_v1 = vperm.slane %v25031_v12, %v28351_v41  ;;  %v24975_v52 = vsel %vm831_vm0, %v24974_v50, %v35612_v34  ;;  %v24980_v23 = vrot.slane %v35614_v16, 4  ;;  %v35615_v2 = vld [vmem:[#allocation227_spill] sm:$0xff]  ;;  %v24171_v34 = vrot.slane %v33363_v47, 4  ;;  %v35619_v16 = vld [vmem:[#allocation233_spill] sm:$0xff] }
0x251e   : > { %v20902_v42 = vsel %vm7063_vm9, %v20898_v14, %v20870_v27  ;;  %v24136_v14 = vsel %vm831_vm0, %v24135_v15, %v35613_v40  ;;  %v24134_v27 = vperm.slane %v24130_v11, %v28351_v41  ;;  %v33415_v9 = vperm.slane %v24975_v52, %v28351_v41  ;;  %v35616_v15 = vld [vmem:[#allocation221_spill] sm:$0xff]  ;;  %v35618_v40 = vld [vmem:[#allocation204_spill] sm:$0xff] }
0x251f   : > { %20913 = vst [vmem:[#allocation1 + $0x11] ss:$2 sm:$0xff] %v20902_v42  ;;  %v24211_v42 = vrot.slane %v33387_v55, 4  ;;  %v25043_v61 = vsel %vm831_vm0, %v25042_v62, %v33393_v1  ;;  %v24140_v50 = vperm.slane %v24136_v14, %v28351_v41  ;;  %v25058_v12 = vrot.slane %v35615_v2, 4 }
0x2520   : > { %v24143_v25 = vrot.slane %v24134_v27, 4  ;;  %v33429_v11 = vperm.slane %v25043_v61, %v28621_v57  ;;  %v24988_v62 = vrot.slane %v33415_v9, 4  ;;  %v20892_v52 = vsel %vm7053_vm8, %v20888_v58, %v33167_v5 }
0x2521   : > { %v24212_v28 = vsel %vm831_vm0, 0.0, %v24211_v42  ;;  %v24141_v8 = vrot.slane %v24140_v50, 4  ;;  %v25059_v14 = vsel %vm831_vm0, %v25058_v12, %v35618_v40  ;;  %v23338_v5 = vrot.slane %v33298_v30, 4 }
0x2522   : > { %24267 = vrot.lane.b32.xlu0 %v33383_v39, %s28227_s17  ;;  %35617 = vst [vmem:[#allocation74_spill] sm:$0xff] %v33429_v11  ;;  %v25054_v2 = vrot.slane %v33429_v11, 4  ;;  %v24144_v58 = vsel %vm831_vm0, %v24140_v50, %v24143_v25  ;;  %v24172_v30 = vsel %vm831_vm0, %v33331_v31, %v24171_v34 }
0x2523   : > { %23416 = vrot.lane.b32.xlu1 %v33304_v18, %s28227_s17  ;;  %23438 = vrot.lane.b32.xlu2 %v23395_v63, %s28228_s18  ;;  %v24181_v18 = vrot.slane %v33398_v22, 4  ;;  %v24981_v63 = vsel %vm831_vm0, %v24980_v23, %v35616_v15  ;;  %v25064_v23 = vrot.slane %v35619_v16, 4  ;;  %v24142_v12 = vsel %vm831_vm0, %v24141_v8, %v24134_v27  ;;  %v35622_v27 = vld [vmem:[#allocation222_spill] sm:$0xff] }
0x2524   : > { %v33444_v47 = vperm.slane %v24981_v63, %v28351_v41  ;;  %v25008_v8 = vrot.slane %v35622_v27, 4  ;;  %v33467_v50 = vperm.slane %v24142_v12, %v28621_v57  ;;  %v33470_v25 = vperm.slane %v24144_v58, %v28621_v57 }
0x2525   : > { %v33411_v0 = vpop.permute.xlu2 %21714  ;;  %v24182_v35 = vsel %vm831_vm0, 0.0, %v24181_v18  ;;  %v20896_v18 = vsel %vm7058_vm10, %v20892_v52, %v33172_v32  ;;  %v35620_v32 = vld [vmem:[#allocation228_spill] sm:$0xff]  ;;  %v35621_v52 = vld [vmem:[#allocation39_spill] sm:$0xff]  ;;  %v25055_v40 = vsel %vm831_vm0, 0.0, %v25054_v2  ;;  %v33474_v31 = vperm.slane %v24172_v30, %v28621_v57  ;;  %v35625_v2 = vld [vmem:[#allocation238_spill] sm:$0xff] }
0x2526   : > { %v24989_v63 = vsel %vm831_vm0, %v33444_v47, %v24988_v62  ;;  %35623 = vst [vmem:[#allocation102_spill] sm:$0xff] %v33467_v50  ;;  %v24225_v62 = vrot.slane %v33343_v51, 4  ;;  %v25875_v12 = vrot.slane %v35625_v2, 4  ;;  %v35626_v51 = vld [vmem:[#allocation218_spill] sm:$0xff]  ;;  %v24155_v30 = vrot.slane %v33470_v25, 4 }
0x2527   : > { %v33477_v34 = vperm.slane %v24989_v63, %v28621_v57  ;;  %v25009_v58 = vsel %vm831_vm0, %v25008_v8, %v35626_v51  ;;  %v35627_v63 = vld [vmem:[#allocation202_spill] sm:$0xff]  ;;  %v35629_v51 = vld [vmem:[#allocation240_spill] sm:$0xff] }
0x2528   : > { %v24226_v8 = vsel %vm831_vm0, %v24225_v62, %v33337_v4  ;;  %v33509_v2 = vperm.slane %v25009_v58, %v28351_v41  ;;  %v35631_v62 = vld [vmem:[#allocation26_spill] sm:$0xff] }
0x2529   : > { %v33523_v4 = vperm.slane %v24226_v8, %v28621_v57 }
0x252a   : > { %24281 = vrot.lane.b32.xlu0 %v24212_v28, %s28228_s18  ;;  %v25065_v28 = vsel %vm831_vm0, %v25064_v23, %v35620_v32  ;;  %v23339_v23 = vsel %vm831_vm0, 0.0, %v23338_v5  ;;  %v25002_v5 = vrot.slane %v35627_v63, 4  ;;  %v25876_v63 = vsel %vm831_vm0, %v25875_v12, %v35629_v51  ;;  %v35632_v12 = vld [vmem:[#allocation225_spill] sm:$0xff] }
0x252b   : > { %23420 = vrot.lane.b32.xlu1 %v33269_v49, %s28227_s17  ;;  %24247 = vrot.lane.b32.xlu2 %v24182_v35, %s28226_s16  ;;  %v33455_v49 = vperm.slane %v25059_v14, %v28351_v41  ;;  %v25881_v35 = vrot.slane %v35621_v52, 4  ;;  %v33482_v16 = vperm.slane %v25065_v28, %v28351_v41  ;;  %v25000_v52 = vrot.slane %v33477_v34, 4 }
0x252d   : > { %v20866_v42 = vpop.permute.xlu1 %20865  ;;  %v33449_v61 = vpop.permute.xlu2 %21728  ;;  %v25072_v14 = vrot.slane %v33455_v49, 4 }
0x252e   : > { %v20900_v15 = vsel %vm7063_vm9, %v20896_v18, %v20866_v42  ;;  %v35624_v42 = vld [vmem:[#allocation65_spill] sm:$0xff] }
0x252f   : > { %20909 = vst [vmem:[#allocation1 + $0x1] ss:$2 sm:$0xff] %v20900_v15  ;;  %v25882_v18 = vsel %vm831_vm0, %v25881_v35, %v35624_v42  ;;  %v24153_v15 = vrot.slane %v33467_v50, 4  ;;  %v35628_v35 = vld [vmem:[#allocation241_spill] sm:$0xff]  ;;  %v35637_v50 = vld [vmem:[#allocation250_spill] sm:$0xff] }
0x2530   : > { %v25847_v27 = vrot.slane %v35628_v35, 4  ;;  %v24156_v35 = vsel %vm831_vm0, 0.0, %v24155_v30  ;;  %v33530_v30 = vperm.slane %v25876_v63, %v28351_v41  ;;  %v26732_v33 = vrot.slane %v35637_v50, 4 }
0x2531   : > { %v24154_v11 = vsel %vm831_vm0, 0.0, %v24153_v15 }
0x2532   : > { %25094 = vrot.lane.b32.xlu0 %v25055_v40, %s28226_s16  ;;  %v33502_v40 = vperm.slane %v25882_v18, %v28351_v41  ;;  %v35630_v18 = vld [vmem:[#allocation219_spill] sm:$0xff]  ;;  %v25848_v58 = vsel %vm831_vm0, %v25847_v27, %v35631_v62  ;;  %v35633_v62 = vld [vmem:[#allocation234_spill] sm:$0xff] }
0x2533   : > { %23434 = vrot.lane.b32.xlu1 %v23339_v23, %s28228_s18  ;;  %24263 = vrot.lane.b32.xlu2 %v33474_v31, %s28227_s17  ;;  %v25073_v23 = vsel %vm831_vm0, %v33482_v16, %v25072_v14  ;;  %v25003_v45 = vsel %vm831_vm0, %v25002_v5, %v35630_v18  ;;  %v25001_v14 = vsel %vm831_vm0, 0.0, %v25000_v52  ;;  %v25014_v5 = vrot.slane %v33509_v2, 4 }
0x2534   : > { %v33520_v60 = vperm.slane %v25073_v23, %v28621_v57  ;;  %v25887_v15 = vrot.slane %v33502_v40, 4  ;;  %v20897_v52 = vsel %vm7058_vm10, %v33147_v37, %v33409_v7  ;;  %v25007_v23 = vperm.slane %v25003_v45, %v28351_v41 }
0x2535   : > { %v33497_v32 = vpop.permute.xlu1 %21712  ;;  %v21743_v28 = vpop.permute.xlu2 %21742  ;;  %v33541_v8 = vperm.slane %v25848_v58, %v28351_v41  ;;  %v24239_v37 = vrot.slane %v33383_v39, 4 }
0x2536   : > { %v20914_v42 = vld.sshfl [vmem:[#allocation1] sm:$0xff pattern:$0x75316420]  ;;  %v25888_v45 = vsel %vm831_vm0, %v25887_v15, %v33530_v30  ;;  %v25015_v7 = vsel %vm831_vm0, %v25014_v5, %v25007_v23  ;;  %v25016_v22 = vrot.slane %v25007_v23, 4 }
0x2537   : > { %28003 = vst [vmem:[%s31238_s30 + $0x20] sm:$0xff] %v20914_v42  ;;  %v25853_v42 = vrot.slane %v35632_v12, 4  ;;  %v25861_v58 = vrot.slane %v33541_v8, 4  ;;  %v33564_v15 = vperm.slane %v25015_v7, %v28621_v57 }
0x2538   : > { %v25017_v50 = vsel %vm831_vm0, %v33509_v2, %v25016_v22  ;;  %v35639_v22 = vld [vmem:[#allocation249_spill] sm:$0xff] }
0x2539   : > { %v26733_v2 = vsel %vm831_vm0, %v26732_v33, %v35639_v22  ;;  %v21755_v33 = vsel %vm991_vm1, %v32977_v6, %v33497_v32 }
0x253a   : > { %25122 = vrot.lane.b32.xlu0 %v25001_v14, %s28228_s18  ;;  %v25084_v14 = vrot.slane %v33520_v60, 4  ;;  %v21759_v6 = vsel %vm996_vm2, %v21755_v33, %v33449_v61 }
0x253b   : > { %24245 = vrot.lane.b32.xlu1 %v24154_v11, %s28226_s16  ;;  %24277 = vrot.lane.b32.xlu2 %v24156_v35, %s28228_s18  ;;  %v25854_v11 = vsel %vm831_vm0, %v25853_v42, %v35633_v62  ;;  %v24237_v35 = vrot.slane %v33523_v4, 4  ;;  %v24240_v42 = vsel %vm831_vm0, 0.0, %v24239_v37  ;;  %v35635_v37 = vld [vmem:[#allocation248_spill] sm:$0xff] }
0x253c   : > { %v20868_v27 = vpop.permute.xlu0 %20867  ;;  %v33554_v12 = vperm.slane %v25854_v11, %v28351_v41 }
0x253d   : > { %v20901_v51 = vsel %vm7063_vm9, %v20897_v52, %v20868_v27  ;;  %v21717_v63 = vpop.permute.xlu1 %21716  ;;  %v21749_v18 = vpop.permute.xlu2 %21748  ;;  %v25085_v52 = vsel %vm831_vm0, 0.0, %v25084_v14  ;;  %v33558_v27 = vperm.slane %v25888_v45, %v28621_v57  ;;  %v24238_v39 = vsel %vm831_vm0, 0.0, %v24237_v35 }
0x253e   : > { %20911 = vst [vmem:[#allocation1 + $0x10] ss:$2 sm:$0xff] %v20901_v51  ;;  %v25862_v35 = vsel %vm831_vm0, %v33554_v12, %v25861_v58 }
0x253f   : > { %35634 = vst [vmem:[#allocation40_spill] sm:$0xff] %v33558_v27  ;;  %v25899_v11 = vrot.slane %v33558_v27, 4  ;;  %v35636_v27 = vld [vmem:[#allocation246_spill] sm:$0xff] }
0x2542   : > { %25128 = vrot.lane.b32.xlu0 %v25085_v52, %s28228_s18  ;;  %v26692_v52 = vrot.slane %v35635_v37, 4 }
0x2543   : > { %24251 = vrot.lane.b32.xlu1 %v24238_v39, %s28226_s16  ;;  %24283 = vrot.lane.b32.xlu2 %v24240_v42, %s28228_s18  ;;  %v25026_v39 = vrot.slane %v33564_v15, 4 }
0x2544   : > { %v21711_v5 = vpop.permute.xlu0 %21710  ;;  %v26693_v58 = vsel %vm831_vm0, %v26692_v52, %v35636_v27 }
0x2545   : > { %v21754_v51 = vsel %vm991_vm1, %v33016_v56, %v21711_v5  ;;  %v21727_v14 = vpop.permute.xlu1 %21726  ;;  %v22558_v62 = vpop.permute.xlu2 %22557  ;;  %v20915_v45 = vld.sshfl [vmem:[#allocation1 + $0x10] sm:$0xff pattern:$0x75316420]  ;;  %v33581_v56 = vperm.slane %v25862_v35, %v28621_v57  ;;  %v25900_v5 = vsel %vm831_vm0, 0.0, %v25899_v11  ;;  %v33599_v27 = vperm.slane %v26693_v58, %v28351_v41 }
0x2546   : > { %v21758_v7 = vsel %vm996_vm2, %v21754_v51, %v21727_v14  ;;  %28004 = vst [vmem:[%s31238_s30 + $0x28] sm:$0xff] %v20915_v45  ;;  %v25027_v51 = vsel %vm831_vm0, 0.0, %v25026_v39  ;;  %v21757_v14 = vsel %vm991_vm1, %v33001_v20, %v21717_v63  ;;  %v22600_v45 = vsel %vm991_vm1, %v33120_v53, %v22558_v62 }
0x2547   : > { %v33578_v42 = vsel %vm1001_vm3, %v21758_v7, %v21743_v28  ;;  %v35638_v28 = vld [vmem:[#allocation247_spill] sm:$0xff]  ;;  %v25873_v35 = vrot.slane %v33581_v56, 4  ;;  %v33623_v62 = vperm.slane %v26733_v2, %v28621_v57  ;;  %v25044_v58 = vrot.slane %v33393_v1, 4 }
0x2548   : > { %v26698_v23 = vrot.slane %v35638_v28, 4 }
0x2549   : > { %v25874_v53 = vsel %vm831_vm0, 0.0, %v25873_v35 }
0x254a   : > { %25939 = vrot.lane.b32.xlu0 %v25900_v5, %s28226_s16  ;;  %v35640_v5 = vld [vmem:[#allocation244_spill] sm:$0xff] }
0x254b   : > { %24261 = vrot.lane.b32.xlu1 %v33470_v25, %s28227_s17  ;;  %25092 = vrot.lane.b32.xlu2 %v25027_v51, %s28226_s16  ;;  %v21756_v25 = vsel %vm991_vm1, %v33004_v36, %v33411_v0  ;;  %v26699_v36 = vsel %vm831_vm0, %v26698_v23, %v35640_v5  ;;  %v33620_v0 = vperm.slane %v25017_v50, %v28621_v57  ;;  %v26706_v51 = vrot.slane %v33599_v27, 4 }
0x254c   : > { %v21733_v11 = vpop.permute.xlu0 %21732  ;;  %v33637_v28 = vperm.slane %v26699_v36, %v28351_v41 }
0x254d   : > { %v21761_v37 = vsel %vm996_vm2, %v21757_v14, %v21733_v11  ;;  %v21731_v52 = vpop.permute.xlu1 %21730  ;;  %v22574_v20 = vpop.permute.xlu2 %22573  ;;  %v24183_v11 = vrot.slane %v33474_v31, 4 }
0x254e   : > { %v21760_v63 = vsel %vm996_vm2, %v21756_v25, %v21731_v52  ;;  %v33609_v7 = vsel %vm996_vm2, %v22600_v45, %v22574_v20  ;;  %v33614_v39 = vsel %vm1001_vm3, %v21761_v37, %v21749_v18  ;;  %v24986_v18 = vrot.slane %v33444_v47, 4 }
0x254f   : > { %v26707_v47 = vsel %vm831_vm0, %v33637_v28, %v26706_v51  ;;  %v25045_v25 = vsel %vm831_vm0, %v33371_v17, %v25044_v58  ;;  %v27577_v52 = vrot.slane %v32461_v10, 4  ;;  %v25070_v20 = vrot.slane %v33482_v16, 4 }
0x2550   : > { %v24987_v50 = vsel %vm831_vm0, %v24986_v18, %v33415_v9  ;;  %v33659_v45 = vperm.slane %v26707_v47, %v28621_v57  ;;  %v33665_v31 = vperm.slane %v25045_v25, %v28621_v57  ;;  %v24184_v9 = vsel %vm831_vm0, 0.0, %v24183_v11  ;;  %v35641_v25 = vld [vmem:[#allocation224_spill] sm:$0xff] }
0x2551   : > { %v33662_v37 = vperm.slane %v24987_v50, %v28621_v57  ;;  %v25859_v17 = vrot.slane %v33554_v12, 4  ;;  %v33683_v16 = vperm.slane %v32438_v3, %v28351_v41  ;;  %v25071_v12 = vsel %vm831_vm0, %v25070_v20, %v33455_v49 }
0x2552   : > { %25969 = vrot.lane.b32.xlu0 %v25874_v53, %s28228_s18  ;;  %v26718_v10 = vrot.slane %v33659_v45, 4  ;;  %v25056_v53 = vrot.slane %v33665_v31, 4 }
0x2553   : > { %24265 = vrot.lane.b32.xlu1 %v33387_v55, %s28227_s17  ;;  %25108 = vrot.lane.b32.xlu2 %v33620_v0, %s28227_s17  ;;  %v26744_v55 = vrot.slane %v33623_v62, 4  ;;  %v24998_v36 = vrot.slane %v33662_v37, 4  ;;  %v25860_v58 = vsel %vm831_vm0, %v25859_v17, %v33541_v8 }
0x2554   : > { %v21747_v1 = vpop.permute.xlu0 %21746  ;;  %v26719_v51 = vsel %vm831_vm0, 0.0, %v26718_v10  ;;  %v25057_v18 = vsel %vm831_vm0, 0.0, %v25056_v53  ;;  %v33708_v49 = vperm.slane %v25860_v58, %v28621_v57  ;;  %v35643_v53 = vld [vmem:[#allocation27_spill] sm:$0xff] }
0x2555   : > { %v33640_v23 = vsel %vm1001_vm3, %v21760_v63, %v21747_v1  ;;  %v21745_v14 = vpop.permute.xlu1 %21744  ;;  %v33644_v32 = vpop.permute.xlu2 %22587  ;;  %v26745_v61 = vsel %vm831_vm0, 0.0, %v26744_v55  ;;  %v27543_v63 = vrot.slane %v32424_v24, 4  ;;  %v27578_v24 = vsel %vm831_vm0, %v27577_v52, %v32450_v26 }
0x2556   : > { %v33649_v35 = vsel %vm1001_vm3, %v21759_v6, %v21745_v14  ;;  %v24999_v33 = vsel %vm831_vm0, 0.0, %v24998_v36  ;;  %v33697_v3 = vperm.slane %v27578_v24, %v28621_v57  ;;  %v27551_v26 = vrot.slane %v33683_v16, 4 }
0x2557   : > { %v25871_v47 = vrot.slane %v33708_v49, 4 }
0x2558   : > { %v27589_v55 = vrot.slane %v33697_v3, 4 }
0x2559   : > { %v25872_v17 = vsel %vm831_vm0, 0.0, %v25871_v47 }
0x255a   : > { %26784 = vrot.lane.b32.xlu0 %v26745_v61, %s28226_s16  ;;  %v25903_v61 = vrot.slane %v35641_v25, 4  ;;  %v27590_v52 = vsel %vm831_vm0, 0.0, %v27589_v55  ;;  %v35645_v55 = vld [vmem:[#allocation230_spill] sm:$0xff] }
0x255b   : > { %24279 = vrot.lane.b32.xlu1 %v24184_v9, %s28228_s18  ;;  %25112 = vrot.lane.b32.xlu2 %v33520_v60, %s28227_s17  ;;  %v27544_v60 = vsel %vm831_vm0, %v27543_v63, %v32409_v43  ;;  %v33705_v43 = vperm.slane %v25071_v12, %v28621_v57  ;;  %v35642_v63 = vld [vmem:[#allocation223_spill] sm:$0xff] }
0x255c   : > { %v22560_v22 = vpop.permute.xlu0 %22559  ;;  %v33701_v1 = vperm.slane %v27544_v60, %v28351_v41  ;;  %v25909_v10 = vrot.slane %v35642_v63, 4  ;;  %v25904_v24 = vsel %vm831_vm0, %v25903_v61, %v35643_v53 }
0x255d   : > { %v22556_v2 = vpop.permute.xlu1 %22555  ;;  %v33676_v5 = vpop.permute.xlu2 %22593  ;;  %v25082_v11 = vrot.slane %v33705_v43, 4  ;;  %v25908_v47 = vperm.slane %v25904_v24, %v28351_v41 }
0x255e   : > { %v27552_v50 = vsel %vm831_vm0, %v33701_v1, %v27551_v26 }
0x255f   : > { %v33720_v9 = vperm.slane %v27552_v50, %v28621_v57  ;;  %v25083_v20 = vsel %vm831_vm0, 0.0, %v25082_v11  ;;  %v25825_v11 = vrot.slane %v35645_v55, 4 }
0x2562   : > { %26814 = vrot.lane.b32.xlu0 %v26719_v51, %s28228_s18  ;;  %v27563_v51 = vrot.slane %v33720_v9, 4 }
0x2563   : > { %25090 = vrot.lane.b32.xlu1 %v24999_v33, %s28226_s16  ;;  %25126 = vrot.lane.b32.xlu2 %v25057_v18, %s28228_s18  ;;  %v35644_v18 = vld [vmem:[#allocation237_spill] sm:$0xff] }
0x2564   : > { %v22578_v8 = vpop.permute.xlu0 %22577  ;;  %v25910_v26 = vsel %vm831_vm0, %v25909_v10, %v35644_v18  ;;  %v27564_v50 = vsel %vm831_vm0, 0.0, %v27563_v51  ;;  %v22601_v10 = vsel %vm991_vm1, %v33109_v29, %v22560_v22  ;;  %v35648_v22 = vld [vmem:[#allocation235_spill] sm:$0xff] }
0x2565   : > { %v22562_v14 = vpop.permute.xlu1 %22561  ;;  %v23403_v6 = vpop.permute.xlu2 %23402  ;;  %v25914_v25 = vperm.slane %v25910_v26, %v28351_v41 }
0x2566   : > { %v23445_v60 = vsel %vm991_vm1, %v33246_v59, %v23403_v6  ;;  %v25889_v59 = vrot.slane %v33530_v30, 4  ;;  %v35646_v6 = vld [vmem:[#allocation232_spill] sm:$0xff]  ;;  %v22599_v30 = vsel %vm991_vm1, %v33112_v44, %v22556_v2  ;;  %v22602_v55 = vsel %vm991_vm1, %v33139_v38, %v22562_v14 }
0x2567   : > { %v25826_v61 = vsel %vm831_vm0, %v25825_v11, %v35646_v6 }
0x2568   : > { %v25890_v51 = vsel %vm831_vm0, %v33502_v40, %v25889_v59  ;;  %v22606_v59 = vsel %vm996_vm2, %v22602_v55, %v22578_v8 }
0x256a   : > { %27629 = vrot.lane.b32.xlu0 %v27590_v52, %s28226_s16  ;;  %v35647_v52 = vld [vmem:[#allocation231_spill] sm:$0xff] }
0x256b   : > { %25096 = vrot.lane.b32.xlu1 %v25083_v20, %s28226_s16  ;;  %25937 = vrot.lane.b32.xlu2 %v25872_v17, %s28226_s16  ;;  %v25819_v20 = vrot.slane %v35647_v52, 4  ;;  %v25917_v17 = vrot.slane %v25908_v47, 4 }
0x256c   : > { %v22592_v36 = vpop.permute.xlu0 %22591 }
0x256d   : > { %v22572_v12 = vpop.permute.xlu1 %22571  ;;  %v23419_v58 = vpop.permute.xlu2 %23418  ;;  %v25820_v44 = vsel %vm831_vm0, %v25819_v20, %v35648_v22  ;;  %v25915_v20 = vrot.slane %v25914_v25, 4  ;;  %v35650_v22 = vld [vmem:[#allocation254_spill] sm:$0xff] }
0x256e   : > { %v33734_v33 = vsel %vm996_vm2, %v23445_v60, %v23419_v58  ;;  %v33763_v58 = vperm.slane %v25826_v61, %v28351_v41  ;;  %v25824_v40 = vperm.slane %v25820_v44, %v28351_v41  ;;  %v22610_v61 = vsel %vm1001_vm3, %v22606_v59, %v33676_v5 }
0x256f   : > { %v26754_v44 = vrot.slane %v35650_v22, 4 }
0x2570   : > { %v25831_v26 = vrot.slane %v33763_v58, 4 }
0x2572   : > { %27659 = vrot.lane.b32.xlu0 %v27564_v50, %s28228_s18  ;;  %v25832_v14 = vsel %vm831_vm0, %v25831_v26, %v25824_v40  ;;  %v35651_v26 = vld [vmem:[#allocation252_spill] sm:$0xff] }
0x2573   : > { %25106 = vrot.lane.b32.xlu1 %v33477_v34, %s28227_s17  ;;  %25953 = vrot.lane.b32.xlu2 %v33581_v56, %s28227_s17  ;;  %v25918_v34 = vsel %vm831_vm0, %v25914_v25, %v25917_v17  ;;  %v22603_v56 = vsel %vm996_vm2, %v22599_v30, %v22572_v12  ;;  %v33779_v12 = vperm.slane %v25890_v51, %v28621_v57 }
0x2574   : > { %v33751_v63 = vpop.permute.xlu0 %23404  ;;  %v22607_v2 = vsel %vm1001_vm3, %v22603_v56, %v33644_v32  ;;  %v33775_v18 = vperm.slane %v25918_v34, %v28621_v57  ;;  %v35649_v34 = vld [vmem:[#allocation253_spill] sm:$0xff] }
0x2575   : > { %v22576_v53 = vpop.permute.xlu1 %22575  ;;  %v33757_v24 = vpop.permute.xlu2 %23432  ;;  %v25901_v38 = vrot.slane %v33779_v12, 4  ;;  %v26748_v56 = vrot.slane %v35649_v34, 4 }
0x2576   : > { %v22605_v60 = vsel %vm996_vm2, %v22601_v10, %v22576_v53  ;;  %v25916_v53 = vsel %vm831_vm0, %v25915_v20, %v25908_v47 }
0x2577   : > { %v33768_v29 = vsel %vm1001_vm3, %v22605_v60, %v22592_v36  ;;  %v26704_v36 = vrot.slane %v33637_v28, 4  ;;  %v25028_v28 = vrot.slane %v33620_v0, 4  ;;  %v25902_v52 = vsel %vm831_vm0, 0.0, %v25901_v38 }
0x2578   : > { %v33826_v51 = vperm.slane %v25916_v53, %v28621_v57  ;;  %v26749_v47 = vsel %vm831_vm0, %v26748_v56, %v35651_v26 }
0x2579   : > { %v25029_v8 = vsel %vm831_vm0, 0.0, %v25028_v28  ;;  %v35652_v28 = vld [vmem:[#allocation255_spill] sm:$0xff] }
0x257a   : > { %27685 = vrot.lane.b32.xlu0 %v22607_v2, %s28229_s22  ;;  %v25927_v59 = vrot.slane %v33826_v51, 4  ;;  %v26755_v38 = vsel %vm831_vm0, %v26754_v44, %v35652_v28 }
0x257b   : > { %25110 = vrot.lane.b32.xlu1 %v33665_v31, %s28227_s17  ;;  %25957 = vrot.lane.b32.xlu2 %v33775_v18, %s28227_s17  ;;  %v26705_v31 = vsel %vm831_vm0, %v26704_v36, %v33599_v27 }
0x257c   : > { %v23423_v32 = vpop.permute.xlu0 %23422  ;;  %v33811_v0 = vperm.slane %v26705_v31, %v28621_v57  ;;  %v33846_v31 = vperm.slane %v26749_v47, %v28351_v41 }
0x257d   : > { %v22590_v11 = vpop.permute.xlu1 %22589  ;;  %v33790_v50 = vpop.permute.xlu2 %23438 }
0x257e   : > { %v33795_v6 = vsel %vm1001_vm3, %v33609_v7, %v22590_v11  ;;  %v33808_v7 = vperm.slane %v25832_v14, %v28621_v57  ;;  %v26716_v30 = vrot.slane %v33811_v0, 4 }
0x2580   : > { %v25843_v10 = vrot.slane %v33808_v7, 4  ;;  %v26717_v25 = vsel %vm831_vm0, 0.0, %v26716_v30 }
0x2582   : > { %27691 = vrot.lane.b32.xlu0 %v22610_v61, %s28229_s22  ;;  %v25844_v60 = vsel %vm831_vm0, 0.0, %v25843_v10  ;;  %v25833_v61 = vrot.slane %v25824_v40, 4 }
0x2583   : > { %25124 = vrot.lane.b32.xlu1 %v25029_v8, %s28228_s18  ;;  %25971 = vrot.lane.b32.xlu2 %v25902_v52, %s28228_s18  ;;  %v33849_v8 = vperm.slane %v26755_v38, %v28351_v41  ;;  %v25928_v52 = vsel %vm831_vm0, 0.0, %v25927_v59 }
0x2584   : > { %v23437_v27 = vpop.permute.xlu0 %23436  ;;  %v25834_v30 = vsel %vm831_vm0, %v33763_v58, %v25833_v61  ;;  %v23446_v58 = vsel %vm991_vm1, %v33212_v54, %v33751_v63  ;;  %v35655_v54 = vld [vmem:[#allocation245_spill] sm:$0xff] }
0x2585   : > { %v33815_v17 = vpop.permute.xlu1 %23400  ;;  %v33817_v5 = vpop.permute.xlu2 %24247  ;;  %v25842_v53 = vperm.slane %v25834_v30, %v28621_v57  ;;  %v26664_v63 = vrot.slane %v35655_v54, 4  ;;  %v25929_v54 = vrot.slane %v33775_v18, 4 }
0x2587   : > { %v25845_v30 = vrot.slane %v25842_v53, 4 }
0x258b   : > { %25935 = vrot.lane.b32.xlu1 %v25844_v60, %s28226_s16  ;;  %26782 = vrot.lane.b32.xlu2 %v26717_v25, %s28226_s16  ;;  %v27549_v60 = vrot.slane %v33701_v1, 4 }
0x258c   : > { %v33831_v2 = vpop.permute.xlu0 %24249 }
0x258d   : > { %v23407_v36 = vpop.permute.xlu1 %23406  ;;  %v33835_v55 = vpop.permute.xlu2 %24263  ;;  %v27550_v1 = vsel %vm831_vm0, %v27549_v60, %v33683_v16  ;;  %v35657_v60 = vld [vmem:[#allocation236_spill] sm:$0xff] }
0x258e   : > { %v23447_v11 = vsel %vm991_vm1, %v33312_v19, %v23407_v36  ;;  %v26762_v19 = vrot.slane %v33846_v31, 4  ;;  %v33892_v38 = vperm.slane %v27550_v1, %v28621_v57 }
0x258f   : > { %v33843_v14 = vsel %vm996_vm2, %v23447_v11, %v23423_v32  ;;  %v35654_v11 = vld [vmem:[#allocation30_spill] sm:$0xff] }
0x2590   : > { %v26763_v40 = vsel %vm831_vm0, %v33849_v8, %v26762_v19  ;;  %v26670_v59 = vrot.slane %v35654_v11, 4 }
0x2591   : > { %v33868_v34 = vperm.slane %v26763_v40, %v28621_v57 }
0x2593   : > { %25941 = vrot.lane.b32.xlu1 %v25928_v52, %s28226_s16  ;;  %26798 = vrot.lane.b32.xlu2 %v33659_v45, %s28227_s17  ;;  %v35653_v45 = vld [vmem:[#allocation251_spill] sm:$0xff] }
0x2594   : > { %v33856_v20 = vpop.permute.xlu0 %24267  ;;  %v33872_v56 = vperm.slane %v35653_v45, %v28621_v57  ;;  %v35656_v52 = vld [vmem:[#allocation243_spill] sm:$0xff]  ;;  %v27561_v45 = vrot.slane %v33892_v38, 4 }
0x2595   : > { %v33858_v32 = vpop.permute.xlu1 %23416  ;;  %v33860_v10 = vpop.permute.xlu2 %24277  ;;  %v26671_v19 = vsel %vm831_vm0, %v26670_v59, %v35656_v52  ;;  %v25930_v52 = vsel %vm831_vm0, 0.0, %v25929_v54 }
0x2596   : > { %v26746_v47 = vrot.slane %v33872_v56, 4 }
0x2598   : > { %v26747_v28 = vsel %vm831_vm0, 0.0, %v26746_v47  ;;  %v27562_v47 = vsel %vm831_vm0, 0.0, %v27561_v45 }
0x259b   : > { %25951 = vrot.lane.b32.xlu1 %v25842_v53, %s28227_s17  ;;  %26802 = vrot.lane.b32.xlu2 %v33868_v34, %s28227_s17  ;;  %v27599_v53 = vrot.slane %v32789_v46, 4 }
0x259c   : > { %v33878_v25 = vpop.permute.xlu0 %24281 }
0x259d   : > { %v23421_v22 = vpop.permute.xlu1 %23420  ;;  %v24284_v44 = vpop.permute.xlu2 %24283 }
0x259e   : > { %v23450_v26 = vsel %vm996_vm2, %v23446_v58, %v23421_v22  ;;  %v26665_v58 = vsel %vm831_vm0, %v26664_v63, %v35657_v60  ;;  %v26675_v22 = vperm.slane %v26671_v19, %v28351_v41 }
0x259f   : > { %v23454_v36 = vsel %vm1001_vm3, %v23450_v26, %v23437_v27  ;;  %v25846_v26 = vsel %vm831_vm0, 0.0, %v25845_v30  ;;  %v26760_v30 = vrot.slane %v33849_v8, 4 }
0x25a0   : > { %27705 = vrot.lane.b32.xlu0 %v23454_v36, %s28230_s23  ;;  %v26669_v36 = vperm.slane %v26665_v58, %v28351_v41  ;;  %v26676_v1 = vrot.slane %v26675_v22, 4 }
0x25a2   : > { %v26677_v46 = vsel %vm831_vm0, %v26676_v1, %v26669_v36 }
0x25a3   : > { %25955 = vrot.lane.b32.xlu1 %v33779_v12, %s28227_s17  ;;  %26816 = vrot.lane.b32.xlu2 %v26747_v28, %s28228_s18  ;;  %v27593_v12 = vrot.slane %v32760_v21, 4  ;;  %v33938_v19 = vperm.slane %v26677_v46, %v28621_v57 }
0x25a4   : > { %v33898_v27 = vpop.permute.xlu0 %25094 }
0x25a5   : > { %v23435_v61 = vpop.permute.xlu1 %23434  ;;  %v33900_v16 = vpop.permute.xlu2 %25092  ;;  %v26688_v58 = vrot.slane %v33938_v19, 4 }
0x25a6   : > { %v33906_v40 = vsel %vm1001_vm3, %v33734_v33, %v23435_v61  ;;  %v27594_v33 = vsel %vm831_vm0, %v27593_v12, %v32768_v48  ;;  %v27600_v48 = vsel %vm831_vm0, %v27599_v53, %v32482_v13 }
0x25a7   : > { %v33926_v28 = vperm.slane %v27594_v33, %v28351_v41  ;;  %v33934_v61 = vperm.slane %v27600_v48, %v28351_v41  ;;  %v26689_v33 = vsel %vm831_vm0, 0.0, %v26688_v58 }
0x25a9   : > { %v27607_v63 = vrot.slane %v33926_v28, 4 }
0x25ab   : > { %25967 = vrot.lane.b32.xlu1 %v25846_v26, %s28228_s18  ;;  %27627 = vrot.lane.b32.xlu2 %v27562_v47, %s28226_s16  ;;  %v27608_v12 = vsel %vm831_vm0, %v33934_v61, %v27607_v63  ;;  %v26761_v26 = vsel %vm831_vm0, %v26760_v30, %v33846_v31 }
0x25ac   : > { %v33921_v21 = vpop.permute.xlu0 %25122  ;;  %v33961_v47 = vperm.slane %v27608_v12, %v28621_v57  ;;  %v33965_v53 = vperm.slane %v26761_v26, %v28621_v57 }
0x25ad   : > { %v24246_v11 = vpop.permute.xlu1 %24245  ;;  %v33923_v59 = vpop.permute.xlu2 %25108 }
0x25ae   : > { %v26772_v63 = vrot.slane %v33965_v53, 4 }
0x25b0   : > { %v26773_v12 = vsel %vm831_vm0, 0.0, %v26772_v63 }
0x25b3   : > { %25973 = vrot.lane.b32.xlu1 %v25930_v52, %s28228_s18  ;;  %27643 = vrot.lane.b32.xlu2 %v33720_v9, %s28227_s17 }
0x25b4   : > { %v33944_v13 = vpop.permute.xlu0 %25128 }
0x25b5   : > { %v24252_v18 = vpop.permute.xlu1 %24251  ;;  %v33946_v45 = vpop.permute.xlu2 %25112 }
0x25b6   : > { %v24292_v60 = vsel %vm991_vm1, %v33523_v4, %v24252_v18  ;;  %v35658_v4 = vld [vmem:[#allocation77_spill] sm:$0xff]  ;;  %v26678_v18 = vrot.slane %v26669_v36, 4 }
0x25b7   : > { %v24296_v8 = vsel %vm996_vm2, %v24292_v60, %v33856_v20  ;;  %v33969_v1 = vperm.slane %v35658_v4, %v28621_v57  ;;  %v35659_v20 = vld [vmem:[#allocation102_spill] sm:$0xff] }
0x25b8   : > { %v33958_v9 = vsel %vm1001_vm3, %v24296_v8, %v24284_v44  ;;  %v24289_v44 = vsel %vm991_vm1, %v35659_v20, %v24246_v11  ;;  %v26679_v26 = vsel %vm831_vm0, %v26675_v22, %v26678_v18 }
0x25b9   : > { %v27591_v52 = vrot.slane %v33969_v1, 4 }
0x25bb   : > { %26780 = vrot.lane.b32.xlu1 %v26689_v33, %s28226_s16  ;;  %27647 = vrot.lane.b32.xlu2 %v33961_v47, %s28227_s17  ;;  %v27592_v60 = vsel %vm831_vm0, 0.0, %v27591_v52  ;;  %v26687_v33 = vperm.slane %v26679_v26, %v28621_v57 }
0x25bc   : > { %v33974_v31 = vpop.permute.xlu0 %25939 }
0x25bd   : > { %v24262_v54 = vpop.permute.xlu1 %24261  ;;  %v33978_v48 = vpop.permute.xlu2 %25126 }
0x25be   : > { %v24293_v46 = vsel %vm996_vm2, %v24289_v44, %v24262_v54 }
0x25bf   : > { %v33985_v30 = vsel %vm1001_vm3, %v24293_v46, %v33860_v10  ;;  %v35660_v10 = vld [vmem:[#allocation76_spill] sm:$0xff]  ;;  %v35661_v46 = vld [vmem:[#allocation53_spill] sm:$0xff] }
0x25c0   : > { %v24290_v36 = vsel %vm991_vm1, %v35660_v10, %v33817_v5  ;;  %v23444_v63 = vsel %vm991_vm1, %v35661_v46, %v33815_v17  ;;  %v35663_v17 = vld [vmem:[#allocation92_spill] sm:$0xff] }
0x25c1   : > { %v24294_v20 = vsel %vm996_vm2, %v24290_v36, %v33835_v55  ;;  %v23448_v5 = vsel %vm996_vm2, %v23444_v63, %v33858_v32  ;;  %v35662_v55 = vld [vmem:[#allocation46_spill] sm:$0xff]  ;;  %v26690_v36 = vrot.slane %v26687_v33, 4 }
0x25c2   : > { %v27515_v18 = vrot.slane %v35662_v55, 4 }
0x25c3   : > { %26786 = vrot.lane.b32.xlu1 %v26773_v12, %s28226_s16  ;;  %27661 = vrot.lane.b32.xlu2 %v27592_v60, %s28228_s18  ;;  %v35664_v60 = vld [vmem:[#allocation20_spill] sm:$0xff] }
0x25c4   : > { %v33991_v11 = vpop.permute.xlu0 %25969  ;;  %v27516_v12 = vsel %vm831_vm0, %v27515_v18, %v35663_v17  ;;  %v26774_v18 = vrot.slane %v33868_v34, 4 }
0x25c5   : > { %v24266_v58 = vpop.permute.xlu1 %24265  ;;  %v25938_v8 = vpop.permute.xlu2 %25937 }
0x25c6   : > { %v25980_v44 = vsel %vm991_vm1, %v33708_v49, %v25938_v8  ;;  %v23452_v49 = vsel %vm1001_vm3, %v23448_v5, %v33757_v24  ;;  %v27509_v8 = vrot.slane %v35664_v60, 4  ;;  %v35666_v5 = vld [vmem:[#allocation32_spill] sm:$0xff] }
0x25c7   : > { %v24291_v55 = vsel %vm991_vm1, %v35666_v5, %v33831_v2 }
0x25cb   : > { %26796 = vrot.lane.b32.xlu1 %v26687_v33, %s28227_s17  ;;  %27687 = vrot.lane.b32.xlu2 %v33795_v6, %s28229_s22 }
0x25cc   : > { %v34001_v4 = vpop.permute.xlu0 %26784 }
0x25cd   : > { %v24280_v22 = vpop.permute.xlu1 %24279  ;;  %v25954_v54 = vpop.permute.xlu2 %25953 }
0x25ce   : > { %v24298_v6 = vsel %vm1001_vm3, %v24294_v20, %v24280_v22  ;;  %v34012_v52 = vsel %vm996_vm2, %v25980_v44, %v25954_v54  ;;  %v27520_v20 = vperm.slane %v27516_v12, %v28351_v41  ;;  %v35665_v44 = vld [vmem:[#allocation80_spill] sm:$0xff]  ;;  %v23455_v22 = vsel %vm1001_vm3, %v33843_v14, %v33790_v50 }
0x25cf   : > { %27719 = vrot.lane.b32.xlu0 %v24298_v6, %s28231_s24  ;;  %v27510_v24 = vsel %vm831_vm0, %v27509_v8, %v35665_v44  ;;  %v24295_v50 = vsel %vm996_vm2, %v24291_v55, %v24266_v58  ;;  %v27605_v12 = vrot.slane %v33934_v61, 4 }
0x25d0   : > { %v27521_v54 = vrot.slane %v27520_v20, 4  ;;  %v27514_v46 = vperm.slane %v27510_v24, %v28351_v41  ;;  %v26775_v41 = vsel %vm831_vm0, 0.0, %v26774_v18 }
0x25d1   : > { %v27606_v61 = vsel %vm831_vm0, %v27605_v12, %v33926_v28 }
0x25d2   : > { %v27522_v14 = vsel %vm831_vm0, %v27521_v54, %v27514_v46  ;;  %v27523_v18 = vrot.slane %v27514_v46, 4 }
0x25d3   : > { %26800 = vrot.lane.b32.xlu1 %v33872_v56, %s28227_s17  ;;  %27701 = vrot.lane.b32.xlu2 %v23452_v49, %s28230_s23  ;;  %v26691_v56 = vsel %vm831_vm0, 0.0, %v26690_v36  ;;  %v24299_v49 = vsel %vm1001_vm3, %v24295_v50, %v33878_v25  ;;  %v34054_v17 = vperm.slane %v27522_v14, %v28621_v57 }
0x25d4   : > { %v34026_v26 = vpop.permute.xlu0 %26814 }
0x25d5   : > { %v25091_v32 = vpop.permute.xlu1 %25090  ;;  %v34028_v10 = vpop.permute.xlu2 %25957  ;;  %v27533_v25 = vrot.slane %v34054_v17, 4 }
0x25d6   : > { %v25134_v34 = vsel %vm991_vm1, %v33662_v37, %v25091_v32  ;;  %v34074_v37 = vperm.slane %v27606_v61, %v28621_v57 }
0x25d7   : > { %v27534_v24 = vsel %vm831_vm0, 0.0, %v27533_v25  ;;  %v27619_v25 = vrot.slane %v33961_v47, 4 }
0x25d8   : > { %v27617_v5 = vrot.slane %v34074_v37, 4 }
0x25db   : > { %26812 = vrot.lane.b32.xlu1 %v26691_v56, %s28228_s18  ;;  %27707 = vrot.lane.b32.xlu2 %v23455_v22, %s28230_s23 }
0x25dc   : > { %v34040_v63 = vpop.permute.xlu0 %27629 }
0x25dd   : > { %v25097_v33 = vpop.permute.xlu1 %25096  ;;  %v34042_v6 = vpop.permute.xlu2 %25971 }
0x25de   : > { %v25137_v44 = vsel %vm991_vm1, %v33705_v43, %v25097_v33 }
0x25df   : > { %v25141_v32 = vsel %vm996_vm2, %v25137_v44, %v33946_v45 }
0x25e0   : > { %v25145_v55 = vsel %vm1001_vm3, %v25141_v32, %v33944_v13 }
0x25e3   : > { %26818 = vrot.lane.b32.xlu1 %v26775_v41, %s28228_s18  ;;  %27721 = vrot.lane.b32.xlu2 %v24299_v49, %s28231_s24  ;;  %v27524_v49 = vsel %vm831_vm0, %v27520_v20, %v27523_v18 }
0x25e4   : > { %v34059_v2 = vpop.permute.xlu0 %27659  ;;  %v27532_v12 = vperm.slane %v27524_v49, %v28621_v57  ;;  %v27620_v57 = vsel %vm831_vm0, 0.0, %v27619_v25 }
0x25e5   : > { %v25107_v58 = vpop.permute.xlu1 %25106  ;;  %v26783_v60 = vpop.permute.xlu2 %26782 }
0x25e6   : > { %v25138_v8 = vsel %vm996_vm2, %v25134_v34, %v25107_v58  ;;  %v27535_v34 = vrot.slane %v27532_v12, 4  ;;  %v26825_v47 = vsel %vm991_vm1, %v33811_v0, %v26783_v60 }
0x25e7   : > { %v25142_v36 = vsel %vm1001_vm3, %v25138_v8, %v33921_v21  ;;  %v35667_v21 = vld [vmem:[#allocation74_spill] sm:$0xff] }
0x25e8   : > { %27733 = vrot.lane.b32.xlu0 %v25142_v36, %s28232_s25  ;;  %v25136_v28 = vsel %vm991_vm1, %v35667_v21, %v33898_v27  ;;  %v27618_v27 = vsel %vm831_vm0, 0.0, %v27617_v5  ;;  %v27536_v58 = vsel %vm831_vm0, 0.0, %v27535_v34  ;;  %v35668_v36 = vld [vmem:[#allocation40_spill] sm:$0xff] }
0x25e9   : > { %v25981_v61 = vsel %vm991_vm1, %v35668_v36, %v33974_v31 }
0x25eb   : > { %27625 = vrot.lane.b32.xlu1 %v27534_v24, %s28226_s16 }
0x25ec   : > { %v27686_v56 = vpop.permute.xlu0 %27685 }
0x25ed   : > { %v34084_v22 = vsel %vm7033_vm4, %v33578_v42, %v27686_v56  ;;  %v25111_v43 = vpop.permute.xlu1 %25110  ;;  %v26799_v54 = vpop.permute.xlu2 %26798  ;;  %v25135_v42 = vsel %vm991_vm1, %v33564_v15, %v33900_v16 }
0x25ee   : > { %v25140_v33 = vsel %vm996_vm2, %v25136_v28, %v25111_v43  ;;  %v25139_v14 = vsel %vm996_vm2, %v25135_v42, %v33923_v59  ;;  %v26829_v56 = vsel %vm996_vm2, %v26825_v47, %v26799_v54 }
0x25ef   : > { %v25144_v45 = vsel %vm1001_vm3, %v25140_v33, %v33978_v48 }
0x25f0   : > { %27739 = vrot.lane.b32.xlu0 %v25145_v55, %s28232_s25 }
0x25f3   : > { %27631 = vrot.lane.b32.xlu1 %v27618_v27, %s28226_s16  ;;  %v25988_v27 = vsel %vm1001_vm3, %v34012_v52, %v33991_v11  ;;  %s27840_s16 = scalar_lea.sflag [#allocation4], %s28321_s5 }
0x25f4   : > { %v27692_v50 = vpop.permute.xlu0 %27691 }
0x25f5   : > { %v27796_v13 = vsel %vm7033_vm4, %v33614_v39, %v27692_v50  ;;  %v25125_v41 = vpop.permute.xlu1 %25124  ;;  %v34102_v48 = vpop.permute.xlu2 %26802 }
0x25f6   : > { %v25143_v46 = vsel %vm1001_vm3, %v25139_v14, %v25125_v41 }
0x25f7   : > { %27735 = vrot.lane.b32.xlu2 %v25143_v46, %s28232_s25 }
0x25fb   : > { %27641 = vrot.lane.b32.xlu1 %v27532_v12, %s28227_s17 }
0x25fd   : > { %v25936_v15 = vpop.permute.xlu1 %25935  ;;  %v26817_v16 = vpop.permute.xlu2 %26816 }
0x25fe   : > { %v25979_v31 = vsel %vm991_vm1, %v33808_v7, %v25936_v15 }
0x2603   : > { %27645 = vrot.lane.b32.xlu1 %v33969_v1, %s28227_s17 }
0x2605   : > { %v25942_v59 = vpop.permute.xlu1 %25941  ;;  %v27628_v39 = vpop.permute.xlu2 %27627 }
0x260b   : > { %27657 = vrot.lane.b32.xlu1 %v27536_v58, %s28228_s18 }
0x260d   : > { %v25952_v8 = vpop.permute.xlu1 %25951  ;;  %v27644_v20 = vpop.permute.xlu2 %27643 }
0x260e   : > { %v25983_v21 = vsel %vm996_vm2, %v25979_v31, %v25952_v8 }
0x2613   : > { %27663 = vrot.lane.b32.xlu1 %v27620_v57, %s28228_s18  ;;  %s28152_s18 = sshra.s32 %s27858_s15, 4  ;;  %s28153_s18 = int_to_ptr.hbm [resolvable:$true] %s28152_s18 }
0x2614   : > { %s28154_s9 = scalar_lea.hbm %s28153_s18, 64  ;;  %p28159_p7 = scmp.lt.s32.totalorder %s28153_s18, %s34270_s1 }
0x2615   : > { %v25956_v1 = vpop.permute.xlu1 %25955  ;;  %v34119_v44 = vpop.permute.xlu2 %27647  ;;  %p28155_p4 = scmp.ne.s32.totalorder %s28153_s18, %s28154_s9 }
0x2616   : > { %v25985_v24 = vsel %vm996_vm2, %v25981_v61, %v25956_v1 }
0x2617   : > { %v25989_v32 = vsel %vm1001_vm3, %v25985_v24, %v34042_v6  ;;  %v26833_v6 = vsel %vm1001_vm3, %v26829_v56, %v34026_v26  ;;  %p28156_p5 = pnand %p28155_p4, %p28298_p9 }
0x2618   : > { %27753 = vrot.lane.b32.xlu0 %v25989_v32, %s28233_s26 }
0x2619   : > { %p28157_p6 = pneg %p28156_p5 }
0x261b   : > { %27689 = vrot.lane.b32.xlu1 %v33768_v29, %s28229_s22  ;;  %v25982_v29 = vsel %vm991_vm1, %v33826_v51, %v25942_v59 }
0x261c   : > { %v25986_v0 = vsel %vm996_vm2, %v25982_v29, %v34028_v10 }
0x261d   : > { %v25968_v28 = vpop.permute.xlu1 %25967  ;;  %v27662_v43 = vpop.permute.xlu2 %27661 }
0x261e   : > { %v25987_v33 = vsel %vm1001_vm3, %v25983_v21, %v25968_v28 }
0x261f   : > { %27749 = vrot.lane.b32.xlu2 %v25987_v33, %s28233_s26 }
0x2620   : > { %27767 = vrot.lane.b32.xlu0 %v26833_v6, %s28234_s27 }
0x2623   : > { %27703 = vrot.lane.b32.xlu1 %v33906_v40, %s28230_s23 }
0x2625   : > { %v25974_v7 = vpop.permute.xlu1 %25973  ;;  %v34144_v60 = vpop.permute.xlu2 %27687 }
0x2626   : > { %v25990_v54 = vsel %vm1001_vm3, %v25986_v0, %v25974_v7 }
0x2627   : > { %27755 = vrot.lane.b32.xlu2 %v25990_v54, %s28233_s26 }
0x262b   : > { %27717 = vrot.lane.b32.xlu1 %v33985_v30, %s28231_s24  ;;  %v26826_v30 = vsel %vm991_vm1, %v33623_v62, %v34001_v4 }
0x262d   : > { %v26781_v26 = vpop.permute.xlu1 %26780  ;;  %v27702_v5 = vpop.permute.xlu2 %27701 }
0x262e   : > { %v27797_v51 = vsel %vm7038_vm5, %v34084_v22, %v27702_v5  ;;  %v26824_v11 = vsel %vm991_vm1, %v33938_v19, %v26781_v26  ;;  %v27794_v26 = vsel %vm7033_vm4, %v33649_v35, %v34144_v60 }
0x2633   : > { %27723 = vrot.lane.b32.xlu1 %v33958_v9, %s28231_s24  ;;  %s28158_s24 = scalar_lea.hbm %s34270_s1, 128 }
0x2634   : > { %p28160_p8 = scmp.lt.s32.totalorder %s28158_s24, %s28154_s9 }
0x2635   : > { %v26787_v40 = vpop.permute.xlu1 %26786  ;;  %v27708_v55 = vpop.permute.xlu2 %27707 }
0x2636   : > { %v27800_v10 = vsel %vm7038_vm5, %v27796_v13, %v27708_v55  ;;  %p28161_p10 = por %p28160_p8, %p28159_p7 }
0x2638   : > { %p28162_p13 = pnand %p28161_p10, %p28157_p6 }
0x263b   : > { %27737 = vrot.lane.b32.xlu1 %v25144_v45, %s28232_s25  ;;  %v27670_v45 = vsel %vm991_vm1, %v33892_v38, %v27628_v39  ;;  %v26827_v38 = vsel %vm991_vm1, %v33965_v53, %v26787_v40 }
0x263c   : > { %v27674_v50 = vsel %vm996_vm2, %v27670_v45, %v27644_v20  ;;  %v26831_v41 = vsel %vm996_vm2, %v26827_v38, %v34102_v48  ;;  %v27706_v20 = vpop.permute.xlu0 %27705 }
0x263d   : > { %v26797_v18 = vpop.permute.xlu1 %26796  ;;  %v27678_v4 = vsel %vm1001_vm3, %v27674_v50, %v34059_v2  ;;  %v27671_v2 = vsel %vm991_vm1, %v33697_v3, %v34040_v63 }
0x263e   : > { %v26828_v52 = vsel %vm996_vm2, %v26824_v11, %v26797_v18 }
0x2643   : > { %27751 = vrot.lane.b32.xlu1 %v25988_v27, %s28233_s26 }
0x2644   : > { %v27720_v1 = vpop.permute.xlu0 %27719 }
0x2645   : > { %v26801_v22 = vpop.permute.xlu1 %26800 }
0x2646   : > { %v26830_v9 = vsel %vm996_vm2, %v26826_v30, %v26801_v22 }
0x2647   : > { %v26834_v42 = vsel %vm1001_vm3, %v26830_v9, %v26817_v16 }
0x2648   : > { %27769 = vrot.lane.b32.xlu2 %v26834_v42, %s28234_s27 }
0x264d   : > { %v26813_v14 = vpop.permute.xlu1 %26812 }
0x264e   : > { %v26832_v62 = vsel %vm1001_vm3, %v26828_v52, %v26813_v14 }
0x264f   : > { %27765 = vrot.lane.b32.xlu1 %v26832_v62, %s28234_s27 }
0x2650   : > { %27783 = vrot.lane.b32.xlu2 %v27678_v4, %s28235_s28 }
0x2655   : > { %v26819_v13 = vpop.permute.xlu1 %26818 }
0x2656   : > { %v26835_v19 = vsel %vm1001_vm3, %v26831_v41, %v26819_v13 }
0x2657   : > { %27771 = vrot.lane.b32.xlu1 %v26835_v19, %s28234_s27 }
0x265a   : > { %v27734_v32 = vpop.permute.xlu0 %27733 }
0x265d   : > { %v27626_v46 = vpop.permute.xlu1 %27625 }
0x265e   : > { %v27669_v48 = vsel %vm991_vm1, %v34054_v17, %v27626_v46  ;;  %v27722_v17 = vpop.permute.xlu2 %27721 }
0x2662   : > { %v27740_v28 = vpop.permute.xlu0 %27739 }
0x2665   : > { %v27632_v49 = vpop.permute.xlu1 %27631 }
0x2666   : > { %v27672_v3 = vsel %vm991_vm1, %v34074_v37, %v27632_v49  ;;  %v27736_v37 = vpop.permute.xlu2 %27735 }
0x2667   : > { %v27676_v63 = vsel %vm996_vm2, %v27672_v3, %v34119_v44 }
0x266d   : > { %v27642_v12 = vpop.permute.xlu1 %27641 }
0x266e   : > { %v27673_v59 = vsel %vm996_vm2, %v27669_v48, %v27642_v12 }
0x2675   : > { %v27646_v15 = vpop.permute.xlu1 %27645 }
0x2676   : > { %v27675_v16 = vsel %vm996_vm2, %v27671_v2, %v27646_v15 }
0x2677   : > { %v27679_v53 = vsel %vm1001_vm3, %v27675_v16, %v27662_v43 }
0x2678   : > { %27785 = vrot.lane.b32.xlu1 %v27679_v53, %s28235_s28 }
0x2679   : > { %v27750_v44 = vpop.permute.xlu2 %27749 }
0x267d   : > { %v27658_v39 = vpop.permute.xlu1 %27657 }
0x267e   : > { %v27677_v34 = vsel %vm1001_vm3, %v27673_v59, %v27658_v39 }
0x267f   : > { %27781 = vrot.lane.b32.xlu0 %v27677_v34, %s28235_s28 }
0x2681   : > { %v27756_v43 = vpop.permute.xlu2 %27755 }
0x2685   : > { %v27664_v58 = vpop.permute.xlu1 %27663 }
0x2686   : > { %v27680_v8 = vsel %vm1001_vm3, %v27676_v63, %v27664_v58 }
0x2687   : > { %27787 = vrot.lane.b32.xlu0 %v27680_v8, %s28235_s28 }
0x268a   : > { %v27754_v7 = vpop.permute.xlu0 %27753 }
0x268d   : > { %v27690_v25 = vpop.permute.xlu1 %27689 }
0x268e   : > { %v27795_v57 = vsel %vm7033_vm4, %v33640_v23, %v27690_v25 }
0x268f   : > { %v27799_v36 = vsel %vm7038_vm5, %v27795_v57, %v27706_v20 }
0x2690   : > { %v27803_v61 = vsel %vm7043_vm6, %v27799_v36, %v27722_v17 }
0x2692   : > { %v27768_v18 = vpop.permute.xlu0 %27767 }
0x2695   : > { %v27704_v24 = vpop.permute.xlu1 %27703 }
0x2696   : > { %v27798_v5 = vsel %vm7038_vm5, %v27794_v26, %v27704_v24 }
0x269d   : > { %v27718_v47 = vpop.permute.xlu1 %27717 }
0x269e   : > { %v27801_v56 = vsel %vm7043_vm6, %v27797_v51, %v27718_v47  ;;  %v27802_v51 = vsel %vm7043_vm6, %v27798_v5, %v27720_v1 }
0x269f   : > { %v27805_v31 = vsel %vm7048_vm7, %v27801_v56, %v27734_v32  ;;  %v27806_v55 = vsel %vm7048_vm7, %v27802_v51, %v27736_v37 }
0x26a0   : > { %v27809_v21 = vsel %vm7053_vm8, %v27805_v31, %v27750_v44 }
0x26a2   : > { %v27770_v0 = vpop.permute.xlu2 %27769 }
0x26a5   : > { %v27724_v33 = vpop.permute.xlu1 %27723 }
0x26a6   : > { %v27804_v23 = vsel %vm7043_vm6, %v27800_v10, %v27724_v33 }
0x26a7   : > { %v27808_v6 = vsel %vm7048_vm7, %v27804_v23, %v27740_v28 }
0x26a8   : > { %v27812_v29 = vsel %vm7053_vm8, %v27808_v6, %v27756_v43 }
0x26aa   : > { %v27784_v27 = vpop.permute.xlu2 %27783 }
0x26ad   : > { %v27738_v54 = vpop.permute.xlu1 %27737 }
0x26ae   : > { %v27807_v35 = vsel %vm7048_vm7, %v27803_v61, %v27738_v54 }
0x26af   : > { %v27811_v60 = vsel %vm7053_vm8, %v27807_v35, %v27754_v7 }
0x26b0   : > { %v27815_v50 = vsel %vm7058_vm10, %v27811_v60, %v27770_v0 }
0x26b5   : > { %v27752_v40 = vpop.permute.xlu1 %27751 }
0x26b6   : > { %v27810_v10 = vsel %vm7053_vm8, %v27806_v55, %v27752_v40 }
0x26b7   : > { %v27814_v30 = vsel %vm7058_vm10, %v27810_v10, %v27768_v18 }
0x26b8   : > { %v27818_v22 = vsel %vm7063_vm9, %v27814_v30, %v27784_v27 }
0x26b9   : > { %27827 = vst [vmem:[#allocation1 + $0x1] ss:$2 sm:$0xff] %v27818_v22 }
0x26c1   : > { %v27766_v9 = vpop.permute.xlu1 %27765 }
0x26c2   : > { %v27813_v52 = vsel %vm7058_vm10, %v27809_v21, %v27766_v9 }
0x26c9   : > { %v27772_v42 = vpop.permute.xlu1 %27771 }
0x26ca   : > { %v27816_v4 = vsel %vm7058_vm10, %v27812_v29, %v27772_v42 }
0x26ea   : > { %v27786_v45 = vpop.permute.xlu1 %27785 }
0x26eb   : > { %v27819_v11 = vsel %vm7063_vm9, %v27815_v50, %v27786_v45 }
0x26ec   : > { %27829 = vst [vmem:[#allocation1 + $0x10] ss:$2 sm:$0xff] %v27819_v11 }
0x26f1   : > { %v27782_v14 = vpop.permute.xlu0 %27781 }
0x26f2   : > { %v27817_v62 = vsel %vm7063_vm9, %v27813_v52, %v27782_v14 }
0x26f3   : > { %27825 = vst [vmem:[#allocation1] ss:$2 sm:$0xff] %v27817_v62 }
0x26f9   : > { %v27788_v38 = vpop.permute.xlu0 %27787 }
0x26fa   : > { %v27832_v13 = vld.sshfl [vmem:[#allocation1] sm:$0xff pattern:$0x75316420]  ;;  %v27820_v41 = vsel %vm7063_vm9, %v27816_v4, %v27788_v38 }
0x26fb   : > { %28021 = vst [vmem:[%s31238_s30 + $0x30] sm:$0xff] %v27832_v13 }
0x26fc   : > { %27831 = vst [vmem:[#allocation1 + $0x11] ss:$2 sm:$0xff] %v27820_v41 }
0x2703   : > { %v27833_v19 = vld.sshfl [vmem:[#allocation1 + $0x10] sm:$0xff pattern:$0x75316420] }
0x2704   : > { %28022 = vst [vmem:[%s31238_s30 + $0x38] sm:$0xff] %v27833_v19 }
0x2705   : > { %28165 = shalt.err (!%p28162_p13)
}
0x2706   : > { %s28236_s5 = smov 128  }
0x2707   : > { %28032 = dma.vmem_to_hbm [thread:$0]  (%p28298_p9), %s27856_s13, 1024, %s27858_s15, %s27840_s16, %s28236_s5, %s28236_s5, %s28227_s17  }
0x2708 PF: > { %s27872_s27 = sand.u32 1, %s28200_s6   ;;  %p28039_p0 = pnand %p27948_p12, %p28305_p11 }
0x2709   : > { %s27873_s28 = scalar_lea.sflag [#allocation4], %s27872_s27 }
0x270a   : > { %p28040_p1 = pneg %p28039_p0 }
0x270c   : > { %28195 = dma.done.wait (%p28040_p1), %s27873_s28, 1024  }
0x270d   : > { %28197 = vsyncadd (%p28040_p1), %s27873_s28, 4294966272  ;;  %s17_s11 = sadd.s32 1, %s28220_s11   ;;  %s35669_s6 = smov %s28204_s7 }
0x270e   : > { %p14_p2 = scmp.ge.s32.totalorder %s17_s11, 4   ;;  %s35670_s7 = smov %s28208_s8 }
0x270f   : > { %s35671_s8 = smov %s28303_s20  ;;  %s35672_s9 = smov %s28216_s10 }
0x2710   : > { %s35673_s10 = smov %s35675_s14  ;;  %16 = sbr.rel (!%p14_p2) target bundleno = 6 (0x6), region = 115 }
0x2715   :  { %27879 = vsyncpa [#allocation3], 1 }
0x2716   :  { %27881 = vsyncpa [#allocation3 + $0x1], 1 }
0x2717   :  { %27882 = vsyncpa [#allocation4], 1 }
0x2718   :  { %27884 = vsyncpa [#allocation4 + $0x1], 1 }

</bundles_post_ra>
